<compile_context>
chip_gen: v7x
topology: tpu7x:2x2x1
jax: 0.10.0
libtpu: 0.0.40
codegen_flags: <defaults>
</compile_context>

<pallas_src>
import numpy as np
import jax
import jax.numpy as jnp
from jax import lax
from jax.experimental import pallas as pl
from jax.experimental.pallas import tpu as pltpu

FEA_DIM = 3            # fea_dim
OUT_PT_FEA_DIM = 64    # out_pt_fea_dim (pool_dim)
TO128 = 128            # to_128 output width
TN1 = 1024             # PPmodel point-tile rows per grid step
TN2 = 512              # scatter-max point-tile rows per grid step
TM = 128               # scatter-max voxel rows per grid step
BN_EPS = 1e-5
BIG = 3.0e38           # finite "-inf" sentinel (avoids NaN in the final matmul)
_PREC = lax.Precision.HIGHEST   # reference only

assert TN1 % TN2 == 0  # kernels share one padded point array


def _round_up(x, m):
    return (x + m - 1) // m * m


def _full_spec(shape):
    zeros = (0,) * len(shape)
    return pl.BlockSpec(shape, lambda *_: zeros)


# ---------------------------------------------------------------------------
# Host-side parameter folding: BN -> (scale, shift) -> folded into Linears.
# Matmul weights are pre-cast to bf16 (single-pass MXU); biases / the K=3
# first-layer weight stay f32 (VPU path, also keeps v5e happy).
# ---------------------------------------------------------------------------
def fold_params(params):
    (s0, t0, w1, b1, s1, t1, w2, b2, s2, t2, w3, b3, s3, t3, w4, b4) = params["mlp"]
    # BN0 folded into Linear1, then BN1 folded into Linear1's output.
    w1f = (s0.reshape(-1, 1) * w1) * s1                         # (3, 64) f32
    b1f = (jnp.dot(t0, w1, precision=_PREC) + b1) * s1 + t1     # (1, 64) f32
    w2f = (w2 * s2).astype(jnp.bfloat16)                        # (64, 128)
    b2f = b2 * s2 + t2
    w3f = (w3 * s3).astype(jnp.bfloat16)                        # (128, 256)
    b3f = b3 * s3 + t3
    w4f = w4.astype(jnp.bfloat16)                               # (256, 64)
    return {"mlp": [w1f, b1f, w2f, b2f, w3f, b3f, w4f, b4],
            "w128": params["w128"].astype(jnp.bfloat16),
            "b128": params["b128"]}


# ---------------------------------------------------------------------------
# Kernel 1: PPmodel MLP (BN pre-folded) tiled over points
# ---------------------------------------------------------------------------
def ppmodel_kernel(x_ref, w1, b1, w2, b2, w3, b3, w4, b4, o_ref):
    x = x_ref[...]                                   # (TN1, 3) f32
    w1v = w1[...]                                    # (3, 64)  f32
    # Layer 1 (K=3): three VPU broadcast-FMAs instead of a padded MXU pass.
    h = (x[:, 0:1] * w1v[0:1, :] + x[:, 1:2] * w1v[1:2, :]
         + x[:, 2:3] * w1v[2:3, :] + b1[...])
    h = jnp.maximum(h, 0.0)
    h = jnp.dot(h.astype(jnp.bfloat16), w2[...],
                preferred_element_type=jnp.float32) + b2[...]
    h = jnp.maximum(h, 0.0)
    h = jnp.dot(h.astype(jnp.bfloat16), w3[...],
                preferred_element_type=jnp.float32) + b3[...]
    h = jnp.maximum(h, 0.0)
    o_ref[...] = jnp.dot(h.astype(jnp.bfloat16), w4[...],
                         preferred_element_type=jnp.float32) + b4[...]


def ppmodel_forward(x_pad, mlp_params):
    n_pad = x_pad.shape[0]
    in_specs = [pl.BlockSpec((TN1, FEA_DIM), lambda i: (i, 0))]
    in_specs += [_full_spec(p.shape) for p in mlp_params]
    # NOTE: output kept in f32; switching it (and kernel 2's fea input) to
    # bf16 would halve the inter-kernel HBM traffic if tighter parity with
    # the f32 reference is not required.
    return pl.pallas_call(
        ppmodel_kernel,
        out_shape=jax.ShapeDtypeStruct((n_pad, OUT_PT_FEA_DIM), jnp.float32),
        grid_spec=pltpu.PrefetchScalarGridSpec(
            num_scalar_prefetch=0,
            grid=(n_pad // TN1,),
            in_specs=in_specs,
            out_specs=pl.BlockSpec((TN1, OUT_PT_FEA_DIM), lambda i: (i, 0)),
        ),
        compiler_params=pltpu.CompilerParams(dimension_semantics=("parallel",)),
    )(x_pad, *mlp_params)


# ---------------------------------------------------------------------------
# Kernel 2: scatter_max over voxels fused with the to_128 Linear.
# Points are pre-sorted by voxel id; scalar-prefetched per-voxel-tile ranges
# make each voxel tile read only the point tiles that can contribute to it.
# ---------------------------------------------------------------------------
def segmax_to128_kernel(t_start_ref, t_cnt_ref,          # scalar prefetch (SMEM)
                        inv_ref, fea_ref, w_ref, b_ref,  # VMEM blocks
                        o_ref, acc_ref):
    mi = pl.program_id(0)     # voxel tile
    ki = pl.program_id(1)     # local point-tile step for this voxel tile

    @pl.when(ki == 0)
    def _init():
        acc_ref[...] = jnp.full(acc_ref.shape, -BIG, acc_ref.dtype)

    @pl.when(ki < t_cnt_ref[mi])            # skip clamped / duplicate steps
    def _accumulate():
        seg = inv_ref[...]                  # (TN2, 1) int32, sorted voxel ids
        fea = fea_ref[...]                  # (TN2, C) f32
        base = mi * TM

        @pl.loop(0, TM)
        def _row(j):
            hit = seg == (base + j)                                      # (TN2, 1)
            row = jnp.max(jnp.where(hit, fea, -BIG), axis=0, keepdims=True)
            acc_ref[pl.ds(j, 1), :] = jnp.maximum(acc_ref[pl.ds(j, 1), :], row)

    @pl.when(ki == pl.num_programs(1) - 1)
    def _finalize():
        pooled = acc_ref[...]
        # padded / empty voxel rows -> 0 (no inf/NaN rows in the output)
        pooled = jnp.where(pooled > -0.5 * BIG, pooled, 0.0)
        o_ref[...] = jnp.dot(pooled.astype(jnp.bfloat16), w_ref[...],
                             preferred_element_type=jnp.float32) + b_ref[...]


def segmax_to128_forward(t_start, t_cnt, inv_pad, fea_pad, m_pad, kmax,
                         w128, b128):
    def pt_map(mi, ki, ts_ref, tc_ref):
        # data-dependent point-tile index; clamped so skipped steps reuse the
        # previous block (no extra DMA, and repeating a tile is a no-op for max)
        return (ts_ref[mi] + jnp.minimum(ki, tc_ref[mi] - 1), 0)

    return pl.pallas_call(
        segmax_to128_kernel,
        out_shape=jax.ShapeDtypeStruct((m_pad, TO128), jnp.float32),
        grid_spec=pltpu.PrefetchScalarGridSpec(
            num_scalar_prefetch=2,
            grid=(m_pad // TM, kmax),
            in_specs=[
                pl.BlockSpec((TN2, 1), pt_map),
                pl.BlockSpec((TN2, OUT_PT_FEA_DIM), pt_map),
                _full_spec(w128.shape),
                _full_spec(b128.shape),
            ],
            out_specs=pl.BlockSpec((TM, TO128), lambda mi, ki, ts, tc: (mi, 0)),
            scratch_shapes=[pltpu.VMEM((TM, OUT_PT_FEA_DIM), jnp.float32)],
        ),
        compiler_params=pltpu.CompilerParams(
            dimension_semantics=("parallel", "arbitrary")),
    )(t_start, t_cnt, inv_pad, fea_pad, w128, b128)


# ---------------------------------------------------------------------------
# Full forward (host glue + kernels)
# ---------------------------------------------------------------------------
def cylinder_fea_forward(pt_fea_list, xy_ind_list, params):
    # pt_ind[i] = F.pad(xy_ind[i], (1, 0), value=i)  (prepend batch index)
    pt_ind = [
        np.concatenate(
            [np.full((x.shape[0], 1), i, np.int32), np.asarray(x, np.int32)], axis=1)
        for i, x in enumerate(xy_ind_list)
    ]
    cat_pt_ind = np.concatenate(pt_ind, axis=0)
    cat_pt_fea = jnp.concatenate(
        [jnp.asarray(f, jnp.float32) for f in pt_fea_list], axis=0)
    n = cat_pt_fea.shape[0]

    # torch.unique(..., dim=0) equivalent (data-dependent sizes -> host glue)
    unq, unq_inv = np.unique(cat_pt_ind, axis=0, return_inverse=True)
    unq_inv = np.asarray(unq_inv).reshape(-1).astype(np.int64)
    m = unq.shape[0]

    # Sort points by voxel id so every voxel tile sees a contiguous point range.
    order = np.argsort(unq_inv, kind="stable")
    sorted_inv = unq_inv[order].astype(np.int32)
    sorted_fea = jnp.take(cat_pt_fea, jnp.asarray(order, jnp.int32), axis=0)

    n_pad = _round_up(max(n, TN1), TN1)        # multiple of TN1 and TN2
    fea_pad = jnp.zeros((n_pad, FEA_DIM), jnp.float32).at[:n].set(sorted_fea)

    folded = fold_params(params)

    # PPmodel MLP (Pallas, tile = TN1 points)
    mlp_fea_pad = ppmodel_forward(fea_pad, folded["mlp"])

    # scatter_max + to_128 (Pallas): per-voxel-tile point-tile ranges
    m_pad = _round_up(m, TM)
    m_tiles = m_pad // TM
    n_tiles = n_pad // TN2

    inv_pad = np.full((n_pad, 1), -1, np.int32)   # -1 = padded point, never matches
    inv_pad[:n, 0] = sorted_inv

    lo = np.searchsorted(sorted_inv, np.arange(m_tiles) * TM, side="left")
    hi = np.searchsorted(sorted_inv, (np.arange(m_tiles) + 1) * TM, side="left")
    t_start = np.minimum(lo // TN2, n_tiles - 1).astype(np.int32)
    t_end = np.minimum((hi + TN2 - 1) // TN2, n_tiles)
    t_cnt = np.maximum(t_end - t_start, 1)
    t_cnt = np.minimum(t_cnt, n_tiles - t_start).astype(np.int32)
    kmax = int(t_cnt.max())

    pooled128_pad = segmax_to128_forward(
        jnp.asarray(t_start), jnp.asarray(t_cnt), jnp.asarray(inv_pad),
        mlp_fea_pad, m_pad, kmax, folded["w128"], folded["b128"])

    # TODO(synk): use_pix_fusion / use_sara / use_att branches (SwiftNetRes18
    # image backbone, Feature_Gather, CAM/SARA, MultiheadAttention) not
    # implemented.  With use_pix_fusion=False the reference never defines
    # `fused_cylinder_data`; we follow the evident intent and return the
    # to_128-projected scatter-max features.
    processed_pooled_data = pooled128_pad[:m]

    return jnp.asarray(unq, jnp.int32), processed_pooled_data, None, None


# ---------------------------------------------------------------------------
# Deterministic parameter initialization (shapes from the module's __init__)
# ---------------------------------------------------------------------------
def init_params(key):
    def bn_scale_shift(c, k):
        k1, k2, k3, k4 = jax.random.split(k, 4)
        gamma = 1.0 + 0.1 * jax.random.normal(k1, (c,), jnp.float32)
        beta = 0.1 * jax.random.normal(k2, (c,), jnp.float32)
        mean = 0.1 * jax.random.normal(k3, (c,), jnp.float32)
        var = jnp.abs(jax.random.normal(k4, (c,), jnp.float32)) + 0.5
        scale = gamma / jnp.sqrt(var + BN_EPS)
        shift = beta - mean * scale
        return scale.reshape(1, c), shift.reshape(1, c)

    def linear(cin, cout, k):
        k1, k2 = jax.random.split(k)
        w = jax.random.normal(k1, (cin, cout), jnp.float32) / np.sqrt(cin)
        b = 0.05 * jax.random.normal(k2, (1, cout), jnp.float32)
        return w, b

    ks = iter(jax.random.split(key, 16))
    s0, t0 = bn_scale_shift(FEA_DIM, next(ks))
    w1, b1 = linear(FEA_DIM, 64, next(ks))
    s1, t1 = bn_scale_shift(64, next(ks))
    w2, b2 = linear(64, 128, next(ks))
    s2, t2 = bn_scale_shift(128, next(ks))
    w3, b3 = linear(128, 256, next(ks))
    s3, t3 = bn_scale_shift(256, next(ks))
    w4, b4 = linear(256, OUT_PT_FEA_DIM, next(ks))
    w128, b128 = linear(OUT_PT_FEA_DIM, TO128, next(ks))
    mlp = [s0, t0, w1, b1, s1, t1, w2, b2, s2, t2, w3, b3, s3, t3, w4, b4]
    return {"mlp": mlp, "w128": w128, "b128": b128}


# ---------------------------------------------------------------------------
# Pure-JAX reference (unfolded, HIGHEST precision) for numerical sanity
# ---------------------------------------------------------------------------
def reference_forward(pt_fea_list, xy_ind_list, params):
    (s0, t0, w1, b1, s1, t1, w2, b2, s2, t2, w3, b3, s3, t3, w4, b4) = params["mlp"]
    h = jnp.concatenate([jnp.asarray(f, jnp.float32) for f in pt_fea_list], axis=0)
    h = h * s0 + t0
    h = jnp.dot(h, w1, precision=_PREC) + b1
    h = jnp.maximum(h * s1 + t1, 0.0)
    h = jnp.dot(h, w2, precision=_PREC) + b2
    h = jnp.maximum(h * s2 + t2, 0.0)
    h = jnp.dot(h, w3, precision=_PREC) + b3
    h = jnp.maximum(h * s3 + t3, 0.0)
    mlp = jnp.dot(h, w4, precision=_PREC) + b4

    pt_ind = [
        np.concatenate(
            [np.full((x.shape[0], 1), i, np.int32), np.asarray(x, np.int32)], axis=1)
        for i, x in enumerate(xy_ind_list)
    ]
    cat_ind = np.concatenate(pt_ind, axis=0)
    unq, inv = np.unique(cat_ind, axis=0, return_inverse=True)
    inv = jnp.asarray(np.asarray(inv).reshape(-1), jnp.int32)
    pooled = jax.ops.segment_max(mlp, inv, num_segments=unq.shape[0])
    out = jnp.dot(pooled, params["w128"], precision=_PREC) + params["b128"]
    return unq, out


if __name__ == "__main__":
    key = jax.random.PRNGKey(0)
    kp, kf1, ki1, kf2, ki2 = jax.random.split(key, 5)
    params = init_params(kp)

    # batch=2 point clouds, fea_dim=3 point features, 3-D cylinder voxel indices
    n_pts = [50, 70]
    pt_fea_list = [
        jax.random.normal(kf1, (n_pts[0], FEA_DIM), jnp.float32),
        jax.random.normal(kf2, (n_pts[1], FEA_DIM), jnp.float32),
    ]
    xy_ind_list = [
        np.asarray(jax.random.randint(ki1, (n_pts[0], 3), 0, 8), np.int32),
        np.asarray(jax.random.randint(ki2, (n_pts[1], 3), 0, 8), np.int32),
    ]

    unq, processed, _, _ = cylinder_fea_forward(pt_fea_list, xy_ind_list, params)
    processed = jax.block_until_ready(processed)

    ref_unq, ref_out = reference_forward(pt_fea_list, xy_ind_list, params)
    ref_out = jax.block_until_ready(ref_out)

    assert np.array_equal(np.asarray(unq), np.asarray(ref_unq, np.int32))
    # Kernels intentionally use single-pass bf16 MXU matmuls (perf feedback);
    # the reference stays at f32 HIGHEST, hence the 2e-2 tolerance.
    np.testing.assert_allclose(np.asarray(processed), np.asarray(ref_out),
                               rtol=2e-2, atol=2e-2)
    print("KERNEL_OK")
</pallas_src>

<mosaic_0001>
module attributes {stable_mosaic.version = 11 : i64} {
  func.func @ppmodel_kernel(%arg0: i32, %arg1: memref<1024x3xf32, #tpu.memory_space<vmem>>, %arg2: memref<3x64xf32, #tpu.memory_space<vmem>>, %arg3: memref<1x64xf32, #tpu.memory_space<vmem>>, %arg4: memref<64x128xbf16, #tpu.memory_space<vmem>>, %arg5: memref<1x128xf32, #tpu.memory_space<vmem>>, %arg6: memref<128x256xbf16, #tpu.memory_space<vmem>>, %arg7: memref<1x256xf32, #tpu.memory_space<vmem>>, %arg8: memref<256x64xbf16, #tpu.memory_space<vmem>>, %arg9: memref<1x64xf32, #tpu.memory_space<vmem>>, %arg10: memref<1024x64xf32, #tpu.memory_space<vmem>>) attributes {dimension_semantics = [#tpu.dimension_semantics<parallel>], iteration_bounds = array<i64: 1>, scalar_prefetch = 0 : i64, scratch_operands = 0 : i64, tpu.core_type = #tpu.core_type<tc>, window_params = [{transform_indices = @transform_0, window_bounds = array<i64: 1024, 3>}, {pipeline_mode = #tpu.pipeline_mode<synchronous>, transform_indices = @transform_1, window_bounds = array<i64: 3, 64>}, {pipeline_mode = #tpu.pipeline_mode<synchronous>, transform_indices = @transform_2, window_bounds = array<i64: 1, 64>}, {pipeline_mode = #tpu.pipeline_mode<synchronous>, transform_indices = @transform_3, window_bounds = array<i64: 64, 128>}, {pipeline_mode = #tpu.pipeline_mode<synchronous>, transform_indices = @transform_4, window_bounds = array<i64: 1, 128>}, {pipeline_mode = #tpu.pipeline_mode<synchronous>, transform_indices = @transform_5, window_bounds = array<i64: 128, 256>}, {pipeline_mode = #tpu.pipeline_mode<synchronous>, transform_indices = @transform_6, window_bounds = array<i64: 1, 256>}, {pipeline_mode = #tpu.pipeline_mode<synchronous>, transform_indices = @transform_7, window_bounds = array<i64: 256, 64>}, {pipeline_mode = #tpu.pipeline_mode<synchronous>, transform_indices = @transform_8, window_bounds = array<i64: 1, 64>}, {transform_indices = @transform_9, window_bounds = array<i64: 1024, 64>}]} {
    %c0 = arith.constant 0 : index
    %c0_0 = arith.constant 0 : index
    %0 = vector.load %arg1[%c0, %c0_0] : memref<1024x3xf32, #tpu.memory_space<vmem>>, vector<1024x3xf32>
    %c0_1 = arith.constant 0 : index
    %c0_2 = arith.constant 0 : index
    %1 = vector.load %arg2[%c0_1, %c0_2] : memref<3x64xf32, #tpu.memory_space<vmem>>, vector<3x64xf32>
    %2 = vector.extract_strided_slice %0 {offsets = [0, 0], sizes = [1024, 1], strides = [1, 1]} : vector<1024x3xf32> to vector<1024x1xf32>
    %3 = vector.extract_strided_slice %1 {offsets = [0, 0], sizes = [1, 64], strides = [1, 1]} : vector<3x64xf32> to vector<1x64xf32>
    %4 = vector.broadcast %2 : vector<1024x1xf32> to vector<1024x64xf32>
    %5 = vector.broadcast %3 : vector<1x64xf32> to vector<1024x64xf32>
    %6 = arith.mulf %4, %5 : vector<1024x64xf32>
    %7 = vector.extract_strided_slice %0 {offsets = [0, 1], sizes = [1024, 1], strides = [1, 1]} : vector<1024x3xf32> to vector<1024x1xf32>
    %8 = vector.extract_strided_slice %1 {offsets = [1, 0], sizes = [1, 64], strides = [1, 1]} : vector<3x64xf32> to vector<1x64xf32>
    %9 = vector.broadcast %7 : vector<1024x1xf32> to vector<1024x64xf32>
    %10 = vector.broadcast %8 : vector<1x64xf32> to vector<1024x64xf32>
    %11 = arith.mulf %9, %10 : vector<1024x64xf32>
    %12 = arith.addf %6, %11 : vector<1024x64xf32>
    %13 = vector.extract_strided_slice %0 {offsets = [0, 2], sizes = [1024, 1], strides = [1, 1]} : vector<1024x3xf32> to vector<1024x1xf32>
    %14 = vector.extract_strided_slice %1 {offsets = [2, 0], sizes = [1, 64], strides = [1, 1]} : vector<3x64xf32> to vector<1x64xf32>
    %15 = vector.broadcast %13 : vector<1024x1xf32> to vector<1024x64xf32>
    %16 = vector.broadcast %14 : vector<1x64xf32> to vector<1024x64xf32>
    %17 = arith.mulf %15, %16 : vector<1024x64xf32>
    %18 = arith.addf %12, %17 : vector<1024x64xf32>
    %c0_3 = arith.constant 0 : index
    %c0_4 = arith.constant 0 : index
    %19 = vector.load %arg3[%c0_3, %c0_4] : memref<1x64xf32, #tpu.memory_space<vmem>>, vector<1x64xf32>
    %20 = vector.broadcast %19 : vector<1x64xf32> to vector<1024x64xf32>
    %21 = arith.addf %18, %20 : vector<1024x64xf32>
    %cst = arith.constant 0.000000e+00 : f32
    %22 = vector.broadcast %cst : f32 to vector<1024x64xf32>
    %23 = arith.maximumf %21, %22 : vector<1024x64xf32>
    %24 = arith.truncf %23 : vector<1024x64xf32> to vector<1024x64xbf16>
    %c0_5 = arith.constant 0 : index
    %c0_6 = arith.constant 0 : index
    %25 = vector.load %arg4[%c0_5, %c0_6] : memref<64x128xbf16, #tpu.memory_space<vmem>>, vector<64x128xbf16>
    %cst_7 = arith.constant dense<0.000000e+00> : vector<1024x128xf32>
    %26 = tpu.matmul %24, %25, %cst_7 {dimension_numbers = #tpu.dot_dimension_numbers<[1], [0], [0], [1], [0, 0, 1, 1], [], []>} : vector<1024x64xbf16>, vector<64x128xbf16>, vector<1024x128xf32> -> vector<1024x128xf32>
    %c0_8 = arith.constant 0 : index
    %c0_9 = arith.constant 0 : index
    %27 = vector.load %arg5[%c0_8, %c0_9] : memref<1x128xf32, #tpu.memory_space<vmem>>, vector<1x128xf32>
    %28 = vector.broadcast %27 : vector<1x128xf32> to vector<1024x128xf32>
    %29 = arith.addf %26, %28 : vector<1024x128xf32>
    %cst_10 = arith.constant 0.000000e+00 : f32
    %30 = vector.broadcast %cst_10 : f32 to vector<1024x128xf32>
    %31 = arith.maximumf %29, %30 : vector<1024x128xf32>
    %32 = arith.truncf %31 : vector<1024x128xf32> to vector<1024x128xbf16>
    %c0_11 = arith.constant 0 : index
    %c0_12 = arith.constant 0 : index
    %33 = vector.load %arg6[%c0_11, %c0_12] : memref<128x256xbf16, #tpu.memory_space<vmem>>, vector<128x256xbf16>
    %cst_13 = arith.constant dense<0.000000e+00> : vector<1024x256xf32>
    %34 = tpu.matmul %32, %33, %cst_13 {dimension_numbers = #tpu.dot_dimension_numbers<[1], [0], [0], [1], [0, 0, 1, 1], [], []>} : vector<1024x128xbf16>, vector<128x256xbf16>, vector<1024x256xf32> -> vector<1024x256xf32>
    %c0_14 = arith.constant 0 : index
    %c0_15 = arith.constant 0 : index
    %35 = vector.load %arg7[%c0_14, %c0_15] : memref<1x256xf32, #tpu.memory_space<vmem>>, vector<1x256xf32>
    %36 = vector.broadcast %35 : vector<1x256xf32> to vector<1024x256xf32>
    %37 = arith.addf %34, %36 : vector<1024x256xf32>
    %cst_16 = arith.constant 0.000000e+00 : f32
    %38 = vector.broadcast %cst_16 : f32 to vector<1024x256xf32>
    %39 = arith.maximumf %37, %38 : vector<1024x256xf32>
    %40 = arith.truncf %39 : vector<1024x256xf32> to vector<1024x256xbf16>
    %c0_17 = arith.constant 0 : index
    %c0_18 = arith.constant 0 : index
    %41 = vector.load %arg8[%c0_17, %c0_18] : memref<256x64xbf16, #tpu.memory_space<vmem>>, vector<256x64xbf16>
    %cst_19 = arith.constant dense<0.000000e+00> : vector<1024x64xf32>
    %42 = tpu.matmul %40, %41, %cst_19 {dimension_numbers = #tpu.dot_dimension_numbers<[1], [0], [0], [1], [0, 0, 1, 1], [], []>} : vector<1024x256xbf16>, vector<256x64xbf16>, vector<1024x64xf32> -> vector<1024x64xf32>
    %c0_20 = arith.constant 0 : index
    %c0_21 = arith.constant 0 : index
    %43 = vector.load %arg9[%c0_20, %c0_21] : memref<1x64xf32, #tpu.memory_space<vmem>>, vector<1x64xf32>
    %44 = vector.broadcast %43 : vector<1x64xf32> to vector<1024x64xf32>
    %45 = arith.addf %42, %44 : vector<1024x64xf32>
    %c0_22 = arith.constant 0 : index
    %c0_23 = arith.constant 0 : index
    %46 = vector.load %arg10[%c0_22, %c0_23] : memref<1024x64xf32, #tpu.memory_space<vmem>>, vector<1024x64xf32>
    tpu.vector_store %arg10[%c0_22, %c0_23], %45 {strides = array<i32>} : memref<1024x64xf32, #tpu.memory_space<vmem>>, vector<1024x64xf32>,
    return
  }
  func.func @transform_0(%arg0: i32) -> (i32, i32) {
    %c0_i32 = arith.constant 0 : i32
    %c0_i32_0 = arith.constant 0 : i32
    return %arg0, %c0_i32 : i32, i32
  }
  func.func @transform_1(%arg0: i32) -> (i32, i32) {
    %c0_i32 = arith.constant 0 : i32
    %c0_i32_0 = arith.constant 0 : i32
    %c0_i32_1 = arith.constant 0 : i32
    return %c0_i32, %c0_i32_0 : i32, i32
  }
  func.func @transform_2(%arg0: i32) -> (i32, i32) {
    %c0_i32 = arith.constant 0 : i32
    %c0_i32_0 = arith.constant 0 : i32
    %c0_i32_1 = arith.constant 0 : i32
    return %c0_i32, %c0_i32_0 : i32, i32
  }
  func.func @transform_3(%arg0: i32) -> (i32, i32) {
    %c0_i32 = arith.constant 0 : i32
    %c0_i32_0 = arith.constant 0 : i32
    %c0_i32_1 = arith.constant 0 : i32
    return %c0_i32, %c0_i32_0 : i32, i32
  }
  func.func @transform_4(%arg0: i32) -> (i32, i32) {
    %c0_i32 = arith.constant 0 : i32
    %c0_i32_0 = arith.constant 0 : i32
    %c0_i32_1 = arith.constant 0 : i32
    return %c0_i32, %c0_i32_0 : i32, i32
  }
  func.func @transform_5(%arg0: i32) -> (i32, i32) {
    %c0_i32 = arith.constant 0 : i32
    %c0_i32_0 = arith.constant 0 : i32
    %c0_i32_1 = arith.constant 0 : i32
    return %c0_i32, %c0_i32_0 : i32, i32
  }
  func.func @transform_6(%arg0: i32) -> (i32, i32) {
    %c0_i32 = arith.constant 0 : i32
    %c0_i32_0 = arith.constant 0 : i32
    %c0_i32_1 = arith.constant 0 : i32
    return %c0_i32, %c0_i32_0 : i32, i32
  }
  func.func @transform_7(%arg0: i32) -> (i32, i32) {
    %c0_i32 = arith.constant 0 : i32
    %c0_i32_0 = arith.constant 0 : i32
    %c0_i32_1 = arith.constant 0 : i32
    return %c0_i32, %c0_i32_0 : i32, i32
  }
  func.func @transform_8(%arg0: i32) -> (i32, i32) {
    %c0_i32 = arith.constant 0 : i32
    %c0_i32_0 = arith.constant 0 : i32
    %c0_i32_1 = arith.constant 0 : i32
    return %c0_i32, %c0_i32_0 : i32, i32
  }
  func.func @transform_9(%arg0: i32) -> (i32, i32) {
    %c0_i32 = arith.constant 0 : i32
    %c0_i32_0 = arith.constant 0 : i32
    return %arg0, %c0_i32 : i32, i32
  }
}

</mosaic_0001>

<bundles_post_ra>
// kernel: tpu_custom_call.1
= control target key start
LH: loop header
LB: loop body
LE: loop exit
PB: predicated region body
PF: predicated region fallthrough
CT: control target
= control target key end

     0   :  { %v10381_v0 = vmov 1   ;;  %v10377_v1 = vmov 0   ;;  %vm2844_vm0 = vcmask 523264   ;;  %s10367_s0 = inlined_call_operand.vmem [shape: f32[1024,3], index: 0, kind: input, shape index: {}]   ;;  %s10368_s3 = inlined_call_operand.vmem [shape: bf16[64,128], index: 3, kind: input, shape index: {}]   ;;  %s10369_s1 = inlined_call_operand.vmem [shape: f32[3,64], index: 1, kind: input, shape index: {}]   ;;  %s10370_s2 = inlined_call_operand.vmem [shape: f32[1,64], index: 2, kind: input, shape index: {}]   ;;  %s10371_s4 = inlined_call_operand.vmem [shape: f32[1,128], index: 4, kind: input, shape index: {}]   ;;  %s10372_s5 = inlined_call_operand.vmem [shape: bf16[128,256], index: 5, kind: input, shape index: {}]   ;;  %s10373_s7 = inlined_call_operand.vmem [shape: bf16[256,64], index: 7, kind: input, shape index: {}]   ;;  %s10374_s6 = inlined_call_operand.vmem [shape: f32[1,256], index: 6, kind: input, shape index: {}]   ;;  %s10375_s8 = inlined_call_operand.vmem [shape: f32[1,64], index: 8, kind: input, shape index: {}]   ;;  %s10376_s9 = inlined_call_operand.vmem [shape: f32[1024,64], index: 9, kind: output, shape index: {}]  }
   0x1   :  { %6070 = vset.pattern.permute.xlu0 %v10381_v0  ;;  %6069 = vset.pattern.permute.xlu1 %v10377_v1  ;;  %v6391_v2 = vld [vmem:[%s10367_s0 + $0x10] sm:$0xff]  ;;  %v6396_v3 = vld [vmem:[%s10367_s0] sm:$0xff]  ;;  %v6403_v4 = vld [vmem:[%s10367_s0 + $0x18] sm:$0xff] }
   0x2   :  { %174 = vperm.xlu1 %6069, %v6391_v2   ;;  %935 = vperm.xlu0 %6070, %v6396_v3   ;;  %v6410_v5 = vld [vmem:[%s10367_s0 + $0x28] sm:$0xff]  ;;  %v6415_v6 = vld [vmem:[%s10367_s0 + $0x20] sm:$0xff]  ;;  %v6422_v7 = vld [vmem:[%s10367_s0 + $0x38] sm:$0xff] }
   0x3   :  { %v6429_v8 = vld [vmem:[%s10367_s0 + $0x48] sm:$0xff]  ;;  %v6437_v9 = vld [vmem:[%s10367_s0 + $0x58] sm:$0xff]  ;;  %v6461_v13 = vld [vmem:[%s10367_s0 + $0x30] sm:$0xff] }
   0x4   :  { %v6442_v10 = vld [vmem:[%s10367_s0 + $0x8] sm:$0xff]  ;;  %v6456_v12 = vld [vmem:[%s10367_s0 + $0x78] sm:$0xff]  ;;  %v6473_v15 = vld [vmem:[%s10367_s0 + $0x40] sm:$0xff] }
   0x5   :  { %v6449_v11 = vld [vmem:[%s10367_s0 + $0x68] sm:$0xff]  ;;  %v6480_v16 = vld [vmem:[%s10367_s0 + $0x98] sm:$0xff]  ;;  %v6485_v17 = vld [vmem:[%s10367_s0 + $0x50] sm:$0xff] }
   0x6   :  { %179 = vperm.xlu1 %6069, %v6403_v4   ;;  %947 = vperm.xlu0 %6070, %v6403_v4   ;;  %v6468_v14 = vld [vmem:[%s10367_s0 + $0x88] sm:$0xff]  ;;  %v6497_v19 = vld [vmem:[%s10367_s0 + $0x60] sm:$0xff]  ;;  %v6504_v20 = vld [vmem:[%s10367_s0 + $0xb8] sm:$0xff] }
   0x7   :  { %v6492_v18 = vld [vmem:[%s10367_s0 + $0xa8] sm:$0xff]  ;;  %v6509_v21 = vld [vmem:[%s10367_s0 + $0x70] sm:$0xff]  ;;  %v6521_v23 = vld [vmem:[%s10367_s0 + $0x80] sm:$0xff] }
   0x8   :  { %v6516_v22 = vld [vmem:[%s10367_s0 + $0xc8] sm:$0xff]  ;;  %v6528_v24 = vld [vmem:[%s10367_s0 + $0xd8] sm:$0xff]  ;;  %v6533_v25 = vld [vmem:[%s10367_s0 + $0x90] sm:$0xff] }
   0x9   :  { %v6540_v26 = vld [vmem:[%s10367_s0 + $0xe8] sm:$0xff]  ;;  %v6545_v27 = vld [vmem:[%s10367_s0 + $0xa0] sm:$0xff]  ;;  %v6552_v28 = vld [vmem:[%s10367_s0 + $0xf8] sm:$0xff] }
   0xa   :  { %189 = vperm.xlu1 %6069, %v6410_v5   ;;  %951 = vperm.xlu0 %6070, %v6415_v6   ;;  %10403 = vst [vmem:[#allocation2_spill] sm:$0xff] %v6540_v26  ;;  %v6557_v29 = vld [vmem:[%s10367_s0 + $0xb0] sm:$0xff]  ;;  %v66_v30 = vld [vmem:[%s10367_s0 + $0x108] sm:$0xff]  ;;  %v6567_v31 = vld [vmem:[%s10367_s0 + $0xc0] sm:$0xff] }
   0xb   :  { %v6573_v32 = vld [vmem:[%s10367_s0 + $0x118] sm:$0xff]  ;;  %v6578_v33 = vld [vmem:[%s10367_s0 + $0xd0] sm:$0xff]  ;;  %v70_v34 = vld [vmem:[%s10367_s0 + $0x128] sm:$0xff] }
   0xc   :  { %v6588_v35 = vld [vmem:[%s10367_s0 + $0xe0] sm:$0xff]  ;;  %v6594_v36 = vld [vmem:[%s10367_s0 + $0x138] sm:$0xff]  ;;  %v6599_v37 = vld [vmem:[%s10367_s0 + $0xf0] sm:$0xff] }
   0xd   :  { %10404 = vst [vmem:[#allocation3_spill] sm:$0xff] %v6599_v37  ;;  %v74_v38 = vld [vmem:[%s10367_s0 + $0x148] sm:$0xff]  ;;  %v6609_v39 = vld [vmem:[%s10367_s0 + $0x100] sm:$0xff]  ;;  %v6615_v40 = vld [vmem:[%s10367_s0 + $0x158] sm:$0xff] }
   0xe   :  { %199 = vperm.xlu1 %6069, %v6422_v7   ;;  %963 = vperm.xlu0 %6070, %v6422_v7   ;;  %v67_v41 = vld [vmem:[%s10367_s0 + $0x110] sm:$0xff]  ;;  %v78_v42 = vld [vmem:[%s10367_s0 + $0x168] sm:$0xff]  ;;  %v6627_v43 = vld [vmem:[%s10367_s0 + $0x120] sm:$0xff] }
   0xf   :  { %v6633_v44 = vld [vmem:[%s10367_s0 + $0x178] sm:$0xff]  ;;  %v71_v45 = vld [vmem:[%s10367_s0 + $0x130] sm:$0xff]  ;;  %v82_v46 = vld [vmem:[%s10367_s0 + $0x188] sm:$0xff] }
  0x10   :  { %v6645_v47 = vld [vmem:[%s10367_s0 + $0x140] sm:$0xff]  ;;  %v6651_v48 = vld [vmem:[%s10367_s0 + $0x198] sm:$0xff]  ;;  %v75_v49 = vld [vmem:[%s10367_s0 + $0x150] sm:$0xff] }
  0x11   :  { %10405 = vst [vmem:[#allocation4_spill] sm:$0xff] %v6651_v48  ;;  %v86_v50 = vld [vmem:[%s10367_s0 + $0x1a8] sm:$0xff]  ;;  %v6663_v51 = vld [vmem:[%s10367_s0 + $0x160] sm:$0xff]  ;;  %v6669_v52 = vld [vmem:[%s10367_s0 + $0x1b8] sm:$0xff] }
  0x12   :  { %209 = vperm.xlu1 %6069, %v6429_v8   ;;  %6074 = vset.pattern.permute.xlu0 %v10377_v1  ;;  %10406 = vst [vmem:[#allocation5_spill] sm:$0xff] %v6669_v52  ;;  %v79_v53 = vld [vmem:[%s10367_s0 + $0x170] sm:$0xff]  ;;  %v90_v54 = vld [vmem:[%s10367_s0 + $0x1c8] sm:$0xff]  ;;  %v6681_v55 = vld [vmem:[%s10367_s0 + $0x180] sm:$0xff] }
  0x13   :  { %164 = vperm.xlu0 %6074, %v6396_v3   ;;  %10407 = vst [vmem:[#allocation6_spill] sm:$0xff] %v6681_v55  ;;  %v92_v56 = vld [vmem:[%s10367_s0 + $0x1d8] sm:$0xff]  ;;  %v83_v57 = vld [vmem:[%s10367_s0 + $0x190] sm:$0xff]  ;;  %v94_v58 = vld [vmem:[%s10367_s0 + $0x1e8] sm:$0xff] }
  0x14   :  { %v6696_v59 = vld [vmem:[%s10367_s0 + $0x1a0] sm:$0xff]  ;;  %v96_v60 = vld [vmem:[%s10367_s0 + $0x1f8] sm:$0xff]  ;;  %v87_v61 = vld [vmem:[%s10367_s0 + $0x1b0] sm:$0xff] }
  0x15   :  { %10408 = vst [vmem:[#allocation7_spill] sm:$0xff] %v6696_v59  ;;  %v6708_v62 = vld [vmem:[%s10367_s0 + $0x208] sm:$0xff]  ;;  %v89_v63 = vld [vmem:[%s10367_s0 + $0x1c0] sm:$0xff] }
  0x16   :  { %219 = vperm.xlu1 %6069, %v6437_v9  }
  0x17   :  { %169 = vperm.xlu0 %6074, %v6442_v10  }
  0x1a   :  { %229 = vperm.xlu1 %6069, %v6449_v11  }
  0x1b   :  { %184 = vperm.xlu0 %6074, %v6415_v6  }
  0x1e   :  { %239 = vperm.xlu1 %6069, %v6456_v12  }
  0x1f   :  { %194 = vperm.xlu0 %6074, %v6461_v13  }
  0x22   :  { %249 = vperm.xlu1 %6069, %v6468_v14  }
  0x23   :  { %204 = vperm.xlu0 %6074, %v6473_v15  }
  0x26   :  { %259 = vperm.xlu1 %6069, %v6480_v16  }
  0x27   :  { %214 = vperm.xlu0 %6074, %v6485_v17  }
  0x2a   :  { %269 = vperm.xlu1 %6069, %v6492_v18  }
  0x2b   :  { %224 = vperm.xlu0 %6074, %v6497_v19  }
  0x2e   :  { %279 = vperm.xlu1 %6069, %v6504_v20  }
  0x2f   :  { %234 = vperm.xlu0 %6074, %v6509_v21  }
  0x32   :  { %289 = vperm.xlu1 %6069, %v6516_v22  }
  0x33   :  { %244 = vperm.xlu0 %6074, %v6521_v23  }
  0x36   :  { %299 = vperm.xlu1 %6069, %v6528_v24  }
  0x37   :  { %254 = vperm.xlu0 %6074, %v6533_v25  }
  0x3a   :  { %309 = vperm.xlu1 %6069, %v6540_v26  }
  0x3b   :  { %264 = vperm.xlu0 %6074, %v6545_v27  }
  0x3e   :  { %319 = vperm.xlu1 %6069, %v6552_v28  }
  0x3f   :  { %274 = vperm.xlu0 %6074, %v6557_v29  }
  0x42   :  { %329 = vperm.xlu1 %6069, %v66_v30  }
  0x43   :  { %284 = vperm.xlu0 %6074, %v6567_v31  }
  0x46   :  { %339 = vperm.xlu1 %6069, %v6573_v32  }
  0x47   :  { %294 = vperm.xlu0 %6074, %v6578_v33  }
  0x4a   :  { %349 = vperm.xlu1 %6069, %v70_v34  }
  0x4b   :  { %304 = vperm.xlu0 %6074, %v6588_v35  }
  0x4e   :  { %359 = vperm.xlu1 %6069, %v6594_v36  }
  0x4f   :  { %314 = vperm.xlu0 %6074, %v6599_v37  }
  0x52   :  { %369 = vperm.xlu1 %6069, %v74_v38   ;;  %v6721_v38 = vld [vmem:[%s10367_s0 + $0x218] sm:$0xff] }
  0x53   :  { %324 = vperm.xlu0 %6074, %v6609_v39  }
  0x56   :  { %379 = vperm.xlu1 %6069, %v6615_v40  }
  0x57   :  { %334 = vperm.xlu0 %6074, %v67_v41   ;;  %v91_v41 = vld [vmem:[%s10367_s0 + $0x1d0] sm:$0xff] }
  0x5a   :  { %389 = vperm.xlu1 %6069, %v78_v42  }
  0x5b   :  { %344 = vperm.xlu0 %6074, %v6627_v43  }
  0x5e   :  { %399 = vperm.xlu1 %6069, %v6633_v44  }
  0x5f   :  { %354 = vperm.xlu0 %6074, %v71_v45  }
  0x62   :  { %409 = vperm.xlu1 %6069, %v82_v46   ;;  %v6734_v46 = vld [vmem:[%s10367_s0 + $0x228] sm:$0xff] }
  0x63   :  { %364 = vperm.xlu0 %6074, %v6645_v47  }
  0x66   :  { %419 = vperm.xlu1 %6069, %v6651_v48  }
  0x67   :  { %374 = vperm.xlu0 %6074, %v75_v49   ;;  %v93_v49 = vld [vmem:[%s10367_s0 + $0x1e0] sm:$0xff] }
  0x6a   :  { %429 = vperm.xlu1 %6069, %v86_v50  }
  0x6b   :  { %384 = vperm.xlu0 %6074, %v6663_v51  }
  0x6e   :  { %439 = vperm.xlu1 %6069, %v6669_v52  }
  0x6f   :  { %394 = vperm.xlu0 %6074, %v79_v53  }
  0x72   :  { %449 = vperm.xlu1 %6069, %v90_v54   ;;  %v6747_v54 = vld [vmem:[%s10367_s0 + $0x238] sm:$0xff] }
  0x73   :  { %404 = vperm.xlu0 %6074, %v6681_v55  }
  0x76   :  { %459 = vperm.xlu1 %6069, %v92_v56   ;;  %v95_v56 = vld [vmem:[%s10367_s0 + $0x1f0] sm:$0xff] }
  0x77   :  { %414 = vperm.xlu0 %6074, %v83_v57  }
  0x7a   :  { %469 = vperm.xlu1 %6069, %v94_v58  }
  0x7b   :  { %424 = vperm.xlu0 %6074, %v6696_v59   ;;  %v10386_v59 = vmov 2  }
  0x7e   :  { %479 = vperm.xlu1 %6069, %v96_v60   ;;  %v6760_v60 = vld [vmem:[%s10367_s0 + $0x248] sm:$0xff] }
  0x7f   :  { %434 = vperm.xlu0 %6074, %v87_v61   ;;  %v6765_v61 = vld [vmem:[%s10367_s0 + $0x200] sm:$0xff] }
  0x81   :  { %v6713_v30 = vpop.permute.xlu1 %174  ;;  %v6715_v34 = vpop.permute.xlu0 %935 }
  0x82   :  { %489 = vperm.xlu1 %6069, %v6708_v62  }
  0x83   :  { %444 = vperm.xlu0 %6074, %v89_v63  }
  0x85   :  { %v6726_v42 = vpop.permute.xlu1 %179  ;;  %v6728_v45 = vpop.permute.xlu0 %947 }
  0x86   :  { %499 = vperm.xlu1 %6069, %v6721_v38  }
  0x87   :  { %454 = vperm.xlu0 %6074, %v91_v41  }
  0x89   :  { %v6739_v50 = vpop.permute.xlu1 %189  ;;  %v6741_v53 = vpop.permute.xlu0 %951 }
  0x8a   :  { %10409 = vst [vmem:[#allocation8_spill] sm:$0xff] %v6739_v50  ;;  %509 = vperm.xlu1 %6069, %v6734_v46  }
  0x8b   :  { %464 = vperm.xlu0 %6074, %v93_v49   ;;  %v6776_v49 = vld [vmem:[%s10367_s0 + $0x210] sm:$0xff] }
  0x8d   :  { %v6752_v57 = vpop.permute.xlu1 %199  ;;  %v6754_v58 = vpop.permute.xlu0 %963 }
  0x8e   :  { %10410 = vst [vmem:[#allocation9_spill] sm:$0xff] %v6752_v57  ;;  %10411 = vst [vmem:[#allocation10_spill] sm:$0xff] %v6754_v58  ;;  %519 = vperm.xlu1 %6069, %v6747_v54  }
  0x8f   :  { %474 = vperm.xlu0 %6074, %v95_v56  }
  0x91   :  { %v6767_v63 = vpop.permute.xlu1 %209 }
  0x92   :  { %10412 = vst [vmem:[#allocation11_spill] sm:$0xff] %v6767_v63  ;;  %529 = vperm.xlu1 %6069, %v6760_v60   ;;  %v6770_v41 = vpop.permute.xlu0 %164  ;;  %v6788_v63 = vld [vmem:[%s10367_s0 + $0x220] sm:$0xff] }
  0x93   :  { %484 = vperm.xlu0 %6074, %v6765_v61  }
  0x95   :  { %v6778_v56 = vpop.permute.xlu1 %219 }
  0x96   :  { %10413 = vst [vmem:[#allocation12_spill] sm:$0xff] %v6778_v56  ;;  %6071 = vset.pattern.permute.xlu1 %v10381_v0  ;;  %v6781_v1 = vpop.permute.xlu0 %169  ;;  %v6799_v0 = vld [vmem:[%s10367_s0 + $0x230] sm:$0xff] }
  0x97   :  { %10414 = vst [vmem:[#allocation13_spill] sm:$0xff] %v6781_v1  ;;  %939 = vperm.xlu1 %6071, %v6442_v10   ;;  %494 = vperm.xlu0 %6074, %v6776_v49  }
  0x99   :  { %v6790_v37 = vpop.permute.xlu1 %229 }
  0x9a   :  { %10415 = vst [vmem:[#allocation14_spill] sm:$0xff] %v6790_v37  ;;  %v6792_v52 = vpop.permute.xlu0 %184  ;;  %v6811_v37 = vld [vmem:[%s10367_s0 + $0x240] sm:$0xff] }
  0x9b   :  { %943 = vperm.xlu1 %6071, %v6391_v2   ;;  %504 = vperm.xlu0 %6074, %v6788_v63  }
  0x9d   :  { %v6801_v56 = vpop.permute.xlu1 %239 }
  0x9e   :  { %10416 = vst [vmem:[#allocation15_spill] sm:$0xff] %v6801_v56  ;;  %v6803_v26 = vpop.permute.xlu0 %194 }
  0x9f   :  { %10417 = vst [vmem:[#allocation16_spill] sm:$0xff] %v6803_v26  ;;  %6072 = vset.pattern.permute.xlu1 %v10386_v59  ;;  %514 = vperm.xlu0 %6074, %v6799_v0   ;;  %v6822_v59 = vld [vmem:[%s10367_s0 + $0x258] sm:$0xff]  ;;  %v10424_v26 = vmov 1  }
  0xa0   :  { %1707 = vperm.xlu1 %6072, %v6396_v3  }
  0xa1   :  { %v6813_v50 = vpop.permute.xlu1 %249 }
  0xa2   :  { %10418 = vst [vmem:[#allocation17_spill] sm:$0xff] %v6813_v50  ;;  %v6815_v48 = vpop.permute.xlu0 %204 }
  0xa3   :  { %10419 = vst [vmem:[#allocation18_spill] sm:$0xff] %v6815_v48  ;;  %524 = vperm.xlu0 %6074, %v6811_v37   ;;  %v6833_v48 = vld [vmem:[%s10367_s0 + $0x268] sm:$0xff] }
  0xa4   :  { %1715 = vperm.xlu1 %6072, %v6391_v2  }
  0xa5   :  { %v6824_v56 = vpop.permute.xlu1 %259 }
  0xa6   :  { %10420 = vst [vmem:[#allocation19_spill] sm:$0xff] %v6824_v56  ;;  %v6826_v3 = vpop.permute.xlu0 %214 }
  0xa7   :  { %10421 = vst [vmem:[#allocation20_spill] sm:$0xff] %v6826_v3  ;;  %539 = vperm.xlu0 %6074, %v6822_v59   ;;  %v6844_v3 = vld [vmem:[%s10367_s0 + $0x270] sm:$0xff] }
  0xa8   :  { %1719 = vperm.xlu1 %6072, %v6403_v4   ;;  %10425 = vst [vmem:[#allocation23_spill] sm:$0xff] %v6844_v3 }
  0xa9   :  { %v6835_v50 = vpop.permute.xlu1 %269 }
  0xaa   :  { %10422 = vst [vmem:[#allocation21_spill] sm:$0xff] %v6835_v50  ;;  %v6837_v2 = vpop.permute.xlu0 %224 }
  0xab   :  { %10423 = vst [vmem:[#allocation22_spill] sm:$0xff] %v6837_v2  ;;  %549 = vperm.xlu0 %6074, %v6833_v48   ;;  %v6855_v2 = vld [vmem:[%s10367_s0 + $0x280] sm:$0xff] }
  0xac   :  { %6073 = vset.pattern.permute.xlu1 %v10424_v26 }
  0xad   :  { %v6846_v56 = vpop.permute.xlu1 %279  ;;  %955 = vperm.xlu1 %6073, %v6410_v5  }
  0xae   :  { %10426 = vst [vmem:[#allocation24_spill] sm:$0xff] %v6846_v56  ;;  %v6849_v4 = vpop.permute.xlu0 %234  ;;  %v6866_v56 = vld [vmem:[%s10367_s0 + $0x2a8] sm:$0xff] }
  0xaf   :  { %10427 = vst [vmem:[#allocation25_spill] sm:$0xff] %v6849_v4  ;;  %554 = vperm.xlu0 %6074, %v6844_v3   ;;  %v10431_v3 = vmov 2  }
  0xb1   :  { %v6857_v50 = vpop.permute.xlu1 %289  ;;  %959 = vperm.xlu1 %6073, %v6461_v13  }
  0xb2   :  { %10428 = vst [vmem:[#allocation26_spill] sm:$0xff] %v6857_v50  ;;  %v6860_v58 = vpop.permute.xlu0 %244 }
  0xb3   :  { %10429 = vst [vmem:[#allocation27_spill] sm:$0xff] %v6860_v58  ;;  %564 = vperm.xlu0 %6074, %v6855_v2   ;;  %v6878_v58 = vld [vmem:[%s10367_s0 + $0x2b0] sm:$0xff] }
  0xb4   :  { %10433 = vst [vmem:[#allocation30_spill] sm:$0xff] %v6878_v58 }
  0xb5   :  { %v6868_v4 = vpop.permute.xlu1 %299  ;;  %6075 = vset.pattern.permute.xlu1 %v10431_v3 }
  0xb6   :  { %10430 = vst [vmem:[#allocation28_spill] sm:$0xff] %v6868_v4  ;;  %1723 = vperm.xlu1 %6075, %v6415_v6   ;;  %v6872_v57 = vpop.permute.xlu0 %254  ;;  %v6889_v6 = vld [vmem:[%s10367_s0 + $0x2c0] sm:$0xff] }
  0xb7   :  { %10432 = vst [vmem:[#allocation29_spill] sm:$0xff] %v6872_v57  ;;  %589 = vperm.xlu0 %6074, %v6866_v56  }
  0xb9   :  { %v6880_v50 = vpop.permute.xlu1 %309 }
  0xba   :  { %10434 = vst [vmem:[#allocation31_spill] sm:$0xff] %v6880_v50  ;;  %1731 = vperm.xlu1 %6075, %v6461_v13   ;;  %v6883_v55 = vpop.permute.xlu0 %264  ;;  %v6900_v13 = vld [vmem:[%s10367_s0 + $0x2e8] sm:$0xff] }
  0xbb   :  { %10435 = vst [vmem:[#allocation32_spill] sm:$0xff] %v6883_v55  ;;  %594 = vperm.xlu0 %6074, %v6878_v58  }
  0xbd   :  { %v6891_v57 = vpop.permute.xlu1 %319 }
  0xbe   :  { %10436 = vst [vmem:[#allocation33_spill] sm:$0xff] %v6891_v57  ;;  %1735 = vperm.xlu1 %6075, %v6422_v7   ;;  %v6894_v4 = vpop.permute.xlu0 %274  ;;  %v6912_v7 = vld [vmem:[%s10367_s0 + $0x2f0] sm:$0xff] }
  0xbf   :  { %10437 = vst [vmem:[#allocation34_spill] sm:$0xff] %v6894_v4  ;;  %604 = vperm.xlu0 %6074, %v6889_v6   ;;  %10440 = vst [vmem:[#allocation37_spill] sm:$0xff] %v6912_v7 }
  0xc1   :  { %v6902_v55 = vpop.permute.xlu1 %329 }
  0xc2   :  { %10438 = vst [vmem:[#allocation35_spill] sm:$0xff] %v6902_v55  ;;  %6076 = vset.pattern.permute.xlu1 %v10424_v26  ;;  %v6905_v50 = vpop.permute.xlu0 %284  ;;  %v6923_v55 = vld [vmem:[%s10367_s0 + $0x300] sm:$0xff] }
  0xc3   :  { %10439 = vst [vmem:[#allocation36_spill] sm:$0xff] %v6905_v50  ;;  %971 = vperm.xlu1 %6076, %v6429_v8   ;;  %629 = vperm.xlu0 %6074, %v6900_v13  }
  0xc5   :  { %v6914_v4 = vpop.permute.xlu1 %339 }
  0xc6   :  { %10441 = vst [vmem:[#allocation38_spill] sm:$0xff] %v6914_v4  ;;  %v6916_v57 = vpop.permute.xlu0 %294  ;;  %v6935_v4 = vld [vmem:[%s10367_s0 + $0x328] sm:$0xff] }
  0xc7   :  { %10442 = vst [vmem:[#allocation39_spill] sm:$0xff] %v6916_v57  ;;  %975 = vperm.xlu1 %6076, %v6485_v17   ;;  %634 = vperm.xlu0 %6074, %v6912_v7  }
  0xc9   :  { %v6925_v50 = vpop.permute.xlu1 %349 }
  0xca   :  { %10443 = vst [vmem:[#allocation40_spill] sm:$0xff] %v6925_v50  ;;  %v6927_v58 = vpop.permute.xlu0 %304  ;;  %v6946_v50 = vld [vmem:[%s10367_s0 + $0x330] sm:$0xff] }
  0xcb   :  { %10444 = vst [vmem:[#allocation41_spill] sm:$0xff] %v6927_v58  ;;  %6077 = vset.pattern.permute.xlu1 %v10431_v3  ;;  %644 = vperm.xlu0 %6074, %v6923_v55   ;;  %10447 = vst [vmem:[#allocation44_spill] sm:$0xff] %v6946_v50 }
  0xcc   :  { %1739 = vperm.xlu1 %6077, %v6473_v15  }
  0xcd   :  { %v6937_v57 = vpop.permute.xlu1 %359 }
  0xce   :  { %10445 = vst [vmem:[#allocation42_spill] sm:$0xff] %v6937_v57  ;;  %v6939_v7 = vpop.permute.xlu0 %314  ;;  %v6957_v57 = vld [vmem:[%s10367_s0 + $0x340] sm:$0xff] }
  0xcf   :  { %10446 = vst [vmem:[#allocation43_spill] sm:$0xff] %v6939_v7  ;;  %669 = vperm.xlu0 %6074, %v6935_v4  }
  0xd0   :  { %1747 = vperm.xlu1 %6077, %v6485_v17  }
  0xd1   :  { %v6948_v58 = vpop.permute.xlu1 %369 }
  0xd2   :  { %10448 = vst [vmem:[#allocation45_spill] sm:$0xff] %v6948_v58  ;;  %v6950_v15 = vpop.permute.xlu0 %324  ;;  %v6968_v58 = vld [vmem:[%s10367_s0 + $0x368] sm:$0xff] }
  0xd3   :  { %10449 = vst [vmem:[#allocation46_spill] sm:$0xff] %v6950_v15  ;;  %674 = vperm.xlu0 %6074, %v6946_v50  }
  0xd4   :  { %1751 = vperm.xlu1 %6077, %v6437_v9  }
  0xd5   :  { %v6959_v7 = vpop.permute.xlu1 %379 }
  0xd6   :  { %10450 = vst [vmem:[#allocation47_spill] sm:$0xff] %v6959_v7  ;;  %v6961_v17 = vpop.permute.xlu0 %334  ;;  %v143_v7 = vld [vmem:[%s10367_s0 + $0x370] sm:$0xff] }
  0xd7   :  { %10451 = vst [vmem:[#allocation48_spill] sm:$0xff] %v6961_v17  ;;  %684 = vperm.xlu0 %6074, %v6957_v57  }
  0xd8   :  { %6078 = vset.pattern.permute.xlu1 %v10424_v26 }
  0xd9   :  { %v6970_v15 = vpop.permute.xlu1 %389  ;;  %987 = vperm.xlu1 %6078, %v6449_v11  }
  0xda   :  { %10452 = vst [vmem:[#allocation49_spill] sm:$0xff] %v6970_v15  ;;  %v6973_v9 = vpop.permute.xlu0 %344  ;;  %v6987_v15 = vld [vmem:[%s10367_s0 + $0x380] sm:$0xff] }
  0xdb   :  { %10453 = vst [vmem:[#allocation50_spill] sm:$0xff] %v6973_v9  ;;  %709 = vperm.xlu0 %6074, %v6968_v58  }
  0xdd   :  { %v6979_v17 = vpop.permute.xlu1 %399  ;;  %991 = vperm.xlu1 %6078, %v6509_v21  }
  0xde   :  { %10454 = vst [vmem:[#allocation51_spill] sm:$0xff] %v6979_v17  ;;  %v6982_v50 = vpop.permute.xlu0 %354  ;;  %v6999_v17 = vld [vmem:[%s10367_s0 + $0x3a8] sm:$0xff] }
  0xdf   :  { %10455 = vst [vmem:[#allocation52_spill] sm:$0xff] %v6982_v50  ;;  %714 = vperm.xlu0 %6074, %v143_v7  }
  0xe1   :  { %v6989_v1 = vpop.permute.xlu1 %409  ;;  %6079 = vset.pattern.permute.xlu1 %v10431_v3 }
  0xe2   :  { %10456 = vst [vmem:[#allocation53_spill] sm:$0xff] %v6989_v1  ;;  %1755 = vperm.xlu1 %6079, %v6497_v19   ;;  %v6993_v9 = vpop.permute.xlu0 %364  ;;  %v151_v19 = vld [vmem:[%s10367_s0 + $0x3b0] sm:$0xff] }
  0xe3   :  { %10457 = vst [vmem:[#allocation54_spill] sm:$0xff] %v6993_v9  ;;  %724 = vperm.xlu0 %6074, %v6987_v15  }
  0xe5   :  { %v7001_v7 = vpop.permute.xlu1 %419 }
  0xe6   :  { %10458 = vst [vmem:[#allocation55_spill] sm:$0xff] %v7001_v7  ;;  %1763 = vperm.xlu1 %6079, %v6509_v21   ;;  %v7004_v50 = vpop.permute.xlu0 %374  ;;  %v7018_v7 = vld [vmem:[%s10367_s0 + $0x3c0] sm:$0xff] }
  0xe7   :  { %10459 = vst [vmem:[#allocation56_spill] sm:$0xff] %v7004_v50  ;;  %749 = vperm.xlu0 %6074, %v6999_v17   ;;  %10462 = vst [vmem:[#allocation59_spill] sm:$0xff] %v7018_v7 }
  0xe9   :  { %v7010_v1 = vpop.permute.xlu1 %429 }
  0xea   :  { %10460 = vst [vmem:[#allocation57_spill] sm:$0xff] %v7010_v1  ;;  %1767 = vperm.xlu1 %6079, %v6456_v12   ;;  %v7013_v9 = vpop.permute.xlu0 %384  ;;  %v7030_v12 = vld [vmem:[%s10367_s0 + $0x3e8] sm:$0xff] }
  0xeb   :  { %10461 = vst [vmem:[#allocation58_spill] sm:$0xff] %v7013_v9  ;;  %754 = vperm.xlu0 %6074, %v151_v19   ;;  %v6198_v9 = vld [vmem:[%s10368_s3] sm:$0xff]  }
  0xec   :  { %5922 = vmatprep.subr.bf16.mxu0 %v6198_v9  ;;  %6058 = vmatprep.subr.bf16.mxu1 %v6198_v9 }
  0xed   :  { %v7020_v21 = vpop.permute.xlu1 %439  ;;  %5923 = vmatpush3.bf16.msra.mxu0 %v6198_v9  ;;  %6062 = vmatpush3.bf16.msra.mxu1 %v6198_v9 }
  0xee   :  { %10463 = vst [vmem:[#allocation60_spill] sm:$0xff] %v7020_v21  ;;  %6080 = vset.pattern.permute.xlu1 %v10424_v26  ;;  %v7023_v50 = vpop.permute.xlu0 %394  ;;  %v159_v21 = vld [vmem:[%s10367_s0 + $0x3f0] sm:$0xff] }
  0xef   :  { %10464 = vst [vmem:[#allocation61_spill] sm:$0xff] %v7023_v50  ;;  %1003 = vperm.xlu1 %6080, %v6468_v14   ;;  %764 = vperm.xlu0 %6074, %v7018_v7  }
  0xf1   :  { %v7032_v19 = vpop.permute.xlu1 %449 }
  0xf2   :  { %10465 = vst [vmem:[#allocation62_spill] sm:$0xff] %v7032_v19  ;;  %v7034_v1 = vpop.permute.xlu0 %404  ;;  %v6199_v19 = vld [vmem:[%s10368_s3 + $0x8] sm:$0xff]  }
  0xf3   :  { %10466 = vst [vmem:[#allocation63_spill] sm:$0xff] %v7034_v1  ;;  %1007 = vperm.xlu1 %6080, %v6533_v25   ;;  %789 = vperm.xlu0 %6074, %v7030_v12  }
  0xf4   :  { %5924 = vmatprep.subr.bf16.mxu0 %v6199_v19  ;;  %6059 = vmatprep.subr.bf16.mxu1 %v6199_v19 }
  0xf5   :  { %v7041_v50 = vpop.permute.xlu1 %459  ;;  %5925 = vmatpush3.bf16.msra.mxu0 %v6199_v19  ;;  %6063 = vmatpush3.bf16.msra.mxu1 %v6199_v19 }
  0xf6   :  { %10467 = vst [vmem:[#allocation64_spill] sm:$0xff] %v7041_v50  ;;  %v7046_v7 = vpop.permute.xlu0 %414 }
  0xf7   :  { %10468 = vst [vmem:[#allocation65_spill] sm:$0xff] %v7046_v7  ;;  %6081 = vset.pattern.permute.xlu1 %v10431_v3  ;;  %794 = vperm.xlu0 %6074, %v159_v21   ;;  %v6200_v21 = vld [vmem:[%s10368_s3 + $0x10] sm:$0xff]  }
  0xf8   :  { %1771 = vperm.xlu1 %6081, %v6521_v23   ;;  %5926 = vmatprep.subr.bf16.mxu0 %v6200_v21 }
  0xf9   :  { %v7053_v1 = vpop.permute.xlu1 %469  ;;  %6060 = vmatprep.subr.bf16.mxu1 %v6200_v21  ;;  %5927 = vmatpush3.bf16.msra.mxu0 %v6200_v21 }
  0xfa   :  { %10469 = vst [vmem:[#allocation66_spill] sm:$0xff] %v7053_v1  ;;  %v7055_v50 = vpop.permute.xlu0 %424  ;;  %6064 = vmatpush3.bf16.msra.mxu1 %v6200_v21 }
  0xfb   :  { %10470 = vst [vmem:[#allocation67_spill] sm:$0xff] %v7055_v50  ;;  %6186 = vset.pattern.permute.xlu0 %v10431_v3 }
  0xfc   :  { %1779 = vperm.xlu1 %6081, %v6533_v25   ;;  %1711 = vperm.xlu0 %6186, %v6442_v10   ;;  %v6201_v10 = vld [vmem:[%s10368_s3 + $0x18] sm:$0xff]  }
  0xfd   :  { %v7060_v23 = vpop.permute.xlu1 %479  ;;  %5928 = vmatprep.subr.bf16.mxu0 %v6201_v10  ;;  %6061 = vmatprep.subr.bf16.mxu1 %v6201_v10 }
  0xfe   :  { %10471 = vst [vmem:[#allocation68_spill] sm:$0xff] %v7060_v23  ;;  %v7065_v1 = vpop.permute.xlu0 %434  ;;  %5929 = vmatpush3.bf16.msra.mxu0 %v6201_v10  ;;  %6065 = vmatpush3.bf16.msra.mxu1 %v6201_v10 }
  0xff   :  { %10472 = vst [vmem:[#allocation69_spill] sm:$0xff] %v7065_v1 }
 0x100   :  { %1783 = vperm.xlu1 %6081, %v6480_v16   ;;  %1727 = vperm.xlu0 %6186, %v6410_v5   ;;  %v10475_v16 = vmov 0  }
 0x101   :  { %v7069_v9 = vpop.permute.xlu1 %489  ;;  %5074 = vmatprep.subr.bf16.mxu0 %v10475_v16 }
 0x102   :  { %v7074_v25 = vpop.permute.xlu0 %444 }
 0x103   :  { %10473 = vst [vmem:[#allocation70_spill] sm:$0xff] %v7074_v25 }
 0x104   :  { %6082 = vset.pattern.permute.xlu1 %v10424_v26  ;;  %1743 = vperm.xlu0 %6186, %v6429_v8  }
 0x105   :  { %v7078_v19 = vpop.permute.xlu1 %499  ;;  %1019 = vperm.xlu1 %6082, %v6492_v18  }
 0x106   :  { %v7081_v5 = vpop.permute.xlu0 %454 }
 0x107   :  { %10474 = vst [vmem:[#allocation71_spill] sm:$0xff] %v7081_v5 }
 0x108   :  { %1759 = vperm.xlu0 %6186, %v6449_v11  }
 0x109   :  { %v7085_v23 = vpop.permute.xlu1 %509  ;;  %1023 = vperm.xlu1 %6082, %v6557_v29  }
 0x10a   :  { %v7088_v21 = vpop.permute.xlu0 %464 }
 0x10b   :  { %10476 = vst [vmem:[#allocation72_spill] sm:$0xff] %v7088_v21 }
 0x10c   :  { %1775 = vperm.xlu0 %6186, %v6468_v14  }
 0x10d   :  { %v7091_v8 = vpop.permute.xlu1 %519  ;;  %6083 = vset.pattern.permute.xlu1 %v10431_v3 }
 0x10e   :  { %1787 = vperm.xlu1 %6083, %v6545_v27   ;;  %v7095_v5 = vpop.permute.xlu0 %474 }
 0x10f   :  { %10477 = vst [vmem:[#allocation73_spill] sm:$0xff] %v7095_v5 }
 0x110   :  { %1791 = vperm.xlu0 %6186, %v6492_v18  }
 0x111   :  { %v7098_v10 = vpop.permute.xlu1 %529 }
 0x112   :  { %1795 = vperm.xlu1 %6083, %v6557_v29   ;;  %v7101_v11 = vpop.permute.xlu0 %484 }
 0x114   :  { %1967 = vperm.xlu0 %6186, %v6708_v62  }
 0x116   :  { %v7104_v21 = vpop.permute.xlu1 %939  ;;  %1799 = vperm.xlu1 %6083, %v6504_v20   ;;  %v7107_v14 = vpop.permute.xlu0 %494 }
 0x118   :  { %1971 = vperm.xlu0 %6186, %v6776_v49  }
 0x11a   :  { %v7110_v27 = vpop.permute.xlu1 %943  ;;  %6084 = vset.pattern.permute.xlu1 %v10424_v26  ;;  %v7113_v18 = vpop.permute.xlu0 %504 }
 0x11b   :  { %10478 = vst [vmem:[#allocation74_spill] sm:$0xff] %v7113_v18  ;;  %1195 = vperm.xlu1 %6084, %v6708_v62  }
 0x11c   :  { %1807 = vperm.xlu0 %6186, %v6516_v22  }
 0x11e   :  { %v7117_v29 = vpop.permute.xlu0 %514 }
 0x11f   :  { %10479 = vst [vmem:[#allocation75_spill] sm:$0xff] %v7117_v29  ;;  %1199 = vperm.xlu1 %6084, %v6776_v49   ;;  %v7120_v5 = vpop.permute.xlu1 %1707 }
 0x120   :  { %1983 = vperm.xlu0 %6186, %v6734_v46  }
 0x122   :  { %v7123_v20 = vpop.permute.xlu0 %524 }
 0x123   :  { %10480 = vst [vmem:[#allocation76_spill] sm:$0xff] %v7123_v20  ;;  %6085 = vset.pattern.permute.xlu1 %v10431_v3  ;;  %v7126_v25 = vpop.permute.xlu1 %1715 }
 0x124   :  { %1963 = vperm.xlu1 %6085, %v6765_v61   ;;  %1995 = vperm.xlu0 %6186, %v6811_v37  }
 0x126   :  { %v7130_v62 = vpop.permute.xlu0 %539 }
 0x127   :  { %10481 = vst [vmem:[#allocation77_spill] sm:$0xff] %v7130_v62  ;;  %v7132_v1 = vpop.permute.xlu1 %1719 }
 0x128   :  { %6086 = vset.pattern.permute.xlu1 %v10424_v26  ;;  %1819 = vperm.xlu0 %6186, %v6588_v35  }
 0x129   :  { %1031 = vperm.xlu1 %6086, %v6567_v31  }
 0x12a   :  { %v7137_v49 = vpop.permute.xlu0 %549 }
 0x12b   :  { %10482 = vst [vmem:[#allocation78_spill] sm:$0xff] %v7137_v49 }
 0x12c   :  { %v7139_v50 = vpop.permute.xlu1 %955  ;;  %1831 = vperm.xlu0 %6186, %v6552_v28  }
 0x12d   :  { %1035 = vperm.xlu1 %6086, %v6516_v22  }
 0x12e   :  { %v7143_v7 = vpop.permute.xlu0 %554 }
 0x12f   :  { %10483 = vst [vmem:[#allocation79_spill] sm:$0xff] %v7143_v7 }
 0x130   :  { %v7145_v20 = vpop.permute.xlu1 %959  ;;  %2015 = vperm.xlu0 %6186, %v6833_v48  }
 0x131   :  { %6087 = vset.pattern.permute.xlu1 %v10431_v3 }
 0x132   :  { %1975 = vperm.xlu1 %6087, %v6721_v38   ;;  %v7150_v62 = vpop.permute.xlu0 %564 }
 0x133   :  { %10484 = vst [vmem:[#allocation80_spill] sm:$0xff] %v7150_v62 }
 0x134   :  { %2027 = vperm.xlu0 %6186, %v6855_v2  }
 0x135   :  { %v7153_v49 = vpop.permute.xlu1 %1723 }
 0x136   :  { %6088 = vset.pattern.permute.xlu1 %v10424_v26  ;;  %v7156_v29 = vpop.permute.xlu0 %589 }
 0x137   :  { %10485 = vst [vmem:[#allocation81_spill] sm:$0xff] %v7156_v29  ;;  %1043 = vperm.xlu1 %6088, %v6528_v24  }
 0x138   :  { %1835 = vperm.xlu0 %6186, %v6609_v39  }
 0x139   :  { %v7160_v22 = vpop.permute.xlu1 %1731 }
 0x13a   :  { %v7162_v7 = vpop.permute.xlu0 %594 }
 0x13b   :  { %10486 = vst [vmem:[#allocation82_spill] sm:$0xff] %v7162_v7  ;;  %6089 = vset.pattern.permute.xlu1 %v10431_v3 }
 0x13c   :  { %1803 = vperm.xlu1 %6089, %v6567_v31   ;;  %1847 = vperm.xlu0 %6186, %v6573_v32  }
 0x13d   :  { %v7167_v62 = vpop.permute.xlu1 %1735 }
 0x13e   :  { %v7169_v18 = vpop.permute.xlu0 %604 }
 0x13f   :  { %10487 = vst [vmem:[#allocation83_spill] sm:$0xff] %v7169_v18 }
 0x140   :  { %1811 = vperm.xlu1 %6089, %v6578_v33   ;;  %2047 = vperm.xlu0 %6186, %v6866_v56  }
 0x142   :  { %v7173_v29 = vpop.permute.xlu1 %971  ;;  %v7175_v39 = vpop.permute.xlu0 %629 }
 0x143   :  { %10488 = vst [vmem:[#allocation84_spill] sm:$0xff] %v7175_v39 }
 0x144   :  { %1815 = vperm.xlu1 %6089, %v6528_v24   ;;  %2059 = vperm.xlu0 %6186, %v6889_v6  }
 0x146   :  { %v7179_v7 = vpop.permute.xlu1 %975  ;;  %v7181_v31 = vpop.permute.xlu0 %634 }
 0x147   :  { %10489 = vst [vmem:[#allocation85_spill] sm:$0xff] %v7181_v31 }
 0x148   :  { %6090 = vset.pattern.permute.xlu1 %v10424_v26  ;;  %1851 = vperm.xlu0 %6186, %v6627_v43  }
 0x149   :  { %1211 = vperm.xlu1 %6090, %v6734_v46  }
 0x14a   :  { %v7186_v32 = vpop.permute.xlu0 %644 }
 0x14b   :  { %10490 = vst [vmem:[#allocation86_spill] sm:$0xff] %v7186_v32  ;;  %v7188_v33 = vpop.permute.xlu1 %1739 }
 0x14c   :  { %1863 = vperm.xlu0 %6186, %v6594_v36  }
 0x14d   :  { %1215 = vperm.xlu1 %6090, %v6799_v0  }
 0x14e   :  { %v7192_v24 = vpop.permute.xlu0 %669 }
 0x14f   :  { %10491 = vst [vmem:[#allocation87_spill] sm:$0xff] %v7192_v24  ;;  %v7194_v6 = vpop.permute.xlu1 %1747 }
 0x150   :  { %2079 = vperm.xlu0 %6186, %v6900_v13  }
 0x151   :  { %6091 = vset.pattern.permute.xlu1 %v10431_v3 }
 0x152   :  { %1979 = vperm.xlu1 %6091, %v6788_v63   ;;  %v7199_v43 = vpop.permute.xlu0 %674 }
 0x153   :  { %10492 = vst [vmem:[#allocation88_spill] sm:$0xff] %v7199_v43  ;;  %v7201_v46 = vpop.permute.xlu1 %1751 }
 0x154   :  { %2091 = vperm.xlu0 %6186, %v6923_v55  }
 0x156   :  { %1987 = vperm.xlu1 %6091, %v6799_v0   ;;  %v7205_v36 = vpop.permute.xlu0 %684 }
 0x157   :  { %10493 = vst [vmem:[#allocation89_spill] sm:$0xff] %v7205_v36 }
 0x158   :  { %v7207_v32 = vpop.permute.xlu1 %987  ;;  %1867 = vperm.xlu0 %6186, %v6645_v47   ;;  %v7226_v47 = vld [vmem:[%s10367_s0 + $0x250] sm:$0xff] }
 0x15a   :  { %1991 = vperm.xlu1 %6091, %v6747_v54   ;;  %v7211_v13 = vpop.permute.xlu0 %709 }
 0x15b   :  { %10494 = vst [vmem:[#allocation90_spill] sm:$0xff] %v7211_v13 }
 0x15c   :  { %v7213_v24 = vpop.permute.xlu1 %991  ;;  %1879 = vperm.xlu0 %6186, %v6615_v40   ;;  %v802_v40 = vlaneseq }
 0x15e   :  { %6092 = vset.pattern.permute.xlu1 %v10424_v26  ;;  %v7217_v43 = vpop.permute.xlu0 %714 }
 0x15f   :  { %10495 = vst [vmem:[#allocation91_spill] sm:$0xff] %v7217_v43  ;;  %1227 = vperm.xlu1 %6092, %v6760_v60  }
 0x160   :  { %2111 = vperm.xlu0 %6186, %v6935_v4   ;;  %v7239_v4 = vshrl.u32 %v802_v40, 7 }
 0x161   :  { %v7221_v0 = vpop.permute.xlu1 %1755 }
 0x162   :  { %10496 = vst [vmem:[#allocation92_spill] sm:$0xff] %v7221_v0  ;;  %v7228_v55 = vpop.permute.xlu0 %724  ;;  %10499 = vst [vmem:[#allocation95_spill] sm:$0xff] %v7239_v4  ;;  %v10396_v31 = vsub.s32 1, %v7239_v4  ;;  %v10508_v0 = vld [vmem:[#allocation6_spill] sm:$0xff] }
 0x163   :  { %10497 = vst [vmem:[#allocation93_spill] sm:$0xff] %v7228_v55  ;;  %6093 = vset.pattern.permute.xlu1 %v10475_v16 }
 0x164   :  { %534 = vperm.xlu1 %6093, %v7226_v47   ;;  %2123 = vperm.xlu0 %6186, %v6957_v57   ;;  %v10397_v57 = vsub.s32 0, %v7239_v4 }
 0x165   :  { %v7233_v43 = vpop.permute.xlu1 %1763 }
 0x166   :  { %v7235_v13 = vpop.permute.xlu0 %749 }
 0x167   :  { %10498 = vst [vmem:[#allocation94_spill] sm:$0xff] %v7235_v13 }
 0x168   :  { %6094 = vset.pattern.permute.xlu1 %v10424_v26  ;;  %1883 = vperm.xlu0 %6186, %v6663_v51   ;;  %v161_v51 = vld [vmem:[%s10369_s1] sm:$0x7] }
 0x169   :  { %1231 = vperm.xlu1 %6094, %v7226_v47   ;;  %v7242_v55 = vpop.permute.xlu1 %1767  ;;  %v7259_v39 = vrot.slane %v161_v51, %v10396_v31 }
 0x16a   :  { %10500 = vst [vmem:[#allocation96_spill] sm:$0xff] %v7242_v55  ;;  %v7244_v36 = vpop.permute.xlu0 %754 }
 0x16b   :  { %10501 = vst [vmem:[#allocation97_spill] sm:$0xff] %v7244_v36  ;;  %v2220_v36 = vsub.s32 2, %v7239_v4  ;;  %v1450_v18 = vmul.f32 %v7259_v39, %v6715_v34  ;;  %v1452_v34 = vmul.f32 %v7259_v39, %v7110_v27 }
 0x16c   :  { %1895 = vperm.xlu0 %6186, %v6633_v44   ;;  %v7265_v44 = vrot.slane %v161_v51, %v10397_v57 }
 0x16d   :  { %1235 = vperm.xlu1 %6094, %v6822_v59   ;;  %v7281_v4 = vrot.slane %v161_v51, %v2220_v36 }
 0x16e   :  { %v7253_v40 = vpop.permute.xlu1 %1003  ;;  %v7255_v13 = vpop.permute.xlu0 %764  ;;  %v809_v31 = vmul.f32 %v7265_v44, %v6726_v42  ;;  %v806_v57 = vmul.f32 %v7265_v44, %v6770_v41  ;;  %v1454_v42 = vmul.f32 %v7259_v39, %v6741_v53  ;;  %v10507_v53 = vld [vmem:[#allocation13_spill] sm:$0xff] }
 0x16f   :  { %10502 = vst [vmem:[#allocation98_spill] sm:$0xff] %v7253_v40  ;;  %10503 = vst [vmem:[#allocation99_spill] sm:$0xff] %v7255_v13  ;;  %v2222_v27 = vmul.f32 %v7281_v4, %v7120_v5  ;;  %v807_v51 = vmul.f32 %v7265_v44, %v10507_v53  ;;  %v2226_v5 = vmul.f32 %v7281_v4, %v7153_v49 }
 0x170   :  { %2143 = vperm.xlu0 %6186, %v6968_v58   ;;  %v1453_v58 = vmul.f32 %v7259_v39, %v6728_v45  ;;  %v810_v45 = vmul.f32 %v7265_v44, %v6792_v52  ;;  %v1578_v36 = vadd.f32 %v1450_v18, %v806_v57  ;;  %v1451_v52 = vmul.f32 %v7259_v39, %v7104_v21 }
 0x171   :  { %6095 = vset.pattern.permute.xlu1 %v10431_v3  ;;  %v1455_v49 = vmul.f32 %v7259_v39, %v7139_v50  ;;  %v2229_v50 = vmul.f32 %v7281_v4, %v7167_v62 }
 0x172   :  { %1999 = vperm.xlu1 %6095, %v6760_v60   ;;  %v7271_v13 = vpop.permute.xlu1 %1007  ;;  %v7273_v55 = vpop.permute.xlu0 %789  ;;  %v2225_v60 = vmul.f32 %v7281_v4, %v7132_v1  ;;  %v2224_v1 = vmul.f32 %v7281_v4, %v7126_v25  ;;  %v1582_v57 = vadd.f32 %v1454_v42, %v810_v45  ;;  %v10512_v42 = vld [vmem:[#allocation8_spill] sm:$0xff] }
 0x173   :  { %10504 = vst [vmem:[#allocation100_spill] sm:$0xff] %v7273_v55  ;;  %v808_v55 = vmul.f32 %v7265_v44, %v6713_v30  ;;  %v811_v45 = vmul.f32 %v7265_v44, %v10512_v42 }
 0x174   :  { %2155 = vperm.xlu0 %6186, %v6987_v15   ;;  %v1581_v15 = vadd.f32 %v1453_v58, %v809_v31  ;;  %v10509_v58 = vld [vmem:[#allocation9_spill] sm:$0xff] }
 0x175   :  { %v1580_v31 = vadd.f32 %v1452_v34, %v808_v55  ;;  %v813_v25 = vmul.f32 %v7265_v44, %v10509_v58  ;;  %v7321_v55 = vld [vmem:[%s10370_s2] ss:$0 sm:$0xff] }
 0x176   :  { %6096 = vset.pattern.permute.xlu1 %v10424_v26  ;;  %v7295_v41 = vpop.permute.xlu0 %794  ;;  %v2353_v18 = vadd.f32 %v2225_v60, %v1581_v15  ;;  %v10511_v60 = vld [vmem:[#allocation4_spill] sm:$0xff] }
 0x177   :  { %10505 = vst [vmem:[#allocation101_spill] sm:$0xff] %v7295_v41  ;;  %1047 = vperm.xlu1 %6096, %v6588_v35   ;;  %v7302_v30 = vpop.permute.xlu1 %1771  ;;  %v10510_v35 = vld [vmem:[#allocation10_spill] sm:$0xff]  ;;  %v2352_v40 = vadd.f32 %v2224_v1, %v1580_v31  ;;  %v10513_v15 = vld [vmem:[#allocation16_spill] sm:$0xff]  ;;  %v1456_v1 = vmul.f32 %v7259_v39, %v7145_v20 }
 0x178   :  { %10506 = vst [vmem:[#allocation102_spill] sm:$0xff] %v7302_v30  ;;  %1899 = vperm.xlu0 %6186, %v10508_v0   ;;  %v1457_v41 = vmul.f32 %v7259_v39, %v10510_v35  ;;  %v2350_v30 = vadd.f32 %v2222_v27, %v1578_v36  ;;  %v1579_v0 = vadd.f32 %v1451_v52, %v807_v51 }
 0x179   :  { %v812_v36 = vmul.f32 %v7265_v44, %v10513_v15  ;;  %v2488_v27 = vadd.f32 %v7321_v55, %v2353_v18  ;;  %v2354_v51 = vadd.f32 %v2226_v5, %v1582_v57  ;;  %v2228_v18 = vmul.f32 %v7281_v4, %v7160_v22 }
 0x17a   :  { %v1585_v31 = vadd.f32 %v1457_v41, %v813_v25 }
 0x17b   :  { %6097 = vset.pattern.permute.xlu1 %v10431_v3  ;;  %v7316_v53 = vpop.permute.xlu1 %1779  ;;  %v1712_v21 = vpop.permute.xlu0 %1711  ;;  %v2616_v20 = vmax.f32 %v2488_v27, 0.0  ;;  %v1584_v41 = vadd.f32 %v1456_v1, %v812_v36 }
 0x17c   :  { %v2223_v34 = vmul.f32 %v7281_v4, %v1712_v21  ;;  %2003 = vperm.xlu1 %6097, %v7226_v47   ;;  %1911 = vperm.xlu0 %6186, %v10511_v60   ;;  %v2487_v47 = vadd.f32 %v7321_v55, %v2352_v40  ;;  %v2485_v21 = vadd.f32 %v7321_v55, %v2350_v30 }
 0x17d   :  { %v1583_v60 = vadd.f32 %v1455_v49, %v811_v45  ;;  %v2489_v40 = vadd.f32 %v7321_v55, %v2354_v51  ;;  %v2357_v57 = vadd.f32 %v2229_v50, %v1585_v31  ;;  %v2356_v22 = vadd.f32 %v2228_v18, %v1584_v41  ;;  %v10515_v31 = vld [vmem:[#allocation7_spill] sm:$0xff]  ;;  %v10517_v18 = vld [vmem:[#allocation5_spill] sm:$0xff] }
 0x17e   :  { %v2351_v52 = vadd.f32 %v2223_v34, %v1579_v0  ;;  %v2613_v30 = vmax.f32 %v2485_v21, 0.0  ;;  %v2615_v49 = vmax.f32 %v2487_v47, 0.0 }
 0x17f   :  { %v7338_v58 = vpop.permute.xlu1 %1783  ;;  %v1728_v35 = vpop.permute.xlu0 %1727  ;;  %v2617_v15 = vmax.f32 %v2489_v40, 0.0  ;;  %v2492_v36 = vadd.f32 %v7321_v55, %v2357_v57  ;;  %v2491_v50 = vadd.f32 %v7321_v55, %v2356_v22  ;;  %v109_v40 = vld [vmem:[%s10367_s0 + $0x260] sm:$0xff] }
 0x180   :  { %v2227_v42 = vmul.f32 %v7281_v4, %v1728_v35  ;;  %2007 = vperm.xlu1 %6097, %v6822_v59   ;;  %2175 = vperm.xlu0 %6186, %v6999_v17   ;;  %v2486_v62 = vadd.f32 %v7321_v55, %v2351_v52  ;;  %v10514_v17 = vld [vmem:[#allocation59_spill] sm:$0xff]  ;;  %v2742_v1 = vpack.c.bf16 %v2616_v20, %v2615_v49  ;;  %v10516_v35 = vld [vmem:[#allocation2_spill] sm:$0xff]  ;;  %v6243_v49 = vld [vmem:[%s10367_s0 + $0x58] sm:$0xff] }
 0x181   :  { %v10519_v20 = vld [vmem:[#allocation3_spill] sm:$0xff] }
 0x182   :  { %v2355_v5 = vadd.f32 %v2227_v42, %v1583_v60  ;;  %v2614_v0 = vmax.f32 %v2486_v62, 0.0  ;;  %v2619_v60 = vmax.f32 %v2491_v50, 0.0  ;;  %v6246_v50 = vld [vmem:[%s10367_s0 + $0x80] sm:$0xff] }
 0x183   :  { %v7348_v25 = vpop.permute.xlu0 %1743 }
 0x184   :  { %v2490_v34 = vadd.f32 %v7321_v55, %v2355_v5  ;;  %6098 = vset.pattern.permute.xlu1 %v10424_v26  ;;  %v7352_v59 = vpop.permute.xlu1 %1019  ;;  %2187 = vperm.xlu0 %6186, %v10514_v17   ;;  %v2741_v45 = vpack.c.bf16 %v2614_v0, %v2613_v30  ;;  %v6242_v0 = vld [vmem:[%s10367_s0 + $0x40] sm:$0xff] }
 0x185   :  { %1059 = vperm.xlu1 %6098, %v6552_v28   ;;  %v2620_v28 = vmax.f32 %v2492_v36, 0.0  ;;  %v6244_v17 = vld [vmem:[%s10367_s0 + $0x60] sm:$0xff] }
 0x186   :  { %v2618_v27 = vmax.f32 %v2490_v34, 0.0  ;;  %5930 = vmatprep.mubr.msk.bf16.mxu0 %vm2844_vm0, %v2741_v45 }
 0x187   :  { %v7358_v51 = vpop.permute.xlu0 %1759  ;;  %5931 = vmatmul.mubr.msk.bf16.vlgmr.msra.gmra.mrb[0].mxu0 %vm2844_vm0, %v2742_v1  ;;  %v2744_v62 = vpack.c.bf16 %v2620_v28, %v2619_v60  ;;  %v6247_v28 = vld [vmem:[%s10367_s0 + $0x98] sm:$0xff] }
 0x188   :  { %v7362_v52 = vpop.permute.xlu1 %1023  ;;  %1915 = vperm.xlu0 %6186, %v10515_v31   ;;  %v2743_v47 = vpack.c.bf16 %v2618_v27, %v2617_v15  ;;  %v112_v15 = vld [vmem:[%s10367_s0 + $0x278] sm:$0xff] }
 0x189   :  { %6099 = vset.pattern.permute.xlu1 %v10431_v3 }
 0x18a   :  { %1823 = vperm.xlu1 %6099, %v10516_v35   ;;  %5934 = vmatprep.mubr.msk.bf16.mxu0 %vm2844_vm0, %v2743_v47 }
 0x18b   :  { %v7368_v21 = vpop.permute.xlu0 %1775 }
 0x18c   :  { %1927 = vperm.xlu0 %6186, %v10517_v18   ;;  %v6248_v18 = vld [vmem:[%s10367_s0 + $0xa0] sm:$0xff] }
 0x18d   :  { %v7371_v42 = vpop.permute.xlu1 %1787 }
 0x18e   :  { %10518 = vst [vmem:[#allocation13_spill] sm:$0xff] %v7371_v42  ;;  %1827 = vperm.xlu1 %6099, %v10519_v20   ;;  %v10527_v20 = vld [vmem:[#allocation23_spill] sm:$0xff] }
 0x18f   :  { %v7374_v41 = vpop.permute.xlu0 %1791  ;;  %5935 = vmatmul.mubr.msk.bf16.gmra.mrb[4].mxu0 %vm2844_vm0, %v2744_v62 }
 0x190   :  { %2207 = vperm.xlu0 %6186, %v7030_v12  }
 0x191   :  { %v7381_v57 = vpop.permute.xlu1 %1795 }
 0x192   :  { %6100 = vset.pattern.permute.xlu1 %v10475_v16 }
 0x193   :  { %544 = vperm.xlu1 %6100, %v109_v40   ;;  %v7384_v5 = vpop.permute.xlu0 %1967 }
 0x194   :  { %6190 = vset.pattern.permute.xlu0 %v10424_v26 }
 0x195   :  { %v7387_v30 = vpop.permute.xlu1 %1799  ;;  %967 = vperm.xlu0 %6190, %v6242_v0  }
 0x196   :  { %10520 = vst [vmem:[#allocation6_spill] sm:$0xff] %v7387_v30  ;;  %v10593_v30 = vld [vmem:[#allocation27_spill] sm:$0xff] }
 0x197   :  { %6101 = vset.pattern.permute.xlu1 %v10424_v26  ;;  %v7393_v12 = vpop.permute.xlu0 %1971 }
 0x198   :  { %1239 = vperm.xlu1 %6101, %v109_v40  }
 0x199   :  { %979 = vperm.xlu0 %6190, %v6243_v49   ;;  %v6249_v49 = vld [vmem:[%s10367_s0 + $0xb8] sm:$0xff] }
 0x19a   :  { %v7398_v22 = vpop.permute.xlu1 %1195 }
 0x19b   :  { %v7400_v34 = vpop.permute.xlu0 %1807 }
 0x19c   :  { %10521 = vst [vmem:[#allocation9_spill] sm:$0xff] %v7400_v34  ;;  %1243 = vperm.xlu1 %6101, %v6833_v48   ;;  %v6245_v48 = vld [vmem:[%s10367_s0 + $0x78] sm:$0xff]  ;;  %v10609_v34 = vld [vmem:[#allocation43_spill] sm:$0xff] }
 0x19d   :  { %983 = vperm.xlu0 %6190, %v6244_v17   ;;  %v114_v17 = vld [vmem:[%s10367_s0 + $0x288] sm:$0xff] }
 0x19e   :  { %v7406_v45 = vpop.permute.xlu1 %1199 }
 0x19f   :  { %v7411_v36 = vpop.permute.xlu0 %1983 }
 0x1a0   :  { %10522 = vst [vmem:[#allocation10_spill] sm:$0xff] %v7411_v36  ;;  %6102 = vset.pattern.permute.xlu1 %v10475_v16  ;;  %v10591_v36 = vld [vmem:[#allocation26_spill] sm:$0xff] }
 0x1a1   :  { %559 = vperm.xlu1 %6102, %v112_v15   ;;  %995 = vperm.xlu0 %6190, %v6245_v48  }
 0x1a3   :  { %v7417_v27 = vpop.permute.xlu1 %1963  ;;  %v7419_v1 = vpop.permute.xlu0 %1995 }
 0x1a4   :  { %10523 = vst [vmem:[#allocation4_spill] sm:$0xff] %v7417_v27  ;;  %10524 = vst [vmem:[#allocation8_spill] sm:$0xff] %v7419_v1 }
 0x1a5   :  { %6103 = vset.pattern.permute.xlu1 %v10424_v26  ;;  %999 = vperm.xlu0 %6190, %v6246_v50  }
 0x1a6   :  { %1251 = vperm.xlu1 %6103, %v112_v15  }
 0x1a7   :  { %v7425_v31 = vpop.permute.xlu0 %1819 }
 0x1a8   :  { %10525 = vst [vmem:[#allocation16_spill] sm:$0xff] %v7425_v31  ;;  %v7427_v47 = vpop.permute.xlu1 %1031 }
 0x1a9   :  { %1011 = vperm.xlu0 %6190, %v6247_v28  }
 0x1aa   :  { %6104 = vset.pattern.permute.xlu1 %v10431_v3 }
 0x1ab   :  { %2011 = vperm.xlu1 %6104, %v109_v40   ;;  %v7433_v35 = vpop.permute.xlu0 %1831 }
 0x1ac   :  { %10526 = vst [vmem:[#allocation59_spill] sm:$0xff] %v7433_v35  ;;  %v7435_v60 = vpop.permute.xlu1 %1035  ;;  %v7587_v35 = vld [vmem:[%s10367_s0 + $0x130] sm:$0xff] }
 0x1ad   :  { %1015 = vperm.xlu0 %6190, %v6248_v18   ;;  %10565 = vst [vmem:[#allocation133_spill] sm:$0xff] %v7587_v35 }
 0x1af   :  { %2019 = vperm.xlu1 %6104, %v10527_v20   ;;  %v7441_v62 = vpop.permute.xlu0 %2015 }
 0x1b0   :  { %10528 = vst [vmem:[#allocation7_spill] sm:$0xff] %v7441_v62 }
 0x1b1   :  { %v7443_v0 = vpop.permute.xlu1 %1975  ;;  %1027 = vperm.xlu0 %6190, %v6249_v49  }
 0x1b2   :  { %10529 = vst [vmem:[#allocation2_spill] sm:$0xff] %v7443_v0 }
 0x1b3   :  { %2023 = vperm.xlu1 %6104, %v112_v15   ;;  %v7448_v40 = vpop.permute.xlu0 %2027 }
 0x1b4   :  { %10530 = vst [vmem:[#allocation5_spill] sm:$0xff] %v7448_v40 }
 0x1b5   :  { %1191 = vperm.xlu0 %6190, %v6765_v61   ;;  %v6250_v61 = vld [vmem:[%s10367_s0 + $0xd0] sm:$0xff] }
 0x1b6   :  { %v7454_v48 = vpop.permute.xlu1 %1043 }
 0x1b7   :  { %10531 = vst [vmem:[#allocation3_spill] sm:$0xff] %v7454_v48  ;;  %6105 = vset.pattern.permute.xlu1 %v10475_v16  ;;  %v7457_v50 = vpop.permute.xlu0 %1835  ;;  %v10590_v48 = vld [vmem:[#allocation25_spill] sm:$0xff] }
 0x1b8   :  { %10532 = vst [vmem:[#allocation23_spill] sm:$0xff] %v7457_v50  ;;  %569 = vperm.xlu1 %6105, %v114_v17  }
 0x1b9   :  { %1203 = vperm.xlu0 %6190, %v6721_v38   ;;  %v115_v38 = vld [vmem:[%s10367_s0 + $0x290] sm:$0xff] }
 0x1bb   :  { %v7460_v28 = vpop.permute.xlu1 %1803  ;;  %v7462_v15 = vpop.permute.xlu0 %1847 }
 0x1bc   :  { %10533 = vst [vmem:[#allocation103_spill] sm:$0xff] %v7460_v28  ;;  %10534 = vst [vmem:[#allocation104_spill] sm:$0xff] %v7462_v15  ;;  %6106 = vset.pattern.permute.xlu1 %v10424_v26  ;;  %v10608_v28 = vld [vmem:[#allocation41_spill] sm:$0xff] }
 0x1bd   :  { %1255 = vperm.xlu1 %6106, %v6855_v2   ;;  %1039 = vperm.xlu0 %6190, %v6250_v61   ;;  %v116_v61 = vld [vmem:[%s10367_s0 + $0x298] sm:$0xff] }
 0x1bf   :  { %v7469_v18 = vpop.permute.xlu1 %1811  ;;  %v7471_v49 = vpop.permute.xlu0 %2047 }
 0x1c0   :  { %10535 = vst [vmem:[#allocation105_spill] sm:$0xff] %v7469_v18  ;;  %10536 = vst [vmem:[#allocation106_spill] sm:$0xff] %v7471_v49 }
 0x1c1   :  { %6107 = vset.pattern.permute.xlu1 %v10475_v16  ;;  %1207 = vperm.xlu0 %6190, %v6788_v63  }
 0x1c2   :  { %574 = vperm.xlu1 %6107, %v115_v38  }
 0x1c3   :  { %v7478_v15 = vpop.permute.xlu1 %1815  ;;  %v7480_v2 = vpop.permute.xlu0 %2059 }
 0x1c4   :  { %10537 = vst [vmem:[#allocation107_spill] sm:$0xff] %v7478_v15  ;;  %10538 = vst [vmem:[#allocation108_spill] sm:$0xff] %v7480_v2  ;;  %v6251_v2 = vld [vmem:[%s10367_s0 + $0xe8] sm:$0xff]  ;;  %v10585_v15 = vld [vmem:[#allocation21_spill] sm:$0xff] }
 0x1c5   :  { %1219 = vperm.xlu0 %6190, %v6747_v54  }
 0x1c6   :  { %579 = vperm.xlu1 %6107, %v116_v61  }
 0x1c7   :  { %v7486_v49 = vpop.permute.xlu0 %1851 }
 0x1c8   :  { %10539 = vst [vmem:[#allocation109_spill] sm:$0xff] %v7486_v49  ;;  %v7488_v50 = vpop.permute.xlu1 %1211 }
 0x1c9   :  { %10540 = vst [vmem:[#allocation110_spill] sm:$0xff] %v7488_v50  ;;  %1223 = vperm.xlu0 %6190, %v6811_v37   ;;  %v6252_v37 = vld [vmem:[%s10367_s0 + $0xf0] sm:$0xff] }
 0x1ca   :  { %6108 = vset.pattern.permute.xlu1 %v10424_v26 }
 0x1cb   :  { %1267 = vperm.xlu1 %6108, %v116_v61   ;;  %v7492_v63 = vpop.permute.xlu0 %1863 }
 0x1cc   :  { %10541 = vst [vmem:[#allocation111_spill] sm:$0xff] %v7492_v63  ;;  %v7494_v40 = vpop.permute.xlu1 %1215 }
 0x1cd   :  { %10542 = vst [vmem:[#allocation112_spill] sm:$0xff] %v7494_v40  ;;  %1051 = vperm.xlu0 %6190, %v6251_v2   ;;  %v6253_v2 = vld [vmem:[%s10367_s0 + $0x100] sm:$0xff]  ;;  %v10583_v40 = vld [vmem:[#allocation19_spill] sm:$0xff] }
 0x1cf   :  { %6109 = vset.pattern.permute.xlu1 %v10431_v3  ;;  %v7500_v54 = vpop.permute.xlu0 %2079 }
 0x1d0   :  { %10543 = vst [vmem:[#allocation113_spill] sm:$0xff] %v7500_v54  ;;  %2031 = vperm.xlu1 %6109, %v114_v17  }
 0x1d1   :  { %v7502_v49 = vpop.permute.xlu1 %1979  ;;  %1055 = vperm.xlu0 %6190, %v6252_v37  }
 0x1d2   :  { %10544 = vst [vmem:[#allocation114_spill] sm:$0xff] %v7502_v49 }
 0x1d3   :  { %v7507_v63 = vpop.permute.xlu0 %2091 }
 0x1d4   :  { %10545 = vst [vmem:[#allocation115_spill] sm:$0xff] %v7507_v63  ;;  %6110 = vset.pattern.permute.xlu1 %v10424_v26 }
 0x1d5   :  { %1063 = vperm.xlu1 %6110, %v6253_v2   ;;  %v7513_v62 = vpop.permute.xlu1 %1987  ;;  %1247 = vperm.xlu0 %6190, %v10527_v20   ;;  %v6254_v20 = vld [vmem:[%s10367_s0 + $0x108] sm:$0xff] }
 0x1d6   :  { %10546 = vst [vmem:[#allocation116_spill] sm:$0xff] %v7513_v62  ;;  %v10577_v62 = vld [vmem:[#allocation12_spill] sm:$0xff] }
 0x1d7   :  { %v7516_v54 = vpop.permute.xlu0 %1867 }
 0x1d8   :  { %10547 = vst [vmem:[#allocation117_spill] sm:$0xff] %v7516_v54  ;;  %v10556_v54 = vld [vmem:[#allocation30_spill] sm:$0xff] }
 0x1d9   :  { %6111 = vset.pattern.permute.xlu1 %v10431_v3  ;;  %v7519_v49 = vpop.permute.xlu1 %1991  ;;  %1259 = vperm.xlu0 %6190, %v114_v17   ;;  %v6255_v17 = vld [vmem:[%s10367_s0 + $0x118] sm:$0xff] }
 0x1da   :  { %10548 = vst [vmem:[#allocation118_spill] sm:$0xff] %v7519_v49  ;;  %2035 = vperm.xlu1 %6111, %v115_v38  }
 0x1db   :  { %v7521_v37 = vpop.permute.xlu0 %1879 }
 0x1dc   :  { %10549 = vst [vmem:[#allocation119_spill] sm:$0xff] %v7521_v37 }
 0x1dd   :  { %1263 = vperm.xlu0 %6190, %v115_v38  }
 0x1de   :  { %2039 = vperm.xlu1 %6111, %v116_v61   ;;  %v7523_v63 = vpop.permute.xlu1 %1227  ;;  %v6256_v61 = vld [vmem:[%s10367_s0 + $0x110] sm:$0xff] }
 0x1df   :  { %10550 = vst [vmem:[#allocation120_spill] sm:$0xff] %v7523_v63  ;;  %v7525_v18 = vpop.permute.xlu0 %2111  ;;  %v10576_v63 = vld [vmem:[#allocation11_spill] sm:$0xff] }
 0x1e0   :  { %10551 = vst [vmem:[#allocation121_spill] sm:$0xff] %v7525_v18 }
 0x1e1   :  { %1067 = vperm.xlu0 %6190, %v6254_v20  }
 0x1e2   :  { %6112 = vset.pattern.permute.xlu1 %v10424_v26 }
 0x1e3   :  { %1075 = vperm.xlu1 %6112, %v6255_v17   ;;  %v7534_v2 = vpop.permute.xlu1 %534  ;;  %v7536_v38 = vpop.permute.xlu0 %2123  ;;  %v7550_v17 = vld [vmem:[%s10367_s0 + $0x2c8] sm:$0xff] }
 0x1e4   :  { %10552 = vst [vmem:[#allocation122_spill] sm:$0xff] %v7534_v2  ;;  %10553 = vst [vmem:[#allocation123_spill] sm:$0xff] %v7536_v38 }
 0x1e5   :  { %1071 = vperm.xlu0 %6190, %v6256_v61  }
 0x1e7   :  { %6113 = vset.pattern.permute.xlu1 %v10431_v3  ;;  %v7542_v18 = vpop.permute.xlu0 %1883 }
 0x1e8   :  { %10554 = vst [vmem:[#allocation124_spill] sm:$0xff] %v7542_v18  ;;  %1839 = vperm.xlu1 %6113, %v6254_v20   ;;  %v7544_v37 = vpop.permute.xlu1 %1231  ;;  %v117_v20 = vld [vmem:[%s10367_s0 + $0x2a0] sm:$0xff]  ;;  %v7563_v18 = vld [vmem:[%s10367_s0 + $0x2d0] sm:$0xff] }
 0x1e9   :  { %10555 = vst [vmem:[#allocation125_spill] sm:$0xff] %v7544_v37  ;;  %1279 = vperm.xlu0 %6190, %v10556_v54  }
 0x1eb   :  { %v7552_v38 = vpop.permute.xlu0 %1895 }
 0x1ec   :  { %10557 = vst [vmem:[#allocation30_spill] sm:$0xff] %v7552_v38  ;;  %1843 = vperm.xlu1 %6113, %v6256_v61   ;;  %v7554_v49 = vpop.permute.xlu1 %1235 }
 0x1ed   :  { %10558 = vst [vmem:[#allocation126_spill] sm:$0xff] %v7554_v49  ;;  %1291 = vperm.xlu0 %6190, %v7550_v17   ;;  %v7577_v49 = vld [vmem:[%s10367_s0 + $0x128] sm:$0xff] }
 0x1ee   :  { %10562 = vst [vmem:[#allocation130_spill] sm:$0xff] %v7577_v49 }
 0x1ef   :  { %v7565_v2 = vpop.permute.xlu0 %2143 }
 0x1f0   :  { %10559 = vst [vmem:[#allocation127_spill] sm:$0xff] %v7565_v2  ;;  %6114 = vset.pattern.permute.xlu1 %v10475_v16 }
 0x1f1   :  { %584 = vperm.xlu1 %6114, %v117_v20   ;;  %v7568_v38 = vpop.permute.xlu1 %1999  ;;  %1295 = vperm.xlu0 %6190, %v7563_v18  }
 0x1f2   :  { %10560 = vst [vmem:[#allocation128_spill] sm:$0xff] %v7568_v38 }
 0x1f3   :  { %v7571_v61 = vpop.permute.xlu0 %2155 }
 0x1f4   :  { %10561 = vst [vmem:[#allocation129_spill] sm:$0xff] %v7571_v61 }
 0x1f5   :  { %6115 = vset.pattern.permute.xlu1 %v10424_v26  ;;  %1083 = vperm.xlu0 %6190, %v7577_v49   ;;  %v120_v49 = vld [vmem:[%s10367_s0 + $0x2b8] sm:$0xff] }
 0x1f6   :  { %1271 = vperm.xlu1 %6115, %v117_v20   ;;  %v7580_v2 = vpop.permute.xlu1 %1047 }
 0x1f7   :  { %10563 = vst [vmem:[#allocation131_spill] sm:$0xff] %v7580_v2  ;;  %v7582_v37 = vpop.permute.xlu0 %1899  ;;  %v10568_v2 = vld [vmem:[#allocation37_spill] sm:$0xff] }
 0x1f8   :  { %10564 = vst [vmem:[#allocation132_spill] sm:$0xff] %v7582_v37  ;;  %v130_v37 = vld [vmem:[%s10367_s0 + $0x308] sm:$0xff] }
 0x1f9   :  { %1087 = vperm.xlu0 %6190, %v7587_v35  }
 0x1fa   :  { %1275 = vperm.xlu1 %6115, %v6866_v56  }
 0x1fb   :  { %v7591_v61 = vpop.permute.xlu1 %2003  ;;  %v7593_v38 = vpop.permute.xlu0 %1911 }
 0x1fc   :  { %10566 = vst [vmem:[#allocation134_spill] sm:$0xff] %v7591_v61  ;;  %10567 = vst [vmem:[#allocation135_spill] sm:$0xff] %v7593_v38  ;;  %v131_v38 = vld [vmem:[%s10367_s0 + $0x310] sm:$0xff] }
 0x1fd   :  { %1311 = vperm.xlu0 %6190, %v10568_v2  }
 0x1fe   :  { %6116 = vset.pattern.permute.xlu1 %v10475_v16 }
 0x1ff   :  { %599 = vperm.xlu1 %6116, %v120_v49   ;;  %v7603_v35 = vpop.permute.xlu1 %2007  ;;  %v7605_v56 = vpop.permute.xlu0 %2175 }
 0x200   :  { %10569 = vst [vmem:[#allocation37_spill] sm:$0xff] %v7603_v35  ;;  %10570 = vst [vmem:[#allocation136_spill] sm:$0xff] %v7605_v56 }
 0x201   :  { %1323 = vperm.xlu0 %6190, %v130_v37   ;;  %v6259_v37 = vld [vmem:[%s10367_s0 + $0x148] sm:$0xff] }
 0x203   :  { %6117 = vset.pattern.permute.xlu1 %v10424_v26  ;;  %v7611_v61 = vpop.permute.xlu0 %2187 }
 0x204   :  { %10571 = vst [vmem:[#allocation137_spill] sm:$0xff] %v7611_v61  ;;  %1283 = vperm.xlu1 %6117, %v120_v49   ;;  %v7613_v2 = vpop.permute.xlu1 %1059  ;;  %v815_v61 = vmul.f32 %v7265_v44, %v10576_v63 }
 0x205   :  { %10572 = vst [vmem:[#allocation138_spill] sm:$0xff] %v7613_v2  ;;  %1327 = vperm.xlu0 %6190, %v131_v38   ;;  %v7629_v38 = vmul.f32 %v7265_v44, %v10577_v62  ;;  %v10581_v2 = vld [vmem:[#allocation17_spill] sm:$0xff] }
 0x206   :  { %v7647_v62 = vmul.f32 %v7265_v44, %v10581_v2  ;;  %v10587_v2 = vld [vmem:[#allocation22_spill] sm:$0xff] }
 0x207   :  { %v7615_v31 = vpop.permute.xlu0 %1915  ;;  %v7667_v50 = vmul.f32 %v7265_v44, %v10587_v2  ;;  %v10594_v2 = vld [vmem:[#allocation28_spill] sm:$0xff] }
 0x208   :  { %10573 = vst [vmem:[#allocation139_spill] sm:$0xff] %v7615_v31  ;;  %6118 = vset.pattern.permute.xlu1 %v10431_v3  ;;  %v7687_v42 = vmul.f32 %v7265_v44, %v10594_v2  ;;  %v10601_v2 = vld [vmem:[#allocation32_spill] sm:$0xff] }
 0x209   :  { %2043 = vperm.xlu1 %6118, %v117_v20   ;;  %v7618_v35 = vpop.permute.xlu1 %1823  ;;  %1099 = vperm.xlu0 %6190, %v6259_v37   ;;  %v6260_v20 = vld [vmem:[%s10367_s0 + $0x150] sm:$0xff] }
 0x20a   :  { %10574 = vst [vmem:[#allocation140_spill] sm:$0xff] %v7618_v35  ;;  %v10579_v35 = vld [vmem:[#allocation14_spill] sm:$0xff]  ;;  %10595 = vst [vmem:[#allocation17_spill] sm:$0xff] %v7687_v42 }
 0x20b   :  { %v7623_v56 = vpop.permute.xlu0 %1927  ;;  %v7639_v37 = vmul.f32 %v7265_v44, %v10579_v35  ;;  %v10584_v35 = vld [vmem:[#allocation20_spill] sm:$0xff] }
 0x20c   :  { %10575 = vst [vmem:[#allocation141_spill] sm:$0xff] %v7623_v56  ;;  %v10580_v56 = vld [vmem:[#allocation15_spill] sm:$0xff]  ;;  %v816_v1 = vmul.f32 %v7265_v44, %v10584_v35  ;;  %v2231_v35 = vmul.f32 %v7281_v4, %v7348_v25 }
 0x20d   :  { %2051 = vperm.xlu1 %6118, %v10556_v54   ;;  %v7632_v31 = vpop.permute.xlu1 %1827  ;;  %1103 = vperm.xlu0 %6190, %v6260_v20   ;;  %v7643_v63 = vmul.f32 %v7265_v44, %v10580_v56  ;;  %v1459_v54 = vmul.f32 %v7259_v39, %v7173_v29  ;;  %v7655_v20 = vmul.f32 %v7265_v44, %v10583_v40  ;;  %v10588_v29 = vld [vmem:[#allocation24_spill] sm:$0xff]  ;;  %v10598_v25 = vld [vmem:[#allocation31_spill] sm:$0xff] }
 0x20e   :  { %10578 = vst [vmem:[#allocation11_spill] sm:$0xff] %v7632_v31  ;;  %v10582_v31 = vld [vmem:[#allocation18_spill] sm:$0xff]  ;;  %v7661_v56 = vmul.f32 %v7265_v44, %v10585_v15  ;;  %v820_v40 = vmul.f32 %v7265_v44, %v10590_v48  ;;  %v7679_v15 = vmul.f32 %v7265_v44, %v10591_v36  ;;  %v7696_v3 = vmul.f32 %v7265_v44, %v10598_v25 }
 0x20f   :  { %v814_v0 = vmul.f32 %v7265_v44, %v10582_v31  ;;  %v7663_v27 = vpop.permute.xlu0 %2207  ;;  %v7671_v31 = vmul.f32 %v7265_v44, %v10588_v29  ;;  %v10596_v29 = vld [vmem:[#allocation44_spill] sm:$0xff]  ;;  %v1587_v36 = vadd.f32 %v1459_v54, %v815_v61  ;;  %v10605_v25 = vld [vmem:[#allocation34_spill] sm:$0xff] }
 0x210   :  { %10586 = vst [vmem:[#allocation12_spill] sm:$0xff] %v7663_v27  ;;  %10592 = vst [vmem:[#allocation15_spill] sm:$0xff] %v7679_v15  ;;  %v7683_v27 = vmul.f32 %v7265_v44, %v10593_v30  ;;  %v1460_v30 = vmul.f32 %v7259_v39, %v7179_v7  ;;  %v7715_v61 = vmul.f32 %v7265_v44, %v10605_v25  ;;  %v10606_v54 = vld [vmem:[#allocation36_spill] sm:$0xff] }
 0x211   :  { %10589 = vst [vmem:[#allocation14_spill] sm:$0xff] %v7671_v31  ;;  %2055 = vperm.xlu1 %6118, %v120_v49   ;;  %1343 = vperm.xlu0 %6190, %v10596_v29   ;;  %v10597_v31 = vld [vmem:[#allocation29_spill] sm:$0xff]  ;;  %10599 = vst [vmem:[#allocation18_spill] sm:$0xff] %v7696_v3  ;;  %v138_v49 = vld [vmem:[%s10367_s0 + $0x348] sm:$0xff]  ;;  %v7707_v29 = vmul.f32 %v7265_v44, %v10601_v2  ;;  %v7719_v7 = vmul.f32 %v7265_v44, %v10606_v54 }
 0x212   :  { %v7692_v48 = vmul.f32 %v7265_v44, %v10597_v31  ;;  %v7700_v15 = vpop.permute.xlu1 %544  ;;  %v10603_v31 = vld [vmem:[#allocation33_spill] sm:$0xff]  ;;  %v10607_v3 = vld [vmem:[#allocation39_spill] sm:$0xff]  ;;  %v7727_v2 = vmul.f32 %v7265_v44, %v10608_v28  ;;  %v7733_v25 = vmul.f32 %v7265_v44, %v10609_v34  ;;  %v7737_v54 = vmul.f32 %v7265_v44, %v7069_v9  ;;  %v139_v9 = vld [vmem:[%s10367_s0 + $0x350] sm:$0xff] }
 0x213   :  { %10600 = vst [vmem:[#allocation19_spill] sm:$0xff] %v7700_v15  ;;  %10602 = vst [vmem:[#allocation20_spill] sm:$0xff] %v7707_v29  ;;  %v7711_v42 = vmul.f32 %v7265_v44, %v10603_v31  ;;  %v7723_v15 = vmul.f32 %v7265_v44, %v10607_v3  ;;  %v2232_v31 = vmul.f32 %v7281_v4, %v7194_v6 }
 0x214   :  { %v968_v29 = vpop.permute.xlu0 %967  ;;  %10610 = vst [vmem:[#allocation22_spill] sm:$0xff] %v7733_v25  ;;  %v7743_v28 = vmul.f32 %v7265_v44, %v7078_v19  ;;  %v7747_v6 = vmul.f32 %v7265_v44, %v7085_v23  ;;  %v1464_v34 = vmul.f32 %v7259_v39, %v7213_v24  ;;  %v2230_v19 = vmul.f32 %v7281_v4, %v7188_v33 }
 0x215   :  { %10604 = vst [vmem:[#allocation21_spill] sm:$0xff] %v7711_v42  ;;  %v2359_v42 = vadd.f32 %v2231_v35, %v1587_v36  ;;  %v1458_v3 = vmul.f32 %v7259_v39, %v968_v29  ;;  %6119 = vset.pattern.permute.xlu1 %v10475_v16  ;;  %1355 = vperm.xlu0 %6190, %v138_v49  }
 0x216   :  { %v1588_v35 = vadd.f32 %v1460_v30, %v816_v1  ;;  %609 = vperm.xlu1 %6119, %v7550_v17   ;;  %v7757_v36 = vmul.f32 %v7265_v44, %v7091_v8  ;;  %v1463_v23 = vmul.f32 %v7259_v39, %v7207_v32  ;;  %v7767_v24 = vmul.f32 %v7265_v44, %v7098_v10 }
 0x217   :  { %v1586_v1 = vadd.f32 %v1458_v3, %v814_v0  ;;  %v7763_v30 = vpop.permute.xlu1 %1239  ;;  %v2236_v29 = vmul.f32 %v7281_v4, %v7233_v43  ;;  %v2494_v8 = vadd.f32 %v7321_v55, %v2359_v42  ;;  %v7774_v33 = vmul.f32 %v7265_v44, %v7101_v11  ;;  %v10613_v42 = vld [vmem:[#allocation75_spill] sm:$0xff] }
 0x218   :  { %10611 = vst [vmem:[#allocation24_spill] sm:$0xff] %v7757_v36  ;;  %v2360_v49 = vadd.f32 %v2232_v31, %v1588_v35  ;;  %v980_v25 = vpop.permute.xlu0 %979  ;;  %v2235_v32 = vmul.f32 %v7281_v4, %v7358_v51  ;;  %v7781_v10 = vmul.f32 %v7265_v44, %v7107_v14  ;;  %v10612_v31 = vld [vmem:[#allocation74_spill] sm:$0xff]  ;;  %v7789_v35 = vmul.f32 %v7265_v44, %v10613_v42 }
 0x219   :  { %v2358_v0 = vadd.f32 %v2230_v19, %v1586_v1  ;;  %v1461_v3 = vmul.f32 %v7259_v39, %v980_v25  ;;  %1359 = vperm.xlu0 %6190, %v139_v9   ;;  %v7785_v43 = vmul.f32 %v7265_v44, %v10612_v31  ;;  %v1592_v11 = vadd.f32 %v1464_v34, %v820_v40  ;;  %v6261_v19 = vld [vmem:[%s10367_s0 + $0x2c0] sm:$0xff] }
 0x21a   :  { %6120 = vset.pattern.permute.xlu1 %v10424_v26  ;;  %v2233_v51 = vmul.f32 %v7281_v4, %v7201_v46  ;;  %v1591_v25 = vadd.f32 %v1463_v23, %v7639_v37  ;;  %v2495_v40 = vadd.f32 %v7321_v55, %v2360_v49  ;;  %v1468_v31 = vmul.f32 %v7259_v39, %v7271_v13  ;;  %v10615_v49 = vld [vmem:[#allocation77_spill] sm:$0xff]  ;;  %v10616_v13 = vld [vmem:[#allocation98_spill] sm:$0xff] }
 0x21b   :  { %v2493_v9 = vadd.f32 %v7321_v55, %v2358_v0  ;;  %v1589_v14 = vadd.f32 %v1461_v3, %v7629_v38  ;;  %1287 = vperm.xlu1 %6120, %v6261_v19   ;;  %v7800_v1 = vpop.permute.xlu1 %1243  ;;  %v2364_v34 = vadd.f32 %v2236_v29, %v1592_v11  ;;  %v2622_v46 = vmax.f32 %v2494_v8, 0.0  ;;  %v6262_v3 = vld [vmem:[%s10367_s0 + $0x168] sm:$0xff]  ;;  %v10614_v19 = vld [vmem:[#allocation76_spill] sm:$0xff] }
 0x21c   :  { %v984_v42 = vpop.permute.xlu0 %983  ;;  %v2363_v37 = vadd.f32 %v2235_v32, %v1591_v25  ;;  %v7811_v36 = vmul.f32 %v7265_v44, %v10614_v19  ;;  %v7815_v29 = vmul.f32 %v7265_v44, %v10615_v49  ;;  %v1467_v8 = vmul.f32 %v7259_v39, %v10616_v13  ;;  %v10617_v11 = vld [vmem:[#allocation92_spill] sm:$0xff] }
 0x21d   :  { %v2621_v23 = vmax.f32 %v2493_v9, 0.0  ;;  %v2361_v0 = vadd.f32 %v2233_v51, %v1589_v14  ;;  %v1462_v38 = vmul.f32 %v7259_v39, %v984_v42  ;;  %1115 = vperm.xlu0 %6190, %v6262_v3   ;;  %v2240_v32 = vmul.f32 %v7281_v4, %v7316_v53 }
 0x21e   :  { %v2234_v51 = vmul.f32 %v7281_v4, %v10617_v11  ;;  %v2623_v42 = vmax.f32 %v2495_v40, 0.0  ;;  %v7827_v3 = vadd.f32 %v7321_v55, %v2364_v34  ;;  %v1596_v19 = vadd.f32 %v1468_v31, %v7692_v48  ;;  %v6263_v40 = vld [vmem:[%s10367_s0 + $0x170] sm:$0xff]  ;;  %v10618_v48 = vld [vmem:[#allocation78_spill] sm:$0xff] }
 0x21f   :  { %v2496_v25 = vadd.f32 %v7321_v55, %v2361_v0  ;;  %v1590_v9 = vadd.f32 %v1462_v38, %v7667_v50  ;;  %6121 = vset.pattern.permute.xlu1 %v10475_v16  ;;  %v2745_v14 = vpack.c.bf16 %v2622_v46, %v2621_v23  ;;  %v2239_v49 = vmul.f32 %v7281_v4, %v7368_v21  ;;  %v7844_v21 = vld [vmem:[%s10367_s0 + $0x2d8] sm:$0xff]  ;;  %v10619_v11 = vld [vmem:[#allocation96_spill] sm:$0xff] }
 0x220   :  { %614 = vperm.xlu1 %6121, %v7563_v18   ;;  %v7833_v53 = vpop.permute.xlu1 %559  ;;  %v996_v13 = vpop.permute.xlu0 %995  ;;  %v2498_v0 = vadd.f32 %v7321_v55, %v2363_v37  ;;  %v7848_v34 = vmul.f32 %v7265_v44, %v10618_v48  ;;  %v1595_v31 = vadd.f32 %v1467_v8, %v7647_v62  ;;  %v2368_v37 = vadd.f32 %v2240_v32, %v1596_v19 }
 0x221   :  { %v2624_v50 = vmax.f32 %v2496_v25, 0.0  ;;  %v2362_v38 = vadd.f32 %v2234_v51, %v1590_v9  ;;  %v1465_v46 = vmul.f32 %v7259_v39, %v996_v13  ;;  %1119 = vperm.xlu0 %6190, %v6263_v40   ;;  %5938 = vmatprep.mubr.msk.bf16.mxu0 %vm2844_vm0, %v2745_v14  ;;  %v1471_v23 = vmul.f32 %v7259_v39, %v7352_v59 }
 0x222   :  { %v2237_v51 = vmul.f32 %v7281_v4, %v10619_v11  ;;  %v2627_v13 = vmax.f32 %v7827_v3, 0.0  ;;  %v1472_v40 = vmul.f32 %v7259_v39, %v7362_v52  ;;  %v2367_v48 = vadd.f32 %v2239_v49, %v1595_v31  ;;  %v10620_v52 = vld [vmem:[#allocation102_spill] sm:$0xff] }
 0x223   :  { %v2497_v25 = vadd.f32 %v7321_v55, %v2362_v38  ;;  %v1593_v9 = vadd.f32 %v1465_v46, %v7643_v63  ;;  %v2746_v14 = vpack.c.bf16 %v2624_v50, %v2623_v42  ;;  %v2243_v62 = vmul.f32 %v7281_v4, %v7374_v41  ;;  %v6264_v63 = vld [vmem:[%s10367_s0 + $0x370] sm:$0xff] }
 0x224   :  { %619 = vperm.xlu1 %6121, %v7844_v21   ;;  %v1000_v59 = vpop.permute.xlu0 %999  ;;  %v2626_v8 = vmax.f32 %v2498_v0, 0.0  ;;  %v2238_v41 = vmul.f32 %v7281_v4, %v10620_v52  ;;  %v7873_v42 = vadd.f32 %v7321_v55, %v2368_v37  ;;  %v1599_v3 = vadd.f32 %v1471_v23, %v7661_v56  ;;  %v146_v0 = vld [vmem:[%s10367_s0 + $0x388] sm:$0xff] }
 0x225   :  { %v2625_v32 = vmax.f32 %v2497_v25, 0.0  ;;  %v2365_v19 = vadd.f32 %v2237_v51, %v1593_v9  ;;  %v1466_v38 = vmul.f32 %v7259_v39, %v1000_v59  ;;  %v7864_v11 = vpop.permute.xlu1 %1251  ;;  %1375 = vperm.xlu0 %6190, %v6264_v63   ;;  %5939 = vmatmul.mubr.msk.bf16.gmra.mrb[8].mxu0 %vm2844_vm0, %v2746_v14  ;;  %v1515_v49 = vmul.f32 %v7259_v39, %v7398_v22 }
 0x226   :  { %v2244_v50 = vmul.f32 %v7281_v4, %v7381_v57  ;;  %v2241_v37 = vmul.f32 %v7281_v4, %v7338_v58  ;;  %v1600_v56 = vadd.f32 %v1472_v40, %v7715_v61  ;;  %v2502_v23 = vadd.f32 %v7321_v55, %v2367_v48  ;;  %v147_v48 = vld [vmem:[%s10367_s0 + $0x390] sm:$0xff] }
 0x227   :  { %v2500_v46 = vadd.f32 %v7321_v55, %v2365_v19  ;;  %v1594_v31 = vadd.f32 %v1466_v38, %v7683_v27  ;;  %v2747_v51 = vpack.c.bf16 %v2626_v8, %v2625_v32  ;;  %v2371_v22 = vadd.f32 %v2243_v62, %v1599_v3  ;;  %v10622_v38 = vld [vmem:[#allocation103_spill] sm:$0xff] }
 0x228   :  { %6122 = vset.pattern.permute.xlu1 %v10424_v26  ;;  %v1012_v25 = vpop.permute.xlu0 %1011  ;;  %v1516_v9 = vmul.f32 %v7259_v39, %v7406_v45  ;;  %v2287_v58 = vmul.f32 %v7281_v4, %v7384_v5  ;;  %v1643_v27 = vadd.f32 %v1515_v49, %v7737_v54  ;;  %v1474_v61 = vmul.f32 %v7259_v39, %v7427_v47 }
 0x229   :  { %v2628_v57 = vmax.f32 %v2500_v46, 0.0  ;;  %v2366_v14 = vadd.f32 %v2238_v41, %v1594_v31  ;;  %v1469_v59 = vmul.f32 %v7259_v39, %v1012_v25  ;;  %1299 = vperm.xlu1 %6122, %v7844_v21   ;;  %1387 = vperm.xlu0 %6190, %v146_v0   ;;  %v1475_v40 = vmul.f32 %v7259_v39, %v7435_v60  ;;  %v10621_v60 = vld [vmem:[#allocation9_spill] sm:$0xff]  ;;  %v10624_v46 = vld [vmem:[#allocation15_spill] sm:$0xff] }
 0x22a   :  { %5942 = vmatprep.mubr.msk.bf16.mxu0 %vm2844_vm0, %v2747_v51  ;;  %v7902_v45 = vpop.permute.xlu1 %2011  ;;  %v2372_v62 = vadd.f32 %v2244_v50, %v1600_v56  ;;  %v7910_v32 = vadd.f32 %v7321_v55, %v2371_v22  ;;  %v2288_v47 = vmul.f32 %v7281_v4, %v7393_v12  ;;  %v2247_v19 = vmul.f32 %v7281_v4, %v10621_v60 }
 0x22b   :  { %v2501_v8 = vadd.f32 %v7321_v55, %v2366_v14  ;;  %v1597_v5 = vadd.f32 %v1469_v59, %v7655_v20  ;;  %v2748_v54 = vpack.c.bf16 %v2628_v57, %v2627_v13  ;;  %v2246_v63 = vmul.f32 %v7281_v4, %v10622_v38 }
 0x22c   :  { %v1016_v52 = vpop.permute.xlu0 %1015  ;;  %v1644_v41 = vadd.f32 %v1516_v9, %v7781_v10  ;;  %v10623_v13 = vmov 2   ;;  %v2630_v0 = vmax.f32 %v2502_v23, 0.0  ;;  %v2415_v50 = vadd.f32 %v2287_v58, %v1643_v27  ;;  %v10625_v10 = vld [vmem:[#allocation13_spill] sm:$0xff]  ;;  %v10626_v23 = vld [vmem:[#allocation20_spill] sm:$0xff] }
 0x22d   :  { %v2629_v3 = vmax.f32 %v2501_v8, 0.0  ;;  %v2369_v49 = vadd.f32 %v2241_v37, %v1597_v5  ;;  %v1470_v20 = vmul.f32 %v7259_v39, %v1016_v52  ;;  %6123 = vset.pattern.permute.xlu1 %v10623_v13  ;;  %1391 = vperm.xlu0 %6190, %v147_v48   ;;  %v1602_v12 = vadd.f32 %v1474_v61, %v7719_v7  ;;  %v10627_v9 = vld [vmem:[#allocation80_spill] sm:$0xff]  ;;  %v6265_v48 = vld [vmem:[%s10367_s0 + $0x188] sm:$0xff]  ;;  %v10628_v8 = vld [vmem:[#allocation6_spill] sm:$0xff] }
 0x22e   :  { %v1603_v31 = vadd.f32 %v1475_v40, %v10624_v46  ;;  %5943 = vmatmul.mubr.msk.bf16.gmra.mrb[12].mxu0 %vm2844_vm0, %v2748_v54  ;;  %2063 = vperm.xlu1 %6123, %v7550_v17   ;;  %v7925_v51 = vpop.permute.xlu1 %2019  ;;  %v2242_v37 = vmul.f32 %v7281_v4, %v10625_v10  ;;  %v7930_v56 = vadd.f32 %v7321_v55, %v2372_v62  ;;  %v2631_v57 = vmax.f32 %v7873_v42, 0.0 }
 0x22f   :  { %v2504_v22 = vadd.f32 %v7321_v55, %v2369_v49  ;;  %v1598_v25 = vadd.f32 %v1470_v20, %v10626_v23  ;;  %v7936_v7 = vmul.f32 %v7265_v44, %v10627_v9  ;;  %v2374_v14 = vadd.f32 %v2246_v63, %v1602_v12  ;;  %v10629_v63 = vld [vmem:[#allocation14_spill] sm:$0xff]  ;;  %v10631_v49 = vld [vmem:[#allocation3_spill] sm:$0xff]  ;;  %v10633_v23 = vld [vmem:[#allocation4_spill] sm:$0xff] }
 0x230   :  { %v1028_v17 = vpop.permute.xlu0 %1027  ;;  %v2749_v59 = vpack.c.bf16 %v2630_v0, %v2629_v3  ;;  %v2416_v58 = vadd.f32 %v2288_v47, %v1644_v41  ;;  %v2634_v62 = vmax.f32 %v7910_v32, 0.0  ;;  %v2245_v5 = vmul.f32 %v7281_v4, %v10628_v8  ;;  %v6266_v32 = vld [vmem:[%s10367_s0 + $0x120] sm:$0xff]  ;;  %v10636_v8 = vld [vmem:[#allocation17_spill] sm:$0xff] }
 0x231   :  { %v2632_v27 = vmax.f32 %v2504_v22, 0.0  ;;  %v2370_v61 = vadd.f32 %v2242_v37, %v1598_v25  ;;  %v1473_v40 = vmul.f32 %v7259_v39, %v1028_v17  ;;  %1131 = vperm.xlu0 %6190, %v6265_v48   ;;  %v2375_v54 = vadd.f32 %v2247_v19, %v1603_v31  ;;  %v10630_v41 = vld [vmem:[#allocation10_spill] sm:$0xff]  ;;  %v6267_v22 = vld [vmem:[%s10367_s0 + $0x190] sm:$0xff] }
 0x232   :  { %5946 = vmatprep.mubr.msk.bf16.mxu0 %vm2844_vm0, %v2749_v59  ;;  %6124 = vset.pattern.permute.xlu1 %v10424_v26  ;;  %v7948_v42 = vpop.permute.xlu1 %2023  ;;  %v7951_v47 = vadd.f32 %v7321_v55, %v2415_v50  ;;  %v2635_v60 = vmax.f32 %v7930_v56, 0.0  ;;  %v2291_v3 = vmul.f32 %v7281_v4, %v10630_v41  ;;  %v1477_v20 = vmul.f32 %v7259_v39, %v10631_v49  ;;  %v10632_v50 = vld [vmem:[#allocation110_spill] sm:$0xff]  ;;  %v10635_v59 = vld [vmem:[#allocation8_spill] sm:$0xff] }
 0x233   :  { %v2505_v38 = vadd.f32 %v7321_v55, %v2370_v61  ;;  %v1601_v52 = vadd.f32 %v1473_v40, %v10629_v63  ;;  %1079 = vperm.xlu1 %6124, %v6266_v32   ;;  %v2750_v19 = vpack.c.bf16 %v2632_v27, %v2631_v57  ;;  %v2509_v0 = vadd.f32 %v7321_v55, %v2374_v14  ;;  %v10634_v57 = vld [vmem:[#allocation107_spill] sm:$0xff]  ;;  %v10637_v63 = vld [vmem:[#allocation112_spill] sm:$0xff]  ;;  %v10638_v49 = vld [vmem:[#allocation2_spill] sm:$0xff] }
 0x234   :  { %v1519_v12 = vmul.f32 %v7259_v39, %v10632_v50  ;;  %v1192_v46 = vpop.permute.xlu0 %1191  ;;  %v7967_v31 = vadd.f32 %v7321_v55, %v2416_v58  ;;  %v2286_v25 = vmul.f32 %v7281_v4, %v10633_v23  ;;  %v2510_v9 = vadd.f32 %v7321_v55, %v2375_v54 }
 0x235   :  { %v2633_v10 = vmax.f32 %v2505_v38, 0.0  ;;  %v2373_v37 = vadd.f32 %v2245_v5, %v1601_v52  ;;  %v1514_v56 = vmul.f32 %v7259_v39, %v1192_v46  ;;  %1135 = vperm.xlu0 %6190, %v6267_v22   ;;  %v2249_v14 = vmul.f32 %v7281_v4, %v10634_v57  ;;  %v10640_v46 = vld [vmem:[#allocation120_spill] sm:$0xff] }
 0x236   :  { %5947 = vmatmul.mubr.msk.bf16.gmra.mrb[16].mxu0 %vm2844_vm0, %v2750_v19  ;;  %v2678_v17 = vmax.f32 %v7951_v47, 0.0  ;;  %v7982_v58 = vmul.f32 %v7281_v4, %v10635_v59  ;;  %v1605_v5 = vadd.f32 %v1477_v20, %v10636_v8  ;;  %v2637_v54 = vmax.f32 %v2509_v0, 0.0  ;;  %v10641_v22 = vld [vmem:[#allocation16_spill] sm:$0xff]  ;;  %v10643_v8 = vld [vmem:[#allocation59_spill] sm:$0xff] }
 0x237   :  { %v2508_v27 = vadd.f32 %v7321_v55, %v2373_v37  ;;  %v1642_v61 = vadd.f32 %v1514_v56, %v7774_v33  ;;  %6125 = vset.pattern.permute.xlu1 %v10623_v13  ;;  %v7987_v40 = vpop.permute.xlu1 %569  ;;  %v2751_v48 = vpack.c.bf16 %v2634_v62, %v2633_v10  ;;  %v1647_v38 = vadd.f32 %v1519_v12, %v7747_v6  ;;  %v6268_v62 = vld [vmem:[%s10367_s0 + $0x3b0] sm:$0xff]  ;;  %v154_v12 = vld [vmem:[%s10367_s0 + $0x3c8] sm:$0xff] }
 0x238   :  { %v1520_v47 = vmul.f32 %v7259_v39, %v10637_v63  ;;  %2067 = vperm.xlu1 %6125, %v7563_v18   ;;  %v1204_v52 = vpop.permute.xlu0 %1203  ;;  %v2679_v32 = vmax.f32 %v7967_v31, 0.0  ;;  %v2638_v6 = vmax.f32 %v2510_v9, 0.0  ;;  %v2289_v20 = vmul.f32 %v7281_v4, %v10638_v49  ;;  %v10639_v18 = vld [vmem:[#allocation116_spill] sm:$0xff] }
 0x239   :  { %v2636_v19 = vmax.f32 %v2508_v27, 0.0  ;;  %v2414_v33 = vadd.f32 %v2286_v25, %v1642_v61  ;;  %v1517_v41 = vmul.f32 %v7259_v39, %v1204_v52  ;;  %1407 = vperm.xlu0 %6190, %v6268_v62   ;;  %5950 = vmatprep.mubr.msk.bf16.mxu0 %vm2844_vm0, %v2751_v48  ;;  %v2377_v0 = vadd.f32 %v2249_v14, %v1605_v5  ;;  %v10642_v27 = vld [vmem:[#allocation128_spill] sm:$0xff]  ;;  %v10646_v62 = vld [vmem:[#allocation5_spill] sm:$0xff] }
 0x23a   :  { %v2292_v50 = vmul.f32 %v7281_v4, %v10639_v18  ;;  %v1523_v31 = vmul.f32 %v7259_v39, %v10640_v46  ;;  %v8013_v23 = vmul.f32 %v7281_v4, %v10641_v22  ;;  %v2419_v25 = vadd.f32 %v2291_v3, %v1647_v38  ;;  %v10644_v3 = vld [vmem:[#allocation105_spill] sm:$0xff]  ;;  %v10649_v22 = vld [vmem:[#allocation122_spill] sm:$0xff] }
 0x23b   :  { %v1645_v10 = vadd.f32 %v1517_v41, %v7743_v28  ;;  %v2752_v37 = vpack.c.bf16 %v2636_v19, %v2635_v60  ;;  %v2549_v56 = vadd.f32 %v7321_v55, %v2414_v33  ;;  %v1648_v9 = vadd.f32 %v1520_v47, %v7789_v35  ;;  %v10645_v33 = vld [vmem:[#allocation7_spill] sm:$0xff] }
 0x23c   :  { %2071 = vperm.xlu1 %6125, %v7844_v21   ;;  %v8017_v57 = vpop.permute.xlu1 %1255  ;;  %v1040_v14 = vpop.permute.xlu0 %1039  ;;  %v2753_v59 = vpack.c.bf16 %v2638_v6, %v2637_v54  ;;  %v2295_v61 = vmul.f32 %v7281_v4, %v10642_v27  ;;  %v8024_v5 = vmul.f32 %v7281_v4, %v10643_v8  ;;  %v2248_v35 = vmul.f32 %v7281_v4, %v10644_v3  ;;  %v155_v54 = vld [vmem:[%s10367_s0 + $0x3d0] sm:$0xff]  ;;  %v10652_v3 = vld [vmem:[#allocation126_spill] sm:$0xff] }
 0x23d   :  { %v2417_v28 = vadd.f32 %v2289_v20, %v1645_v10  ;;  %v1476_v60 = vmul.f32 %v7259_v39, %v1040_v14  ;;  %1419 = vperm.xlu0 %6190, %v154_v12   ;;  %v2677_v48 = vmax.f32 %v2549_v56, 0.0  ;;  %v2512_v21 = vadd.f32 %v7321_v55, %v2377_v0  ;;  %v10647_v20 = vld [vmem:[#allocation125_spill] sm:$0xff]  ;;  %v10648_v10 = vld [vmem:[#allocation114_spill] sm:$0xff] }
 0x23e   :  { %v2420_v38 = vadd.f32 %v2292_v50, %v1648_v9  ;;  %5951 = vmatmul.mubr.msk.bf16.gmra.mrb[20].mxu0 %vm2844_vm0, %v2752_v37  ;;  %v1651_v63 = vadd.f32 %v1523_v31, %v7767_v24  ;;  %v8039_v41 = vmul.f32 %v7281_v4, %v10645_v33  ;;  %v8043_v6 = vmul.f32 %v7281_v4, %v10646_v62  ;;  %v6269_v12 = vld [vmem:[%s10367_s0 + $0x138] sm:$0xff]  ;;  %v10650_v9 = vld [vmem:[#allocation131_spill] sm:$0xff] }
 0x23f   :  { %v2552_v47 = vadd.f32 %v7321_v55, %v2417_v28  ;;  %v1604_v52 = vadd.f32 %v1476_v60, %v7723_v15  ;;  %5954 = vmatprep.mubr.msk.bf16.mxu0 %vm2844_vm0, %v2753_v59  ;;  %v2773_v19 = vpack.c.bf16 %v2678_v17, %v2677_v48  ;;  %v8046_v49 = vadd.f32 %v7321_v55, %v2419_v25  ;;  %v10651_v60 = vld [vmem:[#allocation118_spill] sm:$0xff] }
 0x240   :  { %v1524_v24 = vmul.f32 %v7259_v39, %v10647_v20  ;;  %6126 = vset.pattern.permute.xlu1 %v10424_v26  ;;  %v1208_v15 = vpop.permute.xlu0 %1207  ;;  %v2423_v0 = vadd.f32 %v2295_v61, %v1651_v63  ;;  %v2640_v31 = vmax.f32 %v2512_v21, 0.0  ;;  %v2290_v37 = vmul.f32 %v7281_v4, %v10648_v10 }
 0x241   :  { %v2680_v18 = vmax.f32 %v2552_v47, 0.0  ;;  %v2376_v17 = vadd.f32 %v2248_v35, %v1604_v52  ;;  %v1518_v50 = vmul.f32 %v7259_v39, %v1208_v15  ;;  %1091 = vperm.xlu1 %6126, %v6269_v12   ;;  %v8055_v46 = vpop.permute.xlu1 %574  ;;  %1423 = vperm.xlu0 %6190, %v155_v54   ;;  %v8060_v56 = vadd.f32 %v7321_v55, %v2420_v38  ;;  %v10657_v12 = vld [vmem:[#allocation19_spill] sm:$0xff] }
 0x242   :  { %v880_v25 = vmul.f32 %v7265_v44, %v10649_v22  ;;  %5994 = vmatprep.mubr.msk.bf16.mxu1 %vm2844_vm0, %v2773_v19  ;;  %v1478_v14 = vmul.f32 %v7259_v39, %v10650_v9  ;;  %v2682_v28 = vmax.f32 %v8046_v49, 0.0  ;;  %v2293_v48 = vmul.f32 %v7281_v4, %v10651_v60  ;;  %v10653_v19 = vld [vmem:[#allocation37_spill] sm:$0xff]  ;;  %v10654_v49 = vld [vmem:[#allocation130_spill] sm:$0xff] }
 0x243   :  { %v2511_v59 = vadd.f32 %v7321_v55, %v2376_v17  ;;  %v1646_v27 = vadd.f32 %v1518_v50, %v7785_v43  ;;  %v2774_v61 = vpack.c.bf16 %v2680_v18, %v2679_v32  ;;  %v1525_v35 = vmul.f32 %v7259_v39, %v10652_v3  ;;  %v6270_v32 = vld [vmem:[%s10367_s0 + $0x1a8] sm:$0xff]  ;;  %v10656_v50 = vld [vmem:[#allocation138_spill] sm:$0xff] }
 0x244   :  { %v1652_v8 = vadd.f32 %v1524_v24, %v880_v25  ;;  %v1220_v21 = vpop.permute.xlu0 %1219  ;;  %v8075_v38 = vadd.f32 %v7321_v55, %v2423_v0  ;;  %v2683_v52 = vmax.f32 %v8060_v56, 0.0  ;;  %v2297_v33 = vmul.f32 %v7281_v4, %v10653_v19  ;;  %v8097_v24 = vld [vmem:[%s10370_s2] ss:$0 sm:$0xff]  ;;  %v10655_v0 = vld [vmem:[#allocation24_spill] sm:$0xff] }
 0x245   :  { %v2639_v54 = vmax.f32 %v2511_v59, 0.0  ;;  %v2418_v63 = vadd.f32 %v2290_v37, %v1646_v27  ;;  %v1521_v47 = vmul.f32 %v7259_v39, %v1220_v21  ;;  %6127 = vset.pattern.permute.xlu1 %v10623_v13  ;;  %v8079_v43 = vpop.permute.xlu1 %579  ;;  %1147 = vperm.xlu0 %6190, %v6270_v32   ;;  %v1526_v55 = vmul.f32 %v7259_v39, %v7763_v30  ;;  %v10658_v56 = vld [vmem:[#allocation134_spill] sm:$0xff] }
 0x246   :  { %v1527_v62 = vmul.f32 %v7259_v39, %v7800_v1  ;;  %5995 = vmatmul.mubr.msk.bf16.vlgmr.msra.gmra.mrb[0].mxu1 %vm2844_vm0, %v2774_v61  ;;  %1855 = vperm.xlu1 %6127, %v10654_v49   ;;  %v1606_v20 = vadd.f32 %v1478_v14, %v7727_v2  ;;  %v1653_v30 = vadd.f32 %v1525_v35, %v7815_v29  ;;  %v6272_v29 = vld [vmem:[%s10367_s0 + $0x1b0] sm:$0xff]  ;;  %v10659_v61 = vld [vmem:[#allocation133_spill] sm:$0xff]  ;;  %v8131_v19 = vld [vmem:[%s10367_s0 + $0x2e0] sm:$0xff] }
 0x247   :  { %v2553_v15 = vadd.f32 %v8097_v24, %v2418_v63  ;;  %v1649_v18 = vadd.f32 %v1521_v47, %v10655_v0  ;;  %v2754_v17 = vpack.c.bf16 %v2640_v31, %v2639_v54  ;;  %v1481_v1 = vmul.f32 %v7259_v39, %v10656_v50  ;;  %v10660_v54 = vld [vmem:[#allocation21_spill] sm:$0xff] }
 0x248   :  { %v882_v10 = vmul.f32 %v7265_v44, %v10657_v12  ;;  %v2298_v2 = vmul.f32 %v7281_v4, %v7902_v45  ;;  %v1224_v37 = vpop.permute.xlu0 %1223  ;;  %v2296_v22 = vmul.f32 %v7281_v4, %v10658_v56  ;;  %v2686_v31 = vmax.f32 %v8075_v38, 0.0 }
 0x249   :  { %v2681_v25 = vmax.f32 %v2553_v15, 0.0  ;;  %v2421_v9 = vadd.f32 %v2293_v48, %v1649_v18  ;;  %v1522_v14 = vmul.f32 %v7259_v39, %v1224_v37  ;;  %1151 = vperm.xlu0 %6190, %v6272_v29   ;;  %5955 = vmatmul.mubr.msk.bf16.gmra.mrb[24].mxu0 %vm2844_vm0, %v2754_v17  ;;  %v2425_v59 = vadd.f32 %v2297_v33, %v1653_v30  ;;  %v10662_v15 = vld [vmem:[#allocation18_spill] sm:$0xff] }
 0x24a   :  { %v1654_v27 = vadd.f32 %v1526_v55, %v882_v10  ;;  %v1655_v45 = vadd.f32 %v1527_v62, %v7848_v34  ;;  %1859 = vperm.xlu1 %6127, %v10659_v61   ;;  %v8118_v60 = vpop.permute.xlu1 %1267  ;;  %v2378_v48 = vadd.f32 %v8013_v23, %v1606_v20  ;;  %v1609_v63 = vadd.f32 %v1481_v1, %v10660_v54  ;;  %v6274_v37 = vld [vmem:[%s10367_s0 + $0x1c0] sm:$0xff] }
 0x24b   :  { %v2556_v3 = vadd.f32 %v8097_v24, %v2421_v9  ;;  %v1650_v35 = vadd.f32 %v1522_v14, %v7811_v36  ;;  %v2775_v21 = vpack.c.bf16 %v2682_v28, %v2681_v25  ;;  %v1529_v38 = vmul.f32 %v7259_v39, %v7864_v11  ;;  %v6273_v11 = vld [vmem:[%s10367_s0 + $0x3f0] sm:$0xff]  ;;  %v10664_v25 = vld [vmem:[#allocation11_spill] sm:$0xff]  ;;  %v10665_v29 = vld [vmem:[#allocation22_spill] sm:$0xff] }
 0x24c   :  { %v2426_v47 = vadd.f32 %v2298_v2, %v1654_v27  ;;  %v1530_v34 = vmul.f32 %v7259_v39, %v8017_v57  ;;  %v1052_v32 = vpop.permute.xlu0 %1051  ;;  %v2424_v23 = vadd.f32 %v2296_v22, %v1652_v8  ;;  %v2560_v57 = vadd.f32 %v8097_v24, %v2425_v59 }
 0x24d   :  { %v2684_v33 = vmax.f32 %v2556_v3, 0.0  ;;  %v2422_v36 = vadd.f32 %v7982_v58, %v1650_v35  ;;  %v1479_v28 = vmul.f32 %v7259_v39, %v1052_v32  ;;  %1439 = vperm.xlu0 %6190, %v6273_v11   ;;  %5998 = vmatprep.mubr.msk.bf16.mxu1 %vm2844_vm0, %v2775_v21  ;;  %v2427_v55 = vadd.f32 %v8039_v41, %v1655_v45  ;;  %v10661_v58 = vld [vmem:[#allocation140_spill] sm:$0xff] }
 0x24e   :  { %v885_v62 = vmul.f32 %v7265_v44, %v7833_v53  ;;  %v2301_v8 = vmul.f32 %v7281_v4, %v7948_v42  ;;  %6128 = vset.pattern.permute.xlu1 %v10475_v16  ;;  %v2251_v49 = vmul.f32 %v7281_v4, %v10661_v58  ;;  %v2381_v17 = vadd.f32 %v8024_v5, %v1609_v63  ;;  %v10663_v5 = vld [vmem:[#allocation79_spill] sm:$0xff] }
 0x24f   :  { %v2557_v20 = vadd.f32 %v8097_v24, %v2422_v36  ;;  %v1607_v0 = vadd.f32 %v1479_v28, %v10662_v15  ;;  %624 = vperm.xlu1 %6128, %v8131_v19   ;;  %v8151_v18 = vpop.permute.xlu1 %2031  ;;  %v2776_v41 = vpack.c.bf16 %v2684_v33, %v2683_v52  ;;  %v2561_v30 = vadd.f32 %v8097_v24, %v2426_v47 }
 0x250   :  { %v1657_v53 = vadd.f32 %v1529_v38, %v885_v62  ;;  %v1658_v42 = vadd.f32 %v1530_v34, %v7936_v7  ;;  %v1056_v50 = vpop.permute.xlu0 %1055  ;;  %v2513_v1 = vadd.f32 %v8097_v24, %v2378_v48  ;;  %v884_v52 = vmul.f32 %v7265_v44, %v10663_v5  ;;  %v6275_v34 = vld [vmem:[%s10367_s0 + $0x1d8] sm:$0xff] }
 0x251   :  { %v2685_v12 = vmax.f32 %v2557_v20, 0.0  ;;  %v2379_v10 = vadd.f32 %v2251_v49, %v1607_v0  ;;  %v1480_v2 = vmul.f32 %v7259_v39, %v1056_v50  ;;  %1159 = vperm.xlu0 %6190, %v6274_v37   ;;  %5999 = vmatmul.mubr.msk.bf16.gmra.mrb[4].mxu1 %vm2844_vm0, %v2776_v41  ;;  %v2559_v56 = vadd.f32 %v8097_v24, %v2424_v23  ;;  %v8197_v41 = vld [vmem:[%s10371_s4] ss:$0 sm:$0xff] }
 0x252   :  { %v2562_v7 = vadd.f32 %v8097_v24, %v2427_v55  ;;  %v2429_v22 = vadd.f32 %v2301_v8, %v1657_v53  ;;  %v2252_v9 = vmul.f32 %v7281_v4, %v10664_v25  ;;  %v2688_v45 = vmax.f32 %v2560_v57, 0.0  ;;  %v6276_v55 = vld [vmem:[%s10367_s0 + $0x2e8] sm:$0xff] }
 0x253   :  { %v2514_v14 = vadd.f32 %v8097_v24, %v2379_v10  ;;  %v1608_v59 = vadd.f32 %v1480_v2, %v10665_v29  ;;  %6129 = vset.pattern.permute.xlu1 %v10424_v26  ;;  %v2777_v27 = vpack.c.bf16 %v2686_v31, %v2685_v12  ;;  %v2516_v61 = vadd.f32 %v8097_v24, %v2381_v17  ;;  %v10666_v17 = vld [vmem:[#allocation46_spill] sm:$0xff]  ;;  %v8214_v12 = vld [vmem:[%s10367_s0 + $0x2f8] sm:$0xff] }
 0x254   :  { %v2689_v48 = vmax.f32 %v2561_v30, 0.0  ;;  %v2430_v3 = vadd.f32 %v8043_v6, %v1658_v42  ;;  %1303 = vperm.xlu1 %6129, %v8131_v19   ;;  %v1064_v35 = vpop.permute.xlu1 %1063  ;;  %v1248_v21 = vpop.permute.xlu0 %1247  ;;  %v2641_v54 = vmax.f32 %v2513_v1, 0.0  ;;  %v2687_v31 = vmax.f32 %v2559_v56, 0.0  ;;  %v10667_v30 = vld [vmem:[#allocation23_spill] sm:$0xff] }
 0x255   :  { %v2642_v63 = vmax.f32 %v2514_v14, 0.0  ;;  %v2380_v38 = vadd.f32 %v2252_v9, %v1608_v59  ;;  %v1528_v47 = vmul.f32 %v7259_v39, %v1248_v21  ;;  %1171 = vperm.xlu0 %6190, %v6275_v34   ;;  %6002 = vmatprep.mubr.msk.bf16.mxu1 %vm2844_vm0, %v2777_v27  ;;  %v2690_v32 = vmax.f32 %v2562_v7, 0.0  ;;  %v6277_v1 = vld [vmem:[%s10367_s0 + $0x1c8] sm:$0xff] }
 0x256   :  { %v2564_v6 = vadd.f32 %v8097_v24, %v2429_v22  ;;  %v2300_v23 = vmul.f32 %v7281_v4, %v7925_v51  ;;  %v2644_v11 = vmax.f32 %v2516_v61, 0.0  ;;  %v8184_v57 = vadd.f32 %v8097_v24, %v2430_v3 }
 0x257   :  { %v2515_v33 = vadd.f32 %v8097_v24, %v2380_v38  ;;  %v1656_v36 = vadd.f32 %v1528_v47, %v884_v52  ;;  %v2755_v28 = vpack.c.bf16 %v2642_v63, %v2641_v54  ;;  %v2778_v8 = vpack.c.bf16 %v2688_v45, %v2687_v31  ;;  %v6278_v63 = vld [vmem:[%s10367_s0 + $0x1e0] sm:$0xff] }
 0x258   :  { %1307 = vperm.xlu1 %6129, %v6276_v55   ;;  %v1260_v62 = vpop.permute.xlu0 %1259  ;;  %v2779_v58 = vpack.c.bf16 %v2690_v32, %v2689_v48  ;;  %v887_v49 = vmul.f32 %v7265_v44, %v7987_v40  ;;  %v838_v53 = vmul.f32 %v7265_v44, %v10666_v17  ;;  %v8203_v40 = vmul.f32 %v7281_v4, %v10667_v30 }
 0x259   :  { %v2643_v51 = vmax.f32 %v2515_v33, 0.0  ;;  %v2428_v20 = vadd.f32 %v2300_v23, %v1656_v36  ;;  %v1531_v15 = vmul.f32 %v7259_v39, %v1260_v62  ;;  %v2036_v0 = vpop.permute.xlu1 %2035  ;;  %6193 = vset.pattern.permute.xlu0 %v10623_v13  ;;  %5958 = vmatprep.mubr.msk.bf16.mxu0 %vm2844_vm0, %v2755_v28  ;;  %v2692_v42 = vmax.f32 %v2564_v6, 0.0 }
 0x25a   :  { %v1533_v50 = vmul.f32 %v7259_v39, %v8118_v60  ;;  %6003 = vmatmul.mubr.msk.bf16.gmra.mrb[8].mxu1 %vm2844_vm0, %v2778_v8  ;;  %1935 = vperm.xlu0 %6193, %v6277_v1   ;;  %v2303_v10 = vmul.f32 %v7281_v4, %v8151_v18  ;;  %v5932_v5 = vpop.f32.mrb[0].mxu0  ;;  %v2693_v52 = vmax.f32 %v8184_v57, 0.0  ;;  %v888_v56 = vmul.f32 %v7265_v44, %v8055_v46 }
 0x25b   :  { %v2563_v2 = vadd.f32 %v8097_v24, %v2428_v20  ;;  %v1659_v37 = vadd.f32 %v1531_v15, %v887_v49  ;;  %6006 = vmatprep.mubr.msk.bf16.mxu1 %vm2844_vm0, %v2779_v58  ;;  %v2756_v60 = vpack.c.bf16 %v2644_v11, %v2643_v51  ;;  %v889_v7 = vmul.f32 %v7265_v44, %v8079_v43  ;;  %v3071_v25 = vpop.f32.mrb[1].mxu0  ;;  %v6279_v20 = vld [vmem:[%s10367_s0 + $0x1f8] sm:$0xff] }
 0x25c   :  { %v3080_v22 = vadd.f32 %v5932_v5, %v8197_v41  ;;  %6130 = vset.pattern.permute.xlu1 %v10475_v16  ;;  %v1264_v18 = vpop.permute.xlu0 %1263  ;;  %v1482_v9 = vmul.f32 %v7259_v39, %v1064_v35  ;;  %v3072_v59 = vadd.f32 %v8197_v41, %v3071_v25  ;;  %v5933_v27 = vpop.f32.mrb[2].mxu0  ;;  %v2304_v21 = vmul.f32 %v7281_v4, %v2036_v0  ;;  %v10668_v0 = vld [vmem:[#allocation38_spill] sm:$0xff] }
 0x25d   :  { %v2691_v14 = vmax.f32 %v2563_v2, 0.0  ;;  %v2431_v29 = vadd.f32 %v2303_v10, %v1659_v37  ;;  %639 = vperm.xlu1 %6130, %v8214_v12   ;;  %v2040_v45 = vpop.permute.xlu1 %2039  ;;  %5959 = vmatmul.mubr.msk.bf16.gmra.mrb[28].mxu0 %vm2844_vm0, %v2756_v60  ;;  %v1661_v46 = vadd.f32 %v1533_v50, %v889_v7  ;;  %v3083_v43 = vadd.f32 %v5933_v27, %v8197_v41  ;;  %v3074_v3 = vpop.f32.mrb[3].mxu0  ;;  %v10669_v10 = vld [vmem:[#allocation35_spill] sm:$0xff]  ;;  %v10670_v37 = vld [vmem:[#allocation104_spill] sm:$0xff] }
 0x25e   :  { %v1532_v61 = vmul.f32 %v7259_v39, %v1264_v18  ;;  %v2305_v48 = vmul.f32 %v7281_v4, %v2040_v45  ;;  %6194 = vset.pattern.permute.xlu0 %v10424_v26  ;;  %v3075_v54 = vadd.f32 %v8197_v41, %v3074_v3  ;;  %v3584_v47 = vmax.f32 %v3080_v22, 0.0 }
 0x25f   :  { %v2566_v35 = vadd.f32 %v8097_v24, %v2431_v29  ;;  %1175 = vperm.xlu0 %6194, %v6278_v63   ;;  %v2780_v38 = vpack.c.bf16 %v2692_v42, %v2691_v14  ;;  %v3585_v34 = vmax.f32 %v3083_v43, 0.0  ;;  %v1610_v23 = vadd.f32 %v1482_v9, %v838_v53  ;;  %v6280_v43 = vld [vmem:[%s10367_s0 + $0x1e8] sm:$0xff] }
 0x260   :  { %v1660_v31 = vadd.f32 %v1532_v61, %v888_v56  ;;  %v2433_v32 = vadd.f32 %v2305_v48, %v1661_v46  ;;  %v1068_v6 = vpop.permute.xlu0 %1067  ;;  %v3582_v36 = vmax.f32 %v3072_v59, 0.0  ;;  %v3583_v28 = vmax.f32 %v3075_v54, 0.0  ;;  %v10671_v61 = vld [vmem:[#allocation48_spill] sm:$0xff] }
 0x261   :  { %v2694_v33 = vmax.f32 %v2566_v35, 0.0  ;;  %6131 = vset.pattern.permute.xlu1 %v10424_v26  ;;  %v8245_v62 = vpack.c.bf16 %v3585_v34, %v3584_v47  ;;  %v1483_v58 = vmul.f32 %v7259_v39, %v1068_v6  ;;  %v841_v17 = vmul.f32 %v7265_v44, %v10668_v0 }
 0x262   :  { %v2432_v11 = vadd.f32 %v2304_v21, %v1660_v31  ;;  %v2568_v57 = vadd.f32 %v8097_v24, %v2433_v32  ;;  %6007 = vmatmul.mubr.msk.bf16.gmra.mrb[12].mxu1 %vm2844_vm0, %v2780_v38  ;;  %1315 = vperm.xlu1 %6131, %v8214_v12   ;;  %v1076_v55 = vpop.permute.xlu1 %1075  ;;  %v8247_v8 = vpack.c.bf16 %v3583_v28, %v3582_v36  ;;  %v5936_v51 = vpop.f32.mrb[4].mxu0  ;;  %v6281_v38 = vld [vmem:[%s10367_s0 + $0x2f0] sm:$0xff] }
 0x263   :  { %v1485_v49 = vmul.f32 %v7259_v39, %v1076_v55  ;;  %1187 = vperm.xlu0 %6194, %v6279_v20   ;;  %v2781_v15 = vpack.c.bf16 %v2694_v33, %v2693_v52  ;;  %v3096_v42 = vadd.f32 %v5936_v51, %v8197_v41  ;;  %v3087_v50 = vpop.f32.mrb[5].mxu0  ;;  %v839_v2 = vmul.f32 %v7265_v44, %v10669_v10  ;;  %v6282_v51 = vld [vmem:[%s10367_s0 + $0x308] sm:$0xff]  ;;  %v10673_v10 = vld [vmem:[#allocation106_spill] sm:$0xff] }
 0x264   :  { %v2567_v53 = vadd.f32 %v8097_v24, %v2432_v11  ;;  %v2696_v30 = vmax.f32 %v2568_v57, 0.0  ;;  %v1072_v1 = vpop.permute.xlu0 %1071  ;;  %v2257_v5 = vmul.f32 %v7281_v4, %v10670_v37  ;;  %v3088_v60 = vadd.f32 %v8197_v41, %v3087_v50  ;;  %v5937_v56 = vpop.f32.mrb[6].mxu0  ;;  %v10672_v50 = vld [vmem:[#allocation81_spill] sm:$0xff] }
 0x265   :  { %6010 = vmatprep.mubr.msk.bf16.mxu1 %vm2844_vm0, %v2781_v15  ;;  %v2382_v52 = vadd.f32 %v8203_v40, %v1610_v23  ;;  %v1613_v22 = vadd.f32 %v1485_v49, %v841_v17  ;;  %v3099_v25 = vadd.f32 %v5937_v56, %v8197_v41  ;;  %v3090_v18 = vpop.f32.mrb[7].mxu0  ;;  %v1611_v9 = vadd.f32 %v1483_v58, %v839_v2  ;;  %v6284_v17 = vld [vmem:[%s10367_s0 + $0x310] sm:$0xff] }
 0x266   :  { %v2695_v7 = vmax.f32 %v2567_v53, 0.0  ;;  %6132 = vset.pattern.permute.xlu1 %v10623_v13  ;;  %v1484_v14 = vmul.f32 %v7259_v39, %v1072_v1  ;;  %v3091_v29 = vadd.f32 %v8197_v41, %v3090_v18  ;;  %v3588_v27 = vmax.f32 %v3096_v42, 0.0  ;;  %v132_v42 = vld [vmem:[%s10367_s0 + $0x318] sm:$0xff] }
 0x267   :  { %2075 = vperm.xlu1 %6132, %v8131_v19   ;;  %v1840_v59 = vpop.permute.xlu1 %1839  ;;  %6197 = vset.pattern.permute.xlu0 %v10623_v13  ;;  %v3589_v45 = vmax.f32 %v3099_v25, 0.0  ;;  %v840_v48 = vmul.f32 %v7265_v44, %v10671_v61  ;;  %v3586_v3 = vmax.f32 %v3088_v60, 0.0  ;;  %v2517_v19 = vadd.f32 %v8097_v24, %v2382_v52 }
 0x268   :  { %v2255_v40 = vmul.f32 %v7281_v4, %v1840_v59  ;;  %v2782_v46 = vpack.c.bf16 %v2696_v30, %v2695_v7  ;;  %1951 = vperm.xlu0 %6197, %v6280_v43   ;;  %v3587_v35 = vmax.f32 %v3091_v29, 0.0  ;;  %v2385_v21 = vadd.f32 %v2257_v5, %v1613_v22  ;;  %v1280_v56 = vpop.permute.xlu0 %1279 }
 0x269   :  { %v8279_v63 = vpack.c.bf16 %v3589_v45, %v3588_v27  ;;  %v1612_v31 = vadd.f32 %v1484_v14, %v840_v48  ;;  %v2645_v23 = vmax.f32 %v2517_v19, 0.0  ;;  %v891_v1 = vmul.f32 %v7265_v44, %v10672_v50  ;;  %v10674_v14 = vld [vmem:[#allocation82_spill] sm:$0xff] }
 0x26a   :  { %v2383_v54 = vadd.f32 %v2255_v40, %v1611_v9  ;;  %6011 = vmatmul.mubr.msk.bf16.gmra.mrb[16].mxu1 %vm2844_vm0, %v2782_v46  ;;  %v8284_v34 = vpack.c.bf16 %v3587_v35, %v3586_v3  ;;  %v2520_v33 = vadd.f32 %v8097_v24, %v2385_v21  ;;  %v2307_v2 = vmul.f32 %v7281_v4, %v10673_v10 }
 0x26b   :  { %2083 = vperm.xlu1 %6132, %v6281_v38   ;;  %v1844_v47 = vpop.permute.xlu1 %1843  ;;  %v1536_v25 = vmul.f32 %v7259_v39, %v1280_v56  ;;  %v892_v29 = vmul.f32 %v7265_v44, %v10674_v14 }
 0x26c   :  { %v2518_v32 = vadd.f32 %v8097_v24, %v2383_v54  ;;  %v2256_v6 = vmul.f32 %v7281_v4, %v1844_v47  ;;  %v2648_v58 = vmax.f32 %v2520_v33, 0.0  ;;  %v6285_v47 = vld [vmem:[%s10367_s0 + $0x140] sm:$0xff]  ;;  %v1292_v50 = vpop.permute.xlu0 %1291 }
 0x26d   :  { %v1664_v40 = vadd.f32 %v1536_v25, %v892_v29 }
 0x26e   :  { %v2646_v36 = vmax.f32 %v2518_v32, 0.0  ;;  %v2384_v28 = vadd.f32 %v2256_v6, %v1612_v31 }
 0x26f   :  { %2087 = vperm.xlu1 %6132, %v8214_v12   ;;  %v6283_v12 = vld [vmem:[%s10367_s0 + $0x300] sm:$0xff] }
 0x270   :  { %v2519_v11 = vadd.f32 %v8097_v24, %v2384_v28  ;;  %v585_v57 = vpop.permute.xlu1 %584  ;;  %v2757_v55 = vpack.c.bf16 %v2646_v36, %v2645_v23 }
 0x271   :  { %v890_v52 = vmul.f32 %v7265_v44, %v585_v57 }
 0x272   :  { %v2647_v49 = vmax.f32 %v2519_v11, 0.0  ;;  %5962 = vmatprep.mubr.msk.bf16.mxu0 %vm2844_vm0, %v2757_v55  ;;  %v6286_v55 = vld [vmem:[%s10367_s0 + $0x158] sm:$0xff] }
 0x273   :  { %6133 = vset.pattern.permute.xlu1 %v10475_v16 }
 0x274   :  { %649 = vperm.xlu1 %6133, %v6282_v51   ;;  %v2758_v20 = vpack.c.bf16 %v2648_v58, %v2647_v49 }
 0x275   :  { %v1272_v15 = vpop.permute.xlu1 %1271 }
 0x276   :  { %5963 = vmatmul.mubr.msk.bf16.gmra.mrb[32].mxu0 %vm2844_vm0, %v2758_v20  ;;  %v1534_v60 = vmul.f32 %v7259_v39, %v1272_v15  ;;  %v6287_v20 = vld [vmem:[%s10367_s0 + $0x148] sm:$0xff] }
 0x277   :  { %v10675_v15 = vld [vmem:[#allocation83_spill] sm:$0xff] }
 0x278   :  { %6134 = vset.pattern.permute.xlu1 %v10424_v26  ;;  %v1662_v18 = vadd.f32 %v1534_v60, %v890_v52 }
 0x279   :  { %1319 = vperm.xlu1 %6134, %v6283_v12   ;;  %v1276_v0 = vpop.permute.xlu1 %1275  ;;  %v894_v12 = vmul.f32 %v7265_v44, %v10675_v15 }
 0x27a   :  { %v1535_v30 = vmul.f32 %v7259_v39, %v1276_v0  ;;  %v10676_v0 = vld [vmem:[#allocation108_spill] sm:$0xff] }
 0x27c   :  { %v1663_v37 = vadd.f32 %v1535_v30, %v891_v1  ;;  %v6288_v30 = vld [vmem:[%s10367_s0 + $0x150] sm:$0xff]  ;;  %v1539_v1 = vmul.f32 %v7259_v39, %v1292_v50 }
 0x27d   :  { %6135 = vset.pattern.permute.xlu1 %v10475_v16 }
 0x27e   :  { %654 = vperm.xlu1 %6135, %v6284_v17   ;;  %v600_v53 = vpop.permute.xlu1 %599  ;;  %v2435_v7 = vadd.f32 %v2307_v2, %v1663_v37  ;;  %v133_v2 = vld [vmem:[%s10367_s0 + $0x320] sm:$0xff] }
 0x27f   :  { %v893_v3 = vmul.f32 %v7265_v44, %v600_v53 }
 0x280   :  { %v2570_v59 = vadd.f32 %v8097_v24, %v2435_v7 }
 0x282   :  { %659 = vperm.xlu1 %6135, %v132_v42   ;;  %v2698_v48 = vmax.f32 %v2570_v59, 0.0 }
 0x283   :  { %v1284_v5 = vpop.permute.xlu1 %1283 }
 0x284   :  { %v1537_v46 = vmul.f32 %v7259_v39, %v1284_v5 }
 0x286   :  { %6136 = vset.pattern.permute.xlu1 %v10424_v26  ;;  %v1665_v54 = vadd.f32 %v1537_v46, %v893_v3 }
 0x287   :  { %1331 = vperm.xlu1 %6136, %v132_v42  }
 0x288   :  { %v2044_v22 = vpop.permute.xlu1 %2043 }
 0x289   :  { %v2306_v9 = vmul.f32 %v7281_v4, %v2044_v22 }
 0x28b   :  { %v2434_v27 = vadd.f32 %v2306_v9, %v1662_v18  ;;  %6137 = vset.pattern.permute.xlu1 %v10623_v13  ;;  %v1296_v18 = vpop.permute.xlu0 %1295 }
 0x28c   :  { %2095 = vperm.xlu1 %6137, %v6282_v51   ;;  %v2052_v45 = vpop.permute.xlu1 %2051  ;;  %v1540_v9 = vmul.f32 %v7259_v39, %v1296_v18  ;;  %v6290_v18 = vld [vmem:[%s10367_s0 + $0x330] sm:$0xff] }
 0x28d   :  { %v2569_v43 = vadd.f32 %v8097_v24, %v2434_v27  ;;  %v2308_v61 = vmul.f32 %v7281_v4, %v2052_v45  ;;  %v6289_v27 = vld [vmem:[%s10367_s0 + $0x328] sm:$0xff] }
 0x28f   :  { %v2697_v35 = vmax.f32 %v2569_v43, 0.0  ;;  %v2436_v19 = vadd.f32 %v2308_v61, %v1664_v40 }
 0x290   :  { %6138 = vset.pattern.permute.xlu1 %v10424_v26  ;;  %v2056_v21 = vpop.permute.xlu1 %2055 }
 0x291   :  { %v2309_v38 = vmul.f32 %v7281_v4, %v2056_v21  ;;  %1095 = vperm.xlu1 %6138, %v6285_v47   ;;  %v2783_v31 = vpack.c.bf16 %v2698_v48, %v2697_v35  ;;  %v2571_v32 = vadd.f32 %v8097_v24, %v2436_v19  ;;  %v136_v48 = vld [vmem:[%s10367_s0 + $0x338] sm:$0xff]  ;;  %v1084_v47 = vpop.permute.xlu0 %1083 }
 0x293   :  { %v2437_v6 = vadd.f32 %v2309_v38, %v1665_v54  ;;  %6014 = vmatprep.mubr.msk.bf16.mxu1 %vm2844_vm0, %v2783_v31  ;;  %v2699_v36 = vmax.f32 %v2571_v32, 0.0  ;;  %v10677_v31 = vld [vmem:[#allocation50_spill] sm:$0xff] }
 0x294   :  { %v842_v32 = vmul.f32 %v7265_v44, %v10677_v31 }
 0x295   :  { %v2572_v23 = vadd.f32 %v8097_v24, %v2437_v6  ;;  %6139 = vset.pattern.permute.xlu1 %v10623_v13  ;;  %v610_v33 = vpop.permute.xlu1 %609 }
 0x296   :  { %2099 = vperm.xlu1 %6139, %v6284_v17   ;;  %v2310_v17 = vmul.f32 %v7281_v4, %v10676_v0  ;;  %v895_v10 = vmul.f32 %v7265_v44, %v610_v33  ;;  %v10678_v33 = vld [vmem:[#allocation109_spill] sm:$0xff] }
 0x297   :  { %v2700_v28 = vmax.f32 %v2572_v23, 0.0 }
 0x298   :  { %v1667_v60 = vadd.f32 %v1539_v1, %v895_v10 }
 0x299   :  { %v2784_v11 = vpack.c.bf16 %v2700_v28, %v2699_v36  ;;  %v2258_v36 = vmul.f32 %v7281_v4, %v10678_v33 }
 0x29a   :  { %2103 = vperm.xlu1 %6139, %v132_v42   ;;  %v1288_v57 = vpop.permute.xlu1 %1287 }
 0x29b   :  { %6015 = vmatmul.mubr.msk.bf16.gmra.mrb[20].mxu1 %vm2844_vm0, %v2784_v11  ;;  %v1538_v51 = vmul.f32 %v7259_v39, %v1288_v57 }
 0x29d   :  { %v1666_v53 = vadd.f32 %v1538_v51, %v894_v12  ;;  %v1487_v51 = vmul.f32 %v7259_v39, %v1084_v47  ;;  %v10680_v12 = vld [vmem:[#allocation40_spill] sm:$0xff] }
 0x29e   :  { %6140 = vset.pattern.permute.xlu1 %v10424_v26  ;;  %v843_v0 = vmul.f32 %v7265_v44, %v10680_v12  ;;  %v6293_v47 = vld [vmem:[%s10367_s0 + $0x350] sm:$0xff] }
 0x29f   :  { %1107 = vperm.xlu1 %6140, %v6286_v55   ;;  %v615_v58 = vpop.permute.xlu1 %614  ;;  %v2438_v37 = vadd.f32 %v2310_v17, %v1666_v53  ;;  %v1088_v17 = vpop.permute.xlu0 %1087  ;;  %v10681_v53 = vld [vmem:[#allocation111_spill] sm:$0xff] }
 0x2a0   :  { %v896_v29 = vmul.f32 %v7265_v44, %v615_v58  ;;  %v10679_v58 = vld [vmem:[#allocation42_spill] sm:$0xff] }
 0x2a1   :  { %v2573_v52 = vadd.f32 %v8097_v24, %v2438_v37  ;;  %v1615_v37 = vadd.f32 %v1487_v51, %v843_v0 }
 0x2a2   :  { %v1668_v46 = vadd.f32 %v1540_v9, %v896_v29 }
 0x2a3   :  { %6141 = vset.pattern.permute.xlu1 %v10623_v13  ;;  %v620_v49 = vpop.permute.xlu1 %619  ;;  %v2701_v14 = vmax.f32 %v2573_v52, 0.0 }
 0x2a4   :  { %1871 = vperm.xlu1 %6141, %v6287_v20   ;;  %v897_v3 = vmul.f32 %v7265_v44, %v620_v49  ;;  %v845_v49 = vmul.f32 %v7265_v44, %v10679_v58  ;;  %v1312_v58 = vpop.permute.xlu0 %1311 }
 0x2a8   :  { %1875 = vperm.xlu1 %6141, %v6288_v30   ;;  %v1300_v42 = vpop.permute.xlu1 %1299  ;;  %v2261_v30 = vmul.f32 %v7281_v4, %v10681_v53 }
 0x2a9   :  { %v1541_v43 = vmul.f32 %v7259_v39, %v1300_v42 }
 0x2ab   :  { %v1669_v21 = vadd.f32 %v1541_v43, %v897_v3 }
 0x2ac   :  { %6142 = vset.pattern.permute.xlu1 %v10475_v16 }
 0x2ad   :  { %664 = vperm.xlu1 %6142, %v133_v2   ;;  %v2064_v5 = vpop.permute.xlu1 %2063 }
 0x2ae   :  { %v2311_v56 = vmul.f32 %v7281_v4, %v2064_v5  ;;  %v1488_v5 = vmul.f32 %v7259_v39, %v1088_v17  ;;  %v10685_v17 = vld [vmem:[#allocation85_spill] sm:$0xff] }
 0x2af   :  { %v900_v53 = vmul.f32 %v7265_v44, %v10685_v17 }
 0x2b0   :  { %v2439_v7 = vadd.f32 %v2311_v56, %v1667_v60  ;;  %v10682_v56 = vld [vmem:[#allocation52_spill] sm:$0xff] }
 0x2b1   :  { %6143 = vset.pattern.permute.xlu1 %v10424_v26  ;;  %v844_v52 = vmul.f32 %v7265_v44, %v10682_v56 }
 0x2b2   :  { %v2574_v22 = vadd.f32 %v8097_v24, %v2439_v7  ;;  %1335 = vperm.xlu1 %6143, %v133_v2   ;;  %v1080_v25 = vpop.permute.xlu1 %1079 }
 0x2b3   :  { %v1486_v54 = vmul.f32 %v7259_v39, %v1080_v25  ;;  %v1616_v9 = vadd.f32 %v1488_v5, %v844_v52 }
 0x2b4   :  { %v2702_v59 = vmax.f32 %v2574_v22, 0.0 }
 0x2b5   :  { %v1614_v28 = vadd.f32 %v1486_v54, %v842_v32 }
 0x2b6   :  { %1339 = vperm.xlu1 %6143, %v6289_v27   ;;  %v2785_v45 = vpack.c.bf16 %v2702_v59, %v2701_v14 }
 0x2b7   :  { %v2068_v40 = vpop.permute.xlu1 %2067  ;;  %v2386_v42 = vadd.f32 %v2258_v36, %v1614_v28  ;;  %v10684_v36 = vld [vmem:[#allocation113_spill] sm:$0xff] }
 0x2b8   :  { %v2312_v61 = vmul.f32 %v7281_v4, %v2068_v40  ;;  %6018 = vmatprep.mubr.msk.bf16.mxu1 %vm2844_vm0, %v2785_v45  ;;  %v2315_v28 = vmul.f32 %v7281_v4, %v10684_v36 }
 0x2b9   :  { %v2521_v7 = vadd.f32 %v8097_v24, %v2386_v42 }
 0x2ba   :  { %v2440_v35 = vadd.f32 %v2312_v61, %v1668_v46  ;;  %6144 = vset.pattern.permute.xlu1 %v10475_v16 }
 0x2bb   :  { %679 = vperm.xlu1 %6144, %v136_v48   ;;  %v2072_v19 = vpop.permute.xlu1 %2071  ;;  %v2649_v59 = vmax.f32 %v2521_v7, 0.0 }
 0x2bc   :  { %v2313_v38 = vmul.f32 %v7281_v4, %v2072_v19  ;;  %v2575_v6 = vadd.f32 %v8097_v24, %v2440_v35  ;;  %v6291_v19 = vld [vmem:[%s10367_s0 + $0x348] sm:$0xff] }
 0x2be   :  { %v2441_v23 = vadd.f32 %v2313_v38, %v1669_v21  ;;  %v2703_v20 = vmax.f32 %v2575_v6, 0.0  ;;  %v140_v6 = vld [vmem:[%s10367_s0 + $0x358] sm:$0xff] }
 0x2bf   :  { %6145 = vset.pattern.permute.xlu1 %v10424_v26 }
 0x2c0   :  { %v2576_v11 = vadd.f32 %v8097_v24, %v2441_v23  ;;  %1347 = vperm.xlu1 %6145, %v136_v48   ;;  %v1092_v57 = vpop.permute.xlu1 %1091  ;;  %v10683_v23 = vld [vmem:[#allocation84_spill] sm:$0xff] }
 0x2c1   :  { %v1489_v55 = vmul.f32 %v7259_v39, %v1092_v57  ;;  %v899_v33 = vmul.f32 %v7265_v44, %v10683_v23 }
 0x2c2   :  { %v2704_v15 = vmax.f32 %v2576_v11, 0.0 }
 0x2c3   :  { %v1617_v50 = vadd.f32 %v1489_v55, %v845_v49 }
 0x2c4   :  { %6146 = vset.pattern.permute.xlu1 %v10623_v13  ;;  %v2786_v1 = vpack.c.bf16 %v2704_v15, %v2703_v20  ;;  %v1544_v15 = vmul.f32 %v7259_v39, %v1312_v58 }
 0x2c5   :  { %2107 = vperm.xlu1 %6146, %v133_v2   ;;  %v1856_v10 = vpop.permute.xlu1 %1855  ;;  %v2389_v22 = vadd.f32 %v2261_v30, %v1617_v50 }
 0x2c6   :  { %v2259_v60 = vmul.f32 %v7281_v4, %v1856_v10  ;;  %6019 = vmatmul.mubr.msk.bf16.gmra.mrb[24].mxu1 %vm2844_vm0, %v2786_v1  ;;  %v1672_v1 = vadd.f32 %v1544_v15, %v900_v53 }
 0x2c7   :  { %v2524_v27 = vadd.f32 %v8097_v24, %v2389_v22 }
 0x2c8   :  { %v2387_v25 = vadd.f32 %v2259_v60, %v1615_v37 }
 0x2c9   :  { %2115 = vperm.xlu1 %6146, %v6290_v18   ;;  %v1860_v2 = vpop.permute.xlu1 %1859  ;;  %v2652_v3 = vmax.f32 %v2524_v27, 0.0 }
 0x2ca   :  { %v2522_v14 = vadd.f32 %v8097_v24, %v2387_v25  ;;  %v2260_v29 = vmul.f32 %v7281_v4, %v1860_v2  ;;  %v6294_v2 = vld [vmem:[%s10367_s0 + $0x160] sm:$0xff] }
 0x2cc   :  { %v2650_v45 = vmax.f32 %v2522_v14, 0.0  ;;  %v2388_v40 = vadd.f32 %v2260_v29, %v1616_v9 }
 0x2cd   :  { %2119 = vperm.xlu1 %6146, %v136_v48   ;;  %v6292_v48 = vld [vmem:[%s10367_s0 + $0x340] sm:$0xff] }
 0x2ce   :  { %v2523_v46 = vadd.f32 %v8097_v24, %v2388_v40  ;;  %v625_v43 = vpop.permute.xlu1 %624  ;;  %v2759_v61 = vpack.c.bf16 %v2650_v45, %v2649_v59 }
 0x2cf   :  { %v898_v49 = vmul.f32 %v7265_v44, %v625_v43 }
 0x2d0   :  { %v2651_v35 = vmax.f32 %v2523_v46, 0.0  ;;  %5966 = vmatprep.mubr.msk.bf16.mxu0 %vm2844_vm0, %v2759_v61 }
 0x2d1   :  { %6147 = vset.pattern.permute.xlu1 %v10475_v16 }
 0x2d2   :  { %689 = vperm.xlu1 %6147, %v6291_v19   ;;  %v2760_v21 = vpack.c.bf16 %v2652_v3, %v2651_v35 }
 0x2d3   :  { %v1304_v54 = vpop.permute.xlu1 %1303 }
 0x2d4   :  { %5967 = vmatmul.mubr.msk.bf16.gmra.mrb[36].mxu0 %vm2844_vm0, %v2760_v21  ;;  %v1542_v55 = vmul.f32 %v7259_v39, %v1304_v54 }
 0x2d6   :  { %6148 = vset.pattern.permute.xlu1 %v10424_v26  ;;  %v1670_v12 = vadd.f32 %v1542_v55, %v898_v49 }
 0x2d7   :  { %1351 = vperm.xlu1 %6148, %v6292_v48   ;;  %v1308_v38 = vpop.permute.xlu1 %1307 }
 0x2d8   :  { %v1543_v32 = vmul.f32 %v7259_v39, %v1308_v38 }
 0x2da   :  { %v1671_v11 = vadd.f32 %v1543_v32, %v899_v33  ;;  %v6295_v32 = vld [vmem:[%s10367_s0 + $0x178] sm:$0xff] }
 0x2db   :  { %6149 = vset.pattern.permute.xlu1 %v10475_v16 }
 0x2dc   :  { %694 = vperm.xlu1 %6149, %v6293_v47   ;;  %v640_v31 = vpop.permute.xlu1 %639  ;;  %v2443_v51 = vadd.f32 %v2315_v28, %v1671_v11 }
 0x2dd   :  { %v901_v56 = vmul.f32 %v7265_v44, %v640_v31 }
 0x2de   :  { %v2578_v30 = vadd.f32 %v8097_v24, %v2443_v51  ;;  %v6296_v51 = vld [vmem:[%s10367_s0 + $0x168] sm:$0xff] }
 0x2e0   :  { %699 = vperm.xlu1 %6149, %v140_v6   ;;  %v2706_v60 = vmax.f32 %v2578_v30, 0.0 }
 0x2e1   :  { %v1316_v57 = vpop.permute.xlu1 %1315 }
 0x2e2   :  { %v1545_v10 = vmul.f32 %v7259_v39, %v1316_v57 }
 0x2e4   :  { %6150 = vset.pattern.permute.xlu1 %v10424_v26  ;;  %v1673_v25 = vadd.f32 %v1545_v10, %v901_v56  ;;  %v1324_v56 = vpop.permute.xlu0 %1323 }
 0x2e5   :  { %1363 = vperm.xlu1 %6150, %v140_v6  }
 0x2e6   :  { %v2076_v20 = vpop.permute.xlu1 %2075 }
 0x2e7   :  { %v2314_v0 = vmul.f32 %v7281_v4, %v2076_v20 }
 0x2e9   :  { %v2442_v42 = vadd.f32 %v2314_v0, %v1670_v12  ;;  %6151 = vset.pattern.permute.xlu1 %v10623_v13  ;;  %v10686_v12 = vld [vmem:[#allocation86_spill] sm:$0xff] }
 0x2ea   :  { %2127 = vperm.xlu1 %6151, %v6291_v19   ;;  %v2084_v50 = vpop.permute.xlu1 %2083  ;;  %v902_v0 = vmul.f32 %v7265_v44, %v10686_v12 }
 0x2eb   :  { %v2577_v37 = vadd.f32 %v8097_v24, %v2442_v42  ;;  %v2316_v5 = vmul.f32 %v7281_v4, %v2084_v50  ;;  %v10687_v42 = vld [vmem:[#allocation115_spill] sm:$0xff] }
 0x2ec   :  { %v2318_v50 = vmul.f32 %v7281_v4, %v10687_v42  ;;  %v6298_v42 = vld [vmem:[%s10367_s0 + $0x368] sm:$0xff] }
 0x2ed   :  { %v2705_v52 = vmax.f32 %v2577_v37, 0.0  ;;  %v2444_v7 = vadd.f32 %v2316_v5, %v1672_v1  ;;  %v6297_v5 = vld [vmem:[%s10367_s0 + $0x170] sm:$0xff] }
 0x2ee   :  { %6152 = vset.pattern.permute.xlu1 %v10424_v26  ;;  %v2088_v22 = vpop.permute.xlu1 %2087 }
 0x2ef   :  { %v2317_v18 = vmul.f32 %v7281_v4, %v2088_v22  ;;  %1111 = vperm.xlu1 %6152, %v6294_v2   ;;  %v2787_v9 = vpack.c.bf16 %v2706_v60, %v2705_v52  ;;  %v2579_v14 = vadd.f32 %v8097_v24, %v2444_v7  ;;  %v1547_v22 = vmul.f32 %v7259_v39, %v1324_v56 }
 0x2f1   :  { %v2445_v29 = vadd.f32 %v2317_v18, %v1673_v25  ;;  %6022 = vmatprep.mubr.msk.bf16.mxu1 %vm2844_vm0, %v2787_v9  ;;  %v2707_v45 = vmax.f32 %v2579_v14, 0.0  ;;  %v8486_v18 = vld [vmem:[%s10367_s0 + $0x360] sm:$0xff] }
 0x2f3   :  { %v2580_v59 = vadd.f32 %v8097_v24, %v2445_v29  ;;  %6153 = vset.pattern.permute.xlu1 %v10623_v13  ;;  %v650_v27 = vpop.permute.xlu1 %649 }
 0x2f4   :  { %2131 = vperm.xlu1 %6153, %v6293_v47   ;;  %v903_v25 = vmul.f32 %v7265_v44, %v650_v27 }
 0x2f5   :  { %v2708_v40 = vmax.f32 %v2580_v59, 0.0 }
 0x2f7   :  { %v2788_v46 = vpack.c.bf16 %v2708_v40, %v2707_v45 }
 0x2f8   :  { %2135 = vperm.xlu1 %6153, %v140_v6   ;;  %v1320_v43 = vpop.permute.xlu1 %1319  ;;  %v5940_v61 = vpop.f32.mrb[8].mxu0 }
 0x2f9   :  { %v3112_v3 = vadd.f32 %v5940_v61, %v8197_v41  ;;  %v3103_v35 = vpop.f32.mrb[9].mxu0  ;;  %6023 = vmatmul.mubr.msk.bf16.gmra.mrb[28].mxu1 %vm2844_vm0, %v2788_v46  ;;  %v1546_v55 = vmul.f32 %v7259_v39, %v1320_v43  ;;  %v1675_v43 = vadd.f32 %v1547_v22, %v903_v25  ;;  %v8523_v22 = vld [vmem:[%s10367_s0 + $0x378] sm:$0xff]  ;;  %v10688_v25 = vld [vmem:[#allocation54_spill] sm:$0xff] }
 0x2fa   :  { %v3104_v19 = vadd.f32 %v8197_v41, %v3103_v35  ;;  %v5941_v21 = vpop.f32.mrb[10].mxu0 }
 0x2fb   :  { %v3115_v54 = vadd.f32 %v5941_v21, %v8197_v41  ;;  %v3106_v48 = vpop.f32.mrb[11].mxu0  ;;  %v3592_v47 = vmax.f32 %v3112_v3, 0.0  ;;  %v1674_v1 = vadd.f32 %v1546_v55, %v902_v0 }
 0x2fc   :  { %v3107_v38 = vadd.f32 %v8197_v41, %v3106_v48  ;;  %6154 = vset.pattern.permute.xlu1 %v10424_v26  ;;  %v3590_v23 = vmax.f32 %v3104_v19, 0.0 }
 0x2fd   :  { %v3593_v31 = vmax.f32 %v3115_v54, 0.0  ;;  %1123 = vperm.xlu1 %6154, %v6295_v32   ;;  %v655_v6 = vpop.permute.xlu1 %654  ;;  %v2446_v29 = vadd.f32 %v2318_v50, %v1674_v1  ;;  %v1328_v32 = vpop.permute.xlu0 %1327 }
 0x2fe   :  { %v3591_v33 = vmax.f32 %v3107_v38, 0.0  ;;  %v1548_v55 = vmul.f32 %v7259_v39, %v1328_v32 }
 0x2ff   :  { %v8459_v36 = vpack.c.bf16 %v3593_v31, %v3592_v47  ;;  %v2581_v21 = vadd.f32 %v8097_v24, %v2446_v29 }
 0x300   :  { %v8461_v28 = vpack.c.bf16 %v3591_v33, %v3590_v23 }
 0x301   :  { %v5944_v11 = vpop.f32.mrb[12].mxu0  ;;  %6155 = vset.pattern.permute.xlu1 %v10623_v13  ;;  %v8464_v57 = vpop.permute.xlu1 %659 }
 0x302   :  { %v3128_v58 = vadd.f32 %v5944_v11, %v8197_v41  ;;  %v3119_v49 = vpop.f32.mrb[13].mxu0  ;;  %1887 = vperm.xlu1 %6155, %v6296_v51  }
 0x303   :  { %v3120_v20 = vadd.f32 %v8197_v41, %v3119_v49  ;;  %v5945_v15 = vpop.f32.mrb[14].mxu0 }
 0x304   :  { %v3131_v17 = vadd.f32 %v5945_v15, %v8197_v41  ;;  %v3122_v53 = vpop.f32.mrb[15].mxu0  ;;  %v3596_v10 = vmax.f32 %v3128_v58, 0.0  ;;  %v904_v58 = vmul.f32 %v7265_v44, %v655_v6 }
 0x305   :  { %v3123_v30 = vadd.f32 %v8197_v41, %v3122_v53  ;;  %v3594_v52 = vmax.f32 %v3120_v20, 0.0  ;;  %v2709_v20 = vmax.f32 %v2581_v21, 0.0 }
 0x306   :  { %v3597_v37 = vmax.f32 %v3131_v17, 0.0  ;;  %1891 = vperm.xlu1 %6155, %v6297_v5   ;;  %v1332_v60 = vpop.permute.xlu1 %1331  ;;  %v1676_v50 = vadd.f32 %v1548_v55, %v904_v58  ;;  %v8547_v55 = vld [vmem:[%s10370_s2] ss:$0 sm:$0xff] }
 0x307   :  { %v3595_v7 = vmax.f32 %v3123_v30, 0.0  ;;  %v1549_v5 = vmul.f32 %v7259_v39, %v1332_v60 }
 0x308   :  { %v8488_v2 = vpack.c.bf16 %v3597_v37, %v3596_v10 }
 0x309   :  { %v5948_v9 = vpop.f32.mrb[16].mxu0  ;;  %v8490_v14 = vpack.c.bf16 %v3595_v7, %v3594_v52 }
 0x30a   :  { %v3144_v59 = vadd.f32 %v5948_v9, %v8197_v41  ;;  %v3135_v45 = vpop.f32.mrb[17].mxu0  ;;  %6156 = vset.pattern.permute.xlu1 %v10475_v16  ;;  %v846_v9 = vmul.f32 %v7265_v44, %v10688_v25 }
 0x30b   :  { %v3136_v40 = vadd.f32 %v8197_v41, %v3135_v45  ;;  %v5949_v46 = vpop.f32.mrb[18].mxu0  ;;  %704 = vperm.xlu1 %6156, %v8486_v18   ;;  %v2096_v27 = vpop.permute.xlu1 %2095  ;;  %v905_v45 = vmul.f32 %v7265_v44, %v8464_v57 }
 0x30c   :  { %v3147_v61 = vadd.f32 %v5949_v46, %v8197_v41  ;;  %v2319_v3 = vmul.f32 %v7281_v4, %v2096_v27  ;;  %v3138_v35 = vpop.f32.mrb[19].mxu0  ;;  %v3600_v54 = vmax.f32 %v3144_v59, 0.0  ;;  %v10689_v46 = vld [vmem:[#allocation117_spill] sm:$0xff] }
 0x30d   :  { %v3139_v19 = vadd.f32 %v8197_v41, %v3138_v35  ;;  %v3598_v47 = vmax.f32 %v3136_v40, 0.0  ;;  %v2262_v27 = vmul.f32 %v7281_v4, %v10689_v46  ;;  %v1677_v21 = vadd.f32 %v1549_v5, %v905_v45 }
 0x30e   :  { %v3601_v48 = vmax.f32 %v3147_v61, 0.0  ;;  %v2447_v38 = vadd.f32 %v2319_v3, %v1675_v43 }
 0x30f   :  { %v3599_v31 = vmax.f32 %v3139_v19, 0.0  ;;  %6157 = vset.pattern.permute.xlu1 %v10424_v26  ;;  %v1100_v19 = vpop.permute.xlu0 %1099 }
 0x310   :  { %v2582_v23 = vadd.f32 %v8097_v24, %v2447_v38  ;;  %1367 = vperm.xlu1 %6157, %v8486_v18   ;;  %v1096_v33 = vpop.permute.xlu1 %1095  ;;  %v8503_v11 = vpack.c.bf16 %v3601_v48, %v3600_v54  ;;  %v10690_v38 = vld [vmem:[#allocation47_spill] sm:$0xff] }
 0x311   :  { %v5952_v49 = vpop.f32.mrb[20].mxu0  ;;  %v8507_v51 = vpack.c.bf16 %v3599_v31, %v3598_v47  ;;  %v1490_v1 = vmul.f32 %v7259_v39, %v1096_v33  ;;  %v849_v47 = vmul.f32 %v7265_v44, %v10690_v38 }
 0x312   :  { %v2710_v15 = vmax.f32 %v2582_v23, 0.0  ;;  %v3160_v12 = vadd.f32 %v5952_v49, %v8197_v41  ;;  %v3151_v0 = vpop.f32.mrb[21].mxu0  ;;  %v10691_v23 = vld [vmem:[#allocation119_spill] sm:$0xff] }
 0x313   :  { %v3152_v17 = vadd.f32 %v8197_v41, %v3151_v0  ;;  %v5953_v24 = vpop.f32.mrb[22].mxu0  ;;  %v1618_v43 = vadd.f32 %v1490_v1, %v846_v9  ;;  %v2265_v33 = vmul.f32 %v7281_v4, %v10691_v23  ;;  %v1491_v0 = vmul.f32 %v7259_v39, %v1100_v19 }
 0x314   :  { %v3163_v53 = vadd.f32 %v5953_v24, %v8197_v41  ;;  %v3154_v30 = vpop.f32.mrb[23].mxu0  ;;  %1371 = vperm.xlu1 %6157, %v6298_v42   ;;  %v2789_v6 = vpack.c.bf16 %v2710_v15, %v2709_v20  ;;  %v3604_v56 = vmax.f32 %v3160_v12, 0.0 }
 0x315   :  { %v3155_v10 = vadd.f32 %v8197_v41, %v3154_v30  ;;  %v2100_v37 = vpop.permute.xlu1 %2099  ;;  %v3602_v29 = vmax.f32 %v3152_v17, 0.0  ;;  %v2390_v17 = vadd.f32 %v2262_v27, %v1618_v43 }
 0x316   :  { %v3605_v52 = vmax.f32 %v3163_v53, 0.0  ;;  %v2320_v7 = vmul.f32 %v7281_v4, %v2100_v37  ;;  %6026 = vmatprep.mubr.msk.bf16.mxu1 %vm2844_vm0, %v2789_v6 }
 0x317   :  { %v3603_v59 = vmax.f32 %v3155_v10, 0.0 }
 0x318   :  { %v2448_v60 = vadd.f32 %v2320_v7, %v1676_v50  ;;  %6158 = vset.pattern.permute.xlu1 %v10475_v16  ;;  %v8530_v40 = vpack.c.bf16 %v3605_v52, %v3604_v56 }
 0x319   :  { %v5996_v61 = vpop.f32.mrb[0].mxu1  ;;  %719 = vperm.xlu1 %6158, %v8523_v22   ;;  %v2104_v3 = vpop.permute.xlu1 %2103  ;;  %v8535_v35 = vpack.c.bf16 %v3603_v59, %v3602_v29 }
 0x31a   :  { %v3336_v54 = vadd.f32 %v5996_v61, %v8197_v41  ;;  %v2321_v57 = vmul.f32 %v7281_v4, %v2104_v3  ;;  %v3327_v48 = vpop.f32.mrb[1].mxu1  ;;  %v2583_v58 = vadd.f32 %v8547_v55, %v2448_v60  ;;  %v1104_v60 = vpop.permute.xlu0 %1103  ;;  %v10692_v3 = vld [vmem:[#allocation45_spill] sm:$0xff] }
 0x31b   :  { %v3328_v31 = vadd.f32 %v8197_v41, %v3327_v48  ;;  %v5997_v32 = vpop.f32.mrb[2].mxu1  ;;  %v847_v19 = vmul.f32 %v7265_v44, %v10692_v3 }
 0x31c   :  { %v2449_v49 = vadd.f32 %v2321_v57, %v1677_v21  ;;  %v3339_v20 = vadd.f32 %v5997_v32, %v8197_v41  ;;  %v3330_v15 = vpop.f32.mrb[3].mxu1  ;;  %v5956_v12 = vpop.f32.mrb[24].mxu0  ;;  %v3648_v42 = vmax.f32 %v3336_v54, 0.0  ;;  %v2711_v9 = vmax.f32 %v2583_v58, 0.0 }
 0x31d   :  { %v3331_v24 = vadd.f32 %v8197_v41, %v3330_v15  ;;  %v3176_v53 = vadd.f32 %v5956_v12, %v8197_v41  ;;  %6159 = vset.pattern.permute.xlu1 %v10424_v26  ;;  %v3167_v30 = vpop.f32.mrb[25].mxu0  ;;  %v3646_v5 = vmax.f32 %v3328_v31, 0.0  ;;  %v1619_v31 = vadd.f32 %v1491_v0, %v847_v19 }
 0x31e   :  { %v2584_v6 = vadd.f32 %v8547_v55, %v2449_v49  ;;  %v3649_v50 = vmax.f32 %v3339_v20, 0.0  ;;  %v3168_v1 = vadd.f32 %v8197_v41, %v3167_v30  ;;  %1379 = vperm.xlu1 %6159, %v8523_v22   ;;  %v1108_v10 = vpop.permute.xlu1 %1107  ;;  %v5957_v37 = vpop.f32.mrb[26].mxu0  ;;  %v1492_v32 = vmul.f32 %v7259_v39, %v1104_v60 }
 0x31f   :  { %v3647_v56 = vmax.f32 %v3331_v24, 0.0  ;;  %v1493_v52 = vmul.f32 %v7259_v39, %v1108_v10  ;;  %v3179_v7 = vadd.f32 %v5957_v37, %v8197_v41  ;;  %v3170_v25 = vpop.f32.mrb[27].mxu0  ;;  %v3608_v46 = vmax.f32 %v3176_v53, 0.0 }
 0x320   :  { %v2712_v29 = vmax.f32 %v2584_v6, 0.0  ;;  %v3171_v59 = vadd.f32 %v8197_v41, %v3170_v25  ;;  %v8561_v45 = vpack.c.bf16 %v3649_v50, %v3648_v42  ;;  %v3606_v21 = vmax.f32 %v3168_v1, 0.0  ;;  %v6300_v6 = vld [vmem:[%s10367_s0 + $0x370] sm:$0xff] }
 0x321   :  { %v1621_v27 = vadd.f32 %v1493_v52, %v849_v47  ;;  %v3609_v43 = vmax.f32 %v3179_v7, 0.0  ;;  %v8563_v61 = vpack.c.bf16 %v3647_v56, %v3646_v5  ;;  %v2525_v49 = vadd.f32 %v8547_v55, %v2390_v17 }
 0x322   :  { %v3607_v54 = vmax.f32 %v3171_v59, 0.0  ;;  %6160 = vset.pattern.permute.xlu1 %v10623_v13  ;;  %v2790_v57 = vpack.c.bf16 %v2712_v29, %v2711_v9 }
 0x323   :  { %2139 = vperm.xlu1 %6160, %v8486_v18   ;;  %v1872_v48 = vpop.permute.xlu1 %1871  ;;  %v8569_v38 = vpack.c.bf16 %v3609_v43, %v3608_v46  ;;  %v2393_v20 = vadd.f32 %v2265_v33, %v1621_v27  ;;  %v10693_v18 = vld [vmem:[#allocation56_spill] sm:$0xff]  ;;  %v2653_v5 = vmax.f32 %v2525_v49, 0.0 }
 0x324   :  { %v2263_v47 = vmul.f32 %v7281_v4, %v1872_v48  ;;  %v6000_v23 = vpop.f32.mrb[4].mxu1  ;;  %6027 = vmatmul.mubr.msk.bf16.gmra.mrb[32].mxu1 %vm2844_vm0, %v2790_v57  ;;  %v8574_v58 = vpack.c.bf16 %v3607_v54, %v3606_v21  ;;  %v848_v24 = vmul.f32 %v7265_v44, %v10693_v18  ;;  %v8600_v54 = vld [vmem:[%s10371_s4] ss:$0 sm:$0xff] }
 0x325   :  { %v3352_v15 = vadd.f32 %v6000_v23, %v8197_v41  ;;  %v3343_v12 = vpop.f32.mrb[5].mxu1  ;;  %v2528_v56 = vadd.f32 %v8547_v55, %v2393_v20  ;;  %v8610_v23 = vld [vmem:[%s10367_s0 + $0x388] sm:$0xff] }
 0x326   :  { %v2391_v53 = vadd.f32 %v2263_v47, %v1619_v31  ;;  %v3344_v0 = vadd.f32 %v8197_v41, %v3343_v12  ;;  %v6001_v30 = vpop.f32.mrb[6].mxu1  ;;  %v1620_v33 = vadd.f32 %v1492_v32, %v848_v24 }
 0x327   :  { %v3355_v42 = vadd.f32 %v6001_v30, %v8197_v41  ;;  %2147 = vperm.xlu1 %6160, %v6300_v6   ;;  %v1876_v50 = vpop.permute.xlu1 %1875  ;;  %v3346_v17 = vpop.f32.mrb[7].mxu1  ;;  %v3652_v52 = vmax.f32 %v3352_v15, 0.0  ;;  %v2656_v19 = vmax.f32 %v2528_v56, 0.0 }
 0x328   :  { %v2526_v1 = vadd.f32 %v8547_v55, %v2391_v53  ;;  %v2264_v10 = vmul.f32 %v7281_v4, %v1876_v50  ;;  %v3347_v37 = vadd.f32 %v8197_v41, %v3346_v17  ;;  %v3650_v9 = vmax.f32 %v3344_v0, 0.0 }
 0x329   :  { %v3653_v7 = vmax.f32 %v3355_v42, 0.0 }
 0x32a   :  { %v2654_v25 = vmax.f32 %v2526_v1, 0.0  ;;  %v2392_v29 = vadd.f32 %v2264_v10, %v1620_v33  ;;  %v3651_v59 = vmax.f32 %v3347_v37, 0.0 }
 0x32b   :  { %2151 = vperm.xlu1 %6160, %v8523_v22   ;;  %v8590_v60 = vpack.c.bf16 %v3653_v7, %v3652_v52  ;;  %v6303_v52 = vld [vmem:[%s10367_s0 + $0x380] sm:$0xff] }
 0x32c   :  { %v2527_v46 = vadd.f32 %v8547_v55, %v2392_v29  ;;  %v8593_v27 = vpop.permute.xlu1 %664  ;;  %v2761_v43 = vpack.c.bf16 %v2654_v25, %v2653_v5  ;;  %v8595_v3 = vpack.c.bf16 %v3651_v59, %v3650_v9 }
 0x32d   :  { %v6004_v41 = vpop.f32.mrb[8].mxu1 }
 0x32e   :  { %v2655_v21 = vmax.f32 %v2527_v46, 0.0  ;;  %v3368_v57 = vadd.f32 %v8600_v54, %v6004_v41  ;;  %v3359_v22 = vpop.f32.mrb[9].mxu1  ;;  %5970 = vmatprep.mubr.msk.bf16.mxu0 %vm2844_vm0, %v2761_v43 }
 0x32f   :  { %v3360_v48 = vadd.f32 %v8600_v54, %v3359_v22  ;;  %v6005_v31 = vpop.f32.mrb[10].mxu1  ;;  %6161 = vset.pattern.permute.xlu1 %v10475_v16 }
 0x330   :  { %v3371_v32 = vadd.f32 %v8600_v54, %v6005_v31  ;;  %v3362_v47 = vpop.f32.mrb[11].mxu1  ;;  %729 = vperm.xlu1 %6161, %v8610_v23   ;;  %v5960_v49 = vpop.f32.mrb[28].mxu0  ;;  %v2762_v20 = vpack.c.bf16 %v2656_v19, %v2655_v21  ;;  %v3656_v53 = vmax.f32 %v3368_v57, 0.0 }
 0x331   :  { %v3363_v15 = vadd.f32 %v8600_v54, %v3362_v47  ;;  %v3192_v12 = vadd.f32 %v8600_v54, %v5960_v49  ;;  %v1336_v18 = vpop.permute.xlu1 %1335  ;;  %v3183_v24 = vpop.f32.mrb[29].mxu0  ;;  %v3654_v6 = vmax.f32 %v3360_v48, 0.0  ;;  %v8639_v47 = vld [vmem:[%s10367_s0 + $0x390] sm:$0xff] }
 0x332   :  { %v3657_v0 = vmax.f32 %v3371_v32, 0.0  ;;  %v3184_v30 = vadd.f32 %v8600_v54, %v3183_v24  ;;  %v5961_v42 = vpop.f32.mrb[30].mxu0  ;;  %5971 = vmatmul.mubr.msk.bf16.gmra.mrb[40].mxu0 %vm2844_vm0, %v2762_v20 }
 0x333   :  { %v3655_v50 = vmax.f32 %v3363_v15, 0.0  ;;  %v3195_v17 = vadd.f32 %v8600_v54, %v5961_v42  ;;  %v3186_v33 = vpop.f32.mrb[31].mxu0  ;;  %v3612_v37 = vmax.f32 %v3192_v12, 0.0  ;;  %v8645_v12 = vld [vmem:[%s10367_s0 + $0x398] sm:$0xff]  ;;  %v10694_v42 = vld [vmem:[#allocation87_spill] sm:$0xff] }
 0x334   :  { %v3187_v1 = vadd.f32 %v8600_v54, %v3186_v33  ;;  %6162 = vset.pattern.permute.xlu1 %v10424_v26  ;;  %v8620_v10 = vpack.c.bf16 %v3657_v0, %v3656_v53  ;;  %v3610_v9 = vmax.f32 %v3184_v30, 0.0 }
 0x335   :  { %v3613_v5 = vmax.f32 %v3195_v17, 0.0  ;;  %v6008_v56 = vpop.f32.mrb[12].mxu1  ;;  %1383 = vperm.xlu1 %6162, %v6303_v52   ;;  %v1340_v7 = vpop.permute.xlu1 %1339  ;;  %v8625_v25 = vpack.c.bf16 %v3655_v50, %v3654_v6  ;;  %v907_v6 = vmul.f32 %v7265_v44, %v10694_v42  ;;  %v10696_v42 = vld [vmem:[#allocation88_spill] sm:$0xff] }
 0x336   :  { %v3611_v29 = vmax.f32 %v3187_v1, 0.0  ;;  %v3384_v59 = vadd.f32 %v8600_v54, %v6008_v56  ;;  %v3375_v46 = vpop.f32.mrb[13].mxu1  ;;  %v1551_v24 = vmul.f32 %v7259_v39, %v1340_v7  ;;  %v1550_v7 = vmul.f32 %v7259_v39, %v1336_v18 }
 0x337   :  { %v3376_v43 = vadd.f32 %v8600_v54, %v3375_v46  ;;  %v6009_v41 = vpop.f32.mrb[14].mxu1  ;;  %v8629_v19 = vpack.c.bf16 %v3613_v5, %v3612_v37  ;;  %v1344_v46 = vpop.permute.xlu0 %1343 }
 0x338   :  { %v3387_v21 = vadd.f32 %v8600_v54, %v6009_v41  ;;  %v3378_v57 = vpop.f32.mrb[15].mxu1  ;;  %v8632_v22 = vpack.c.bf16 %v3611_v29, %v3610_v9  ;;  %v3660_v31 = vmax.f32 %v3384_v59, 0.0  ;;  %v1679_v5 = vadd.f32 %v1551_v24, %v907_v6  ;;  %v10695_v29 = vld [vmem:[#allocation121_spill] sm:$0xff] }
 0x339   :  { %v3379_v48 = vadd.f32 %v8600_v54, %v3378_v57  ;;  %6163 = vset.pattern.permute.xlu1 %v10475_v16  ;;  %v3658_v20 = vmax.f32 %v3376_v43, 0.0  ;;  %v2323_v59 = vmul.f32 %v7281_v4, %v10695_v29  ;;  %v908_v6 = vmul.f32 %v7265_v44, %v10696_v42 }
 0x33a   :  { %v3661_v32 = vmax.f32 %v3387_v21, 0.0  ;;  %734 = vperm.xlu1 %6163, %v8639_v47   ;;  %v680_v49 = vpop.permute.xlu1 %679  ;;  %v906_v21 = vmul.f32 %v7265_v44, %v8593_v27 }
 0x33b   :  { %v3659_v15 = vmax.f32 %v3379_v48, 0.0  ;;  %v909_v29 = vmul.f32 %v7265_v44, %v680_v49  ;;  %v6305_v49 = vld [vmem:[%s10367_s0 + $0x180] sm:$0xff] }
 0x33c   :  { %v8648_v53 = vpack.c.bf16 %v3661_v32, %v3660_v31  ;;  %v2451_v31 = vadd.f32 %v2323_v59, %v1679_v5 }
 0x33d   :  { %v6012_v0 = vpop.f32.mrb[16].mxu1  ;;  %v8650_v30 = vpack.c.bf16 %v3659_v15, %v3658_v20  ;;  %v1552_v20 = vmul.f32 %v7259_v39, %v1344_v46  ;;  %v1678_v15 = vadd.f32 %v1550_v7, %v906_v21 }
 0x33e   :  { %v3400_v50 = vadd.f32 %v8600_v54, %v6012_v0  ;;  %v3391_v17 = vpop.f32.mrb[17].mxu1  ;;  %739 = vperm.xlu1 %6163, %v8645_v12   ;;  %v2586_v27 = vadd.f32 %v8547_v55, %v2451_v31 }
 0x33f   :  { %v3392_v33 = vadd.f32 %v8600_v54, %v3391_v17  ;;  %v6013_v1 = vpop.f32.mrb[18].mxu1  ;;  %v1348_v37 = vpop.permute.xlu1 %1347 }
 0x340   :  { %v3403_v56 = vadd.f32 %v8600_v54, %v6013_v1  ;;  %v3394_v52 = vpop.f32.mrb[19].mxu1  ;;  %v3664_v43 = vmax.f32 %v3400_v50, 0.0  ;;  %v1553_v1 = vmul.f32 %v7259_v39, %v1348_v37 }
 0x341   :  { %v3395_v9 = vadd.f32 %v8600_v54, %v3394_v52  ;;  %v3662_v57 = vmax.f32 %v3392_v33, 0.0  ;;  %v1680_v33 = vadd.f32 %v1552_v20, %v908_v6 }
 0x342   :  { %v3665_v41 = vmax.f32 %v3403_v56, 0.0  ;;  %6164 = vset.pattern.permute.xlu1 %v10424_v26 }
 0x343   :  { %v3663_v48 = vmax.f32 %v3395_v9, 0.0  ;;  %1395 = vperm.xlu1 %6164, %v8645_v12  }
 0x344   :  { %v2108_v32 = vpop.permute.xlu1 %2107  ;;  %v8666_v18 = vpack.c.bf16 %v3665_v41, %v3664_v43 }
 0x345   :  { %v2322_v24 = vmul.f32 %v7281_v4, %v2108_v32  ;;  %v8670_v0 = vpack.c.bf16 %v3663_v48, %v3662_v57  ;;  %v1681_v48 = vadd.f32 %v1553_v1, %v909_v29  ;;  %v6306_v29 = vld [vmem:[%s10367_s0 + $0x198] sm:$0xff] }
 0x347   :  { %v2450_v50 = vadd.f32 %v2322_v24, %v1678_v15  ;;  %6165 = vset.pattern.permute.xlu1 %v10623_v13 }
 0x348   :  { %2159 = vperm.xlu1 %6165, %v8610_v23   ;;  %v2116_v17 = vpop.permute.xlu1 %2115  ;;  %v2714_v23 = vmax.f32 %v2586_v27, 0.0 }
 0x349   :  { %v2585_v5 = vadd.f32 %v8547_v55, %v2450_v50  ;;  %v2324_v56 = vmul.f32 %v7281_v4, %v2116_v17  ;;  %v5964_v52 = vpop.f32.mrb[32].mxu0 }
 0x34a   :  { %v3208_v7 = vadd.f32 %v8600_v54, %v5964_v52  ;;  %v3199_v9 = vpop.f32.mrb[33].mxu0 }
 0x34b   :  { %v2713_v59 = vmax.f32 %v2585_v5, 0.0  ;;  %v2452_v46 = vadd.f32 %v2324_v56, %v1680_v33  ;;  %v3200_v43 = vadd.f32 %v8600_v54, %v3199_v9  ;;  %v5965_v41 = vpop.f32.mrb[34].mxu0 }
 0x34c   :  { %v3211_v21 = vadd.f32 %v8600_v54, %v5965_v41  ;;  %6166 = vset.pattern.permute.xlu1 %v10424_v26  ;;  %v2120_v37 = vpop.permute.xlu1 %2119  ;;  %v3202_v57 = vpop.f32.mrb[35].mxu0  ;;  %v3616_v20 = vmax.f32 %v3208_v7, 0.0 }
 0x34d   :  { %v2325_v31 = vmul.f32 %v7281_v4, %v2120_v37  ;;  %v3203_v32 = vadd.f32 %v8600_v54, %v3202_v57  ;;  %1127 = vperm.xlu1 %6166, %v6305_v49   ;;  %v2791_v24 = vpack.c.bf16 %v2714_v23, %v2713_v59  ;;  %v2587_v42 = vadd.f32 %v8547_v55, %v2452_v46  ;;  %v1356_v57 = vpop.permute.xlu0 %1355 }
 0x34e   :  { %v3617_v15 = vmax.f32 %v3211_v21, 0.0  ;;  %v3614_v6 = vmax.f32 %v3200_v43, 0.0  ;;  %v10697_v43 = vld [vmem:[#allocation89_spill] sm:$0xff]  ;;  %v6308_v21 = vld [vmem:[%s10367_s0 + $0x190] sm:$0xff] }
 0x34f   :  { %v2453_v50 = vadd.f32 %v2325_v31, %v1681_v48  ;;  %v3615_v27 = vmax.f32 %v3203_v32, 0.0  ;;  %6030 = vmatprep.mubr.msk.bf16.mxu1 %vm2844_vm0, %v2791_v24  ;;  %v2715_v56 = vmax.f32 %v2587_v42, 0.0  ;;  %v910_v41 = vmul.f32 %v7265_v44, %v10697_v43  ;;  %v10698_v48 = vld [vmem:[#allocation123_spill] sm:$0xff] }
 0x350   :  { %v8692_v17 = vpack.c.bf16 %v3617_v15, %v3616_v20  ;;  %v2326_v31 = vmul.f32 %v7281_v4, %v10698_v48  ;;  %v1555_v32 = vmul.f32 %v7259_v39, %v1356_v57  ;;  %v8722_v20 = vld [vmem:[%s10367_s0 + $0x3a0] sm:$0xff] }
 0x351   :  { %v2588_v33 = vadd.f32 %v8547_v55, %v2453_v50  ;;  %6167 = vset.pattern.permute.xlu1 %v10623_v13  ;;  %v690_v1 = vpop.permute.xlu1 %689  ;;  %v8696_v5 = vpack.c.bf16 %v3615_v27, %v3614_v6 }
 0x352   :  { %2163 = vperm.xlu1 %6167, %v8639_v47   ;;  %v911_v49 = vmul.f32 %v7265_v44, %v690_v1 }
 0x353   :  { %v2716_v52 = vmax.f32 %v2588_v33, 0.0  ;;  %v1360_v33 = vpop.permute.xlu0 %1359 }
 0x354   :  { %v1683_v42 = vadd.f32 %v1555_v32, %v911_v49 }
 0x355   :  { %v2792_v7 = vpack.c.bf16 %v2716_v52, %v2715_v56 }
 0x356   :  { %2167 = vperm.xlu1 %6167, %v8645_v12   ;;  %v1352_v9 = vpop.permute.xlu1 %1351  ;;  %v6307_v12 = vld [vmem:[%s10367_s0 + $0x188] sm:$0xff] }
 0x357   :  { %6031 = vmatmul.mubr.msk.bf16.gmra.mrb[36].mxu1 %vm2844_vm0, %v2792_v7  ;;  %v1554_v47 = vmul.f32 %v7259_v39, %v1352_v9  ;;  %v1556_v7 = vmul.f32 %v7259_v39, %v1360_v33  ;;  %v152_v33 = vld [vmem:[%s10367_s0 + $0x3b8] sm:$0xff] }
 0x359   :  { %v1682_v23 = vadd.f32 %v1554_v47, %v910_v41 }
 0x35a   :  { %6168 = vset.pattern.permute.xlu1 %v10424_v26 }
 0x35b   :  { %1139 = vperm.xlu1 %6168, %v6306_v29   ;;  %v695_v59 = vpop.permute.xlu1 %694  ;;  %v2454_v15 = vadd.f32 %v2326_v31, %v1682_v23  ;;  %v6309_v31 = vld [vmem:[%s10367_s0 + $0x3a8] sm:$0xff] }
 0x35c   :  { %v912_v9 = vmul.f32 %v7265_v44, %v695_v59 }
 0x35d   :  { %v2589_v50 = vadd.f32 %v8547_v55, %v2454_v15 }
 0x35e   :  { %v1684_v59 = vadd.f32 %v1556_v7, %v912_v9 }
 0x35f   :  { %6169 = vset.pattern.permute.xlu1 %v10623_v13  ;;  %v700_v46 = vpop.permute.xlu1 %699 }
 0x360   :  { %1903 = vperm.xlu1 %6169, %v6307_v12   ;;  %v2717_v12 = vmax.f32 %v2589_v50, 0.0 }
 0x364   :  { %1907 = vperm.xlu1 %6169, %v6308_v21   ;;  %v1364_v37 = vpop.permute.xlu1 %1363 }
 0x368   :  { %6170 = vset.pattern.permute.xlu1 %v10475_v16 }
 0x369   :  { %744 = vperm.xlu1 %6170, %v8722_v20   ;;  %v2128_v24 = vpop.permute.xlu1 %2127 }
 0x36a   :  { %v2327_v6 = vmul.f32 %v7281_v4, %v2128_v24 }
 0x36c   :  { %v2455_v27 = vadd.f32 %v2327_v6, %v1683_v42  ;;  %v1557_v42 = vmul.f32 %v7259_v39, %v1364_v37 }
 0x36d   :  { %6171 = vset.pattern.permute.xlu1 %v10424_v26 }
 0x36e   :  { %v2590_v1 = vadd.f32 %v8547_v55, %v2455_v27  ;;  %1399 = vperm.xlu1 %6171, %v8722_v20   ;;  %v1112_v56 = vpop.permute.xlu1 %1111  ;;  %v6016_v52 = vpop.f32.mrb[20].mxu1 }
 0x36f   :  { %v3416_v29 = vadd.f32 %v8600_v54, %v6016_v52  ;;  %v3407_v47 = vpop.f32.mrb[21].mxu1  ;;  %v913_v52 = vmul.f32 %v7265_v44, %v700_v46 }
 0x370   :  { %v2718_v43 = vmax.f32 %v2590_v1, 0.0  ;;  %v3408_v41 = vadd.f32 %v8600_v54, %v3407_v47  ;;  %v6017_v23 = vpop.f32.mrb[22].mxu1  ;;  %v1494_v47 = vmul.f32 %v7259_v39, %v1112_v56 }
 0x371   :  { %v3419_v21 = vadd.f32 %v8600_v54, %v6017_v23  ;;  %v3410_v57 = vpop.f32.mrb[23].mxu1  ;;  %v3668_v49 = vmax.f32 %v3416_v29, 0.0  ;;  %v1685_v29 = vadd.f32 %v1557_v42, %v913_v52 }
 0x372   :  { %v3411_v48 = vadd.f32 %v8600_v54, %v3410_v57  ;;  %1403 = vperm.xlu1 %6171, %v6309_v31   ;;  %v2793_v32 = vpack.c.bf16 %v2718_v43, %v2717_v12  ;;  %v3666_v6 = vmax.f32 %v3408_v41, 0.0  ;;  %v1116_v43 = vpop.permute.xlu0 %1115  ;;  %v10699_v41 = vld [vmem:[#allocation58_spill] sm:$0xff] }
 0x373   :  { %v3669_v15 = vmax.f32 %v3419_v21, 0.0  ;;  %v2132_v24 = vpop.permute.xlu1 %2131  ;;  %v850_v23 = vmul.f32 %v7265_v44, %v10699_v41 }
 0x374   :  { %v3667_v50 = vmax.f32 %v3411_v48, 0.0  ;;  %v2328_v27 = vmul.f32 %v7281_v4, %v2132_v24  ;;  %6034 = vmatprep.mubr.msk.bf16.mxu1 %vm2844_vm0, %v2793_v32  ;;  %v10700_v32 = vld [vmem:[#allocation51_spill] sm:$0xff]  ;;  %v1495_v24 = vmul.f32 %v7259_v39, %v1116_v43 }
 0x375   :  { %v8746_v1 = vpack.c.bf16 %v3669_v15, %v3668_v49  ;;  %v1622_v46 = vadd.f32 %v1494_v47, %v850_v23  ;;  %v10701_v49 = vld [vmem:[#allocation124_spill] sm:$0xff] }
 0x376   :  { %v2456_v7 = vadd.f32 %v2328_v27, %v1684_v59  ;;  %6172 = vset.pattern.permute.xlu1 %v10475_v16  ;;  %v8750_v9 = vpack.c.bf16 %v3667_v50, %v3666_v6  ;;  %v853_v59 = vmul.f32 %v7265_v44, %v10700_v32  ;;  %v2266_v15 = vmul.f32 %v7281_v4, %v10701_v49  ;;  %v1120_v50 = vpop.permute.xlu0 %1119  ;;  %v10702_v27 = vld [vmem:[#allocation49_spill] sm:$0xff] }
 0x377   :  { %759 = vperm.xlu1 %6172, %v152_v33   ;;  %v2136_v37 = vpop.permute.xlu1 %2135  ;;  %v851_v52 = vmul.f32 %v7265_v44, %v10702_v27  ;;  %v1496_v43 = vmul.f32 %v7259_v39, %v1120_v50 }
 0x378   :  { %v2329_v12 = vmul.f32 %v7281_v4, %v2136_v37  ;;  %v2591_v21 = vadd.f32 %v8547_v55, %v2456_v7  ;;  %v2394_v7 = vadd.f32 %v2266_v15, %v1622_v46 }
 0x379   :  { %v1623_v23 = vadd.f32 %v1495_v24, %v851_v52 }
 0x37a   :  { %v2457_v57 = vadd.f32 %v2329_v12, %v1685_v29  ;;  %v2719_v42 = vmax.f32 %v2591_v21, 0.0  ;;  %v10703_v12 = vld [vmem:[#allocation30_spill] sm:$0xff] }
 0x37b   :  { %6173 = vset.pattern.permute.xlu1 %v10424_v26  ;;  %v2269_v41 = vmul.f32 %v7281_v4, %v10703_v12 }
 0x37c   :  { %v2592_v48 = vadd.f32 %v8547_v55, %v2457_v57  ;;  %1411 = vperm.xlu1 %6173, %v152_v33   ;;  %v1124_v31 = vpop.permute.xlu1 %1123  ;;  %v10704_v57 = vld [vmem:[#allocation61_spill] sm:$0xff] }
 0x37d   :  { %v1497_v56 = vmul.f32 %v7259_v39, %v1124_v31  ;;  %v852_v46 = vmul.f32 %v7265_v44, %v10704_v57  ;;  %v8804_v57 = vld [vmem:[%s10367_s0 + $0x3d0] sm:$0xff] }
 0x37e   :  { %v2720_v6 = vmax.f32 %v2592_v48, 0.0  ;;  %v2529_v48 = vadd.f32 %v8547_v55, %v2394_v7 }
 0x37f   :  { %v1625_v37 = vadd.f32 %v1497_v56, %v853_v59  ;;  %v1624_v56 = vadd.f32 %v1496_v43, %v852_v46 }
 0x380   :  { %6174 = vset.pattern.permute.xlu1 %v10623_v13  ;;  %v2794_v29 = vpack.c.bf16 %v2720_v6, %v2719_v42  ;;  %v2657_v24 = vmax.f32 %v2529_v48, 0.0 }
 0x381   :  { %2171 = vperm.xlu1 %6174, %v8722_v20   ;;  %v1888_v47 = vpop.permute.xlu1 %1887  ;;  %v2397_v31 = vadd.f32 %v2269_v41, %v1625_v37  ;;  %v6310_v20 = vld [vmem:[%s10367_s0 + $0x3b0] sm:$0xff] }
 0x382   :  { %v2267_v21 = vmul.f32 %v7281_v4, %v1888_v47  ;;  %6035 = vmatmul.mubr.msk.bf16.gmra.mrb[40].mxu1 %vm2844_vm0, %v2794_v29  ;;  %v6311_v47 = vld [vmem:[%s10367_s0 + $0x3c8] sm:$0xff] }
 0x383   :  { %v2532_v42 = vadd.f32 %v8547_v55, %v2397_v31  ;;  %v8810_v31 = vld [vmem:[%s10367_s0 + $0x3d8] sm:$0xff] }
 0x384   :  { %v2395_v32 = vadd.f32 %v2267_v21, %v1623_v23  ;;  %v6312_v23 = vld [vmem:[%s10367_s0 + $0x3c0] sm:$0xff] }
 0x385   :  { %2179 = vperm.xlu1 %6174, %v6310_v20   ;;  %v1892_v59 = vpop.permute.xlu1 %1891  ;;  %v2660_v37 = vmax.f32 %v2532_v42, 0.0  ;;  %v6204_v21 = vld [vmem:[%s10372_s5 + $0x4] ss:$8 sps:$4 sm:$0xff]  }
 0x386   :  { %v2530_v49 = vadd.f32 %v8547_v55, %v2395_v32  ;;  %v2268_v15 = vmul.f32 %v7281_v4, %v1892_v59  ;;  %3882 = vmatprep.subr.bf16.mxu1 %v6204_v21  ;;  %v10705_v42 = vld [vmem:[#allocation90_spill] sm:$0xff] }
 0x388   :  { %v2658_v6 = vmax.f32 %v2530_v49, 0.0  ;;  %v2396_v50 = vadd.f32 %v2268_v15, %v1624_v56  ;;  %v6205_v15 = vld [vmem:[%s10372_s5 + $0x10] ss:$8 sps:$4 sm:$0xff]  }
 0x389   :  { %2183 = vperm.xlu1 %6174, %v152_v33   ;;  %v6202_v33 = vld [vmem:[%s10372_s5] ss:$8 sps:$4 sm:$0xff]  }
 0x38a   :  { %v2531_v27 = vadd.f32 %v8547_v55, %v2396_v50  ;;  %v705_v52 = vpop.permute.xlu1 %704  ;;  %v2763_v7 = vpack.c.bf16 %v2658_v6, %v2657_v24  ;;  %3883 = vmatpush1.bf16.msra.mxu1 %v6202_v33  ;;  %v6207_v24 = vld [vmem:[%s10372_s5 + $0x14] ss:$8 sps:$4 sm:$0xff]   ;;  %v915_v6 = vmul.f32 %v7265_v44, %v10705_v42  ;;  %v1376_v42 = vpop.permute.xlu0 %1375 }
 0x38b   :  { %3884 = vmatprep.subr.bf16.mxu1 %v6207_v24 }
 0x38c   :  { %v2659_v29 = vmax.f32 %v2531_v27, 0.0  ;;  %5974 = vmatprep.mubr.msk.bf16.mxu0 %vm2844_vm0, %v2763_v7 }
 0x38d   :  { %6175 = vset.pattern.permute.xlu1 %v10475_v16 }
 0x38e   :  { %769 = vperm.xlu1 %6175, %v6311_v47   ;;  %v2764_v12 = vpack.c.bf16 %v2660_v37, %v2659_v29  ;;  %3885 = vmatpush1.bf16.msra.mxu1 %v6205_v15 }
 0x38f   :  { %v1368_v41 = vpop.permute.xlu1 %1367 }
 0x390   :  { %5975 = vmatmul.mubr.msk.bf16.gmra.mrb[44].mxu0 %vm2844_vm0, %v2764_v12 }
 0x392   :  { %6176 = vset.pattern.permute.xlu1 %v10424_v26 }
 0x393   :  { %1415 = vperm.xlu1 %6176, %v6312_v23   ;;  %v1372_v43 = vpop.permute.xlu1 %1371  ;;  %v1558_v23 = vmul.f32 %v7259_v39, %v1368_v41  ;;  %v1560_v41 = vmul.f32 %v7259_v39, %v1376_v42 }
 0x394   :  { %v1559_v32 = vmul.f32 %v7259_v39, %v1372_v43 }
 0x396   :  { %v1687_v29 = vadd.f32 %v1559_v32, %v915_v6  ;;  %v10709_v6 = vld [vmem:[#allocation91_spill] sm:$0xff] }
 0x397   :  { %6177 = vset.pattern.permute.xlu1 %v10475_v16 }
 0x398   :  { %774 = vperm.xlu1 %6177, %v8804_v57   ;;  %v720_v46 = vpop.permute.xlu1 %719 }
 0x399   :  { %v6020_v48 = vpop.f32.mrb[24].mxu1  ;;  %v917_v42 = vmul.f32 %v7265_v44, %v720_v46  ;;  %v6314_v46 = vld [vmem:[%s10367_s0 + $0x1a0] sm:$0xff] }
 0x39a   :  { %v3432_v20 = vadd.f32 %v8600_v54, %v6020_v48  ;;  %v3423_v59 = vpop.f32.mrb[25].mxu1  ;;  %v10706_v48 = vld [vmem:[#allocation127_spill] sm:$0xff] }
 0x39b   :  { %v3424_v56 = vadd.f32 %v8600_v54, %v3423_v59  ;;  %v6021_v49 = vpop.f32.mrb[26].mxu1  ;;  %v2331_v59 = vmul.f32 %v7281_v4, %v10706_v48 }
 0x39c   :  { %v3435_v50 = vadd.f32 %v8600_v54, %v6021_v49  ;;  %779 = vperm.xlu1 %6177, %v8810_v31   ;;  %v3426_v27 = vpop.f32.mrb[27].mxu1  ;;  %v3672_v12 = vmax.f32 %v3432_v20, 0.0 }
 0x39d   :  { %v3427_v7 = vadd.f32 %v8600_v54, %v3426_v27  ;;  %v1380_v37 = vpop.permute.xlu1 %1379  ;;  %v3670_v43 = vmax.f32 %v3424_v56, 0.0  ;;  %v914_v27 = vmul.f32 %v7265_v44, %v705_v52  ;;  %v2459_v20 = vadd.f32 %v2331_v59, %v1687_v29 }
 0x39e   :  { %v3673_v33 = vmax.f32 %v3435_v50, 0.0  ;;  %v916_v50 = vmul.f32 %v7265_v44, %v10709_v6 }
 0x39f   :  { %v3671_v21 = vmax.f32 %v3427_v7, 0.0  ;;  %v1686_v56 = vadd.f32 %v1558_v23, %v914_v27 }
 0x3a0   :  { %6178 = vset.pattern.permute.xlu1 %v10424_v26  ;;  %v8830_v49 = vpack.c.bf16 %v3673_v33, %v3672_v12  ;;  %v2594_v12 = vadd.f32 %v8547_v55, %v2459_v20  ;;  %v1688_v33 = vadd.f32 %v1560_v41, %v916_v50 }
 0x3a1   :  { %1427 = vperm.xlu1 %6178, %v8810_v31   ;;  %v8834_v32 = vpack.c.bf16 %v3671_v21, %v3670_v43  ;;  %v1561_v43 = vmul.f32 %v7259_v39, %v1380_v37 }
 0x3a2   :  { %10707 = vst [vmem:[#allocation25_spill] sm:$0xff] %v8830_v49  ;;  %v2140_v15 = vpop.permute.xlu1 %2139 }
 0x3a3   :  { %10708 = vst [vmem:[#allocation26_spill] sm:$0xff] %v8834_v32  ;;  %v2330_v24 = vmul.f32 %v7281_v4, %v2140_v15  ;;  %v1689_v6 = vadd.f32 %v1561_v43, %v917_v42  ;;  %v6208_v43 = vld [vmem:[%s10372_s5 + $0x20] ss:$8 sps:$4 sm:$0xff]   ;;  %v6210_v42 = vld [vmem:[%s10372_s5 + $0x24] ss:$8 sps:$4 sm:$0xff]  }
 0x3a4   :  { %3886 = vmatprep.subr.bf16.mxu1 %v6210_v42 }
 0x3a5   :  { %v2458_v7 = vadd.f32 %v2330_v24, %v1686_v56  ;;  %6179 = vset.pattern.permute.xlu1 %v10623_v13  ;;  %3887 = vmatpush1.bf16.msra.mxu1 %v6208_v43 }
 0x3a6   :  { %2191 = vperm.xlu1 %6179, %v6311_v47   ;;  %v2148_v52 = vpop.permute.xlu1 %2147  ;;  %v2722_v47 = vmax.f32 %v2594_v12, 0.0 }
 0x3a7   :  { %v2593_v29 = vadd.f32 %v8547_v55, %v2458_v7  ;;  %v2332_v21 = vmul.f32 %v7281_v4, %v2148_v52  ;;  %v5968_v23 = vpop.f32.mrb[36].mxu0 }
 0x3a8   :  { %v3224_v48 = vadd.f32 %v8600_v54, %v5968_v23  ;;  %v3215_v59 = vpop.f32.mrb[37].mxu0 }
 0x3a9   :  { %v2721_v27 = vmax.f32 %v2593_v29, 0.0  ;;  %v2460_v15 = vadd.f32 %v2332_v21, %v1688_v33  ;;  %v3216_v56 = vadd.f32 %v8600_v54, %v3215_v59  ;;  %v5969_v20 = vpop.f32.mrb[38].mxu0 }
 0x3aa   :  { %v3227_v41 = vadd.f32 %v8600_v54, %v5969_v20  ;;  %6180 = vset.pattern.permute.xlu1 %v10424_v26  ;;  %v2152_v37 = vpop.permute.xlu1 %2151  ;;  %v3218_v24 = vpop.f32.mrb[39].mxu0  ;;  %v3620_v52 = vmax.f32 %v3224_v48, 0.0 }
 0x3ab   :  { %v2333_v50 = vmul.f32 %v7281_v4, %v2152_v37  ;;  %v3219_v7 = vadd.f32 %v8600_v54, %v3218_v24  ;;  %1143 = vperm.xlu1 %6180, %v6314_v46   ;;  %v2795_v29 = vpack.c.bf16 %v2722_v47, %v2721_v27  ;;  %v2595_v12 = vadd.f32 %v8547_v55, %v2460_v15  ;;  %v6315_v24 = vld [vmem:[%s10367_s0 + $0x1b8] sm:$0xff] }
 0x3ac   :  { %v3621_v33 = vmax.f32 %v3227_v41, 0.0  ;;  %v3618_v21 = vmax.f32 %v3216_v56, 0.0 }
 0x3ad   :  { %v2461_v23 = vadd.f32 %v2333_v50, %v1689_v6  ;;  %v3619_v59 = vmax.f32 %v3219_v7, 0.0  ;;  %6038 = vmatprep.mubr.msk.bf16.mxu1 %vm2844_vm0, %v2795_v29  ;;  %v2723_v56 = vmax.f32 %v2595_v12, 0.0  ;;  %v10710_v7 = vld [vmem:[#allocation93_spill] sm:$0xff]  ;;  %v6317_v12 = vld [vmem:[%s10367_s0 + $0x1b0] sm:$0xff] }
 0x3ae   :  { %v8863_v20 = vpack.c.bf16 %v3621_v33, %v3620_v52  ;;  %v918_v46 = vmul.f32 %v7265_v44, %v10710_v7  ;;  %v6211_v52 = vld [vmem:[%s10372_s5 + $0x30] ss:$8 sps:$4 sm:$0xff]   ;;  %v6213_v33 = vld [vmem:[%s10372_s5 + $0x34] ss:$8 sps:$4 sm:$0xff]   ;;  %v6216_v7 = vld [vmem:[%s10372_s5 + $0x44] ss:$8 sps:$4 sm:$0xff]  }
 0x3af   :  { %v2596_v48 = vadd.f32 %v8547_v55, %v2461_v23  ;;  %6181 = vset.pattern.permute.xlu1 %v10623_v13  ;;  %v730_v27 = vpop.permute.xlu1 %729  ;;  %v8867_v15 = vpack.c.bf16 %v3619_v59, %v3618_v21  ;;  %v1388_v23 = vpop.permute.xlu0 %1387  ;;  %3888 = vmatprep.subr.bf16.mxu1 %v6213_v33  ;;  %v10711_v59 = vld [vmem:[#allocation129_spill] sm:$0xff] }
 0x3b0   :  { %2195 = vperm.xlu1 %6181, %v8804_v57   ;;  %v2334_v43 = vmul.f32 %v7281_v4, %v10711_v59  ;;  %v1563_v42 = vmul.f32 %v7259_v39, %v1388_v23  ;;  %3889 = vmatpush1.bf16.msra.mxu1 %v6211_v52 }
 0x3b1   :  { %v2724_v47 = vmax.f32 %v2596_v48, 0.0  ;;  %v919_v48 = vmul.f32 %v7265_v44, %v730_v27  ;;  %v6214_v27 = vld [vmem:[%s10372_s5 + $0x40] ss:$8 sps:$4 sm:$0xff]   ;;  %3890 = vmatprep.subr.bf16.mxu1 %v6216_v7 }
 0x3b2   :  { %v6318_v7 = vld [vmem:[%s10367_s0 + $0x3e8] sm:$0xff] }
 0x3b3   :  { %v2796_v41 = vpack.c.bf16 %v2724_v47, %v2723_v56  ;;  %v8899_v56 = vld [vmem:[%s10367_s0 + $0x3e0] sm:$0xff] }
 0x3b4   :  { %2199 = vperm.xlu1 %6181, %v8810_v31   ;;  %v1384_v37 = vpop.permute.xlu1 %1383  ;;  %v6316_v31 = vld [vmem:[%s10367_s0 + $0x1a8] sm:$0xff]  ;;  %3891 = vmatpush1.bf16.msra.mxu1 %v6214_v27 }
 0x3b5   :  { %6039 = vmatmul.mubr.msk.bf16.gmra.mrb[44].mxu1 %vm2844_vm0, %v2796_v41  ;;  %v1562_v50 = vmul.f32 %v7259_v39, %v1384_v37  ;;  %v1691_v37 = vadd.f32 %v1563_v42, %v919_v48 }
 0x3b7   :  { %v1690_v29 = vadd.f32 %v1562_v50, %v918_v46  ;;  %v1392_v46 = vpop.permute.xlu0 %1391 }
 0x3b8   :  { %6182 = vset.pattern.permute.xlu1 %v10424_v26 }
 0x3b9   :  { %1155 = vperm.xlu1 %6182, %v6315_v24   ;;  %v735_v6 = vpop.permute.xlu1 %734  ;;  %v2462_v47 = vadd.f32 %v2334_v43, %v1690_v29 }
 0x3ba   :  { %v920_v23 = vmul.f32 %v7265_v44, %v735_v6 }
 0x3bb   :  { %v2597_v50 = vadd.f32 %v8547_v55, %v2462_v47 }
 0x3bd   :  { %6183 = vset.pattern.permute.xlu1 %v10623_v13  ;;  %v740_v57 = vpop.permute.xlu1 %739  ;;  %v2725_v42 = vmax.f32 %v2597_v50, 0.0 }
 0x3be   :  { %1919 = vperm.xlu1 %6183, %v6316_v31  }
 0x3c2   :  { %1923 = vperm.xlu1 %6183, %v6317_v12   ;;  %v1396_v21 = vpop.permute.xlu1 %1395  ;;  %v1564_v12 = vmul.f32 %v7259_v39, %v1392_v46 }
 0x3c3   :  { %v1565_v50 = vmul.f32 %v7259_v39, %v1396_v21 }
 0x3c4   :  { %v1692_v6 = vadd.f32 %v1564_v12, %v920_v23 }
 0x3c6   :  { %6184 = vset.pattern.permute.xlu1 %v10475_v16 }
 0x3c7   :  { %784 = vperm.xlu1 %6184, %v8899_v56   ;;  %v2160_v41 = vpop.permute.xlu1 %2159 }
 0x3c8   :  { %v2335_v24 = vmul.f32 %v7281_v4, %v2160_v41 }
 0x3ca   :  { %v2463_v31 = vadd.f32 %v2335_v24, %v1691_v37 }
 0x3cb   :  { %6185 = vset.pattern.permute.xlu1 %v10424_v26 }
 0x3cc   :  { %v2598_v52 = vadd.f32 %v8547_v55, %v2463_v31  ;;  %1431 = vperm.xlu1 %6185, %v8899_v56   ;;  %v1128_v33 = vpop.permute.xlu1 %1127  ;;  %v6024_v29 = vpop.f32.mrb[28].mxu1 }
 0x3cd   :  { %v3448_v59 = vadd.f32 %v8600_v54, %v6024_v29  ;;  %v3439_v43 = vpop.f32.mrb[29].mxu1 }
 0x3ce   :  { %v2726_v48 = vmax.f32 %v2598_v52, 0.0  ;;  %v3440_v47 = vadd.f32 %v8600_v54, %v3439_v43  ;;  %v6025_v41 = vpop.f32.mrb[30].mxu1 }
 0x3cf   :  { %v3451_v55 = vadd.f32 %v8600_v54, %v6025_v41  ;;  %v3442_v37 = vpop.f32.mrb[31].mxu1  ;;  %v3676_v46 = vmax.f32 %v3448_v59, 0.0  ;;  %v921_v41 = vmul.f32 %v7265_v44, %v740_v57  ;;  %v8942_v57 = vld [vmem:[%s10370_s2] ss:$0 sm:$0xff] }
 0x3d0   :  { %v2797_v24 = vpack.c.bf16 %v2726_v48, %v2725_v42  ;;  %v3443_v31 = vadd.f32 %v8600_v54, %v3442_v37  ;;  %1435 = vperm.xlu1 %6185, %v6318_v7   ;;  %v3674_v52 = vmax.f32 %v3440_v47, 0.0  ;;  %v160_v42 = vld [vmem:[%s10367_s0 + $0x3f8] sm:$0xff]  ;;  %v1498_v47 = vmul.f32 %v7259_v39, %v1128_v33  ;;  %v1132_v37 = vpop.permute.xlu0 %1131 }
 0x3d1   :  { %v3677_v29 = vmax.f32 %v3451_v55, 0.0  ;;  %v2164_v27 = vpop.permute.xlu1 %2163  ;;  %v1693_v59 = vadd.f32 %v1565_v50, %v921_v41  ;;  %v1499_v41 = vmul.f32 %v7259_v39, %v1132_v37 }
 0x3d2   :  { %v3675_v43 = vmax.f32 %v3443_v31, 0.0  ;;  %v2336_v49 = vmul.f32 %v7281_v4, %v2164_v27  ;;  %6042 = vmatprep.mubr.msk.bf16.mxu1 %vm2844_vm0, %v2797_v24  ;;  %v10714_v24 = vld [vmem:[#allocation63_spill] sm:$0xff] }
 0x3d3   :  { %v8929_v48 = vpack.c.bf16 %v3677_v29, %v3676_v46  ;;  %v854_v31 = vmul.f32 %v7265_v44, %v10714_v24  ;;  %v10715_v29 = vld [vmem:[#allocation55_spill] sm:$0xff]  ;;  %v10717_v24 = vld [vmem:[#allocation53_spill] sm:$0xff] }
 0x3d4   :  { %v2464_v12 = vadd.f32 %v2336_v49, %v1692_v6  ;;  %6187 = vset.pattern.permute.xlu1 %v10475_v16  ;;  %v8933_v23 = vpack.c.bf16 %v3675_v43, %v3674_v52  ;;  %v857_v27 = vmul.f32 %v7265_v44, %v10715_v29  ;;  %v10716_v52 = vld [vmem:[#allocation132_spill] sm:$0xff] }
 0x3d5   :  { %10712 = vst [vmem:[#allocation27_spill] sm:$0xff] %v8929_v48  ;;  %799 = vperm.xlu1 %6187, %v160_v42   ;;  %v2168_v21 = vpop.permute.xlu1 %2167  ;;  %v1626_v6 = vadd.f32 %v1498_v47, %v854_v31  ;;  %v2270_v43 = vmul.f32 %v7281_v4, %v10716_v52  ;;  %v6217_v47 = vld [vmem:[%s10372_s5 + $0x50] ss:$8 sps:$4 sm:$0xff]   ;;  %v855_v31 = vmul.f32 %v7265_v44, %v10717_v24 }
 0x3d6   :  { %10713 = vst [vmem:[#allocation28_spill] sm:$0xff] %v8933_v23  ;;  %v2337_v55 = vmul.f32 %v7281_v4, %v2168_v21  ;;  %v2599_v49 = vadd.f32 %v8942_v57, %v2464_v12 }
 0x3d7   :  { %v1627_v52 = vadd.f32 %v1499_v41, %v855_v31 }
 0x3d8   :  { %v2465_v7 = vadd.f32 %v2337_v55, %v1693_v59  ;;  %v2727_v21 = vmax.f32 %v2599_v49, 0.0  ;;  %v1136_v59 = vpop.permute.xlu0 %1135  ;;  %v6219_v55 = vld [vmem:[%s10372_s5 + $0x54] ss:$8 sps:$4 sm:$0xff]   ;;  %v10718_v49 = vld [vmem:[#allocation135_spill] sm:$0xff] }
 0x3d9   :  { %6188 = vset.pattern.permute.xlu1 %v10424_v26  ;;  %3892 = vmatprep.subr.bf16.mxu1 %v6219_v55  ;;  %v1500_v48 = vmul.f32 %v7259_v39, %v1136_v59 }
 0x3da   :  { %v2600_v46 = vadd.f32 %v8942_v57, %v2465_v7  ;;  %1443 = vperm.xlu1 %6188, %v160_v42   ;;  %v1140_v33 = vpop.permute.xlu1 %1139  ;;  %v2398_v7 = vadd.f32 %v2270_v43, %v1626_v6  ;;  %3893 = vmatpush1.bf16.msra.mxu1 %v6217_v47  ;;  %v10719_v6 = vld [vmem:[#allocation65_spill] sm:$0xff] }
 0x3db   :  { %v1501_v50 = vmul.f32 %v7259_v39, %v1140_v33 }
 0x3dc   :  { %v2728_v12 = vmax.f32 %v2600_v46, 0.0  ;;  %v2273_v46 = vmul.f32 %v7281_v4, %v10718_v49 }
 0x3dd   :  { %v1629_v29 = vadd.f32 %v1501_v50, %v857_v27  ;;  %v856_v27 = vmul.f32 %v7265_v44, %v10719_v6  ;;  %v2533_v50 = vadd.f32 %v8942_v57, %v2398_v7  ;;  %v6222_v6 = vld [vmem:[%s10372_s5 + $0x64] ss:$8 sps:$4 sm:$0xff]  }
 0x3de   :  { %v2798_v33 = vpack.c.bf16 %v2728_v12, %v2727_v21  ;;  %6189 = vset.pattern.permute.xlu1 %v10623_v13  ;;  %v6320_v21 = vld [vmem:[%s10367_s0 + $0x3f0] sm:$0xff]  ;;  %3894 = vmatprep.subr.bf16.mxu1 %v6222_v6 }
 0x3df   :  { %2203 = vperm.xlu1 %6189, %v8899_v56   ;;  %v1904_v37 = vpop.permute.xlu1 %1903  ;;  %v2401_v43 = vadd.f32 %v2273_v46, %v1629_v29  ;;  %v1628_v12 = vadd.f32 %v1500_v48, %v856_v27  ;;  %v2661_v24 = vmax.f32 %v2533_v50, 0.0  ;;  %v6321_v46 = vld [vmem:[%s10367_s0 + $0x1c8] sm:$0xff]  ;;  %v6322_v27 = vld [vmem:[%s10367_s0 + $0x1d0] sm:$0xff] }
 0x3e0   :  { %v2271_v23 = vmul.f32 %v7281_v4, %v1904_v37  ;;  %6043 = vmatmul.mubr.msk.bf16.gmra.mrb[48].mxu1 %vm2844_vm0, %v2798_v33 }
 0x3e1   :  { %v2536_v47 = vadd.f32 %v8942_v57, %v2401_v43  ;;  %v6225_v43 = vld [vmem:[%s10372_s5 + $0x74] ss:$8 sps:$4 sm:$0xff]  }
 0x3e2   :  { %v2399_v56 = vadd.f32 %v2271_v23, %v1627_v52 }
 0x3e3   :  { %2211 = vperm.xlu1 %6189, %v6320_v21   ;;  %v1908_v41 = vpop.permute.xlu1 %1907  ;;  %v2664_v37 = vmax.f32 %v2536_v47, 0.0  ;;  %v6223_v21 = vld [vmem:[%s10372_s5 + $0x70] ss:$8 sps:$4 sm:$0xff]   ;;  %v10720_v47 = vld [vmem:[#allocation94_spill] sm:$0xff] }
 0x3e4   :  { %v2534_v59 = vadd.f32 %v8942_v57, %v2399_v56  ;;  %v2272_v55 = vmul.f32 %v7281_v4, %v1908_v41  ;;  %v6323_v56 = vld [vmem:[%s10367_s0 + $0x1c0] sm:$0xff] }
 0x3e6   :  { %v2662_v31 = vmax.f32 %v2534_v59, 0.0  ;;  %v2400_v33 = vadd.f32 %v2272_v55, %v1628_v12 }
 0x3e7   :  { %2215 = vperm.xlu1 %6189, %v160_v42   ;;  %v6220_v42 = vld [vmem:[%s10372_s5 + $0x60] ss:$8 sps:$4 sm:$0xff]  }
 0x3e8   :  { %v2765_v7 = vpack.c.bf16 %v2662_v31, %v2661_v24  ;;  %v2535_v23 = vadd.f32 %v8942_v57, %v2400_v33  ;;  %v745_v29 = vpop.permute.xlu1 %744  ;;  %3895 = vmatpush1.bf16.msra.mxu1 %v6220_v42  ;;  %v923_v31 = vmul.f32 %v7265_v44, %v10720_v47 }
 0x3e9   :  { %3896 = vmatprep.subr.bf16.mxu1 %v6225_v43  ;;  %v10721_v43 = vld [vmem:[#allocation136_spill] sm:$0xff]  ;;  %v922_v47 = vmul.f32 %v7265_v44, %v745_v29 }
 0x3ea   :  { %v2663_v49 = vmax.f32 %v2535_v23, 0.0  ;;  %5978 = vmatprep.mubr.msk.bf16.mxu0 %vm2844_vm0, %v2765_v7 }
 0x3eb   :  { %6191 = vset.pattern.permute.xlu1 %v10424_v26 }
 0x3ec   :  { %v2766_v48 = vpack.c.bf16 %v2664_v37, %v2663_v49  ;;  %1163 = vperm.xlu1 %6191, %v6321_v46   ;;  %3897 = vmatpush1.bf16.msra.mxu1 %v6223_v21 }
 0x3ed   :  { %v1400_v52 = vpop.permute.xlu1 %1399 }
 0x3ee   :  { %5979 = vmatmul.mubr.msk.bf16.gmra.mrb[48].mxu0 %vm2844_vm0, %v2766_v48  ;;  %v9012_v48 = vld [vmem:[%s10371_s4] ss:$0 sm:$0xff] }
 0x3f0   :  { %1167 = vperm.xlu1 %6191, %v6322_v27  }
 0x3f1   :  { %v1404_v50 = vpop.permute.xlu1 %1403 }
 0x3f2   :  { %v1567_v12 = vmul.f32 %v7259_v39, %v1404_v50 }
 0x3f4   :  { %6192 = vset.pattern.permute.xlu1 %v10623_v13  ;;  %v1695_v49 = vadd.f32 %v1567_v12, %v923_v31  ;;  %v1408_v12 = vpop.permute.xlu0 %1407 }
 0x3f5   :  { %1931 = vperm.xlu1 %6192, %v6323_v56   ;;  %v2339_v56 = vmul.f32 %v7281_v4, %v10721_v43 }
 0x3f6   :  { %v760_v41 = vpop.permute.xlu1 %759 }
 0x3f7   :  { %v6028_v59 = vpop.f32.mrb[32].mxu1  ;;  %v2467_v31 = vadd.f32 %v2339_v56, %v1695_v49 }
 0x3f8   :  { %v3464_v55 = vadd.f32 %v8600_v54, %v6028_v59  ;;  %v3455_v24 = vpop.f32.mrb[33].mxu1 }
 0x3f9   :  { %v3456_v33 = vadd.f32 %v8600_v54, %v3455_v24  ;;  %1939 = vperm.xlu1 %6192, %v6322_v27   ;;  %v6029_v7 = vpop.f32.mrb[34].mxu1  ;;  %v1566_v27 = vmul.f32 %v7259_v39, %v1400_v52  ;;  %v2602_v29 = vadd.f32 %v8942_v57, %v2467_v31  ;;  %v925_v31 = vmul.f32 %v7265_v44, %v760_v41 }
 0x3fa   :  { %v3467_v23 = vadd.f32 %v8600_v54, %v6029_v7  ;;  %v3458_v37 = vpop.f32.mrb[35].mxu1  ;;  %v3680_v6 = vmax.f32 %v3464_v55, 0.0  ;;  %v6325_v54 = vld [vmem:[%s10367_s0 + $0x1d8] sm:$0xff] }
 0x3fb   :  { %v3459_v46 = vadd.f32 %v9012_v48, %v3458_v37  ;;  %v1412_v42 = vpop.permute.xlu1 %1411  ;;  %v3678_v21 = vmax.f32 %v3456_v33, 0.0  ;;  %v1694_v37 = vadd.f32 %v1566_v27, %v922_v47  ;;  %v6326_v33 = vld [vmem:[%s10367_s0 + $0x1e8] sm:$0xff]  ;;  %v2730_v47 = vmax.f32 %v2602_v29, 0.0 }
 0x3fc   :  { %v3681_v50 = vmax.f32 %v3467_v23, 0.0  ;;  %v1568_v23 = vmul.f32 %v7259_v39, %v1408_v12  ;;  %v1569_v56 = vmul.f32 %v7259_v39, %v1412_v42 }
 0x3fd   :  { %v3679_v59 = vmax.f32 %v3459_v46, 0.0  ;;  %1943 = vperm.xlu1 %6192, %v6325_v54   ;;  %v10724_v46 = vld [vmem:[#allocation97_spill] sm:$0xff]  ;;  %v6327_v54 = vld [vmem:[%s10367_s0 + $0x1f0] sm:$0xff] }
 0x3fe   :  { %v9021_v24 = vpack.c.bf16 %v3681_v50, %v3680_v6  ;;  %v924_v6 = vmul.f32 %v7265_v44, %v10724_v46 }
 0x3ff   :  { %v9024_v55 = vpack.c.bf16 %v3679_v59, %v3678_v21 }
 0x400   :  { %10722 = vst [vmem:[#allocation44_spill] sm:$0xff] %v9021_v24  ;;  %v2172_v7 = vpop.permute.xlu1 %2171  ;;  %v1696_v43 = vadd.f32 %v1568_v23, %v924_v6  ;;  %v1697_v6 = vadd.f32 %v1569_v56, %v925_v31 }
 0x401   :  { %10723 = vst [vmem:[#allocation29_spill] sm:$0xff] %v9024_v55  ;;  %v2338_v52 = vmul.f32 %v7281_v4, %v2172_v7  ;;  %6195 = vset.pattern.permute.xlu1 %v10424_v26 }
 0x402   :  { %1179 = vperm.xlu1 %6195, %v6326_v33  }
 0x403   :  { %v2466_v49 = vadd.f32 %v2338_v52, %v1694_v37 }
 0x404   :  { %v2180_v50 = vpop.permute.xlu1 %2179 }
 0x405   :  { %v2601_v27 = vadd.f32 %v8942_v57, %v2466_v49  ;;  %v2340_v21 = vmul.f32 %v7281_v4, %v2180_v50  ;;  %v5972_v26 = vpop.f32.mrb[40].mxu0 }
 0x406   :  { %v3240_v59 = vadd.f32 %v9012_v48, %v5972_v26  ;;  %1183 = vperm.xlu1 %6195, %v6327_v54   ;;  %v3231_v12 = vpop.f32.mrb[41].mxu0 }
 0x407   :  { %v2729_v7 = vmax.f32 %v2601_v27, 0.0  ;;  %v2468_v23 = vadd.f32 %v2340_v21, %v1696_v43  ;;  %v5973_v37 = vpop.f32.mrb[42].mxu0  ;;  %v3232_v42 = vadd.f32 %v9012_v48, %v3231_v12  ;;  %v6328_v43 = vld [vmem:[%s10367_s0 + $0x1e0] sm:$0xff] }
 0x408   :  { %v3243_v52 = vadd.f32 %v9012_v48, %v5973_v37  ;;  %v2184_v33 = vpop.permute.xlu1 %2183  ;;  %v3234_v46 = vpop.f32.mrb[43].mxu0  ;;  %v3624_v26 = vmax.f32 %v3240_v59, 0.0  ;;  %v6329_v37 = vld [vmem:[%s10367_s0 + $0x1f8] sm:$0xff] }
 0x409   :  { %v2799_v49 = vpack.c.bf16 %v2730_v47, %v2729_v7  ;;  %v2341_v50 = vmul.f32 %v7281_v4, %v2184_v33  ;;  %v3235_v55 = vadd.f32 %v9012_v48, %v3234_v46  ;;  %v2603_v41 = vadd.f32 %v8942_v57, %v2468_v23 }
 0x40a   :  { %v3625_v24 = vmax.f32 %v3243_v52, 0.0  ;;  %6196 = vset.pattern.permute.xlu1 %v10623_v13  ;;  %v3622_v56 = vmax.f32 %v3232_v42, 0.0  ;;  %v10725_v52 = vld [vmem:[#allocation99_spill] sm:$0xff] }
 0x40b   :  { %v2469_v29 = vadd.f32 %v2341_v50, %v1697_v6  ;;  %1947 = vperm.xlu1 %6196, %v6328_v43   ;;  %6046 = vmatprep.mubr.msk.bf16.mxu1 %vm2844_vm0, %v2799_v49  ;;  %v3623_v27 = vmax.f32 %v3235_v55, 0.0  ;;  %v2731_v13 = vmax.f32 %v2603_v41, 0.0  ;;  %v926_v33 = vmul.f32 %v7265_v44, %v10725_v52  ;;  %v10726_v49 = vld [vmem:[#allocation137_spill] sm:$0xff] }
 0x40c   :  { %v9053_v21 = vpack.c.bf16 %v3625_v24, %v3624_v26  ;;  %v1420_v26 = vpop.permute.xlu0 %1419 }
 0x40d   :  { %v2604_v59 = vadd.f32 %v8942_v57, %v2469_v29  ;;  %v770_v12 = vpop.permute.xlu1 %769  ;;  %v9056_v47 = vpack.c.bf16 %v3623_v27, %v3622_v56  ;;  %v1571_v41 = vmul.f32 %v7259_v39, %v1420_v26 }
 0x40e   :  { %v927_v50 = vmul.f32 %v7265_v44, %v770_v12 }
 0x40f   :  { %v2732_v31 = vmax.f32 %v2604_v59, 0.0  ;;  %1955 = vperm.xlu1 %6196, %v6327_v54   ;;  %v2342_v54 = vmul.f32 %v7281_v4, %v10726_v49 }
 0x410   :  { %v1699_v56 = vadd.f32 %v1571_v41, %v927_v50  ;;  %v1424_v52 = vpop.permute.xlu0 %1423 }
 0x411   :  { %v2800_v7 = vpack.c.bf16 %v2732_v31, %v2731_v13  ;;  %v1572_v50 = vmul.f32 %v7259_v39, %v1424_v52 }
 0x412   :  { %v1416_v23 = vpop.permute.xlu1 %1415 }
 0x413   :  { %1959 = vperm.xlu1 %6196, %v6329_v37   ;;  %6047 = vmatmul.mubr.msk.bf16.gmra.mrb[52].mxu1 %vm2844_vm0, %v2800_v7  ;;  %v1570_v42 = vmul.f32 %v7259_v39, %v1416_v23 }
 0x415   :  { %v1698_v46 = vadd.f32 %v1570_v42, %v926_v33 }
 0x417   :  { %v775_v55 = vpop.permute.xlu1 %774  ;;  %v2470_v29 = vadd.f32 %v2342_v54, %v1698_v46 }
 0x418   :  { %v928_v37 = vmul.f32 %v7265_v44, %v775_v55 }
 0x419   :  { %v2605_v59 = vadd.f32 %v8942_v57, %v2470_v29 }
 0x41b   :  { %v780_v24 = vpop.permute.xlu1 %779  ;;  %v2733_v33 = vmax.f32 %v2605_v59, 0.0 }
 0x41c   :  { %v929_v52 = vmul.f32 %v7265_v44, %v780_v24 }
 0x420   :  { %v1428_v6 = vpop.permute.xlu1 %1427 }
 0x425   :  { %v2192_v43 = vpop.permute.xlu1 %2191 }
 0x426   :  { %v2343_v27 = vmul.f32 %v7281_v4, %v2192_v43 }
 0x428   :  { %v2471_v13 = vadd.f32 %v2343_v27, %v1699_v56  ;;  %v1700_v56 = vadd.f32 %v1572_v50, %v928_v37 }
 0x42a   :  { %v2606_v31 = vadd.f32 %v8942_v57, %v2471_v13  ;;  %v1144_v7 = vpop.permute.xlu1 %1143  ;;  %v6032_v23 = vpop.f32.mrb[36].mxu1 }
 0x42b   :  { %v3480_v42 = vadd.f32 %v9012_v48, %v6032_v23  ;;  %v3471_v12 = vpop.f32.mrb[37].mxu1  ;;  %v1573_v23 = vmul.f32 %v7259_v39, %v1428_v6  ;;  %v1148_v6 = vpop.permute.xlu0 %1147 }
 0x42c   :  { %v2734_v49 = vmax.f32 %v2606_v31, 0.0  ;;  %v3472_v46 = vadd.f32 %v9012_v48, %v3471_v12  ;;  %v6033_v54 = vpop.f32.mrb[38].mxu1 }
 0x42d   :  { %v3483_v26 = vadd.f32 %v9012_v48, %v6033_v54  ;;  %v3474_v41 = vpop.f32.mrb[39].mxu1  ;;  %v3684_v27 = vmax.f32 %v3480_v42, 0.0  ;;  %v1701_v37 = vadd.f32 %v1573_v23, %v929_v52  ;;  %v1502_v42 = vmul.f32 %v7259_v39, %v1144_v7 }
 0x42e   :  { %v2801_v29 = vpack.c.bf16 %v2734_v49, %v2733_v33  ;;  %v3475_v43 = vadd.f32 %v9012_v48, %v3474_v41  ;;  %v3682_v32 = vmax.f32 %v3472_v46, 0.0  ;;  %v10729_v46 = vld [vmem:[#allocation67_spill] sm:$0xff]  ;;  %v1503_v23 = vmul.f32 %v7259_v39, %v1148_v6  ;;  %v10734_v6 = vld [vmem:[#allocation69_spill] sm:$0xff] }
 0x42f   :  { %v3685_v55 = vmax.f32 %v3483_v26, 0.0  ;;  %v2196_v13 = vpop.permute.xlu1 %2195  ;;  %v858_v26 = vmul.f32 %v7265_v44, %v10729_v46  ;;  %v1152_v52 = vpop.permute.xlu0 %1151 }
 0x430   :  { %v3683_v59 = vmax.f32 %v3475_v43, 0.0  ;;  %v2344_v31 = vmul.f32 %v7281_v4, %v2196_v13  ;;  %6050 = vmatprep.mubr.msk.bf16.mxu1 %vm2844_vm0, %v2801_v29  ;;  %v10731_v13 = vld [vmem:[#allocation139_spill] sm:$0xff] }
 0x431   :  { %v9081_v12 = vpack.c.bf16 %v3685_v55, %v3684_v27  ;;  %v1630_v43 = vadd.f32 %v1502_v42, %v858_v26  ;;  %v2274_v7 = vmul.f32 %v7281_v4, %v10731_v13  ;;  %v10733_v26 = vld [vmem:[#allocation141_spill] sm:$0xff] }
 0x432   :  { %v9084_v54 = vpack.c.bf16 %v3683_v59, %v3682_v32  ;;  %v2472_v33 = vadd.f32 %v2344_v31, %v1700_v56  ;;  %v10730_v32 = vld [vmem:[#allocation60_spill] sm:$0xff] }
 0x433   :  { %10727 = vst [vmem:[#allocation31_spill] sm:$0xff] %v9081_v12  ;;  %v2200_v49 = vpop.permute.xlu1 %2199  ;;  %v861_v56 = vmul.f32 %v7265_v44, %v10730_v32 }
 0x434   :  { %10728 = vst [vmem:[#allocation32_spill] sm:$0xff] %v9084_v54  ;;  %v2345_v50 = vmul.f32 %v7281_v4, %v2200_v49  ;;  %v2607_v41 = vadd.f32 %v8942_v57, %v2472_v33  ;;  %v10732_v49 = vld [vmem:[#allocation57_spill] sm:$0xff] }
 0x435   :  { %v859_v33 = vmul.f32 %v7265_v44, %v10732_v49 }
 0x436   :  { %v2473_v29 = vadd.f32 %v2345_v50, %v1701_v37  ;;  %v2735_v59 = vmax.f32 %v2607_v41, 0.0  ;;  %v2402_v37 = vadd.f32 %v2274_v7, %v1630_v43  ;;  %v860_v41 = vmul.f32 %v7265_v44, %v10734_v6 }
 0x437   :  { %v1631_v32 = vadd.f32 %v1503_v23, %v859_v33 }
 0x438   :  { %v2608_v27 = vadd.f32 %v8942_v57, %v2473_v29  ;;  %v1156_v24 = vpop.permute.xlu1 %1155  ;;  %v2277_v29 = vmul.f32 %v7281_v4, %v10733_v26 }
 0x439   :  { %v1505_v55 = vmul.f32 %v7259_v39, %v1156_v24  ;;  %v1504_v24 = vmul.f32 %v7259_v39, %v1152_v52 }
 0x43a   :  { %v2736_v31 = vmax.f32 %v2608_v27, 0.0  ;;  %v2537_v27 = vadd.f32 %v8942_v57, %v2402_v37 }
 0x43b   :  { %v1633_v50 = vadd.f32 %v1505_v55, %v861_v56  ;;  %v1632_v56 = vadd.f32 %v1504_v24, %v860_v41 }
 0x43c   :  { %v2802_v42 = vpack.c.bf16 %v2736_v31, %v2735_v59  ;;  %v2665_v23 = vmax.f32 %v2537_v27, 0.0 }
 0x43d   :  { %v1920_v46 = vpop.permute.xlu1 %1919  ;;  %v2405_v49 = vadd.f32 %v2277_v29, %v1633_v50 }
 0x43e   :  { %v2275_v13 = vmul.f32 %v7281_v4, %v1920_v46  ;;  %6051 = vmatmul.mubr.msk.bf16.gmra.mrb[56].mxu1 %vm2844_vm0, %v2802_v42 }
 0x43f   :  { %v2540_v31 = vadd.f32 %v8942_v57, %v2405_v49  ;;  %v10735_v49 = vld [vmem:[#allocation100_spill] sm:$0xff] }
 0x440   :  { %v2403_v43 = vadd.f32 %v2275_v13, %v1631_v32 }
 0x441   :  { %v1924_v7 = vpop.permute.xlu1 %1923  ;;  %v2668_v6 = vmax.f32 %v2540_v31, 0.0 }
 0x442   :  { %v2538_v55 = vadd.f32 %v8942_v57, %v2403_v43  ;;  %v2276_v59 = vmul.f32 %v7281_v4, %v1924_v7  ;;  %v931_v43 = vmul.f32 %v7265_v44, %v10735_v49 }
 0x444   :  { %v2666_v52 = vmax.f32 %v2538_v55, 0.0  ;;  %v2404_v33 = vadd.f32 %v2276_v59, %v1632_v56 }
 0x446   :  { %v2767_v46 = vpack.c.bf16 %v2666_v52, %v2665_v23  ;;  %v2539_v42 = vadd.f32 %v8942_v57, %v2404_v33  ;;  %v785_v26 = vpop.permute.xlu1 %784 }
 0x448   :  { %v2667_v12 = vmax.f32 %v2539_v42, 0.0  ;;  %5982 = vmatprep.mubr.msk.bf16.mxu0 %vm2844_vm0, %v2767_v46  ;;  %v10736_v46 = vld [vmem:[#allocation12_spill] sm:$0xff] }
 0x449   :  { %v2347_v42 = vmul.f32 %v7281_v4, %v10736_v46 }
 0x44a   :  { %v2768_v37 = vpack.c.bf16 %v2668_v6, %v2667_v12 }
 0x44b   :  { %v1432_v50 = vpop.permute.xlu1 %1431 }
 0x44c   :  { %5983 = vmatmul.mubr.msk.bf16.gmra.mrb[52].mxu0 %vm2844_vm0, %v2768_v37  ;;  %v1574_v6 = vmul.f32 %v7259_v39, %v1432_v50 }
 0x44f   :  { %v1436_v29 = vpop.permute.xlu1 %1435 }
 0x450   :  { %v1575_v24 = vmul.f32 %v7259_v39, %v1436_v29 }
 0x452   :  { %v1703_v59 = vadd.f32 %v1575_v24, %v931_v43 }
 0x454   :  { %v800_v32 = vpop.permute.xlu1 %799 }
 0x455   :  { %v6036_v13 = vpop.f32.mrb[40].mxu1 }
 0x456   :  { %v3496_v41 = vadd.f32 %v9012_v48, %v6036_v13  ;;  %v3487_v27 = vpop.f32.mrb[41].mxu1  ;;  %v1440_v13 = vpop.permute.xlu0 %1439 }
 0x457   :  { %v3488_v7 = vadd.f32 %v9012_v48, %v3487_v27  ;;  %v6037_v56 = vpop.f32.mrb[42].mxu1  ;;  %v930_v27 = vmul.f32 %v7265_v44, %v785_v26  ;;  %v1576_v43 = vmul.f32 %v7259_v39, %v1440_v13 }
 0x458   :  { %v3499_v55 = vadd.f32 %v9012_v48, %v6037_v56  ;;  %v3490_v12 = vpop.f32.mrb[43].mxu1  ;;  %v3688_v52 = vmax.f32 %v3496_v41, 0.0  ;;  %v2475_v56 = vadd.f32 %v2347_v42, %v1703_v59 }
 0x459   :  { %v3491_v23 = vadd.f32 %v9012_v48, %v3490_v12  ;;  %v1444_v31 = vpop.permute.xlu1 %1443  ;;  %v3686_v37 = vmax.f32 %v3488_v7, 0.0  ;;  %v1702_v41 = vadd.f32 %v1574_v6, %v930_v27  ;;  %v10739_v12 = vld [vmem:[#allocation101_spill] sm:$0xff]  ;;  %v933_v27 = vmul.f32 %v7265_v44, %v800_v32 }
 0x45a   :  { %v3689_v33 = vmax.f32 %v3499_v55, 0.0  ;;  %v932_v46 = vmul.f32 %v7265_v44, %v10739_v12  ;;  %v2610_v50 = vadd.f32 %v8942_v57, %v2475_v56 }
 0x45b   :  { %v3687_v29 = vmax.f32 %v3491_v23, 0.0 }
 0x45c   :  { %v9124_v49 = vpack.c.bf16 %v3689_v33, %v3688_v52  ;;  %v1704_v52 = vadd.f32 %v1576_v43, %v932_v46  ;;  %v1577_v33 = vmul.f32 %v7259_v39, %v1444_v31  ;;  %v2738_v13 = vmax.f32 %v2610_v50, 0.0 }
 0x45d   :  { %v9127_v54 = vpack.c.bf16 %v3687_v29, %v3686_v37  ;;  %v1160_v37 = vpop.permute.xlu0 %1159 }
 0x45e   :  { %10737 = vst [vmem:[#allocation33_spill] sm:$0xff] %v9124_v49  ;;  %v2204_v24 = vpop.permute.xlu1 %2203  ;;  %v1705_v46 = vadd.f32 %v1577_v33, %v933_v27 }
 0x45f   :  { %10738 = vst [vmem:[#allocation34_spill] sm:$0xff] %v9127_v54  ;;  %v2346_v55 = vmul.f32 %v7281_v4, %v2204_v24 }
 0x461   :  { %v2474_v7 = vadd.f32 %v2346_v55, %v1702_v41 }
 0x462   :  { %v2212_v23 = vpop.permute.xlu1 %2211 }
 0x463   :  { %v2609_v26 = vadd.f32 %v8942_v57, %v2474_v7  ;;  %v2348_v59 = vmul.f32 %v7281_v4, %v2212_v23  ;;  %v5976_v42 = vpop.f32.mrb[44].mxu0 }
 0x464   :  { %v3256_v6 = vadd.f32 %v9012_v48, %v5976_v42  ;;  %v3247_v29 = vpop.f32.mrb[45].mxu0 }
 0x465   :  { %v2737_v24 = vmax.f32 %v2609_v26, 0.0  ;;  %v2476_v12 = vadd.f32 %v2348_v59, %v1704_v52  ;;  %v5977_v56 = vpop.f32.mrb[46].mxu0  ;;  %v3248_v41 = vadd.f32 %v9012_v48, %v3247_v29  ;;  %v1172_v52 = vpop.permute.xlu0 %1171 }
 0x466   :  { %v3259_v43 = vadd.f32 %v9012_v48, %v5977_v56  ;;  %v2216_v31 = vpop.permute.xlu1 %2215  ;;  %v3250_v55 = vpop.f32.mrb[47].mxu0  ;;  %v3628_v49 = vmax.f32 %v3256_v6, 0.0  ;;  %v10740_v6 = vld [vmem:[#allocation62_spill] sm:$0xff] }
 0x467   :  { %v2803_v7 = vpack.c.bf16 %v2738_v13, %v2737_v24  ;;  %v2349_v23 = vmul.f32 %v7281_v4, %v2216_v31  ;;  %v3251_v42 = vadd.f32 %v9012_v48, %v3250_v55  ;;  %v2611_v50 = vadd.f32 %v8942_v57, %v2476_v12 }
 0x468   :  { %v3629_v54 = vmax.f32 %v3259_v43, 0.0  ;;  %v3626_v26 = vmax.f32 %v3248_v41, 0.0  ;;  %v863_v24 = vmul.f32 %v7265_v44, %v10740_v6  ;;  %v6226_v41 = vld [vmem:[%s10373_s7] sm:$0xff]  }
 0x469   :  { %v2477_v32 = vadd.f32 %v2349_v23, %v1705_v46  ;;  %6054 = vmatprep.mubr.msk.bf16.mxu1 %vm2844_vm0, %v2803_v7  ;;  %v3627_v59 = vmax.f32 %v3251_v42, 0.0  ;;  %v2739_v43 = vmax.f32 %v2611_v50, 0.0  ;;  %v1936_v31 = vpop.permute.xlu0 %1935  ;;  %v6227_v7 = vld [vmem:[%s10373_s7 + $0x8] sm:$0xff]   ;;  %5075 = vmatpush1.bf16.msra.mxu0 %v6226_v41  ;;  %v1506_v23 = vmul.f32 %v7259_v39, %v1160_v37  ;;  %v10741_v42 = vld [vmem:[#allocation70_spill] sm:$0xff] }
 0x46a   :  { %v9145_v29 = vpack.c.bf16 %v3629_v54, %v3628_v49  ;;  %v2279_v54 = vmul.f32 %v7281_v4, %v1936_v31  ;;  %5076 = vmatprep.subr.bf16.mxu0 %v10475_v16  ;;  %v862_v50 = vmul.f32 %v7265_v44, %v10741_v42 }
 0x46b   :  { %v2612_v56 = vadd.f32 %v8942_v57, %v2477_v32  ;;  %v1164_v33 = vpop.permute.xlu1 %1163  ;;  %v9149_v27 = vpack.c.bf16 %v3627_v59, %v3626_v26  ;;  %v6228_v59 = vld [vmem:[%s10373_s7 + $0x10] sm:$0xff]  }
 0x46c   :  { %v1507_v13 = vmul.f32 %v7259_v39, %v1164_v33 }
 0x46d   :  { %v2740_v12 = vmax.f32 %v2612_v56, 0.0  ;;  %5077 = vmatpush1.bf16.msra.mxu0 %v6227_v7  ;;  %v1634_v56 = vadd.f32 %v1506_v23, %v862_v50  ;;  %v1176_v31 = vpop.permute.xlu0 %1175  ;;  %v10743_v7 = vld [vmem:[#allocation64_spill] sm:$0xff] }
 0x46e   :  { %v1635_v55 = vadd.f32 %v1507_v13, %v863_v24  ;;  %5078 = vmatprep.subr.bf16.mxu0 %v10475_v16  ;;  %v10742_v13 = vld [vmem:[#allocation71_spill] sm:$0xff] }
 0x46f   :  { %v2804_v49 = vpack.c.bf16 %v2740_v12, %v2739_v43  ;;  %v1168_v46 = vpop.permute.xlu1 %1167  ;;  %v864_v6 = vmul.f32 %v7265_v44, %v10742_v13  ;;  %v1509_v12 = vmul.f32 %v7259_v39, %v1172_v52  ;;  %v865_v52 = vmul.f32 %v7265_v44, %v10743_v7 }
 0x470   :  { %v2407_v32 = vadd.f32 %v2279_v54, %v1635_v55  ;;  %v1508_v33 = vmul.f32 %v7259_v39, %v1168_v46  ;;  %v6229_v46 = vld [vmem:[%s10373_s7 + $0x18] sm:$0xff]  }
 0x471   :  { %6055 = vmatmul.mubr.msk.bf16.gmra.mrb[60].mxu1 %vm2844_vm0, %v2804_v49  ;;  %5079 = vmatpush1.bf16.msra.mxu0 %v6228_v59 }
 0x472   :  { %3914 = vmatprep.mubr.bf16.mxu1 %v10475_v16  ;;  %v2542_v24 = vadd.f32 %v8942_v57, %v2407_v32  ;;  %v1636_v54 = vadd.f32 %v1508_v33, %v864_v6  ;;  %5080 = vmatprep.subr.bf16.mxu0 %v10475_v16 }
 0x474   :  { %v1932_v26 = vpop.permute.xlu1 %1931  ;;  %v2670_v23 = vmax.f32 %v2542_v24, 0.0 }
 0x475   :  { %v2278_v37 = vmul.f32 %v7281_v4, %v1932_v26  ;;  %5081 = vmatpush1.bf16.msra.mxu0 %v6229_v46  ;;  %v1637_v26 = vadd.f32 %v1509_v12, %v865_v52  ;;  %v6230_v12 = vld [vmem:[%s10373_s7 + $0x20] sm:$0xff]  }
 0x476   :  { %5082 = vmatprep.subr.bf16.mxu0 %v10475_v16 }
 0x477   :  { %v2406_v43 = vadd.f32 %v2278_v37, %v1634_v56  ;;  %v1188_v56 = vpop.permute.xlu0 %1187 }
 0x478   :  { %v1940_v41 = vpop.permute.xlu1 %1939 }
 0x479   :  { %v2541_v49 = vadd.f32 %v8942_v57, %v2406_v43  ;;  %v2280_v55 = vmul.f32 %v7281_v4, %v1940_v41  ;;  %3915 = vmatmul.mubr.bf16.vlgmr.msra.gmra.mrb[64].mxu1 %v8247_v8  ;;  %v10744_v41 = vld [vmem:[#allocation66_spill] sm:$0xff]  ;;  %5083 = vmatpush1.bf16.msra.mxu0 %v6230_v12 }
 0x47a   :  { %3924 = vmatprep.mubr.bf16.mxu1 %v10475_v16  ;;  %5084 = vmatprep.subr.bf16.mxu0 %v10475_v16 }
 0x47b   :  { %v2669_v42 = vmax.f32 %v2541_v49, 0.0  ;;  %v2408_v50 = vadd.f32 %v2280_v55, %v1636_v54  ;;  %v1952_v43 = vpop.permute.xlu0 %1951  ;;  %v867_v54 = vmul.f32 %v7265_v44, %v10744_v41 }
 0x47c   :  { %v1944_v32 = vpop.permute.xlu1 %1943  ;;  %v2283_v52 = vmul.f32 %v7281_v4, %v1952_v43 }
 0x47d   :  { %v2769_v59 = vpack.c.bf16 %v2670_v23, %v2669_v42  ;;  %v2281_v8 = vmul.f32 %v7281_v4, %v1944_v32  ;;  %v2543_v33 = vadd.f32 %v8942_v57, %v2408_v50  ;;  %v1510_v23 = vmul.f32 %v7259_v39, %v1176_v31  ;;  %v10745_v50 = vld [vmem:[#allocation72_spill] sm:$0xff]  ;;  %v6231_v31 = vld [vmem:[%s10373_s7 + $0x28] sm:$0xff]  }
 0x47e   :  { %v866_v32 = vmul.f32 %v7265_v44, %v10745_v50  ;;  %5085 = vmatpush1.bf16.msra.mxu0 %v6231_v31 }
 0x47f   :  { %v2409_v37 = vadd.f32 %v2281_v8, %v1637_v26  ;;  %5986 = vmatprep.mubr.msk.bf16.mxu0 %vm2844_vm0, %v2769_v59  ;;  %v2671_v49 = vmax.f32 %v2543_v33, 0.0  ;;  %5086 = vmatprep.subr.bf16.mxu0 %v10475_v16 }
 0x481   :  { %v2544_v13 = vadd.f32 %v8942_v57, %v2409_v37  ;;  %v1180_v6 = vpop.permute.xlu1 %1179  ;;  %3925 = vmatmul.mubr.bf16.gmra.mrb[68].mxu1 %v8245_v62 }
 0x482   :  { %v1511_v24 = vmul.f32 %v7259_v39, %v1180_v6  ;;  %3934 = vmatprep.mubr.bf16.mxu1 %v10475_v16  ;;  %v1638_v6 = vadd.f32 %v1510_v23, %v866_v32 }
 0x483   :  { %v2672_v55 = vmax.f32 %v2544_v13, 0.0 }
 0x484   :  { %v1639_v7 = vadd.f32 %v1511_v24, %v867_v54  ;;  %v10746_v54 = vld [vmem:[#allocation73_spill] sm:$0xff] }
 0x485   :  { %v2770_v46 = vpack.c.bf16 %v2672_v55, %v2671_v49  ;;  %v1184_v62 = vpop.permute.xlu1 %1183 }
 0x486   :  { %v2411_v26 = vadd.f32 %v2283_v52, %v1639_v7  ;;  %v1512_v24 = vmul.f32 %v7259_v39, %v1184_v62  ;;  %v1513_v62 = vmul.f32 %v7259_v39, %v1188_v56 }
 0x487   :  { %5987 = vmatmul.mubr.msk.bf16.gmra.mrb[56].mxu0 %vm2844_vm0, %v2770_v46 }
 0x488   :  { %v6040_v42 = vpop.f32.mrb[44].mxu1  ;;  %v2546_v55 = vadd.f32 %v8942_v57, %v2411_v26  ;;  %v10747_v26 = vld [vmem:[#allocation68_spill] sm:$0xff] }
 0x489   :  { %v3512_v59 = vadd.f32 %v9012_v48, %v6040_v42  ;;  %v3503_v8 = vpop.f32.mrb[45].mxu1  ;;  %3935 = vmatmul.mubr.bf16.gmra.mrb[72].mxu1 %v8284_v34  ;;  %v868_v34 = vmul.f32 %v7265_v44, %v10746_v54 }
 0x48a   :  { %v3504_v33 = vadd.f32 %v9012_v48, %v3503_v8  ;;  %v1948_v37 = vpop.permute.xlu1 %1947  ;;  %v6041_v13 = vpop.f32.mrb[46].mxu1  ;;  %3944 = vmatprep.mubr.bf16.mxu1 %v10475_v16 }
 0x48b   :  { %v2282_v43 = vmul.f32 %v7281_v4, %v1948_v37  ;;  %v3515_v12 = vadd.f32 %v9012_v48, %v6041_v13  ;;  %v3506_v41 = vpop.f32.mrb[47].mxu1  ;;  %v3692_v46 = vmax.f32 %v3512_v59, 0.0  ;;  %v1640_v32 = vadd.f32 %v1512_v24, %v868_v34 }
 0x48c   :  { %v3507_v49 = vadd.f32 %v9012_v48, %v3506_v41  ;;  %v3690_v23 = vmax.f32 %v3504_v33, 0.0  ;;  %v869_v59 = vmul.f32 %v7265_v44, %v10747_v26 }
 0x48d   :  { %v2410_v7 = vadd.f32 %v2282_v43, %v1638_v6  ;;  %v3693_v52 = vmax.f32 %v3515_v12, 0.0  ;;  %v2674_v6 = vmax.f32 %v2546_v55, 0.0 }
 0x48e   :  { %v3691_v42 = vmax.f32 %v3507_v49, 0.0  ;;  %v1956_v50 = vpop.permute.xlu1 %1955  ;;  %v1641_v56 = vadd.f32 %v1513_v62, %v869_v59  ;;  %v6237_v59 = vld [vmem:[%s10373_s7 + $0x58] sm:$0xff]  }
 0x48f   :  { %v2545_v8 = vadd.f32 %v8942_v57, %v2410_v7  ;;  %v9222_v37 = vpack.c.bf16 %v3693_v52, %v3692_v46  ;;  %v2284_v13 = vmul.f32 %v7281_v4, %v1956_v50 }
 0x490   :  { %v9225_v31 = vpack.c.bf16 %v3691_v42, %v3690_v23 }
 0x491   :  { %v2673_v43 = vmax.f32 %v2545_v8, 0.0  ;;  %v2412_v12 = vadd.f32 %v2284_v13, %v1640_v32  ;;  %3945 = vmatmul.mubr.bf16.gmra.mrb[76].mxu1 %v8279_v63  ;;  %v6232_v63 = vld [vmem:[%s10373_s7 + $0x30] sm:$0xff]  }
 0x492   :  { %v1960_v39 = vpop.permute.xlu1 %1959  ;;  %3954 = vmatprep.mubr.bf16.mxu1 %v10475_v16  ;;  %5087 = vmatpush1.bf16.msra.mxu0 %v6232_v63 }
 0x493   :  { %v2771_v33 = vpack.c.bf16 %v2674_v6, %v2673_v43  ;;  %v2285_v24 = vmul.f32 %v7281_v4, %v1960_v39  ;;  %v2547_v41 = vadd.f32 %v8942_v57, %v2412_v12  ;;  %5088 = vmatprep.subr.bf16.mxu0 %v10475_v16  ;;  %v6233_v4 = vld [vmem:[%s10373_s7 + $0x38] sm:$0xff]  }
 0x495   :  { %v2413_v54 = vadd.f32 %v2285_v24, %v1641_v56  ;;  %5990 = vmatprep.mubr.msk.bf16.mxu0 %vm2844_vm0, %v2771_v33  ;;  %v2675_v44 = vmax.f32 %v2547_v41, 0.0 }
 0x496   :  { %5089 = vmatpush1.bf16.msra.mxu0 %v6233_v4  ;;  %v6239_v4 = vld [vmem:[%s10373_s7 + $0x68] sm:$0xff]  }
 0x497   :  { %v2548_v34 = vadd.f32 %v8942_v57, %v2413_v54  ;;  %5090 = vmatprep.subr.bf16.mxu0 %v10475_v16 }
 0x499   :  { %v2676_v49 = vmax.f32 %v2548_v34, 0.0  ;;  %3955 = vmatmul.mubr.bf16.gmra.mrb[80].mxu1 %v8461_v28  ;;  %v6234_v28 = vld [vmem:[%s10373_s7 + $0x40] sm:$0xff]  }
 0x49a   :  { %3964 = vmatprep.mubr.bf16.mxu1 %v10475_v16  ;;  %5091 = vmatpush1.bf16.msra.mxu0 %v6234_v28  ;;  %v6240_v28 = vld [vmem:[%s10373_s7 + $0x70] sm:$0xff]  }
 0x49b   :  { %v2772_v55 = vpack.c.bf16 %v2676_v49, %v2675_v44  ;;  %5092 = vmatprep.subr.bf16.mxu0 %v10475_v16 }
 0x49d   :  { %5991 = vmatmul.mubr.msk.bf16.gmra.mrb[60].mxu0 %vm2844_vm0, %v2772_v55 }
 0x4a1   :  { %3965 = vmatmul.mubr.bf16.gmra.mrb[84].mxu1 %v8459_v36  ;;  %v6235_v36 = vld [vmem:[%s10373_s7 + $0x48] sm:$0xff]  }
 0x4a2   :  { %3974 = vmatprep.mubr.bf16.mxu1 %v10475_v16  ;;  %5093 = vmatpush1.bf16.msra.mxu0 %v6235_v36 }
 0x4a3   :  { %5094 = vmatprep.subr.bf16.mxu0 %v10475_v16 }
 0x4a9   :  { %3975 = vmatmul.mubr.bf16.gmra.mrb[88].mxu1 %v8490_v14  ;;  %v6236_v14 = vld [vmem:[%s10373_s7 + $0x50] sm:$0xff]  }
 0x4aa   :  { %3984 = vmatprep.mubr.bf16.mxu1 %v10475_v16  ;;  %5095 = vmatpush1.bf16.msra.mxu0 %v6236_v14 }
 0x4ab   :  { %5096 = vmatprep.subr.bf16.mxu0 %v10475_v16 }
 0x4ae   :  { %5097 = vmatpush1.bf16.msra.mxu0 %v6237_v59 }
 0x4af   :  { %5098 = vmatprep.subr.bf16.mxu0 %v10475_v16 }
 0x4b1   :  { %3985 = vmatmul.mubr.bf16.gmra.mrb[92].mxu1 %v8488_v2 }
 0x4b2   :  { %3994 = vmatprep.mubr.bf16.mxu1 %v10475_v16 }
 0x4b3   :  { %v6044_v57 = vpop.f32.mrb[48].mxu1 }
 0x4b4   :  { %v3528_v46 = vadd.f32 %v9012_v48, %v6044_v57  ;;  %v3519_v7 = vpop.f32.mrb[49].mxu1 }
 0x4b5   :  { %v3520_v52 = vadd.f32 %v9012_v48, %v3519_v7  ;;  %v6045_v62 = vpop.f32.mrb[50].mxu1 }
 0x4b6   :  { %v3531_v23 = vadd.f32 %v9012_v48, %v6045_v62  ;;  %v3522_v42 = vpop.f32.mrb[51].mxu1  ;;  %v3696_v50 = vmax.f32 %v3528_v46, 0.0 }
 0x4b7   :  { %v3523_v2 = vadd.f32 %v9012_v48, %v3522_v42  ;;  %v3694_v8 = vmax.f32 %v3520_v52, 0.0 }
 0x4b8   :  { %v3697_v32 = vmax.f32 %v3531_v23, 0.0 }
 0x4b9   :  { %v3695_v13 = vmax.f32 %v3523_v2, 0.0  ;;  %3995 = vmatmul.mubr.bf16.gmra.mrb[96].mxu1 %v8507_v51 }
 0x4ba   :  { %v9269_v26 = vpack.c.bf16 %v3697_v32, %v3696_v50  ;;  %4004 = vmatprep.mubr.bf16.mxu1 %v10475_v16 }
 0x4bb   :  { %v9275_v6 = vpack.c.bf16 %v3695_v13, %v3694_v8 }
 0x4c1   :  { %v5980_v43 = vpop.f32.mrb[48].mxu0  ;;  %4005 = vmatmul.mubr.bf16.gmra.mrb[100].mxu1 %v8503_v11  ;;  %v6238_v11 = vld [vmem:[%s10373_s7 + $0x60] sm:$0xff]  }
 0x4c2   :  { %v3272_v12 = vadd.f32 %v9012_v48, %v5980_v43  ;;  %v3263_v39 = vpop.f32.mrb[49].mxu0  ;;  %4014 = vmatprep.mubr.bf16.mxu1 %v10475_v16  ;;  %5099 = vmatpush1.bf16.msra.mxu0 %v6238_v11 }
 0x4c3   :  { %v3264_v51 = vadd.f32 %v9012_v48, %v3263_v39  ;;  %v5981_v56 = vpop.f32.mrb[50].mxu0  ;;  %5100 = vmatprep.subr.bf16.mxu0 %v10475_v16 }
 0x4c4   :  { %v3275_v33 = vadd.f32 %v9012_v48, %v5981_v56  ;;  %v3266_v24 = vpop.f32.mrb[51].mxu0  ;;  %v3632_v54 = vmax.f32 %v3272_v12, 0.0 }
 0x4c5   :  { %v3267_v41 = vadd.f32 %v9012_v48, %v3266_v24  ;;  %v3630_v44 = vmax.f32 %v3264_v51, 0.0 }
 0x4c6   :  { %v3633_v34 = vmax.f32 %v3275_v33, 0.0  ;;  %5101 = vmatpush1.bf16.msra.mxu0 %v6239_v4 }
 0x4c7   :  { %v3631_v49 = vmax.f32 %v3267_v41, 0.0  ;;  %5102 = vmatprep.subr.bf16.mxu0 %v10475_v16 }
 0x4c8   :  { %v9287_v63 = vpack.c.bf16 %v3633_v34, %v3632_v54 }
 0x4c9   :  { %4015 = vmatmul.mubr.bf16.gmra.mrb[104].mxu1 %v8535_v35  ;;  %v9290_v55 = vpack.c.bf16 %v3631_v49, %v3630_v44  ;;  %v6241_v35 = vld [vmem:[%s10373_s7 + $0x78] sm:$0xff]  }
 0x4ca   :  { %4024 = vmatprep.mubr.bf16.mxu1 %v10475_v16  ;;  %5103 = vmatpush1.bf16.msra.mxu0 %v6240_v28 }
 0x4cb   :  { %5104 = vmatprep.subr.bf16.mxu0 %v10475_v16 }
 0x4ce   :  { %5105 = vmatpush1.bf16.msra.mxu0 %v6241_v35 }
 0x4d1   :  { %4025 = vmatmul.mubr.bf16.gmra.mrb[108].mxu1 %v8530_v40 }
 0x4d2   :  { %4034 = vmatprep.mubr.bf16.mxu1 %v10475_v16 }
 0x4d9   :  { %4035 = vmatmul.mubr.bf16.gmra.mrb[112].mxu1 %v8574_v58 }
 0x4da   :  { %4044 = vmatprep.mubr.bf16.mxu1 %v10475_v16 }
 0x4e1   :  { %4045 = vmatmul.mubr.bf16.gmra.mrb[116].mxu1 %v8569_v38 }
 0x4e2   :  { %4054 = vmatprep.mubr.bf16.mxu1 %v10475_v16 }
 0x4e6   :  { %v6048_v36 = vpop.f32.mrb[52].mxu1 }
 0x4e7   :  { %v3544_v40 = vadd.f32 %v9012_v48, %v6048_v36  ;;  %v3535_v14 = vpop.f32.mrb[53].mxu1 }
 0x4e8   :  { %v3536_v57 = vadd.f32 %v9012_v48, %v3535_v14  ;;  %v6049_v46 = vpop.f32.mrb[54].mxu1 }
 0x4e9   :  { %v3547_v7 = vadd.f32 %v9012_v48, %v6049_v46  ;;  %v3538_v52 = vpop.f32.mrb[55].mxu1  ;;  %4055 = vmatmul.mubr.bf16.gmra.mrb[120].mxu1 %v8632_v22  ;;  %v3700_v62 = vmax.f32 %v3544_v40, 0.0 }
 0x4ea   :  { %v3539_v58 = vadd.f32 %v9012_v48, %v3538_v52  ;;  %4064 = vmatprep.mubr.bf16.mxu1 %v10475_v16  ;;  %v3698_v23 = vmax.f32 %v3536_v57, 0.0 }
 0x4eb   :  { %v3701_v38 = vmax.f32 %v3547_v7, 0.0 }
 0x4ec   :  { %v3699_v42 = vmax.f32 %v3539_v58, 0.0  ;;  %v10748_v58 = vld [vmem:[#allocation95_spill] sm:$0xff] }
 0x4ed   :  { %v9317_v2 = vpack.c.bf16 %v3701_v38, %v3700_v62  ;;  %v10749_v62 = vsub.s32 0, %v10748_v58 }
 0x4ee   :  { %v9319_v50 = vpack.c.bf16 %v3699_v42, %v3698_v23 }
 0x4f1   :  { %4065 = vmatmul.mubr.bf16.gmra.mrb[124].mxu1 %v8629_v19 }
 0x4f2   :  { %4074 = vmatprep.mubr.bf16.mxu1 %v10475_v16 }
 0x4f9   :  { %4075 = vmatmul.mubr.bf16.gmra.mrb[128].mxu1 %v8696_v5 }
 0x4fa   :  { %4084 = vmatprep.mubr.bf16.mxu1 %v10475_v16 }
 0x501   :  { %4085 = vmatmul.mubr.bf16.gmra.mrb[132].mxu1 %v8692_v17 }
 0x502   :  { %4094 = vmatprep.mubr.bf16.mxu1 %v10475_v16 }
 0x509   :  { %4095 = vmatmul.mubr.bf16.gmra.mrb[136].mxu1 %v8867_v15 }
 0x50a   :  { %4104 = vmatprep.mubr.bf16.mxu1 %v10475_v16 }
 0x511   :  { %v6052_v22 = vpop.f32.mrb[56].mxu1  ;;  %4105 = vmatmul.mubr.bf16.gmra.mrb[140].mxu1 %v8863_v20 }
 0x512   :  { %v3560_v32 = vadd.f32 %v9012_v48, %v6052_v22  ;;  %v3551_v19 = vpop.f32.mrb[57].mxu1  ;;  %4114 = vmatprep.mubr.bf16.mxu1 %v10475_v16  ;;  %v10750_v22 = vsub.s32 1, %v10748_v58 }
 0x513   :  { %v3552_v5 = vadd.f32 %v9012_v48, %v3551_v19  ;;  %v6053_v8 = vpop.f32.mrb[58].mxu1 }
 0x514   :  { %v3563_v13 = vadd.f32 %v9012_v48, %v6053_v8  ;;  %v3554_v17 = vpop.f32.mrb[59].mxu1  ;;  %v3704_v43 = vmax.f32 %v3560_v32, 0.0 }
 0x515   :  { %v3555_v59 = vadd.f32 %v9012_v48, %v3554_v17  ;;  %v3702_v12 = vmax.f32 %v3552_v5, 0.0 }
 0x516   :  { %v3705_v15 = vmax.f32 %v3563_v13, 0.0 }
 0x517   :  { %v3703_v39 = vmax.f32 %v3555_v59, 0.0 }
 0x518   :  { %v9335_v51 = vpack.c.bf16 %v3705_v15, %v3704_v43 }
 0x519   :  { %v9337_v20 = vpack.c.bf16 %v3703_v39, %v3702_v12  ;;  %4115 = vmatmul.mubr.bf16.gmra.mrb[144].mxu1 %v9056_v47 }
 0x51a   :  { %4124 = vmatprep.mubr.bf16.mxu1 %v10475_v16 }
 0x51f   :  { %v5984_v56 = vpop.f32.mrb[52].mxu0 }
 0x520   :  { %v3288_v33 = vadd.f32 %v9012_v48, %v5984_v56  ;;  %v3279_v24 = vpop.f32.mrb[53].mxu0 }
 0x521   :  { %v3280_v41 = vadd.f32 %v9012_v48, %v3279_v24  ;;  %v5985_v54 = vpop.f32.mrb[54].mxu0  ;;  %4125 = vmatmul.mubr.bf16.gmra.mrb[148].mxu1 %v9053_v21  ;;  %v9358_v21 = vld [vmem:[%s10371_s4] ss:$0 sm:$0xff] }
 0x522   :  { %v3291_v34 = vadd.f32 %v9012_v48, %v5985_v54  ;;  %v3282_v44 = vpop.f32.mrb[55].mxu0  ;;  %4134 = vmatprep.mubr.bf16.mxu1 %v10475_v16  ;;  %v3636_v11 = vmax.f32 %v3288_v33, 0.0 }
 0x523   :  { %v3283_v49 = vadd.f32 %v9012_v48, %v3282_v44  ;;  %v3634_v4 = vmax.f32 %v3280_v41, 0.0 }
 0x524   :  { %v3637_v47 = vmax.f32 %v3291_v34, 0.0 }
 0x525   :  { %v3635_v28 = vmax.f32 %v3283_v49, 0.0 }
 0x526   :  { %v3737_v35 = vpack.c.bf16 %v3637_v47, %v3636_v11 }
 0x527   :  { %v3736_v36 = vpack.c.bf16 %v3635_v28, %v3634_v4 }
 0x529   :  { %4135 = vmatmul.mubr.bf16.gmra.mrb[152].mxu1 %v9149_v27 }
 0x52a   :  { %4144 = vmatprep.mubr.bf16.mxu1 %v10475_v16 }
 0x531   :  { %4145 = vmatmul.mubr.bf16.gmra.mrb[156].mxu1 %v9145_v29 }
 0x532   :  { %4154 = vmatprep.mubr.bf16.mxu1 %v10475_v16 }
 0x539   :  { %4155 = vmatmul.mubr.bf16.gmra.mrb[160].mxu1 %v9290_v55  ;;  %v3790_v55 = vld [vmem:[%s10374_s6] sm:$0x3] }
 0x53a   :  { %4164 = vmatprep.mubr.bf16.mxu1 %v10475_v16  ;;  %v9369_v38 = vrot.slane %v3790_v55, %v10749_v62  ;;  %v9373_v32 = vrot.slane %v3790_v55, %v10750_v22 }
 0x541   :  { %4165 = vmatmul.mubr.bf16.gmra.mrb[164].mxu1 %v9287_v63 }
 0x542   :  { %4174 = vmatprep.mubr.bf16.mxu1 %v10475_v16 }
 0x544   :  { %v6056_v48 = vpop.f32.mrb[60].mxu1 }
 0x545   :  { %v3576_v27 = vadd.f32 %v9358_v21, %v6056_v48  ;;  %v3567_v40 = vpop.f32.mrb[61].mxu1 }
 0x546   :  { %v3568_v29 = vadd.f32 %v9358_v21, %v3567_v40  ;;  %v6057_v14 = vpop.f32.mrb[62].mxu1 }
 0x547   :  { %v3579_v63 = vadd.f32 %v9358_v21, %v6057_v14  ;;  %v3570_v57 = vpop.f32.mrb[63].mxu1  ;;  %v3708_v7 = vmax.f32 %v3576_v27, 0.0 }
 0x548   :  { %v3571_v46 = vadd.f32 %v9358_v21, %v3570_v57  ;;  %v3706_v23 = vmax.f32 %v3568_v29, 0.0 }
 0x549   :  { %v3709_v52 = vmax.f32 %v3579_v63, 0.0  ;;  %4175 = vmatmul.mubr.bf16.gmra.mrb[168].mxu1 %v3736_v36 }
 0x54a   :  { %v3707_v42 = vmax.f32 %v3571_v46, 0.0  ;;  %4184 = vmatprep.mubr.bf16.mxu1 %v10475_v16 }
 0x54b   :  { %v9376_v19 = vpack.c.bf16 %v3709_v52, %v3708_v7 }
 0x54c   :  { %v9378_v5 = vpack.c.bf16 %v3707_v42, %v3706_v23  ;;  %v3916_v8 = vpop.f32.mrb[64].mxu1 }
 0x54d   :  { %v3917_v13 = vadd.f32 %v3916_v8, %v9369_v38  ;;  %v3918_v17 = vpop.f32.mrb[65].mxu1 }
 0x54e   :  { %v3919_v59 = vadd.f32 %v3918_v17, %v9373_v32  ;;  %v3920_v43 = vpop.f32.mrb[66].mxu1 }
 0x54f   :  { %v3921_v15 = vadd.f32 %v3920_v43, %v9369_v38  ;;  %v3922_v12 = vpop.f32.mrb[67].mxu1  ;;  %v4555_v56 = vmax.f32 %v3917_v13, 0.0 }
 0x550   :  { %v3923_v39 = vadd.f32 %v3922_v12, %v9373_v32  ;;  %v4556_v24 = vmax.f32 %v3919_v59, 0.0 }
 0x551   :  { %v4557_v33 = vmax.f32 %v3921_v15, 0.0  ;;  %4185 = vmatmul.mubr.bf16.gmra.mrb[172].mxu1 %v3737_v35 }
 0x552   :  { %v4558_v41 = vmax.f32 %v3923_v39, 0.0  ;;  %4194 = vmatprep.mubr.bf16.mxu1 %v10475_v16 }
 0x553   :  { %v4811_v54 = vpack.c.bf16 %v4557_v33, %v4555_v56 }
 0x554   :  { %v4812_v34 = vpack.c.bf16 %v4558_v41, %v4556_v24  ;;  %v3926_v44 = vpop.f32.mrb[68].mxu1 }
 0x555   :  { %v3927_v49 = vadd.f32 %v3926_v44, %v9369_v38  ;;  %v3928_v11 = vpop.f32.mrb[69].mxu1 }
 0x556   :  { %v3929_v47 = vadd.f32 %v3928_v11, %v9373_v32  ;;  %v3930_v4 = vpop.f32.mrb[70].mxu1  ;;  %5106 = vmatprep.mubr.bf16.mxu0 %v4812_v34 }
 0x557   :  { %v3931_v28 = vadd.f32 %v3930_v4, %v9369_v38  ;;  %v3932_v36 = vpop.f32.mrb[71].mxu1  ;;  %5107 = vmatmul.mubr.bf16.vlgmr.msra.gmra.mrb[64].mxu0 %v4811_v54  ;;  %v4559_v48 = vmax.f32 %v3927_v49, 0.0 }
 0x558   :  { %v3933_v35 = vadd.f32 %v3932_v36, %v9373_v32  ;;  %v4560_v40 = vmax.f32 %v3929_v47, 0.0 }
 0x559   :  { %v4561_v27 = vmax.f32 %v3931_v28, 0.0 }
 0x55a   :  { %v4562_v29 = vmax.f32 %v3933_v35, 0.0  ;;  %v5988_v14 = vpop.f32.mrb[56].mxu0 }
 0x55b   :  { %v4813_v55 = vpack.c.bf16 %v4561_v27, %v4559_v48  ;;  %v3304_v63 = vadd.f32 %v9358_v21, %v5988_v14  ;;  %v3295_v57 = vpop.f32.mrb[57].mxu0 }
 0x55c   :  { %v4814_v46 = vpack.c.bf16 %v4562_v29, %v4560_v40  ;;  %v3296_v7 = vadd.f32 %v9358_v21, %v3295_v57  ;;  %v5989_v52 = vpop.f32.mrb[58].mxu0  ;;  %v3936_v58 = vpop.f32.mrb[72].mxu1 }
 0x55d   :  { %v3307_v62 = vadd.f32 %v9358_v21, %v5989_v52  ;;  %v3937_v23 = vadd.f32 %v3936_v58, %v9369_v38  ;;  %v3298_v42 = vpop.f32.mrb[59].mxu0  ;;  %v3938_v22 = vpop.f32.mrb[73].mxu1  ;;  %v3640_v59 = vmax.f32 %v3304_v63, 0.0 }
 0x55e   :  { %v3299_v8 = vadd.f32 %v9358_v21, %v3298_v42  ;;  %v3939_v13 = vadd.f32 %v3938_v22, %v9373_v32  ;;  %v3940_v17 = vpop.f32.mrb[74].mxu1  ;;  %5114 = vmatprep.mubr.bf16.mxu0 %v4814_v46  ;;  %v3638_v39 = vmax.f32 %v3296_v7, 0.0 }
 0x55f   :  { %v3641_v43 = vmax.f32 %v3307_v62, 0.0  ;;  %v3941_v15 = vadd.f32 %v3940_v17, %v9369_v38  ;;  %v3942_v12 = vpop.f32.mrb[75].mxu1  ;;  %5115 = vmatmul.mubr.bf16.gmra.mrb[68].mxu0 %v4813_v55  ;;  %v4563_v24 = vmax.f32 %v3937_v23, 0.0 }
 0x560   :  { %v3639_v56 = vmax.f32 %v3299_v8, 0.0  ;;  %v3943_v33 = vadd.f32 %v3942_v12, %v9373_v32  ;;  %v4564_v34 = vmax.f32 %v3939_v13, 0.0 }
 0x561   :  { %v4565_v41 = vmax.f32 %v3941_v15, 0.0  ;;  %v3739_v54 = vpack.c.bf16 %v3641_v43, %v3640_v59 }
 0x562   :  { %v4566_v44 = vmax.f32 %v3943_v33, 0.0  ;;  %v3738_v49 = vpack.c.bf16 %v3639_v56, %v3638_v39 }
 0x563   :  { %v4815_v11 = vpack.c.bf16 %v4565_v41, %v4563_v24 }
 0x564   :  { %v4816_v47 = vpack.c.bf16 %v4566_v44, %v4564_v34  ;;  %v3946_v4 = vpop.f32.mrb[76].mxu1  ;;  %4195 = vmatmul.mubr.bf16.gmra.mrb[176].mxu1 %v3738_v49 }
 0x565   :  { %v3947_v28 = vadd.f32 %v3946_v4, %v9369_v38  ;;  %v3948_v36 = vpop.f32.mrb[77].mxu1  ;;  %4204 = vmatprep.mubr.bf16.mxu1 %v10475_v16 }
 0x566   :  { %v3949_v35 = vadd.f32 %v3948_v36, %v9373_v32  ;;  %v3950_v48 = vpop.f32.mrb[78].mxu1  ;;  %5122 = vmatprep.mubr.bf16.mxu0 %v4816_v47 }
 0x567   :  { %v3951_v27 = vadd.f32 %v3950_v48, %v9369_v38  ;;  %v3952_v40 = vpop.f32.mrb[79].mxu1  ;;  %5123 = vmatmul.mubr.bf16.gmra.mrb[72].mxu0 %v4815_v11  ;;  %v4567_v14 = vmax.f32 %v3947_v28, 0.0 }
 0x568   :  { %v3953_v29 = vadd.f32 %v3952_v40, %v9373_v32  ;;  %v4568_v63 = vmax.f32 %v3949_v35, 0.0 }
 0x569   :  { %v4569_v55 = vmax.f32 %v3951_v27, 0.0 }
 0x56a   :  { %v4570_v57 = vmax.f32 %v3953_v29, 0.0 }
 0x56b   :  { %v4817_v46 = vpack.c.bf16 %v4569_v55, %v4567_v14 }
 0x56c   :  { %v4818_v7 = vpack.c.bf16 %v4570_v57, %v4568_v63  ;;  %v3956_v52 = vpop.f32.mrb[80].mxu1  ;;  %4205 = vmatmul.mubr.bf16.gmra.mrb[180].mxu1 %v3739_v54 }
 0x56d   :  { %v3957_v58 = vadd.f32 %v3956_v52, %v9369_v38  ;;  %v3958_v62 = vpop.f32.mrb[81].mxu1  ;;  %4214 = vmatprep.mubr.bf16.mxu1 %v10475_v16 }
 0x56e   :  { %v3959_v23 = vadd.f32 %v3958_v62, %v9373_v32  ;;  %v3960_v42 = vpop.f32.mrb[82].mxu1  ;;  %5130 = vmatprep.mubr.bf16.mxu0 %v4818_v7 }
 0x56f   :  { %v3961_v22 = vadd.f32 %v3960_v42, %v9369_v38  ;;  %v3962_v8 = vpop.f32.mrb[83].mxu1  ;;  %5131 = vmatmul.mubr.bf16.gmra.mrb[76].mxu0 %v4817_v46  ;;  %v4571_v59 = vmax.f32 %v3957_v58, 0.0 }
 0x570   :  { %v3963_v13 = vadd.f32 %v3962_v8, %v9373_v32  ;;  %v5992_v17 = vpop.f32.mrb[60].mxu0  ;;  %v4572_v39 = vmax.f32 %v3959_v23, 0.0 }
 0x571   :  { %v4573_v43 = vmax.f32 %v3961_v22, 0.0  ;;  %v3320_v15 = vadd.f32 %v9358_v21, %v5992_v17  ;;  %v3311_v12 = vpop.f32.mrb[61].mxu0 }
 0x572   :  { %v4574_v56 = vmax.f32 %v3963_v13, 0.0  ;;  %v3312_v33 = vadd.f32 %v9358_v21, %v3311_v12  ;;  %v5993_v24 = vpop.f32.mrb[62].mxu0 }
 0x573   :  { %v4819_v41 = vpack.c.bf16 %v4573_v43, %v4571_v59  ;;  %v3323_v54 = vadd.f32 %v9358_v21, %v5993_v24  ;;  %v3314_v34 = vpop.f32.mrb[63].mxu0  ;;  %v3644_v47 = vmax.f32 %v3320_v15, 0.0 }
 0x574   :  { %v4820_v44 = vpack.c.bf16 %v4574_v56, %v4572_v39  ;;  %v3315_v49 = vadd.f32 %v9358_v21, %v3314_v34  ;;  %v3966_v11 = vpop.f32.mrb[84].mxu1  ;;  %v3642_v35 = vmax.f32 %v3312_v33, 0.0 }
 0x575   :  { %v3645_v4 = vmax.f32 %v3323_v54, 0.0  ;;  %v3967_v28 = vadd.f32 %v3966_v11, %v9369_v38  ;;  %v3968_v36 = vpop.f32.mrb[85].mxu1 }
 0x576   :  { %v3643_v48 = vmax.f32 %v3315_v49, 0.0  ;;  %v3969_v27 = vadd.f32 %v3968_v36, %v9373_v32  ;;  %v3970_v40 = vpop.f32.mrb[86].mxu1  ;;  %5138 = vmatprep.mubr.bf16.mxu0 %v4820_v44 }
 0x577   :  { %v3971_v29 = vadd.f32 %v3970_v40, %v9369_v38  ;;  %v3972_v14 = vpop.f32.mrb[87].mxu1  ;;  %5139 = vmatmul.mubr.bf16.gmra.mrb[80].mxu0 %v4819_v41  ;;  %v3741_v55 = vpack.c.bf16 %v3645_v4, %v3644_v47  ;;  %v4575_v57 = vmax.f32 %v3967_v28, 0.0 }
 0x578   :  { %v3973_v63 = vadd.f32 %v3972_v14, %v9373_v32  ;;  %v3740_v21 = vpack.c.bf16 %v3643_v48, %v3642_v35  ;;  %v4576_v7 = vmax.f32 %v3969_v27, 0.0 }
 0x579   :  { %v4577_v46 = vmax.f32 %v3971_v29, 0.0 }
 0x57a   :  { %v4578_v52 = vmax.f32 %v3973_v63, 0.0  ;;  %4215 = vmatmul.mubr.bf16.gmra.mrb[184].mxu1 %v3740_v21 }
 0x57b   :  { %v4821_v58 = vpack.c.bf16 %v4577_v46, %v4575_v57  ;;  %4224 = vmatprep.mubr.bf16.mxu1 %v10475_v16 }
 0x57c   :  { %v4822_v62 = vpack.c.bf16 %v4578_v52, %v4576_v7  ;;  %v3976_v23 = vpop.f32.mrb[88].mxu1 }
 0x57d   :  { %v3977_v42 = vadd.f32 %v3976_v23, %v9369_v38  ;;  %v3978_v22 = vpop.f32.mrb[89].mxu1 }
 0x57e   :  { %v3979_v8 = vadd.f32 %v3978_v22, %v9373_v32  ;;  %v3980_v13 = vpop.f32.mrb[90].mxu1  ;;  %5146 = vmatprep.mubr.bf16.mxu0 %v4822_v62 }
 0x57f   :  { %v3981_v17 = vadd.f32 %v3980_v13, %v9369_v38  ;;  %v3982_v59 = vpop.f32.mrb[91].mxu1  ;;  %5147 = vmatmul.mubr.bf16.gmra.mrb[84].mxu0 %v4821_v58  ;;  %v4579_v15 = vmax.f32 %v3977_v42, 0.0 }
 0x580   :  { %v3983_v43 = vadd.f32 %v3982_v59, %v9373_v32  ;;  %v4580_v39 = vmax.f32 %v3979_v8, 0.0 }
 0x581   :  { %v4581_v12 = vmax.f32 %v3981_v17, 0.0 }
 0x582   :  { %v4582_v56 = vmax.f32 %v3983_v43, 0.0  ;;  %4225 = vmatmul.mubr.bf16.gmra.mrb[188].mxu1 %v3741_v55 }
 0x583   :  { %v4823_v33 = vpack.c.bf16 %v4581_v12, %v4579_v15  ;;  %4234 = vmatprep.mubr.bf16.mxu1 %v10475_v16 }
 0x584   :  { %v4824_v24 = vpack.c.bf16 %v4582_v56, %v4580_v39  ;;  %v3986_v41 = vpop.f32.mrb[92].mxu1 }
 0x585   :  { %v3987_v54 = vadd.f32 %v3986_v41, %v9369_v38  ;;  %v3988_v34 = vpop.f32.mrb[93].mxu1 }
 0x586   :  { %v3989_v44 = vadd.f32 %v3988_v34, %v9373_v32  ;;  %v3990_v49 = vpop.f32.mrb[94].mxu1  ;;  %5154 = vmatprep.mubr.bf16.mxu0 %v4824_v24 }
 0x587   :  { %v3991_v11 = vadd.f32 %v3990_v49, %v9369_v38  ;;  %v3992_v47 = vpop.f32.mrb[95].mxu1  ;;  %5155 = vmatmul.mubr.bf16.gmra.mrb[88].mxu0 %v4823_v33  ;;  %v4583_v28 = vmax.f32 %v3987_v54, 0.0 }
 0x588   :  { %v3993_v4 = vadd.f32 %v3992_v47, %v9373_v32  ;;  %v4584_v35 = vmax.f32 %v3989_v44, 0.0 }
 0x589   :  { %v4585_v36 = vmax.f32 %v3991_v11, 0.0 }
 0x58a   :  { %v4586_v48 = vmax.f32 %v3993_v4, 0.0  ;;  %4235 = vmatmul.mubr.bf16.gmra.mrb[192].mxu1 %v8563_v61 }
 0x58b   :  { %v4825_v27 = vpack.c.bf16 %v4585_v36, %v4583_v28  ;;  %4244 = vmatprep.mubr.bf16.mxu1 %v10475_v16 }
 0x58c   :  { %v4826_v40 = vpack.c.bf16 %v4586_v48, %v4584_v35  ;;  %v3996_v29 = vpop.f32.mrb[96].mxu1 }
 0x58d   :  { %v3997_v14 = vadd.f32 %v3996_v29, %v9369_v38  ;;  %v3998_v55 = vpop.f32.mrb[97].mxu1 }
 0x58e   :  { %v3999_v63 = vadd.f32 %v3998_v55, %v9373_v32  ;;  %v4000_v21 = vpop.f32.mrb[98].mxu1  ;;  %5162 = vmatprep.mubr.bf16.mxu0 %v4826_v40 }
 0x58f   :  { %v4001_v57 = vadd.f32 %v4000_v21, %v9369_v38  ;;  %v4002_v46 = vpop.f32.mrb[99].mxu1  ;;  %5163 = vmatmul.mubr.bf16.gmra.mrb[92].mxu0 %v4825_v27  ;;  %v4587_v52 = vmax.f32 %v3997_v14, 0.0 }
 0x590   :  { %v4003_v7 = vadd.f32 %v4002_v46, %v9373_v32  ;;  %v4588_v58 = vmax.f32 %v3999_v63, 0.0 }
 0x591   :  { %v4589_v61 = vmax.f32 %v4001_v57, 0.0 }
 0x592   :  { %v4590_v62 = vmax.f32 %v4003_v7, 0.0  ;;  %4245 = vmatmul.mubr.bf16.gmra.mrb[196].mxu1 %v8561_v45 }
 0x593   :  { %v4827_v23 = vpack.c.bf16 %v4589_v61, %v4587_v52  ;;  %4254 = vmatprep.mubr.bf16.mxu1 %v10475_v16 }
 0x594   :  { %v4828_v42 = vpack.c.bf16 %v4590_v62, %v4588_v58  ;;  %v4006_v22 = vpop.f32.mrb[100].mxu1 }
 0x595   :  { %v4007_v8 = vadd.f32 %v4006_v22, %v9369_v38  ;;  %v4008_v13 = vpop.f32.mrb[101].mxu1 }
 0x596   :  { %v4009_v17 = vadd.f32 %v4008_v13, %v9373_v32  ;;  %v4010_v59 = vpop.f32.mrb[102].mxu1  ;;  %5170 = vmatprep.mubr.bf16.mxu0 %v4828_v42 }
 0x597   :  { %v4011_v43 = vadd.f32 %v4010_v59, %v9369_v38  ;;  %v4012_v15 = vpop.f32.mrb[103].mxu1  ;;  %5171 = vmatmul.mubr.bf16.gmra.mrb[96].mxu0 %v4827_v23  ;;  %v4591_v39 = vmax.f32 %v4007_v8, 0.0 }
 0x598   :  { %v4013_v12 = vadd.f32 %v4012_v15, %v9373_v32  ;;  %v4592_v56 = vmax.f32 %v4009_v17, 0.0 }
 0x599   :  { %v4593_v45 = vmax.f32 %v4011_v43, 0.0 }
 0x59a   :  { %v4594_v33 = vmax.f32 %v4013_v12, 0.0  ;;  %4255 = vmatmul.mubr.bf16.gmra.mrb[200].mxu1 %v8595_v3 }
 0x59b   :  { %v4829_v24 = vpack.c.bf16 %v4593_v45, %v4591_v39  ;;  %4264 = vmatprep.mubr.bf16.mxu1 %v10475_v16 }
 0x59c   :  { %v4830_v41 = vpack.c.bf16 %v4594_v33, %v4592_v56  ;;  %v4016_v54 = vpop.f32.mrb[104].mxu1 }
 0x59d   :  { %v4017_v34 = vadd.f32 %v4016_v54, %v9369_v38  ;;  %v4018_v44 = vpop.f32.mrb[105].mxu1 }
 0x59e   :  { %v4019_v49 = vadd.f32 %v4018_v44, %v9373_v32  ;;  %v4020_v11 = vpop.f32.mrb[106].mxu1  ;;  %5178 = vmatprep.mubr.bf16.mxu0 %v4830_v41 }
 0x59f   :  { %v4021_v47 = vadd.f32 %v4020_v11, %v9369_v38  ;;  %v4022_v4 = vpop.f32.mrb[107].mxu1  ;;  %5179 = vmatmul.mubr.bf16.gmra.mrb[100].mxu0 %v4829_v24  ;;  %v4595_v36 = vmax.f32 %v4017_v34, 0.0 }
 0x5a0   :  { %v4023_v28 = vadd.f32 %v4022_v4, %v9373_v32  ;;  %v4596_v35 = vmax.f32 %v4019_v49, 0.0 }
 0x5a1   :  { %v4597_v3 = vmax.f32 %v4021_v47, 0.0 }
 0x5a2   :  { %v4598_v48 = vmax.f32 %v4023_v28, 0.0  ;;  %4265 = vmatmul.mubr.bf16.gmra.mrb[204].mxu1 %v8590_v60 }
 0x5a3   :  { %v4831_v27 = vpack.c.bf16 %v4597_v3, %v4595_v36  ;;  %4274 = vmatprep.mubr.bf16.mxu1 %v10475_v16 }
 0x5a4   :  { %v4832_v40 = vpack.c.bf16 %v4598_v48, %v4596_v35  ;;  %v4026_v29 = vpop.f32.mrb[108].mxu1 }
 0x5a5   :  { %v4027_v14 = vadd.f32 %v4026_v29, %v9369_v38  ;;  %v4028_v55 = vpop.f32.mrb[109].mxu1 }
 0x5a6   :  { %v4029_v63 = vadd.f32 %v4028_v55, %v9373_v32  ;;  %v4030_v21 = vpop.f32.mrb[110].mxu1  ;;  %5186 = vmatprep.mubr.bf16.mxu0 %v4832_v40 }
 0x5a7   :  { %v4031_v57 = vadd.f32 %v4030_v21, %v9369_v38  ;;  %v4032_v46 = vpop.f32.mrb[111].mxu1  ;;  %5187 = vmatmul.mubr.bf16.gmra.mrb[104].mxu0 %v4831_v27  ;;  %v4599_v52 = vmax.f32 %v4027_v14, 0.0 }
 0x5a8   :  { %v4033_v7 = vadd.f32 %v4032_v46, %v9373_v32  ;;  %v4600_v61 = vmax.f32 %v4029_v63, 0.0 }
 0x5a9   :  { %v4601_v60 = vmax.f32 %v4031_v57, 0.0 }
 0x5aa   :  { %v4602_v58 = vmax.f32 %v4033_v7, 0.0  ;;  %4275 = vmatmul.mubr.bf16.gmra.mrb[208].mxu1 %v8625_v25 }
 0x5ab   :  { %v4833_v62 = vpack.c.bf16 %v4601_v60, %v4599_v52  ;;  %4284 = vmatprep.mubr.bf16.mxu1 %v10475_v16 }
 0x5ac   :  { %v4834_v23 = vpack.c.bf16 %v4602_v58, %v4600_v61  ;;  %v4036_v42 = vpop.f32.mrb[112].mxu1 }
 0x5ad   :  { %v4037_v22 = vadd.f32 %v4036_v42, %v9369_v38  ;;  %v4038_v8 = vpop.f32.mrb[113].mxu1 }
 0x5ae   :  { %v4039_v13 = vadd.f32 %v4038_v8, %v9373_v32  ;;  %v4040_v17 = vpop.f32.mrb[114].mxu1  ;;  %5194 = vmatprep.mubr.bf16.mxu0 %v4834_v23 }
 0x5af   :  { %v4041_v59 = vadd.f32 %v4040_v17, %v9369_v38  ;;  %v4042_v43 = vpop.f32.mrb[115].mxu1  ;;  %5195 = vmatmul.mubr.bf16.gmra.mrb[108].mxu0 %v4833_v62  ;;  %v4603_v12 = vmax.f32 %v4037_v22, 0.0 }
 0x5b0   :  { %v4043_v15 = vadd.f32 %v4042_v43, %v9373_v32  ;;  %v4604_v39 = vmax.f32 %v4039_v13, 0.0 }
 0x5b1   :  { %v4605_v25 = vmax.f32 %v4041_v59, 0.0 }
 0x5b2   :  { %v4606_v45 = vmax.f32 %v4043_v15, 0.0  ;;  %4285 = vmatmul.mubr.bf16.gmra.mrb[212].mxu1 %v8620_v10 }
 0x5b3   :  { %v4835_v56 = vpack.c.bf16 %v4605_v25, %v4603_v12  ;;  %4294 = vmatprep.mubr.bf16.mxu1 %v10475_v16 }
 0x5b4   :  { %v4836_v33 = vpack.c.bf16 %v4606_v45, %v4604_v39  ;;  %v4046_v24 = vpop.f32.mrb[116].mxu1 }
 0x5b5   :  { %v4047_v41 = vadd.f32 %v4046_v24, %v9369_v38  ;;  %v4048_v54 = vpop.f32.mrb[117].mxu1 }
 0x5b6   :  { %v4049_v34 = vadd.f32 %v4048_v54, %v9373_v32  ;;  %v4050_v44 = vpop.f32.mrb[118].mxu1  ;;  %5202 = vmatprep.mubr.bf16.mxu0 %v4836_v33 }
 0x5b7   :  { %v4051_v49 = vadd.f32 %v4050_v44, %v9369_v38  ;;  %v4052_v11 = vpop.f32.mrb[119].mxu1  ;;  %5203 = vmatmul.mubr.bf16.gmra.mrb[112].mxu0 %v4835_v56  ;;  %v4607_v4 = vmax.f32 %v4047_v41, 0.0 }
 0x5b8   :  { %v4053_v47 = vadd.f32 %v4052_v11, %v9373_v32  ;;  %v4608_v28 = vmax.f32 %v4049_v34, 0.0 }
 0x5b9   :  { %v4609_v10 = vmax.f32 %v4051_v49, 0.0 }
 0x5ba   :  { %v4610_v36 = vmax.f32 %v4053_v47, 0.0  ;;  %4295 = vmatmul.mubr.bf16.gmra.mrb[216].mxu1 %v8650_v30 }
 0x5bb   :  { %v4837_v3 = vpack.c.bf16 %v4609_v10, %v4607_v4  ;;  %4304 = vmatprep.mubr.bf16.mxu1 %v10475_v16 }
 0x5bc   :  { %v4838_v35 = vpack.c.bf16 %v4610_v36, %v4608_v28  ;;  %v4056_v48 = vpop.f32.mrb[120].mxu1 }
 0x5bd   :  { %v4057_v27 = vadd.f32 %v4056_v48, %v9369_v38  ;;  %v4058_v40 = vpop.f32.mrb[121].mxu1 }
 0x5be   :  { %v4059_v29 = vadd.f32 %v4058_v40, %v9373_v32  ;;  %v4060_v14 = vpop.f32.mrb[122].mxu1  ;;  %5210 = vmatprep.mubr.bf16.mxu0 %v4838_v35 }
 0x5bf   :  { %v4061_v55 = vadd.f32 %v4060_v14, %v9369_v38  ;;  %v4062_v63 = vpop.f32.mrb[123].mxu1  ;;  %5211 = vmatmul.mubr.bf16.gmra.mrb[116].mxu0 %v4837_v3  ;;  %v4611_v57 = vmax.f32 %v4057_v27, 0.0 }
 0x5c0   :  { %v4063_v21 = vadd.f32 %v4062_v63, %v9373_v32  ;;  %v4612_v46 = vmax.f32 %v4059_v29, 0.0 }
 0x5c1   :  { %v4613_v30 = vmax.f32 %v4061_v55, 0.0 }
 0x5c2   :  { %v4614_v7 = vmax.f32 %v4063_v21, 0.0  ;;  %4305 = vmatmul.mubr.bf16.gmra.mrb[220].mxu1 %v8648_v53 }
 0x5c3   :  { %v4839_v52 = vpack.c.bf16 %v4613_v30, %v4611_v57  ;;  %4314 = vmatprep.mubr.bf16.mxu1 %v10475_v16 }
 0x5c4   :  { %v4840_v60 = vpack.c.bf16 %v4614_v7, %v4612_v46  ;;  %v4066_v61 = vpop.f32.mrb[124].mxu1 }
 0x5c5   :  { %v4067_v58 = vadd.f32 %v4066_v61, %v9369_v38  ;;  %v4068_v62 = vpop.f32.mrb[125].mxu1 }
 0x5c6   :  { %v4069_v23 = vadd.f32 %v4068_v62, %v9373_v32  ;;  %v4070_v42 = vpop.f32.mrb[126].mxu1  ;;  %5218 = vmatprep.mubr.bf16.mxu0 %v4840_v60 }
 0x5c7   :  { %v4071_v22 = vadd.f32 %v4070_v42, %v9369_v38  ;;  %v4072_v8 = vpop.f32.mrb[127].mxu1  ;;  %5219 = vmatmul.mubr.bf16.gmra.mrb[120].mxu0 %v4839_v52  ;;  %v4615_v17 = vmax.f32 %v4067_v58, 0.0 }
 0x5c8   :  { %v4073_v13 = vadd.f32 %v4072_v8, %v9373_v32  ;;  %v4616_v59 = vmax.f32 %v4069_v23, 0.0 }
 0x5c9   :  { %v4617_v53 = vmax.f32 %v4071_v22, 0.0 }
 0x5ca   :  { %v4618_v43 = vmax.f32 %v4073_v13, 0.0  ;;  %4315 = vmatmul.mubr.bf16.gmra.mrb[224].mxu1 %v8670_v0 }
 0x5cb   :  { %v4841_v15 = vpack.c.bf16 %v4617_v53, %v4615_v17  ;;  %4324 = vmatprep.mubr.bf16.mxu1 %v10475_v16 }
 0x5cc   :  { %v4842_v12 = vpack.c.bf16 %v4618_v43, %v4616_v59  ;;  %v4076_v25 = vpop.f32.mrb[128].mxu1 }
 0x5cd   :  { %v4077_v39 = vadd.f32 %v4076_v25, %v9369_v38  ;;  %v4078_v45 = vpop.f32.mrb[129].mxu1 }
 0x5ce   :  { %v4079_v56 = vadd.f32 %v4078_v45, %v9373_v32  ;;  %v4080_v33 = vpop.f32.mrb[130].mxu1  ;;  %5226 = vmatprep.mubr.bf16.mxu0 %v4842_v12 }
 0x5cf   :  { %v4081_v24 = vadd.f32 %v4080_v33, %v9369_v38  ;;  %v4082_v41 = vpop.f32.mrb[131].mxu1  ;;  %5227 = vmatmul.mubr.bf16.gmra.mrb[124].mxu0 %v4841_v15  ;;  %v4619_v34 = vmax.f32 %v4077_v39, 0.0 }
 0x5d0   :  { %v4083_v54 = vadd.f32 %v4082_v41, %v9373_v32  ;;  %v4620_v44 = vmax.f32 %v4079_v56, 0.0  ;;  %v10751_v56 = vld [vmem:[#allocation26_spill] sm:$0xff] }
 0x5d1   :  { %v4621_v0 = vmax.f32 %v4081_v24, 0.0 }
 0x5d2   :  { %v4622_v49 = vmax.f32 %v4083_v54, 0.0  ;;  %4325 = vmatmul.mubr.bf16.gmra.mrb[228].mxu1 %v8666_v18 }
 0x5d3   :  { %v4843_v11 = vpack.c.bf16 %v4621_v0, %v4619_v34  ;;  %4334 = vmatprep.mubr.bf16.mxu1 %v10475_v16 }
 0x5d4   :  { %v4844_v47 = vpack.c.bf16 %v4622_v49, %v4620_v44  ;;  %v4086_v4 = vpop.f32.mrb[132].mxu1 }
 0x5d5   :  { %v4087_v10 = vadd.f32 %v4086_v4, %v9369_v38  ;;  %v4088_v28 = vpop.f32.mrb[133].mxu1 }
 0x5d6   :  { %v4089_v36 = vadd.f32 %v4088_v28, %v9373_v32  ;;  %v4090_v3 = vpop.f32.mrb[134].mxu1  ;;  %5234 = vmatprep.mubr.bf16.mxu0 %v4844_v47 }
 0x5d7   :  { %v4091_v35 = vadd.f32 %v4090_v3, %v9369_v38  ;;  %v4092_v48 = vpop.f32.mrb[135].mxu1  ;;  %5235 = vmatmul.mubr.bf16.gmra.mrb[128].mxu0 %v4843_v11  ;;  %v4623_v40 = vmax.f32 %v4087_v10, 0.0  ;;  %v10752_v3 = vld [vmem:[#allocation25_spill] sm:$0xff] }
 0x5d8   :  { %v4093_v27 = vadd.f32 %v4092_v48, %v9373_v32  ;;  %v4624_v29 = vmax.f32 %v4089_v36, 0.0 }
 0x5d9   :  { %v4625_v18 = vmax.f32 %v4091_v35, 0.0 }
 0x5da   :  { %v4626_v14 = vmax.f32 %v4093_v27, 0.0  ;;  %4335 = vmatmul.mubr.bf16.gmra.mrb[232].mxu1 %v8750_v9 }
 0x5db   :  { %v4845_v55 = vpack.c.bf16 %v4625_v18, %v4623_v40  ;;  %4344 = vmatprep.mubr.bf16.mxu1 %v10475_v16 }
 0x5dc   :  { %v4846_v63 = vpack.c.bf16 %v4626_v14, %v4624_v29  ;;  %v4096_v21 = vpop.f32.mrb[136].mxu1 }
 0x5dd   :  { %v4097_v57 = vadd.f32 %v4096_v21, %v9369_v38  ;;  %v4098_v30 = vpop.f32.mrb[137].mxu1 }
 0x5de   :  { %v4099_v46 = vadd.f32 %v4098_v30, %v9373_v32  ;;  %v4100_v7 = vpop.f32.mrb[138].mxu1  ;;  %5242 = vmatprep.mubr.bf16.mxu0 %v4846_v63 }
 0x5df   :  { %v4101_v52 = vadd.f32 %v4100_v7, %v9369_v38  ;;  %v4102_v60 = vpop.f32.mrb[139].mxu1  ;;  %5243 = vmatmul.mubr.bf16.gmra.mrb[132].mxu0 %v4845_v55  ;;  %v4627_v58 = vmax.f32 %v4097_v57, 0.0 }
 0x5e0   :  { %v4103_v61 = vadd.f32 %v4102_v60, %v9373_v32  ;;  %v4628_v62 = vmax.f32 %v4099_v46, 0.0 }
 0x5e1   :  { %v4629_v9 = vmax.f32 %v4101_v52, 0.0  ;;  %v10753_v52 = vld [vmem:[#allocation28_spill] sm:$0xff] }
 0x5e2   :  { %v4630_v23 = vmax.f32 %v4103_v61, 0.0  ;;  %4345 = vmatmul.mubr.bf16.gmra.mrb[236].mxu1 %v8746_v1 }
 0x5e3   :  { %v4847_v42 = vpack.c.bf16 %v4629_v9, %v4627_v58  ;;  %4354 = vmatprep.mubr.bf16.mxu1 %v10475_v16 }
 0x5e4   :  { %v4848_v22 = vpack.c.bf16 %v4630_v23, %v4628_v62  ;;  %v4106_v8 = vpop.f32.mrb[140].mxu1 }
 0x5e5   :  { %v4107_v13 = vadd.f32 %v4106_v8, %v9369_v38  ;;  %v4108_v17 = vpop.f32.mrb[141].mxu1 }
 0x5e6   :  { %v4109_v53 = vadd.f32 %v4108_v17, %v9373_v32  ;;  %v4110_v59 = vpop.f32.mrb[142].mxu1  ;;  %5250 = vmatprep.mubr.bf16.mxu0 %v4848_v22 }
 0x5e7   :  { %v4111_v43 = vadd.f32 %v4110_v59, %v9369_v38  ;;  %v4112_v15 = vpop.f32.mrb[143].mxu1  ;;  %5251 = vmatmul.mubr.bf16.gmra.mrb[136].mxu0 %v4847_v42  ;;  %v4631_v25 = vmax.f32 %v4107_v13, 0.0 }
 0x5e8   :  { %v4113_v12 = vadd.f32 %v4112_v15, %v9373_v32  ;;  %v4632_v39 = vmax.f32 %v4109_v53, 0.0  ;;  %v10754_v15 = vld [vmem:[#allocation27_spill] sm:$0xff] }
 0x5e9   :  { %v4633_v1 = vmax.f32 %v4111_v43, 0.0 }
 0x5ea   :  { %v4634_v45 = vmax.f32 %v4113_v12, 0.0  ;;  %4355 = vmatmul.mubr.bf16.gmra.mrb[240].mxu1 %v10751_v56 }
 0x5eb   :  { %v4849_v33 = vpack.c.bf16 %v4633_v1, %v4631_v25  ;;  %4364 = vmatprep.mubr.bf16.mxu1 %v10475_v16 }
 0x5ec   :  { %v4850_v24 = vpack.c.bf16 %v4634_v45, %v4632_v39  ;;  %v4116_v41 = vpop.f32.mrb[144].mxu1 }
 0x5ed   :  { %v4117_v54 = vadd.f32 %v4116_v41, %v9369_v38  ;;  %v4118_v34 = vpop.f32.mrb[145].mxu1 }
 0x5ee   :  { %v4119_v0 = vadd.f32 %v4118_v34, %v9373_v32  ;;  %v4120_v44 = vpop.f32.mrb[146].mxu1  ;;  %5258 = vmatprep.mubr.bf16.mxu0 %v4850_v24 }
 0x5ef   :  { %v4121_v49 = vadd.f32 %v4120_v44, %v9369_v38  ;;  %v4122_v11 = vpop.f32.mrb[147].mxu1  ;;  %5259 = vmatmul.mubr.bf16.gmra.mrb[140].mxu0 %v4849_v33  ;;  %v4635_v4 = vmax.f32 %v4117_v54, 0.0 }
 0x5f0   :  { %v4123_v47 = vadd.f32 %v4122_v11, %v9373_v32  ;;  %v4636_v28 = vmax.f32 %v4119_v0, 0.0  ;;  %v10755_v11 = vld [vmem:[#allocation29_spill] sm:$0xff] }
 0x5f1   :  { %v4637_v10 = vmax.f32 %v4121_v49, 0.0 }
 0x5f2   :  { %v4638_v36 = vmax.f32 %v4123_v47, 0.0  ;;  %4365 = vmatmul.mubr.bf16.gmra.mrb[244].mxu1 %v10752_v3 }
 0x5f3   :  { %v4851_v35 = vpack.c.bf16 %v4637_v10, %v4635_v4  ;;  %4374 = vmatprep.mubr.bf16.mxu1 %v10475_v16 }
 0x5f4   :  { %v4852_v48 = vpack.c.bf16 %v4638_v36, %v4636_v28  ;;  %v4126_v27 = vpop.f32.mrb[148].mxu1 }
 0x5f5   :  { %v4127_v40 = vadd.f32 %v4126_v27, %v9369_v38  ;;  %v4128_v18 = vpop.f32.mrb[149].mxu1 }
 0x5f6   :  { %v4129_v29 = vadd.f32 %v4128_v18, %v9373_v32  ;;  %v4130_v14 = vpop.f32.mrb[150].mxu1  ;;  %5266 = vmatprep.mubr.bf16.mxu0 %v4852_v48 }
 0x5f7   :  { %v4131_v55 = vadd.f32 %v4130_v14, %v9369_v38  ;;  %v4132_v63 = vpop.f32.mrb[151].mxu1  ;;  %5267 = vmatmul.mubr.bf16.gmra.mrb[144].mxu0 %v4851_v35  ;;  %v4639_v57 = vmax.f32 %v4127_v40, 0.0 }
 0x5f8   :  { %v4133_v21 = vadd.f32 %v4132_v63, %v9373_v32  ;;  %v4640_v46 = vmax.f32 %v4129_v29, 0.0  ;;  %v10756_v63 = vld [vmem:[#allocation44_spill] sm:$0xff] }
 0x5f9   :  { %v4641_v30 = vmax.f32 %v4131_v55, 0.0 }
 0x5fa   :  { %v4642_v7 = vmax.f32 %v4133_v21, 0.0  ;;  %4375 = vmatmul.mubr.bf16.gmra.mrb[248].mxu1 %v10753_v52 }
 0x5fb   :  { %v4853_v60 = vpack.c.bf16 %v4641_v30, %v4639_v57  ;;  %4384 = vmatprep.mubr.bf16.mxu1 %v10475_v16 }
 0x5fc   :  { %v4854_v61 = vpack.c.bf16 %v4642_v7, %v4640_v46  ;;  %v4136_v58 = vpop.f32.mrb[152].mxu1 }
 0x5fd   :  { %v4137_v9 = vadd.f32 %v4136_v58, %v9369_v38  ;;  %v4138_v62 = vpop.f32.mrb[153].mxu1 }
 0x5fe   :  { %v4139_v23 = vadd.f32 %v4138_v62, %v9373_v32  ;;  %v4140_v42 = vpop.f32.mrb[154].mxu1  ;;  %5274 = vmatprep.mubr.bf16.mxu0 %v4854_v61 }
 0x5ff   :  { %v4141_v22 = vadd.f32 %v4140_v42, %v9369_v38  ;;  %v4142_v8 = vpop.f32.mrb[155].mxu1  ;;  %5275 = vmatmul.mubr.bf16.gmra.mrb[148].mxu0 %v4853_v60  ;;  %v4643_v17 = vmax.f32 %v4137_v9, 0.0 }
 0x600   :  { %v4143_v13 = vadd.f32 %v4142_v8, %v9373_v32  ;;  %v4644_v59 = vmax.f32 %v4139_v23, 0.0  ;;  %v10757_v8 = vld [vmem:[#allocation32_spill] sm:$0xff] }
 0x601   :  { %v4645_v53 = vmax.f32 %v4141_v22, 0.0 }
 0x602   :  { %v4646_v43 = vmax.f32 %v4143_v13, 0.0  ;;  %4385 = vmatmul.mubr.bf16.gmra.mrb[252].mxu1 %v10754_v15 }
 0x603   :  { %v4855_v12 = vpack.c.bf16 %v4645_v53, %v4643_v17  ;;  %4394 = vmatprep.mubr.bf16.mxu1 %v10475_v16 }
 0x604   :  { %v4856_v25 = vpack.c.bf16 %v4646_v43, %v4644_v59  ;;  %v4146_v1 = vpop.f32.mrb[156].mxu1 }
 0x605   :  { %v4147_v39 = vadd.f32 %v4146_v1, %v9369_v38  ;;  %v4148_v45 = vpop.f32.mrb[157].mxu1 }
 0x606   :  { %v4149_v56 = vadd.f32 %v4148_v45, %v9373_v32  ;;  %v4150_v33 = vpop.f32.mrb[158].mxu1  ;;  %5282 = vmatprep.mubr.bf16.mxu0 %v4856_v25 }
 0x607   :  { %v4151_v24 = vadd.f32 %v4150_v33, %v9369_v38  ;;  %v4152_v41 = vpop.f32.mrb[159].mxu1  ;;  %5283 = vmatmul.mubr.bf16.gmra.mrb[152].mxu0 %v4855_v12  ;;  %v4647_v34 = vmax.f32 %v4147_v39, 0.0 }
 0x608   :  { %v4153_v54 = vadd.f32 %v4152_v41, %v9373_v32  ;;  %v4648_v44 = vmax.f32 %v4149_v56, 0.0  ;;  %v10758_v41 = vld [vmem:[#allocation31_spill] sm:$0xff] }
 0x609   :  { %v4649_v0 = vmax.f32 %v4151_v24, 0.0 }
 0x60a   :  { %v4650_v49 = vmax.f32 %v4153_v54, 0.0  ;;  %4395 = vmatmul.mubr.bf16.gmra.mrb[0].mxu1 %v10755_v11 }
 0x60b   :  { %v4857_v47 = vpack.c.bf16 %v4649_v0, %v4647_v34  ;;  %4404 = vmatprep.mubr.bf16.mxu1 %v10475_v16 }
 0x60c   :  { %v4858_v4 = vpack.c.bf16 %v4650_v49, %v4648_v44  ;;  %v4156_v10 = vpop.f32.mrb[160].mxu1 }
 0x60d   :  { %v4157_v28 = vadd.f32 %v4156_v10, %v9369_v38  ;;  %v4158_v36 = vpop.f32.mrb[161].mxu1 }
 0x60e   :  { %v4159_v3 = vadd.f32 %v4158_v36, %v9373_v32  ;;  %v4160_v35 = vpop.f32.mrb[162].mxu1  ;;  %5290 = vmatprep.mubr.bf16.mxu0 %v4858_v4  ;;  %v9548_v36 = vld [vmem:[%s10375_s8] ss:$0 sm:$0xff] }
 0x60f   :  { %v4161_v48 = vadd.f32 %v4160_v35, %v9369_v38  ;;  %v4162_v27 = vpop.f32.mrb[163].mxu1  ;;  %5291 = vmatmul.mubr.bf16.gmra.mrb[156].mxu0 %v4857_v47  ;;  %v4651_v18 = vmax.f32 %v4157_v28, 0.0 }
 0x610   :  { %v4163_v40 = vadd.f32 %v4162_v27, %v9373_v32  ;;  %v4652_v14 = vmax.f32 %v4159_v3, 0.0 }
 0x611   :  { %v4653_v29 = vmax.f32 %v4161_v48, 0.0 }
 0x612   :  { %v4654_v55 = vmax.f32 %v4163_v40, 0.0  ;;  %4405 = vmatmul.mubr.bf16.gmra.mrb[4].mxu1 %v10756_v63  ;;  %v10759_v40 = vld [vmem:[#allocation34_spill] sm:$0xff] }
 0x613   :  { %v4859_v21 = vpack.c.bf16 %v4653_v29, %v4651_v18  ;;  %4414 = vmatprep.mubr.bf16.mxu1 %v10475_v16 }
 0x614   :  { %v4860_v57 = vpack.c.bf16 %v4654_v55, %v4652_v14  ;;  %v4166_v30 = vpop.f32.mrb[164].mxu1 }
 0x615   :  { %v4167_v46 = vadd.f32 %v4166_v30, %v9369_v38  ;;  %v4168_v7 = vpop.f32.mrb[165].mxu1 }
 0x616   :  { %v4169_v52 = vadd.f32 %v4168_v7, %v9373_v32  ;;  %v4170_v60 = vpop.f32.mrb[166].mxu1  ;;  %5298 = vmatprep.mubr.bf16.mxu0 %v4860_v57 }
 0x617   :  { %v4171_v61 = vadd.f32 %v4170_v60, %v9369_v38  ;;  %v4172_v58 = vpop.f32.mrb[167].mxu1  ;;  %5299 = vmatmul.mubr.bf16.gmra.mrb[160].mxu0 %v4859_v21  ;;  %v4655_v62 = vmax.f32 %v4167_v46, 0.0  ;;  %v10760_v46 = vld [vmem:[#allocation33_spill] sm:$0xff] }
 0x618   :  { %v4173_v9 = vadd.f32 %v4172_v58, %v9373_v32  ;;  %v4656_v42 = vmax.f32 %v4169_v52, 0.0 }
 0x619   :  { %v4657_v23 = vmax.f32 %v4171_v61, 0.0 }
 0x61a   :  { %v4658_v22 = vmax.f32 %v4173_v9, 0.0  ;;  %4415 = vmatmul.mubr.bf16.gmra.mrb[8].mxu1 %v10757_v8 }
 0x61b   :  { %v4861_v13 = vpack.c.bf16 %v4657_v23, %v4655_v62  ;;  %4424 = vmatprep.mubr.bf16.mxu1 %v10475_v16 }
 0x61c   :  { %v4862_v17 = vpack.c.bf16 %v4658_v22, %v4656_v42  ;;  %v4176_v53 = vpop.f32.mrb[168].mxu1 }
 0x61d   :  { %v4177_v59 = vadd.f32 %v4176_v53, %v9369_v38  ;;  %v4178_v43 = vpop.f32.mrb[169].mxu1 }
 0x61e   :  { %v4179_v15 = vadd.f32 %v4178_v43, %v9373_v32  ;;  %v4180_v12 = vpop.f32.mrb[170].mxu1  ;;  %5306 = vmatprep.mubr.bf16.mxu0 %v4862_v17 }
 0x61f   :  { %v4181_v25 = vadd.f32 %v4180_v12, %v9369_v38  ;;  %v4182_v1 = vpop.f32.mrb[171].mxu1  ;;  %5307 = vmatmul.mubr.bf16.gmra.mrb[164].mxu0 %v4861_v13  ;;  %v4659_v45 = vmax.f32 %v4177_v59, 0.0 }
 0x620   :  { %v4183_v39 = vadd.f32 %v4182_v1, %v9373_v32  ;;  %v4660_v33 = vmax.f32 %v4179_v15, 0.0 }
 0x621   :  { %v4661_v56 = vmax.f32 %v4181_v25, 0.0 }
 0x622   :  { %v4662_v24 = vmax.f32 %v4183_v39, 0.0  ;;  %4425 = vmatmul.mubr.bf16.gmra.mrb[12].mxu1 %v10758_v41 }
 0x623   :  { %v4863_v54 = vpack.c.bf16 %v4661_v56, %v4659_v45  ;;  %4434 = vmatprep.mubr.bf16.mxu1 %v10475_v16 }
 0x624   :  { %v4864_v34 = vpack.c.bf16 %v4662_v24, %v4660_v33  ;;  %v4186_v0 = vpop.f32.mrb[172].mxu1 }
 0x625   :  { %v4187_v44 = vadd.f32 %v4186_v0, %v9369_v38  ;;  %v4188_v49 = vpop.f32.mrb[173].mxu1 }
 0x626   :  { %v4189_v11 = vadd.f32 %v4188_v49, %v9373_v32  ;;  %v4190_v47 = vpop.f32.mrb[174].mxu1  ;;  %5314 = vmatprep.mubr.bf16.mxu0 %v4864_v34 }
 0x627   :  { %v4191_v4 = vadd.f32 %v4190_v47, %v9369_v38  ;;  %v4192_v10 = vpop.f32.mrb[175].mxu1  ;;  %5315 = vmatmul.mubr.bf16.gmra.mrb[168].mxu0 %v4863_v54  ;;  %v4663_v3 = vmax.f32 %v4187_v44, 0.0 }
 0x628   :  { %v4193_v28 = vadd.f32 %v4192_v10, %v9373_v32  ;;  %v4664_v48 = vmax.f32 %v4189_v11, 0.0 }
 0x629   :  { %v4665_v35 = vmax.f32 %v4191_v4, 0.0 }
 0x62a   :  { %v4666_v27 = vmax.f32 %v4193_v28, 0.0  ;;  %4435 = vmatmul.mubr.bf16.gmra.mrb[16].mxu1 %v10759_v40  ;;  %v5108_v18 = vpop.f32.mrb[64].mxu0 }
 0x62b   :  { %v4865_v29 = vpack.c.bf16 %v4665_v35, %v4663_v3  ;;  %v5109_v14 = vadd.f32 %v9548_v36, %v5108_v18  ;;  %v5110_v55 = vpop.f32.mrb[65].mxu0  ;;  %4444 = vmatprep.mubr.bf16.mxu1 %v10475_v16 }
 0x62c   :  { %v4866_v63 = vpack.c.bf16 %v4666_v27, %v4664_v48  ;;  %v5111_v21 = vpop.f32.mrb[66].mxu0 }
 0x62d   :  { %5619 = vst.msk [vmem:[%s10376_s9] sm:$0xff] %vm2844_vm0, %v5109_v14  ;;  %v5112_v57 = vadd.f32 %v9548_v36, %v5111_v21  ;;  %v5113_v30 = vpop.f32.mrb[67].mxu0 }
 0x62e   :  { %5322 = vmatprep.mubr.bf16.mxu0 %v4866_v63 }
 0x62f   :  { %5620 = vst.msk [vmem:[%s10376_s9 + $0x8] sm:$0xff] %vm2844_vm0, %v5112_v57  ;;  %5323 = vmatmul.mubr.bf16.gmra.mrb[172].mxu0 %v4865_v29 }
 0x632   :  { %4445 = vmatmul.mubr.bf16.gmra.mrb[20].mxu1 %v10760_v46  ;;  %v5116_v7 = vpop.f32.mrb[68].mxu0 }
 0x633   :  { %v5117_v52 = vadd.f32 %v9548_v36, %v5116_v7  ;;  %v5118_v60 = vpop.f32.mrb[69].mxu0  ;;  %4454 = vmatprep.mubr.bf16.mxu1 %v10475_v16 }
 0x634   :  { %v5119_v61 = vpop.f32.mrb[70].mxu0 }
 0x635   :  { %5621 = vst.msk [vmem:[%s10376_s9 + $0x10] sm:$0xff] %vm2844_vm0, %v5117_v52  ;;  %v5120_v58 = vadd.f32 %v9548_v36, %v5119_v61  ;;  %v5121_v9 = vpop.f32.mrb[71].mxu0 }
 0x637   :  { %5622 = vst.msk [vmem:[%s10376_s9 + $0x18] sm:$0xff] %vm2844_vm0, %v5120_v58  ;;  %v4196_v62 = vpop.f32.mrb[176].mxu1 }
 0x638   :  { %v4197_v23 = vadd.f32 %v4196_v62, %v9369_v38  ;;  %v4198_v42 = vpop.f32.mrb[177].mxu1 }
 0x639   :  { %v4199_v22 = vadd.f32 %v4198_v42, %v9373_v32  ;;  %v4200_v8 = vpop.f32.mrb[178].mxu1 }
 0x63a   :  { %v4201_v13 = vadd.f32 %v4200_v8, %v9369_v38  ;;  %v4202_v17 = vpop.f32.mrb[179].mxu1  ;;  %4455 = vmatmul.mubr.bf16.gmra.mrb[24].mxu1 %v9225_v31  ;;  %v5124_v53 = vpop.f32.mrb[72].mxu0  ;;  %v4667_v12 = vmax.f32 %v4197_v23, 0.0 }
 0x63b   :  { %v4203_v59 = vadd.f32 %v4202_v17, %v9373_v32  ;;  %v5125_v43 = vadd.f32 %v9548_v36, %v5124_v53  ;;  %v5126_v15 = vpop.f32.mrb[73].mxu0  ;;  %4464 = vmatprep.mubr.bf16.mxu1 %v10475_v16  ;;  %v4668_v39 = vmax.f32 %v4199_v22, 0.0 }
 0x63c   :  { %v4669_v25 = vmax.f32 %v4201_v13, 0.0  ;;  %v5127_v1 = vpop.f32.mrb[74].mxu0 }
 0x63d   :  { %v4670_v45 = vmax.f32 %v4203_v59, 0.0  ;;  %5623 = vst.msk [vmem:[%s10376_s9 + $0x20] sm:$0xff] %vm2844_vm0, %v5125_v43  ;;  %v5128_v31 = vadd.f32 %v9548_v36, %v5127_v1  ;;  %v5129_v56 = vpop.f32.mrb[75].mxu0 }
 0x63e   :  { %v4867_v33 = vpack.c.bf16 %v4669_v25, %v4667_v12 }
 0x63f   :  { %v4868_v24 = vpack.c.bf16 %v4670_v45, %v4668_v39  ;;  %5624 = vst.msk [vmem:[%s10376_s9 + $0x28] sm:$0xff] %vm2844_vm0, %v5128_v31  ;;  %v4206_v41 = vpop.f32.mrb[180].mxu1 }
 0x640   :  { %v4207_v54 = vadd.f32 %v4206_v41, %v9369_v38  ;;  %v4208_v34 = vpop.f32.mrb[181].mxu1 }
 0x641   :  { %v4209_v0 = vadd.f32 %v4208_v34, %v9373_v32  ;;  %v4210_v44 = vpop.f32.mrb[182].mxu1  ;;  %5330 = vmatprep.mubr.bf16.mxu0 %v4868_v24 }
 0x642   :  { %v4211_v49 = vadd.f32 %v4210_v44, %v9369_v38  ;;  %v4212_v11 = vpop.f32.mrb[183].mxu1  ;;  %4465 = vmatmul.mubr.bf16.gmra.mrb[28].mxu1 %v9222_v37  ;;  %v5132_v47 = vpop.f32.mrb[76].mxu0  ;;  %5331 = vmatmul.mubr.bf16.gmra.mrb[176].mxu0 %v4867_v33  ;;  %v4671_v3 = vmax.f32 %v4207_v54, 0.0 }
 0x643   :  { %v4213_v4 = vadd.f32 %v4212_v11, %v9373_v32  ;;  %v5133_v10 = vadd.f32 %v9548_v36, %v5132_v47  ;;  %v5134_v28 = vpop.f32.mrb[77].mxu0  ;;  %4474 = vmatprep.mubr.bf16.mxu1 %v10475_v16  ;;  %v4672_v27 = vmax.f32 %v4209_v0, 0.0 }
 0x644   :  { %v4673_v35 = vmax.f32 %v4211_v49, 0.0  ;;  %v5135_v48 = vpop.f32.mrb[78].mxu0 }
 0x645   :  { %v4674_v40 = vmax.f32 %v4213_v4, 0.0  ;;  %5625 = vst.msk [vmem:[%s10376_s9 + $0x30] sm:$0xff] %vm2844_vm0, %v5133_v10  ;;  %v5136_v37 = vadd.f32 %v9548_v36, %v5135_v48  ;;  %v5137_v18 = vpop.f32.mrb[79].mxu0 }
 0x646   :  { %v4869_v29 = vpack.c.bf16 %v4673_v35, %v4671_v3 }
 0x647   :  { %v4870_v14 = vpack.c.bf16 %v4674_v40, %v4672_v27  ;;  %5626 = vst.msk [vmem:[%s10376_s9 + $0x38] sm:$0xff] %vm2844_vm0, %v5136_v37 }
 0x649   :  { %5338 = vmatprep.mubr.bf16.mxu0 %v4870_v14 }
 0x64a   :  { %4475 = vmatmul.mubr.bf16.gmra.mrb[32].mxu1 %v9275_v6  ;;  %v5140_v55 = vpop.f32.mrb[80].mxu0  ;;  %5339 = vmatmul.mubr.bf16.gmra.mrb[180].mxu0 %v4869_v29 }
 0x64b   :  { %v5141_v63 = vadd.f32 %v9548_v36, %v5140_v55  ;;  %v5142_v21 = vpop.f32.mrb[81].mxu0  ;;  %4484 = vmatprep.mubr.bf16.mxu1 %v10475_v16 }
 0x64c   :  { %v5143_v57 = vpop.f32.mrb[82].mxu0 }
 0x64d   :  { %5627 = vst.msk [vmem:[%s10376_s9 + $0x40] sm:$0xff] %vm2844_vm0, %v5141_v63  ;;  %v5144_v30 = vadd.f32 %v9548_v36, %v5143_v57  ;;  %v4216_v46 = vpop.f32.mrb[184].mxu1  ;;  %v5145_v7 = vpop.f32.mrb[83].mxu0 }
 0x64e   :  { %v4217_v52 = vadd.f32 %v4216_v46, %v9369_v38  ;;  %v4218_v6 = vpop.f32.mrb[185].mxu1 }
 0x64f   :  { %5628 = vst.msk [vmem:[%s10376_s9 + $0x48] sm:$0xff] %vm2844_vm0, %v5144_v30  ;;  %v4219_v60 = vadd.f32 %v4218_v6, %v9373_v32  ;;  %v4220_v61 = vpop.f32.mrb[186].mxu1 }
 0x650   :  { %v4221_v58 = vadd.f32 %v4220_v61, %v9369_v38  ;;  %v4222_v9 = vpop.f32.mrb[187].mxu1  ;;  %v4675_v23 = vmax.f32 %v4217_v52, 0.0 }
 0x651   :  { %v4223_v62 = vadd.f32 %v4222_v9, %v9373_v32  ;;  %v4676_v8 = vmax.f32 %v4219_v60, 0.0 }
 0x652   :  { %v4677_v42 = vmax.f32 %v4221_v58, 0.0  ;;  %4485 = vmatmul.mubr.bf16.gmra.mrb[36].mxu1 %v9269_v26  ;;  %v5148_v22 = vpop.f32.mrb[84].mxu0 }
 0x653   :  { %v4678_v13 = vmax.f32 %v4223_v62, 0.0  ;;  %v5149_v17 = vadd.f32 %v9548_v36, %v5148_v22  ;;  %v5150_v53 = vpop.f32.mrb[85].mxu0  ;;  %4494 = vmatprep.mubr.bf16.mxu1 %v10475_v16 }
 0x654   :  { %v4871_v59 = vpack.c.bf16 %v4677_v42, %v4675_v23  ;;  %v5151_v43 = vpop.f32.mrb[86].mxu0 }
 0x655   :  { %v4872_v15 = vpack.c.bf16 %v4678_v13, %v4676_v8  ;;  %5629 = vst.msk [vmem:[%s10376_s9 + $0x50] sm:$0xff] %vm2844_vm0, %v5149_v17  ;;  %v5152_v12 = vadd.f32 %v9548_v36, %v5151_v43  ;;  %v4226_v25 = vpop.f32.mrb[188].mxu1  ;;  %v5153_v26 = vpop.f32.mrb[87].mxu0 }
 0x656   :  { %v4227_v1 = vadd.f32 %v4226_v25, %v9369_v38  ;;  %v4228_v39 = vpop.f32.mrb[189].mxu1 }
 0x657   :  { %5630 = vst.msk [vmem:[%s10376_s9 + $0x58] sm:$0xff] %vm2844_vm0, %v5152_v12  ;;  %v4229_v45 = vadd.f32 %v4228_v39, %v9373_v32  ;;  %v4230_v31 = vpop.f32.mrb[190].mxu1  ;;  %5346 = vmatprep.mubr.bf16.mxu0 %v4872_v15 }
 0x658   :  { %v4231_v56 = vadd.f32 %v4230_v31, %v9369_v38  ;;  %v4232_v33 = vpop.f32.mrb[191].mxu1  ;;  %5347 = vmatmul.mubr.bf16.gmra.mrb[184].mxu0 %v4871_v59  ;;  %v4679_v41 = vmax.f32 %v4227_v1, 0.0 }
 0x659   :  { %v4233_v24 = vadd.f32 %v4232_v33, %v9373_v32  ;;  %v4680_v0 = vmax.f32 %v4229_v45, 0.0 }
 0x65a   :  { %v4681_v54 = vmax.f32 %v4231_v56, 0.0  ;;  %4495 = vmatmul.mubr.bf16.gmra.mrb[40].mxu1 %v9319_v50  ;;  %v5156_v34 = vpop.f32.mrb[88].mxu0 }
 0x65b   :  { %v4682_v44 = vmax.f32 %v4233_v24, 0.0  ;;  %v5157_v49 = vadd.f32 %v9548_v36, %v5156_v34  ;;  %v5158_v11 = vpop.f32.mrb[89].mxu0  ;;  %4504 = vmatprep.mubr.bf16.mxu1 %v10475_v16 }
 0x65c   :  { %v4873_v47 = vpack.c.bf16 %v4681_v54, %v4679_v41  ;;  %v5159_v4 = vpop.f32.mrb[90].mxu0 }
 0x65d   :  { %v4874_v10 = vpack.c.bf16 %v4682_v44, %v4680_v0  ;;  %5631 = vst.msk [vmem:[%s10376_s9 + $0x60] sm:$0xff] %vm2844_vm0, %v5157_v49  ;;  %v5160_v28 = vadd.f32 %v9548_v36, %v5159_v4  ;;  %v4236_v3 = vpop.f32.mrb[192].mxu1  ;;  %v5161_v50 = vpop.f32.mrb[91].mxu0 }
 0x65e   :  { %v4237_v35 = vadd.f32 %v4236_v3, %v9369_v38  ;;  %v4238_v48 = vpop.f32.mrb[193].mxu1 }
 0x65f   :  { %5632 = vst.msk [vmem:[%s10376_s9 + $0x68] sm:$0xff] %vm2844_vm0, %v5160_v28  ;;  %v4239_v27 = vadd.f32 %v4238_v48, %v9373_v32  ;;  %v4240_v40 = vpop.f32.mrb[194].mxu1  ;;  %5354 = vmatprep.mubr.bf16.mxu0 %v4874_v10 }
 0x660   :  { %v4241_v37 = vadd.f32 %v4240_v40, %v9369_v38  ;;  %v4242_v18 = vpop.f32.mrb[195].mxu1  ;;  %5355 = vmatmul.mubr.bf16.gmra.mrb[188].mxu0 %v4873_v47  ;;  %v4683_v14 = vmax.f32 %v4237_v35, 0.0 }
 0x661   :  { %v4243_v29 = vadd.f32 %v4242_v18, %v9373_v32  ;;  %v4684_v21 = vmax.f32 %v4239_v27, 0.0 }
 0x662   :  { %v4685_v55 = vmax.f32 %v4241_v37, 0.0  ;;  %4505 = vmatmul.mubr.bf16.gmra.mrb[44].mxu1 %v9317_v2  ;;  %v5164_v63 = vpop.f32.mrb[92].mxu0 }
 0x663   :  { %v4686_v57 = vmax.f32 %v4243_v29, 0.0  ;;  %v5165_v30 = vadd.f32 %v9548_v36, %v5164_v63  ;;  %v5166_v46 = vpop.f32.mrb[93].mxu0  ;;  %4514 = vmatprep.mubr.bf16.mxu1 %v10475_v16 }
 0x664   :  { %v4875_v7 = vpack.c.bf16 %v4685_v55, %v4683_v14  ;;  %v5167_v52 = vpop.f32.mrb[94].mxu0 }
 0x665   :  { %v4876_v6 = vpack.c.bf16 %v4686_v57, %v4684_v21  ;;  %5633 = vst.msk [vmem:[%s10376_s9 + $0x70] sm:$0xff] %vm2844_vm0, %v5165_v30  ;;  %v5168_v60 = vadd.f32 %v9548_v36, %v5167_v52  ;;  %v4246_v61 = vpop.f32.mrb[196].mxu1  ;;  %v5169_v2 = vpop.f32.mrb[95].mxu0 }
 0x666   :  { %v4247_v58 = vadd.f32 %v4246_v61, %v9369_v38  ;;  %v4248_v9 = vpop.f32.mrb[197].mxu1 }
 0x667   :  { %5634 = vst.msk [vmem:[%s10376_s9 + $0x78] sm:$0xff] %vm2844_vm0, %v5168_v60  ;;  %v4249_v62 = vadd.f32 %v4248_v9, %v9373_v32  ;;  %v4250_v23 = vpop.f32.mrb[198].mxu1  ;;  %5362 = vmatprep.mubr.bf16.mxu0 %v4876_v6 }
 0x668   :  { %v4251_v42 = vadd.f32 %v4250_v23, %v9369_v38  ;;  %v4252_v22 = vpop.f32.mrb[199].mxu1  ;;  %5363 = vmatmul.mubr.bf16.gmra.mrb[192].mxu0 %v4875_v7  ;;  %v4687_v13 = vmax.f32 %v4247_v58, 0.0 }
 0x669   :  { %v4253_v8 = vadd.f32 %v4252_v22, %v9373_v32  ;;  %v4688_v59 = vmax.f32 %v4249_v62, 0.0 }
 0x66a   :  { %v4689_v17 = vmax.f32 %v4251_v42, 0.0  ;;  %4515 = vmatmul.mubr.bf16.gmra.mrb[48].mxu1 %v9337_v20  ;;  %v5172_v53 = vpop.f32.mrb[96].mxu0 }
 0x66b   :  { %v4690_v43 = vmax.f32 %v4253_v8, 0.0  ;;  %v5173_v15 = vadd.f32 %v9548_v36, %v5172_v53  ;;  %v5174_v12 = vpop.f32.mrb[97].mxu0  ;;  %4524 = vmatprep.mubr.bf16.mxu1 %v10475_v16 }
 0x66c   :  { %v4877_v25 = vpack.c.bf16 %v4689_v17, %v4687_v13  ;;  %v5175_v26 = vpop.f32.mrb[98].mxu0 }
 0x66d   :  { %v4878_v1 = vpack.c.bf16 %v4690_v43, %v4688_v59  ;;  %5635 = vst.msk [vmem:[%s10376_s9 + $0x80] sm:$0xff] %vm2844_vm0, %v5173_v15  ;;  %v5176_v39 = vadd.f32 %v9548_v36, %v5175_v26  ;;  %v4256_v45 = vpop.f32.mrb[200].mxu1  ;;  %v5177_v20 = vpop.f32.mrb[99].mxu0 }
 0x66e   :  { %v4257_v31 = vadd.f32 %v4256_v45, %v9369_v38  ;;  %v4258_v56 = vpop.f32.mrb[201].mxu1 }
 0x66f   :  { %5636 = vst.msk [vmem:[%s10376_s9 + $0x88] sm:$0xff] %vm2844_vm0, %v5176_v39  ;;  %v4259_v33 = vadd.f32 %v4258_v56, %v9373_v32  ;;  %v4260_v24 = vpop.f32.mrb[202].mxu1  ;;  %5370 = vmatprep.mubr.bf16.mxu0 %v4878_v1 }
 0x670   :  { %v4261_v41 = vadd.f32 %v4260_v24, %v9369_v38  ;;  %v4262_v54 = vpop.f32.mrb[203].mxu1  ;;  %5371 = vmatmul.mubr.bf16.gmra.mrb[196].mxu0 %v4877_v25  ;;  %v4691_v0 = vmax.f32 %v4257_v31, 0.0 }
 0x671   :  { %v4263_v34 = vadd.f32 %v4262_v54, %v9373_v32  ;;  %v4692_v11 = vmax.f32 %v4259_v33, 0.0 }
 0x672   :  { %v4693_v44 = vmax.f32 %v4261_v41, 0.0  ;;  %4525 = vmatmul.mubr.bf16.gmra.mrb[52].mxu1 %v9335_v51  ;;  %v5180_v49 = vpop.f32.mrb[100].mxu0 }
 0x673   :  { %v4694_v47 = vmax.f32 %v4263_v34, 0.0  ;;  %v5181_v4 = vadd.f32 %v9548_v36, %v5180_v49  ;;  %v5182_v10 = vpop.f32.mrb[101].mxu0  ;;  %4534 = vmatprep.mubr.bf16.mxu1 %v10475_v16 }
 0x674   :  { %v4879_v28 = vpack.c.bf16 %v4693_v44, %v4691_v0  ;;  %v5183_v3 = vpop.f32.mrb[102].mxu0 }
 0x675   :  { %v4880_v50 = vpack.c.bf16 %v4694_v47, %v4692_v11  ;;  %5637 = vst.msk [vmem:[%s10376_s9 + $0x90] sm:$0xff] %vm2844_vm0, %v5181_v4  ;;  %v5184_v35 = vadd.f32 %v9548_v36, %v5183_v3  ;;  %v4266_v48 = vpop.f32.mrb[204].mxu1  ;;  %v5185_v51 = vpop.f32.mrb[103].mxu0 }
 0x676   :  { %v4267_v27 = vadd.f32 %v4266_v48, %v9369_v38  ;;  %v4268_v40 = vpop.f32.mrb[205].mxu1 }
 0x677   :  { %5638 = vst.msk [vmem:[%s10376_s9 + $0x98] sm:$0xff] %vm2844_vm0, %v5184_v35  ;;  %v4269_v37 = vadd.f32 %v4268_v40, %v9373_v32  ;;  %v4270_v18 = vpop.f32.mrb[206].mxu1  ;;  %5378 = vmatprep.mubr.bf16.mxu0 %v4880_v50 }
 0x678   :  { %v4271_v29 = vadd.f32 %v4270_v18, %v9369_v38  ;;  %v4272_v14 = vpop.f32.mrb[207].mxu1  ;;  %5379 = vmatmul.mubr.bf16.gmra.mrb[200].mxu0 %v4879_v28  ;;  %v4695_v63 = vmax.f32 %v4267_v27, 0.0 }
 0x679   :  { %v4273_v55 = vadd.f32 %v4272_v14, %v9373_v32  ;;  %v4696_v30 = vmax.f32 %v4269_v37, 0.0 }
 0x67a   :  { %v4697_v21 = vmax.f32 %v4271_v29, 0.0  ;;  %4535 = vmatmul.mubr.bf16.gmra.mrb[56].mxu1 %v9378_v5  ;;  %v5188_v57 = vpop.f32.mrb[104].mxu0 }
 0x67b   :  { %v4698_v46 = vmax.f32 %v4273_v55, 0.0  ;;  %v5189_v7 = vadd.f32 %v9548_v36, %v5188_v57  ;;  %v5190_v52 = vpop.f32.mrb[105].mxu0  ;;  %4544 = vmatprep.mubr.bf16.mxu1 %v10475_v16 }
 0x67c   :  { %v4881_v6 = vpack.c.bf16 %v4697_v21, %v4695_v63  ;;  %v5191_v60 = vpop.f32.mrb[106].mxu0 }
 0x67d   :  { %v4882_v61 = vpack.c.bf16 %v4698_v46, %v4696_v30  ;;  %5639 = vst.msk [vmem:[%s10376_s9 + $0xa0] sm:$0xff] %vm2844_vm0, %v5189_v7  ;;  %v5192_v2 = vadd.f32 %v9548_v36, %v5191_v60  ;;  %v4276_v58 = vpop.f32.mrb[208].mxu1  ;;  %v5193_v5 = vpop.f32.mrb[107].mxu0 }
 0x67e   :  { %v4277_v9 = vadd.f32 %v4276_v58, %v9369_v38  ;;  %v4278_v62 = vpop.f32.mrb[209].mxu1 }
 0x67f   :  { %5640 = vst.msk [vmem:[%s10376_s9 + $0xa8] sm:$0xff] %vm2844_vm0, %v5192_v2  ;;  %v4279_v16 = vadd.f32 %v4278_v62, %v9373_v32  ;;  %v4280_v23 = vpop.f32.mrb[210].mxu1  ;;  %5386 = vmatprep.mubr.bf16.mxu0 %v4882_v61 }
 0x680   :  { %v4281_v42 = vadd.f32 %v4280_v23, %v9369_v38  ;;  %v4282_v22 = vpop.f32.mrb[211].mxu1  ;;  %5387 = vmatmul.mubr.bf16.gmra.mrb[204].mxu0 %v4881_v6  ;;  %v4699_v13 = vmax.f32 %v4277_v9, 0.0 }
 0x681   :  { %v4283_v8 = vadd.f32 %v4282_v22, %v9373_v32  ;;  %v4700_v59 = vmax.f32 %v4279_v16, 0.0 }
 0x682   :  { %v4701_v17 = vmax.f32 %v4281_v42, 0.0  ;;  %4545 = vmatmul.mubr.bf16.gmra.mrb[60].mxu1 %v9376_v19  ;;  %v5196_v53 = vpop.f32.mrb[108].mxu0 }
 0x683   :  { %v4702_v43 = vmax.f32 %v4283_v8, 0.0  ;;  %v5197_v15 = vadd.f32 %v9548_v36, %v5196_v53  ;;  %v5198_v12 = vpop.f32.mrb[109].mxu0 }
 0x684   :  { %v4883_v25 = vpack.c.bf16 %v4701_v17, %v4699_v13  ;;  %v5199_v26 = vpop.f32.mrb[110].mxu0 }
 0x685   :  { %v4884_v1 = vpack.c.bf16 %v4702_v43, %v4700_v59  ;;  %5641 = vst.msk [vmem:[%s10376_s9 + $0xb0] sm:$0xff] %vm2844_vm0, %v5197_v15  ;;  %v5200_v39 = vadd.f32 %v9548_v36, %v5199_v26  ;;  %v4286_v45 = vpop.f32.mrb[212].mxu1  ;;  %v5201_v20 = vpop.f32.mrb[111].mxu0 }
 0x686   :  { %v4287_v19 = vadd.f32 %v4286_v45, %v9369_v38  ;;  %v4288_v31 = vpop.f32.mrb[213].mxu1 }
 0x687   :  { %5642 = vst.msk [vmem:[%s10376_s9 + $0xb8] sm:$0xff] %vm2844_vm0, %v5200_v39  ;;  %v4289_v56 = vadd.f32 %v4288_v31, %v9373_v32  ;;  %v4290_v33 = vpop.f32.mrb[214].mxu1  ;;  %5394 = vmatprep.mubr.bf16.mxu0 %v4884_v1 }
 0x688   :  { %v4291_v24 = vadd.f32 %v4290_v33, %v9369_v38  ;;  %v4292_v41 = vpop.f32.mrb[215].mxu1  ;;  %5395 = vmatmul.mubr.bf16.gmra.mrb[208].mxu0 %v4883_v25  ;;  %v4703_v34 = vmax.f32 %v4287_v19, 0.0 }
 0x689   :  { %v4293_v54 = vadd.f32 %v4292_v41, %v9373_v32  ;;  %v4704_v49 = vmax.f32 %v4289_v56, 0.0 }
 0x68a   :  { %v4705_v0 = vmax.f32 %v4291_v24, 0.0  ;;  %v5204_v44 = vpop.f32.mrb[112].mxu0 }
 0x68b   :  { %v4706_v11 = vmax.f32 %v4293_v54, 0.0  ;;  %v5205_v47 = vadd.f32 %v9548_v36, %v5204_v44  ;;  %v5206_v4 = vpop.f32.mrb[113].mxu0 }
 0x68c   :  { %v4885_v10 = vpack.c.bf16 %v4705_v0, %v4703_v34  ;;  %v5207_v28 = vpop.f32.mrb[114].mxu0 }
 0x68d   :  { %v4886_v3 = vpack.c.bf16 %v4706_v11, %v4704_v49  ;;  %5643 = vst.msk [vmem:[%s10376_s9 + $0xc0] sm:$0xff] %vm2844_vm0, %v5205_v47  ;;  %v5208_v50 = vadd.f32 %v9548_v36, %v5207_v28  ;;  %v4296_v35 = vpop.f32.mrb[216].mxu1  ;;  %v5209_v48 = vpop.f32.mrb[115].mxu0 }
 0x68e   :  { %v4297_v51 = vadd.f32 %v4296_v35, %v9369_v38  ;;  %v4298_v27 = vpop.f32.mrb[217].mxu1 }
 0x68f   :  { %5644 = vst.msk [vmem:[%s10376_s9 + $0xc8] sm:$0xff] %vm2844_vm0, %v5208_v50  ;;  %v4299_v40 = vadd.f32 %v4298_v27, %v9373_v32  ;;  %v4300_v37 = vpop.f32.mrb[218].mxu1  ;;  %5402 = vmatprep.mubr.bf16.mxu0 %v4886_v3 }
 0x690   :  { %v4301_v18 = vadd.f32 %v4300_v37, %v9369_v38  ;;  %v4302_v29 = vpop.f32.mrb[219].mxu1  ;;  %5403 = vmatmul.mubr.bf16.gmra.mrb[212].mxu0 %v4885_v10  ;;  %v4707_v55 = vmax.f32 %v4297_v51, 0.0 }
 0x691   :  { %v4303_v14 = vadd.f32 %v4302_v29, %v9373_v32  ;;  %v4708_v57 = vmax.f32 %v4299_v40, 0.0 }
 0x692   :  { %v4709_v63 = vmax.f32 %v4301_v18, 0.0  ;;  %v5212_v21 = vpop.f32.mrb[116].mxu0 }
 0x693   :  { %v4710_v30 = vmax.f32 %v4303_v14, 0.0  ;;  %v5213_v46 = vadd.f32 %v9548_v36, %v5212_v21  ;;  %v5214_v7 = vpop.f32.mrb[117].mxu0 }
 0x694   :  { %v4887_v52 = vpack.c.bf16 %v4709_v63, %v4707_v55  ;;  %v5215_v6 = vpop.f32.mrb[118].mxu0 }
 0x695   :  { %v4888_v60 = vpack.c.bf16 %v4710_v30, %v4708_v57  ;;  %5645 = vst.msk [vmem:[%s10376_s9 + $0xd0] sm:$0xff] %vm2844_vm0, %v5213_v46  ;;  %v5216_v61 = vadd.f32 %v9548_v36, %v5215_v6  ;;  %v4306_v2 = vpop.f32.mrb[220].mxu1  ;;  %v5217_v58 = vpop.f32.mrb[119].mxu0 }
 0x696   :  { %v4307_v5 = vadd.f32 %v4306_v2, %v9369_v38  ;;  %v4308_v9 = vpop.f32.mrb[221].mxu1 }
 0x697   :  { %5646 = vst.msk [vmem:[%s10376_s9 + $0xd8] sm:$0xff] %vm2844_vm0, %v5216_v61  ;;  %v4309_v62 = vadd.f32 %v4308_v9, %v9373_v32  ;;  %v4310_v16 = vpop.f32.mrb[222].mxu1  ;;  %5410 = vmatprep.mubr.bf16.mxu0 %v4888_v60 }
 0x698   :  { %v4311_v23 = vadd.f32 %v4310_v16, %v9369_v38  ;;  %v4312_v42 = vpop.f32.mrb[223].mxu1  ;;  %5411 = vmatmul.mubr.bf16.gmra.mrb[216].mxu0 %v4887_v52  ;;  %v4711_v8 = vmax.f32 %v4307_v5, 0.0 }
 0x699   :  { %v4313_v22 = vadd.f32 %v4312_v42, %v9373_v32  ;;  %v4712_v53 = vmax.f32 %v4309_v62, 0.0 }
 0x69a   :  { %v4713_v13 = vmax.f32 %v4311_v23, 0.0  ;;  %v5220_v17 = vpop.f32.mrb[120].mxu0 }
 0x69b   :  { %v4714_v59 = vmax.f32 %v4313_v22, 0.0  ;;  %v5221_v43 = vadd.f32 %v9548_v36, %v5220_v17  ;;  %v5222_v15 = vpop.f32.mrb[121].mxu0 }
 0x69c   :  { %v4889_v12 = vpack.c.bf16 %v4713_v13, %v4711_v8  ;;  %v5223_v25 = vpop.f32.mrb[122].mxu0 }
 0x69d   :  { %v4890_v26 = vpack.c.bf16 %v4714_v59, %v4712_v53  ;;  %5647 = vst.msk [vmem:[%s10376_s9 + $0xe0] sm:$0xff] %vm2844_vm0, %v5221_v43  ;;  %v5224_v1 = vadd.f32 %v9548_v36, %v5223_v25  ;;  %v4316_v39 = vpop.f32.mrb[224].mxu1  ;;  %v5225_v45 = vpop.f32.mrb[123].mxu0 }
 0x69e   :  { %v4317_v20 = vadd.f32 %v4316_v39, %v9369_v38  ;;  %v4318_v19 = vpop.f32.mrb[225].mxu1 }
 0x69f   :  { %5648 = vst.msk [vmem:[%s10376_s9 + $0xe8] sm:$0xff] %vm2844_vm0, %v5224_v1  ;;  %v4319_v31 = vadd.f32 %v4318_v19, %v9373_v32  ;;  %v4320_v56 = vpop.f32.mrb[226].mxu1  ;;  %5418 = vmatprep.mubr.bf16.mxu0 %v4890_v26 }
 0x6a0   :  { %v4321_v33 = vadd.f32 %v4320_v56, %v9369_v38  ;;  %v4322_v24 = vpop.f32.mrb[227].mxu1  ;;  %5419 = vmatmul.mubr.bf16.gmra.mrb[220].mxu0 %v4889_v12  ;;  %v4715_v54 = vmax.f32 %v4317_v20, 0.0 }
 0x6a1   :  { %v4323_v41 = vadd.f32 %v4322_v24, %v9373_v32  ;;  %v4716_v44 = vmax.f32 %v4319_v31, 0.0 }
 0x6a2   :  { %v4717_v34 = vmax.f32 %v4321_v33, 0.0  ;;  %v5228_v0 = vpop.f32.mrb[124].mxu0 }
 0x6a3   :  { %v4718_v49 = vmax.f32 %v4323_v41, 0.0  ;;  %v5229_v11 = vadd.f32 %v9548_v36, %v5228_v0  ;;  %v5230_v47 = vpop.f32.mrb[125].mxu0 }
 0x6a4   :  { %v4891_v4 = vpack.c.bf16 %v4717_v34, %v4715_v54  ;;  %v5231_v10 = vpop.f32.mrb[126].mxu0 }
 0x6a5   :  { %v4892_v28 = vpack.c.bf16 %v4718_v49, %v4716_v44  ;;  %5649 = vst.msk [vmem:[%s10376_s9 + $0xf0] sm:$0xff] %vm2844_vm0, %v5229_v11  ;;  %v5232_v3 = vadd.f32 %v9548_v36, %v5231_v10  ;;  %v4326_v50 = vpop.f32.mrb[228].mxu1  ;;  %v5233_v35 = vpop.f32.mrb[127].mxu0 }
 0x6a6   :  { %v4327_v48 = vadd.f32 %v4326_v50, %v9369_v38  ;;  %v4328_v51 = vpop.f32.mrb[229].mxu1 }
 0x6a7   :  { %5650 = vst.msk [vmem:[%s10376_s9 + $0xf8] sm:$0xff] %vm2844_vm0, %v5232_v3  ;;  %v4329_v27 = vadd.f32 %v4328_v51, %v9373_v32  ;;  %v4330_v40 = vpop.f32.mrb[230].mxu1  ;;  %5426 = vmatprep.mubr.bf16.mxu0 %v4892_v28 }
 0x6a8   :  { %v4331_v37 = vadd.f32 %v4330_v40, %v9369_v38  ;;  %v4332_v18 = vpop.f32.mrb[231].mxu1  ;;  %5427 = vmatmul.mubr.bf16.gmra.mrb[224].mxu0 %v4891_v4  ;;  %v4719_v14 = vmax.f32 %v4327_v48, 0.0 }
 0x6a9   :  { %v4333_v29 = vadd.f32 %v4332_v18, %v9373_v32  ;;  %v4720_v21 = vmax.f32 %v4329_v27, 0.0 }
 0x6aa   :  { %v4721_v55 = vmax.f32 %v4331_v37, 0.0  ;;  %v5236_v63 = vpop.f32.mrb[128].mxu0 }
 0x6ab   :  { %v4722_v57 = vmax.f32 %v4333_v29, 0.0  ;;  %v5237_v30 = vadd.f32 %v9548_v36, %v5236_v63  ;;  %v5238_v46 = vpop.f32.mrb[129].mxu0 }
 0x6ac   :  { %v4893_v7 = vpack.c.bf16 %v4721_v55, %v4719_v14  ;;  %v5239_v52 = vpop.f32.mrb[130].mxu0 }
 0x6ad   :  { %v4894_v6 = vpack.c.bf16 %v4722_v57, %v4720_v21  ;;  %5651 = vst.msk [vmem:[%s10376_s9 + $0x100] sm:$0xff] %vm2844_vm0, %v5237_v30  ;;  %v5240_v60 = vadd.f32 %v9548_v36, %v5239_v52  ;;  %v4336_v61 = vpop.f32.mrb[232].mxu1  ;;  %v5241_v2 = vpop.f32.mrb[131].mxu0 }
 0x6ae   :  { %v4337_v58 = vadd.f32 %v4336_v61, %v9369_v38  ;;  %v4338_v5 = vpop.f32.mrb[233].mxu1 }
 0x6af   :  { %5652 = vst.msk [vmem:[%s10376_s9 + $0x108] sm:$0xff] %vm2844_vm0, %v5240_v60  ;;  %v4339_v9 = vadd.f32 %v4338_v5, %v9373_v32  ;;  %v4340_v62 = vpop.f32.mrb[234].mxu1  ;;  %5434 = vmatprep.mubr.bf16.mxu0 %v4894_v6 }
 0x6b0   :  { %v4341_v16 = vadd.f32 %v4340_v62, %v9369_v38  ;;  %v4342_v23 = vpop.f32.mrb[235].mxu1  ;;  %5435 = vmatmul.mubr.bf16.gmra.mrb[228].mxu0 %v4893_v7  ;;  %v4723_v22 = vmax.f32 %v4337_v58, 0.0 }
 0x6b1   :  { %v4343_v42 = vadd.f32 %v4342_v23, %v9373_v32  ;;  %v4724_v17 = vmax.f32 %v4339_v9, 0.0 }
 0x6b2   :  { %v4725_v8 = vmax.f32 %v4341_v16, 0.0  ;;  %v5244_v13 = vpop.f32.mrb[132].mxu0 }
 0x6b3   :  { %v4726_v53 = vmax.f32 %v4343_v42, 0.0  ;;  %v5245_v59 = vadd.f32 %v9548_v36, %v5244_v13  ;;  %v5246_v43 = vpop.f32.mrb[133].mxu0 }
 0x6b4   :  { %v4895_v15 = vpack.c.bf16 %v4725_v8, %v4723_v22  ;;  %v5247_v12 = vpop.f32.mrb[134].mxu0 }
 0x6b5   :  { %v4896_v25 = vpack.c.bf16 %v4726_v53, %v4724_v17  ;;  %5653 = vst.msk [vmem:[%s10376_s9 + $0x110] sm:$0xff] %vm2844_vm0, %v5245_v59  ;;  %v5248_v26 = vadd.f32 %v9548_v36, %v5247_v12  ;;  %v4346_v1 = vpop.f32.mrb[236].mxu1  ;;  %v5249_v39 = vpop.f32.mrb[135].mxu0 }
 0x6b6   :  { %v4347_v45 = vadd.f32 %v4346_v1, %v9369_v38  ;;  %v4348_v20 = vpop.f32.mrb[237].mxu1 }
 0x6b7   :  { %5654 = vst.msk [vmem:[%s10376_s9 + $0x118] sm:$0xff] %vm2844_vm0, %v5248_v26  ;;  %v4349_v19 = vadd.f32 %v4348_v20, %v9373_v32  ;;  %v4350_v31 = vpop.f32.mrb[238].mxu1  ;;  %5442 = vmatprep.mubr.bf16.mxu0 %v4896_v25 }
 0x6b8   :  { %v4351_v56 = vadd.f32 %v4350_v31, %v9369_v38  ;;  %v4352_v33 = vpop.f32.mrb[239].mxu1  ;;  %5443 = vmatmul.mubr.bf16.gmra.mrb[232].mxu0 %v4895_v15  ;;  %v4727_v41 = vmax.f32 %v4347_v45, 0.0 }
 0x6b9   :  { %v4353_v24 = vadd.f32 %v4352_v33, %v9373_v32  ;;  %v4728_v0 = vmax.f32 %v4349_v19, 0.0 }
 0x6ba   :  { %v4729_v54 = vmax.f32 %v4351_v56, 0.0  ;;  %v5252_v34 = vpop.f32.mrb[136].mxu0 }
 0x6bb   :  { %v4730_v44 = vmax.f32 %v4353_v24, 0.0  ;;  %v5253_v49 = vadd.f32 %v9548_v36, %v5252_v34  ;;  %v5254_v11 = vpop.f32.mrb[137].mxu0 }
 0x6bc   :  { %v4897_v47 = vpack.c.bf16 %v4729_v54, %v4727_v41  ;;  %v5255_v4 = vpop.f32.mrb[138].mxu0 }
 0x6bd   :  { %v4898_v10 = vpack.c.bf16 %v4730_v44, %v4728_v0  ;;  %5655 = vst.msk [vmem:[%s10376_s9 + $0x120] sm:$0xff] %vm2844_vm0, %v5253_v49  ;;  %v5256_v28 = vadd.f32 %v9548_v36, %v5255_v4  ;;  %v4356_v3 = vpop.f32.mrb[240].mxu1  ;;  %v5257_v50 = vpop.f32.mrb[139].mxu0 }
 0x6be   :  { %v4357_v35 = vadd.f32 %v4356_v3, %v9369_v38  ;;  %v4358_v48 = vpop.f32.mrb[241].mxu1 }
 0x6bf   :  { %5656 = vst.msk [vmem:[%s10376_s9 + $0x128] sm:$0xff] %vm2844_vm0, %v5256_v28  ;;  %v4359_v51 = vadd.f32 %v4358_v48, %v9373_v32  ;;  %v4360_v27 = vpop.f32.mrb[242].mxu1  ;;  %5450 = vmatprep.mubr.bf16.mxu0 %v4898_v10 }
 0x6c0   :  { %v4361_v40 = vadd.f32 %v4360_v27, %v9369_v38  ;;  %v4362_v37 = vpop.f32.mrb[243].mxu1  ;;  %5451 = vmatmul.mubr.bf16.gmra.mrb[236].mxu0 %v4897_v47  ;;  %v4731_v29 = vmax.f32 %v4357_v35, 0.0 }
 0x6c1   :  { %v4363_v18 = vadd.f32 %v4362_v37, %v9373_v32  ;;  %v4732_v63 = vmax.f32 %v4359_v51, 0.0 }
 0x6c2   :  { %v4733_v14 = vmax.f32 %v4361_v40, 0.0  ;;  %v5260_v55 = vpop.f32.mrb[140].mxu0 }
 0x6c3   :  { %v4734_v21 = vmax.f32 %v4363_v18, 0.0  ;;  %v5261_v57 = vadd.f32 %v9548_v36, %v5260_v55  ;;  %v5262_v30 = vpop.f32.mrb[141].mxu0 }
 0x6c4   :  { %v4899_v46 = vpack.c.bf16 %v4733_v14, %v4731_v29  ;;  %v5263_v7 = vpop.f32.mrb[142].mxu0 }
 0x6c5   :  { %v4900_v52 = vpack.c.bf16 %v4734_v21, %v4732_v63  ;;  %5657 = vst.msk [vmem:[%s10376_s9 + $0x130] sm:$0xff] %vm2844_vm0, %v5261_v57  ;;  %v5264_v6 = vadd.f32 %v9548_v36, %v5263_v7  ;;  %v4366_v60 = vpop.f32.mrb[244].mxu1  ;;  %v5265_v61 = vpop.f32.mrb[143].mxu0  ;;  %v9876_v63 = vld [vmem:[%s10375_s8] ss:$0 sm:$0xff] }
 0x6c6   :  { %v4367_v2 = vadd.f32 %v4366_v60, %v9369_v38  ;;  %v4368_v58 = vpop.f32.mrb[245].mxu1 }
 0x6c7   :  { %5658 = vst.msk [vmem:[%s10376_s9 + $0x138] sm:$0xff] %vm2844_vm0, %v5264_v6  ;;  %v4369_v5 = vadd.f32 %v4368_v58, %v9373_v32  ;;  %v4370_v9 = vpop.f32.mrb[246].mxu1  ;;  %5458 = vmatprep.mubr.bf16.mxu0 %v4900_v52 }
 0x6c8   :  { %v4371_v62 = vadd.f32 %v4370_v9, %v9369_v38  ;;  %v4372_v16 = vpop.f32.mrb[247].mxu1  ;;  %5459 = vmatmul.mubr.bf16.gmra.mrb[240].mxu0 %v4899_v46  ;;  %v4735_v42 = vmax.f32 %v4367_v2, 0.0 }
 0x6c9   :  { %v4373_v23 = vadd.f32 %v4372_v16, %v9373_v32  ;;  %v4736_v13 = vmax.f32 %v4369_v5, 0.0 }
 0x6ca   :  { %v4737_v22 = vmax.f32 %v4371_v62, 0.0  ;;  %v5268_v8 = vpop.f32.mrb[144].mxu0 }
 0x6cb   :  { %v4738_v17 = vmax.f32 %v4373_v23, 0.0  ;;  %v5269_v53 = vadd.f32 %v9548_v36, %v5268_v8  ;;  %v5270_v59 = vpop.f32.mrb[145].mxu0 }
 0x6cc   :  { %v4901_v43 = vpack.c.bf16 %v4737_v22, %v4735_v42  ;;  %v5271_v15 = vpop.f32.mrb[146].mxu0 }
 0x6cd   :  { %v4902_v12 = vpack.c.bf16 %v4738_v17, %v4736_v13  ;;  %5659 = vst.msk [vmem:[%s10376_s9 + $0x140] sm:$0xff] %vm2844_vm0, %v5269_v53  ;;  %v5272_v25 = vadd.f32 %v9548_v36, %v5271_v15  ;;  %v4376_v26 = vpop.f32.mrb[248].mxu1  ;;  %v5273_v1 = vpop.f32.mrb[147].mxu0 }
 0x6ce   :  { %v4377_v39 = vadd.f32 %v4376_v26, %v9369_v38  ;;  %v4378_v45 = vpop.f32.mrb[249].mxu1 }
 0x6cf   :  { %5660 = vst.msk [vmem:[%s10376_s9 + $0x148] sm:$0xff] %vm2844_vm0, %v5272_v25  ;;  %v4379_v20 = vadd.f32 %v4378_v45, %v9373_v32  ;;  %v4380_v19 = vpop.f32.mrb[250].mxu1  ;;  %5466 = vmatprep.mubr.bf16.mxu0 %v4902_v12 }
 0x6d0   :  { %v4381_v31 = vadd.f32 %v4380_v19, %v9369_v38  ;;  %v4382_v56 = vpop.f32.mrb[251].mxu1  ;;  %5467 = vmatmul.mubr.bf16.gmra.mrb[244].mxu0 %v4901_v43  ;;  %v4739_v24 = vmax.f32 %v4377_v39, 0.0 }
 0x6d1   :  { %v4383_v33 = vadd.f32 %v4382_v56, %v9373_v32  ;;  %v4740_v34 = vmax.f32 %v4379_v20, 0.0 }
 0x6d2   :  { %v4741_v41 = vmax.f32 %v4381_v31, 0.0  ;;  %v5276_v54 = vpop.f32.mrb[148].mxu0 }
 0x6d3   :  { %v4742_v0 = vmax.f32 %v4383_v33, 0.0  ;;  %v5277_v44 = vadd.f32 %v9548_v36, %v5276_v54  ;;  %v5278_v49 = vpop.f32.mrb[149].mxu0 }
 0x6d4   :  { %v4903_v11 = vpack.c.bf16 %v4741_v41, %v4739_v24  ;;  %v5279_v47 = vpop.f32.mrb[150].mxu0 }
 0x6d5   :  { %v4904_v4 = vpack.c.bf16 %v4742_v0, %v4740_v34  ;;  %5661 = vst.msk [vmem:[%s10376_s9 + $0x150] sm:$0xff] %vm2844_vm0, %v5277_v44  ;;  %v5280_v10 = vadd.f32 %v9548_v36, %v5279_v47  ;;  %v4386_v28 = vpop.f32.mrb[252].mxu1  ;;  %v5281_v3 = vpop.f32.mrb[151].mxu0 }
 0x6d6   :  { %v4387_v50 = vadd.f32 %v4386_v28, %v9369_v38  ;;  %v4388_v35 = vpop.f32.mrb[253].mxu1 }
 0x6d7   :  { %5662 = vst.msk [vmem:[%s10376_s9 + $0x158] sm:$0xff] %vm2844_vm0, %v5280_v10  ;;  %v4389_v48 = vadd.f32 %v4388_v35, %v9373_v32  ;;  %v4390_v51 = vpop.f32.mrb[254].mxu1  ;;  %5474 = vmatprep.mubr.bf16.mxu0 %v4904_v4 }
 0x6d8   :  { %v4391_v27 = vadd.f32 %v4390_v51, %v9369_v38  ;;  %v4392_v40 = vpop.f32.mrb[255].mxu1  ;;  %5475 = vmatmul.mubr.bf16.gmra.mrb[248].mxu0 %v4903_v11  ;;  %v4743_v37 = vmax.f32 %v4387_v50, 0.0 }
 0x6d9   :  { %v4393_v36 = vadd.f32 %v4392_v40, %v9373_v32  ;;  %v4744_v14 = vmax.f32 %v4389_v48, 0.0 }
 0x6da   :  { %v4745_v18 = vmax.f32 %v4391_v27, 0.0  ;;  %v5284_v29 = vpop.f32.mrb[152].mxu0 }
 0x6db   :  { %v4746_v55 = vmax.f32 %v4393_v36, 0.0  ;;  %v5285_v21 = vadd.f32 %v9876_v63, %v5284_v29  ;;  %v5286_v57 = vpop.f32.mrb[153].mxu0 }
 0x6dc   :  { %v4905_v30 = vpack.c.bf16 %v4745_v18, %v4743_v37  ;;  %v5287_v46 = vpop.f32.mrb[154].mxu0 }
 0x6dd   :  { %v4906_v7 = vpack.c.bf16 %v4746_v55, %v4744_v14  ;;  %5663 = vst.msk [vmem:[%s10376_s9 + $0x160] sm:$0xff] %vm2844_vm0, %v5285_v21  ;;  %v5288_v52 = vadd.f32 %v9876_v63, %v5287_v46  ;;  %v4396_v6 = vpop.f32.mrb[0].mxu1  ;;  %v5289_v60 = vpop.f32.mrb[155].mxu0 }
 0x6de   :  { %v4397_v61 = vadd.f32 %v4396_v6, %v9369_v38  ;;  %v4398_v2 = vpop.f32.mrb[1].mxu1 }
 0x6df   :  { %5664 = vst.msk [vmem:[%s10376_s9 + $0x168] sm:$0xff] %vm2844_vm0, %v5288_v52  ;;  %v4399_v58 = vadd.f32 %v4398_v2, %v9373_v32  ;;  %v4400_v5 = vpop.f32.mrb[2].mxu1  ;;  %5482 = vmatprep.mubr.bf16.mxu0 %v4906_v7 }
 0x6e0   :  { %v4401_v9 = vadd.f32 %v4400_v5, %v9369_v38  ;;  %v4402_v62 = vpop.f32.mrb[3].mxu1  ;;  %5483 = vmatmul.mubr.bf16.gmra.mrb[252].mxu0 %v4905_v30  ;;  %v4747_v23 = vmax.f32 %v4397_v61, 0.0 }
 0x6e1   :  { %v4403_v16 = vadd.f32 %v4402_v62, %v9373_v32  ;;  %v4748_v8 = vmax.f32 %v4399_v58, 0.0 }
 0x6e2   :  { %v4749_v42 = vmax.f32 %v4401_v9, 0.0  ;;  %v5292_v22 = vpop.f32.mrb[156].mxu0 }
 0x6e3   :  { %v4750_v13 = vmax.f32 %v4403_v16, 0.0  ;;  %v5293_v17 = vadd.f32 %v9876_v63, %v5292_v22  ;;  %v5294_v53 = vpop.f32.mrb[157].mxu0 }
 0x6e4   :  { %v4907_v59 = vpack.c.bf16 %v4749_v42, %v4747_v23  ;;  %v5295_v43 = vpop.f32.mrb[158].mxu0 }
 0x6e5   :  { %v4908_v15 = vpack.c.bf16 %v4750_v13, %v4748_v8  ;;  %5665 = vst.msk [vmem:[%s10376_s9 + $0x170] sm:$0xff] %vm2844_vm0, %v5293_v17  ;;  %v5296_v12 = vadd.f32 %v9876_v63, %v5295_v43  ;;  %v4406_v25 = vpop.f32.mrb[4].mxu1  ;;  %v5297_v26 = vpop.f32.mrb[159].mxu0 }
 0x6e6   :  { %v4407_v1 = vadd.f32 %v4406_v25, %v9369_v38  ;;  %v4408_v39 = vpop.f32.mrb[5].mxu1 }
 0x6e7   :  { %5666 = vst.msk [vmem:[%s10376_s9 + $0x178] sm:$0xff] %vm2844_vm0, %v5296_v12  ;;  %v4409_v45 = vadd.f32 %v4408_v39, %v9373_v32  ;;  %v4410_v20 = vpop.f32.mrb[6].mxu1  ;;  %5490 = vmatprep.mubr.bf16.mxu0 %v4908_v15 }
 0x6e8   :  { %v4411_v19 = vadd.f32 %v4410_v20, %v9369_v38  ;;  %v4412_v31 = vpop.f32.mrb[7].mxu1  ;;  %5491 = vmatmul.mubr.bf16.gmra.mrb[0].mxu0 %v4907_v59  ;;  %v4751_v33 = vmax.f32 %v4407_v1, 0.0 }
 0x6e9   :  { %v4413_v56 = vadd.f32 %v4412_v31, %v9373_v32  ;;  %v4752_v54 = vmax.f32 %v4409_v45, 0.0 }
 0x6ea   :  { %v4753_v24 = vmax.f32 %v4411_v19, 0.0  ;;  %v5300_v41 = vpop.f32.mrb[160].mxu0 }
 0x6eb   :  { %v4754_v34 = vmax.f32 %v4413_v56, 0.0  ;;  %v5301_v0 = vadd.f32 %v9876_v63, %v5300_v41  ;;  %v5302_v44 = vpop.f32.mrb[161].mxu0 }
 0x6ec   :  { %v4909_v49 = vpack.c.bf16 %v4753_v24, %v4751_v33  ;;  %v5303_v11 = vpop.f32.mrb[162].mxu0 }
 0x6ed   :  { %v4910_v47 = vpack.c.bf16 %v4754_v34, %v4752_v54  ;;  %5667 = vst.msk [vmem:[%s10376_s9 + $0x180] sm:$0xff] %vm2844_vm0, %v5301_v0  ;;  %v5304_v4 = vadd.f32 %v9876_v63, %v5303_v11  ;;  %v4416_v10 = vpop.f32.mrb[8].mxu1  ;;  %v5305_v28 = vpop.f32.mrb[163].mxu0 }
 0x6ee   :  { %v4417_v3 = vadd.f32 %v4416_v10, %v9369_v38  ;;  %v4418_v50 = vpop.f32.mrb[9].mxu1 }
 0x6ef   :  { %5668 = vst.msk [vmem:[%s10376_s9 + $0x188] sm:$0xff] %vm2844_vm0, %v5304_v4  ;;  %v4419_v35 = vadd.f32 %v4418_v50, %v9373_v32  ;;  %v4420_v48 = vpop.f32.mrb[10].mxu1  ;;  %5498 = vmatprep.mubr.bf16.mxu0 %v4910_v47 }
 0x6f0   :  { %v4421_v51 = vadd.f32 %v4420_v48, %v9369_v38  ;;  %v4422_v27 = vpop.f32.mrb[11].mxu1  ;;  %5499 = vmatmul.mubr.bf16.gmra.mrb[4].mxu0 %v4909_v49  ;;  %v4755_v36 = vmax.f32 %v4417_v3, 0.0 }
 0x6f1   :  { %v4423_v40 = vadd.f32 %v4422_v27, %v9373_v32  ;;  %v4756_v29 = vmax.f32 %v4419_v35, 0.0 }
 0x6f2   :  { %v4757_v37 = vmax.f32 %v4421_v51, 0.0  ;;  %v5308_v18 = vpop.f32.mrb[164].mxu0 }
 0x6f3   :  { %v4758_v14 = vmax.f32 %v4423_v40, 0.0  ;;  %v5309_v55 = vadd.f32 %v9876_v63, %v5308_v18  ;;  %v5310_v21 = vpop.f32.mrb[165].mxu0 }
 0x6f4   :  { %v4911_v57 = vpack.c.bf16 %v4757_v37, %v4755_v36  ;;  %v5311_v30 = vpop.f32.mrb[166].mxu0 }
 0x6f5   :  { %v4912_v46 = vpack.c.bf16 %v4758_v14, %v4756_v29  ;;  %5669 = vst.msk [vmem:[%s10376_s9 + $0x190] sm:$0xff] %vm2844_vm0, %v5309_v55  ;;  %v5312_v7 = vadd.f32 %v9876_v63, %v5311_v30  ;;  %v4426_v52 = vpop.f32.mrb[12].mxu1  ;;  %v5313_v6 = vpop.f32.mrb[167].mxu0 }
 0x6f6   :  { %v4427_v60 = vadd.f32 %v4426_v52, %v9369_v38  ;;  %v4428_v61 = vpop.f32.mrb[13].mxu1 }
 0x6f7   :  { %5670 = vst.msk [vmem:[%s10376_s9 + $0x198] sm:$0xff] %vm2844_vm0, %v5312_v7  ;;  %v4429_v2 = vadd.f32 %v4428_v61, %v9373_v32  ;;  %v4430_v58 = vpop.f32.mrb[14].mxu1  ;;  %5506 = vmatprep.mubr.bf16.mxu0 %v4912_v46 }
 0x6f8   :  { %v4431_v5 = vadd.f32 %v4430_v58, %v9369_v38  ;;  %v4432_v9 = vpop.f32.mrb[15].mxu1  ;;  %5507 = vmatmul.mubr.bf16.gmra.mrb[8].mxu0 %v4911_v57  ;;  %v4759_v16 = vmax.f32 %v4427_v60, 0.0 }
 0x6f9   :  { %v4433_v62 = vadd.f32 %v4432_v9, %v9373_v32  ;;  %v4760_v22 = vmax.f32 %v4429_v2, 0.0 }
 0x6fa   :  { %v4761_v23 = vmax.f32 %v4431_v5, 0.0  ;;  %v5316_v42 = vpop.f32.mrb[168].mxu0 }
 0x6fb   :  { %v4762_v8 = vmax.f32 %v4433_v62, 0.0  ;;  %v5317_v13 = vadd.f32 %v9876_v63, %v5316_v42  ;;  %v5318_v17 = vpop.f32.mrb[169].mxu0 }
 0x6fc   :  { %v4913_v53 = vpack.c.bf16 %v4761_v23, %v4759_v16  ;;  %v5319_v59 = vpop.f32.mrb[170].mxu0 }
 0x6fd   :  { %v4914_v43 = vpack.c.bf16 %v4762_v8, %v4760_v22  ;;  %5671 = vst.msk [vmem:[%s10376_s9 + $0x1a0] sm:$0xff] %vm2844_vm0, %v5317_v13  ;;  %v5320_v15 = vadd.f32 %v9876_v63, %v5319_v59  ;;  %v4436_v12 = vpop.f32.mrb[16].mxu1  ;;  %v5321_v25 = vpop.f32.mrb[171].mxu0 }
 0x6fe   :  { %v4437_v26 = vadd.f32 %v4436_v12, %v9369_v38  ;;  %v4438_v1 = vpop.f32.mrb[17].mxu1 }
 0x6ff   :  { %5672 = vst.msk [vmem:[%s10376_s9 + $0x1a8] sm:$0xff] %vm2844_vm0, %v5320_v15  ;;  %v4439_v39 = vadd.f32 %v4438_v1, %v9373_v32  ;;  %v4440_v45 = vpop.f32.mrb[18].mxu1  ;;  %5514 = vmatprep.mubr.bf16.mxu0 %v4914_v43 }
 0x700   :  { %v4441_v20 = vadd.f32 %v4440_v45, %v9369_v38  ;;  %v4442_v19 = vpop.f32.mrb[19].mxu1  ;;  %5515 = vmatmul.mubr.bf16.gmra.mrb[12].mxu0 %v4913_v53  ;;  %v4763_v56 = vmax.f32 %v4437_v26, 0.0 }
 0x701   :  { %v4443_v31 = vadd.f32 %v4442_v19, %v9373_v32  ;;  %v4764_v41 = vmax.f32 %v4439_v39, 0.0 }
 0x702   :  { %v4765_v33 = vmax.f32 %v4441_v20, 0.0  ;;  %v5324_v24 = vpop.f32.mrb[172].mxu0 }
 0x703   :  { %v4766_v54 = vmax.f32 %v4443_v31, 0.0  ;;  %v5325_v34 = vadd.f32 %v9876_v63, %v5324_v24  ;;  %v5326_v0 = vpop.f32.mrb[173].mxu0 }
 0x704   :  { %v4915_v44 = vpack.c.bf16 %v4765_v33, %v4763_v56  ;;  %v5327_v49 = vpop.f32.mrb[174].mxu0 }
 0x705   :  { %v4916_v11 = vpack.c.bf16 %v4766_v54, %v4764_v41  ;;  %5673 = vst.msk [vmem:[%s10376_s9 + $0x1b0] sm:$0xff] %vm2844_vm0, %v5325_v34  ;;  %v5328_v47 = vadd.f32 %v9876_v63, %v5327_v49  ;;  %v4446_v4 = vpop.f32.mrb[20].mxu1  ;;  %v5329_v10 = vpop.f32.mrb[175].mxu0 }
 0x706   :  { %v4447_v28 = vadd.f32 %v4446_v4, %v9369_v38  ;;  %v4448_v3 = vpop.f32.mrb[21].mxu1 }
 0x707   :  { %5674 = vst.msk [vmem:[%s10376_s9 + $0x1b8] sm:$0xff] %vm2844_vm0, %v5328_v47  ;;  %v4449_v50 = vadd.f32 %v4448_v3, %v9373_v32  ;;  %v4450_v35 = vpop.f32.mrb[22].mxu1  ;;  %5522 = vmatprep.mubr.bf16.mxu0 %v4916_v11 }
 0x708   :  { %v4451_v48 = vadd.f32 %v4450_v35, %v9369_v38  ;;  %v4452_v51 = vpop.f32.mrb[23].mxu1  ;;  %5523 = vmatmul.mubr.bf16.gmra.mrb[16].mxu0 %v4915_v44  ;;  %v4767_v40 = vmax.f32 %v4447_v28, 0.0 }
 0x709   :  { %v4453_v27 = vadd.f32 %v4452_v51, %v9373_v32  ;;  %v4768_v37 = vmax.f32 %v4449_v50, 0.0 }
 0x70a   :  { %v4769_v36 = vmax.f32 %v4451_v48, 0.0 }
 0x70b   :  { %v4770_v18 = vmax.f32 %v4453_v27, 0.0 }
 0x70c   :  { %v4917_v29 = vpack.c.bf16 %v4769_v36, %v4767_v40 }
 0x70d   :  { %v4918_v14 = vpack.c.bf16 %v4770_v18, %v4768_v37  ;;  %v4456_v55 = vpop.f32.mrb[24].mxu1 }
 0x70e   :  { %v4457_v21 = vadd.f32 %v4456_v55, %v9369_v38  ;;  %v4458_v57 = vpop.f32.mrb[25].mxu1 }
 0x70f   :  { %v4459_v30 = vadd.f32 %v4458_v57, %v9373_v32  ;;  %v4460_v46 = vpop.f32.mrb[26].mxu1  ;;  %5530 = vmatprep.mubr.bf16.mxu0 %v4918_v14 }
 0x710   :  { %v4461_v7 = vadd.f32 %v4460_v46, %v9369_v38  ;;  %v4462_v52 = vpop.f32.mrb[27].mxu1  ;;  %5531 = vmatmul.mubr.bf16.gmra.mrb[20].mxu0 %v4917_v29  ;;  %v4771_v60 = vmax.f32 %v4457_v21, 0.0 }
 0x711   :  { %v4463_v6 = vadd.f32 %v4462_v52, %v9373_v32  ;;  %v4772_v2 = vmax.f32 %v4459_v30, 0.0 }
 0x712   :  { %v4773_v61 = vmax.f32 %v4461_v7, 0.0 }
 0x713   :  { %v4774_v58 = vmax.f32 %v4463_v6, 0.0 }
 0x714   :  { %v4919_v5 = vpack.c.bf16 %v4773_v61, %v4771_v60 }
 0x715   :  { %v4920_v9 = vpack.c.bf16 %v4774_v58, %v4772_v2  ;;  %v4466_v62 = vpop.f32.mrb[28].mxu1  ;;  %v5332_v16 = vpop.f32.mrb[176].mxu0 }
 0x716   :  { %v4467_v23 = vadd.f32 %v4466_v62, %v9369_v38  ;;  %v5333_v42 = vadd.f32 %v9876_v63, %v5332_v16  ;;  %v4468_v22 = vpop.f32.mrb[29].mxu1  ;;  %v5334_v8 = vpop.f32.mrb[177].mxu0 }
 0x717   :  { %v4469_v13 = vadd.f32 %v4468_v22, %v9373_v32  ;;  %v4470_v17 = vpop.f32.mrb[30].mxu1  ;;  %v5335_v53 = vpop.f32.mrb[178].mxu0  ;;  %5538 = vmatprep.mubr.bf16.mxu0 %v4920_v9 }
 0x718   :  { %5675 = vst.msk [vmem:[%s10376_s9 + $0x1c0] sm:$0xff] %vm2844_vm0, %v5333_v42  ;;  %v4471_v59 = vadd.f32 %v4470_v17, %v9369_v38  ;;  %v5336_v43 = vadd.f32 %v9876_v63, %v5335_v53  ;;  %v4472_v15 = vpop.f32.mrb[31].mxu1  ;;  %v5337_v12 = vpop.f32.mrb[179].mxu0  ;;  %5539 = vmatmul.mubr.bf16.gmra.mrb[24].mxu0 %v4919_v5  ;;  %v4775_v26 = vmax.f32 %v4467_v23, 0.0 }
 0x719   :  { %v4473_v25 = vadd.f32 %v4472_v15, %v9373_v32  ;;  %v4776_v39 = vmax.f32 %v4469_v13, 0.0 }
 0x71a   :  { %v4777_v1 = vmax.f32 %v4471_v59, 0.0  ;;  %5676 = vst.msk [vmem:[%s10376_s9 + $0x1c8] sm:$0xff] %vm2844_vm0, %v5336_v43 }
 0x71b   :  { %v4778_v45 = vmax.f32 %v4473_v25, 0.0 }
 0x71c   :  { %v4921_v20 = vpack.c.bf16 %v4777_v1, %v4775_v26 }
 0x71d   :  { %v4922_v19 = vpack.c.bf16 %v4778_v45, %v4776_v39  ;;  %v4476_v31 = vpop.f32.mrb[32].mxu1  ;;  %v5340_v56 = vpop.f32.mrb[180].mxu0 }
 0x71e   :  { %v4477_v33 = vadd.f32 %v4476_v31, %v9369_v38  ;;  %v5341_v24 = vadd.f32 %v9876_v63, %v5340_v56  ;;  %v4478_v41 = vpop.f32.mrb[33].mxu1  ;;  %v5342_v54 = vpop.f32.mrb[181].mxu0 }
 0x71f   :  { %v4479_v34 = vadd.f32 %v4478_v41, %v9373_v32  ;;  %v4480_v0 = vpop.f32.mrb[34].mxu1  ;;  %v5343_v44 = vpop.f32.mrb[182].mxu0  ;;  %5546 = vmatprep.mubr.bf16.mxu0 %v4922_v19 }
 0x720   :  { %5677 = vst.msk [vmem:[%s10376_s9 + $0x1d0] sm:$0xff] %vm2844_vm0, %v5341_v24  ;;  %v4481_v49 = vadd.f32 %v4480_v0, %v9369_v38  ;;  %v5344_v11 = vadd.f32 %v9876_v63, %v5343_v44  ;;  %v4482_v47 = vpop.f32.mrb[35].mxu1  ;;  %v5345_v4 = vpop.f32.mrb[183].mxu0  ;;  %5547 = vmatmul.mubr.bf16.gmra.mrb[28].mxu0 %v4921_v20  ;;  %v4779_v28 = vmax.f32 %v4477_v33, 0.0 }
 0x721   :  { %v4483_v10 = vadd.f32 %v4482_v47, %v9373_v32  ;;  %v4780_v50 = vmax.f32 %v4479_v34, 0.0 }
 0x722   :  { %v4781_v3 = vmax.f32 %v4481_v49, 0.0  ;;  %5678 = vst.msk [vmem:[%s10376_s9 + $0x1d8] sm:$0xff] %vm2844_vm0, %v5344_v11 }
 0x723   :  { %v4782_v35 = vmax.f32 %v4483_v10, 0.0 }
 0x724   :  { %v4923_v48 = vpack.c.bf16 %v4781_v3, %v4779_v28 }
 0x725   :  { %v4924_v51 = vpack.c.bf16 %v4782_v35, %v4780_v50  ;;  %v4486_v27 = vpop.f32.mrb[36].mxu1 }
 0x726   :  { %v4487_v40 = vadd.f32 %v4486_v27, %v9369_v38  ;;  %v4488_v36 = vpop.f32.mrb[37].mxu1 }
 0x727   :  { %v4489_v37 = vadd.f32 %v4488_v36, %v9373_v32  ;;  %v4490_v18 = vpop.f32.mrb[38].mxu1  ;;  %5554 = vmatprep.mubr.bf16.mxu0 %v4924_v51 }
 0x728   :  { %v4491_v29 = vadd.f32 %v4490_v18, %v9369_v38  ;;  %v4492_v14 = vpop.f32.mrb[39].mxu1  ;;  %5555 = vmatmul.mubr.bf16.gmra.mrb[32].mxu0 %v4923_v48  ;;  %v4783_v21 = vmax.f32 %v4487_v40, 0.0 }
 0x729   :  { %v4493_v55 = vadd.f32 %v4492_v14, %v9373_v32  ;;  %v4784_v30 = vmax.f32 %v4489_v37, 0.0 }
 0x72a   :  { %v4785_v57 = vmax.f32 %v4491_v29, 0.0 }
 0x72b   :  { %v4786_v46 = vmax.f32 %v4493_v55, 0.0  ;;  %v5348_v7 = vpop.f32.mrb[184].mxu0 }
 0x72c   :  { %v4925_v52 = vpack.c.bf16 %v4785_v57, %v4783_v21  ;;  %v5349_v6 = vadd.f32 %v9876_v63, %v5348_v7  ;;  %v5350_v60 = vpop.f32.mrb[185].mxu0 }
 0x72d   :  { %v4926_v61 = vpack.c.bf16 %v4786_v46, %v4784_v30  ;;  %v4496_v2 = vpop.f32.mrb[40].mxu1  ;;  %v5351_v58 = vpop.f32.mrb[186].mxu0 }
 0x72e   :  { %5679 = vst.msk [vmem:[%s10376_s9 + $0x1e0] sm:$0xff] %vm2844_vm0, %v5349_v6  ;;  %v4497_v5 = vadd.f32 %v4496_v2, %v9369_v38  ;;  %v5352_v9 = vadd.f32 %v9876_v63, %v5351_v58  ;;  %v4498_v62 = vpop.f32.mrb[41].mxu1  ;;  %v5353_v16 = vpop.f32.mrb[187].mxu0 }
 0x72f   :  { %v4499_v23 = vadd.f32 %v4498_v62, %v9373_v32  ;;  %v4500_v42 = vpop.f32.mrb[42].mxu1  ;;  %5562 = vmatprep.mubr.bf16.mxu0 %v4926_v61 }
 0x730   :  { %5680 = vst.msk [vmem:[%s10376_s9 + $0x1e8] sm:$0xff] %vm2844_vm0, %v5352_v9  ;;  %v4501_v22 = vadd.f32 %v4500_v42, %v9369_v38  ;;  %v4502_v8 = vpop.f32.mrb[43].mxu1  ;;  %5563 = vmatmul.mubr.bf16.gmra.mrb[36].mxu0 %v4925_v52  ;;  %v4787_v17 = vmax.f32 %v4497_v5, 0.0 }
 0x731   :  { %v4503_v13 = vadd.f32 %v4502_v8, %v9373_v32  ;;  %v4788_v59 = vmax.f32 %v4499_v23, 0.0 }
 0x732   :  { %v4789_v53 = vmax.f32 %v4501_v22, 0.0 }
 0x733   :  { %v4790_v43 = vmax.f32 %v4503_v13, 0.0  ;;  %v5356_v15 = vpop.f32.mrb[188].mxu0 }
 0x734   :  { %v4927_v12 = vpack.c.bf16 %v4789_v53, %v4787_v17  ;;  %v5357_v25 = vadd.f32 %v9876_v63, %v5356_v15  ;;  %v5358_v26 = vpop.f32.mrb[189].mxu0 }
 0x735   :  { %v4928_v1 = vpack.c.bf16 %v4790_v43, %v4788_v59  ;;  %v4506_v39 = vpop.f32.mrb[44].mxu1  ;;  %v5359_v45 = vpop.f32.mrb[190].mxu0 }
 0x736   :  { %5681 = vst.msk [vmem:[%s10376_s9 + $0x1f0] sm:$0xff] %vm2844_vm0, %v5357_v25  ;;  %v4507_v20 = vadd.f32 %v4506_v39, %v9369_v38  ;;  %v5360_v19 = vadd.f32 %v9876_v63, %v5359_v45  ;;  %v4508_v31 = vpop.f32.mrb[45].mxu1  ;;  %v5361_v56 = vpop.f32.mrb[191].mxu0 }
 0x737   :  { %v4509_v33 = vadd.f32 %v4508_v31, %v9373_v32  ;;  %v4510_v24 = vpop.f32.mrb[46].mxu1  ;;  %5570 = vmatprep.mubr.bf16.mxu0 %v4928_v1 }
 0x738   :  { %5682 = vst.msk [vmem:[%s10376_s9 + $0x1f8] sm:$0xff] %vm2844_vm0, %v5360_v19  ;;  %v4511_v41 = vadd.f32 %v4510_v24, %v9369_v38  ;;  %v4512_v54 = vpop.f32.mrb[47].mxu1  ;;  %5571 = vmatmul.mubr.bf16.gmra.mrb[40].mxu0 %v4927_v12  ;;  %v4791_v0 = vmax.f32 %v4507_v20, 0.0 }
 0x739   :  { %v4513_v34 = vadd.f32 %v4512_v54, %v9373_v32  ;;  %v4792_v49 = vmax.f32 %v4509_v33, 0.0 }
 0x73a   :  { %v4793_v44 = vmax.f32 %v4511_v41, 0.0 }
 0x73b   :  { %v4794_v11 = vmax.f32 %v4513_v34, 0.0  ;;  %v5364_v47 = vpop.f32.mrb[192].mxu0 }
 0x73c   :  { %v4929_v4 = vpack.c.bf16 %v4793_v44, %v4791_v0  ;;  %v5365_v10 = vadd.f32 %v9876_v63, %v5364_v47  ;;  %v5366_v28 = vpop.f32.mrb[193].mxu0 }
 0x73d   :  { %v4930_v3 = vpack.c.bf16 %v4794_v11, %v4792_v49  ;;  %v4516_v50 = vpop.f32.mrb[48].mxu1  ;;  %v5367_v35 = vpop.f32.mrb[194].mxu0 }
 0x73e   :  { %5683 = vst.msk [vmem:[%s10376_s9 + $0x200] sm:$0xff] %vm2844_vm0, %v5365_v10  ;;  %v4517_v48 = vadd.f32 %v4516_v50, %v9369_v38  ;;  %v5368_v51 = vadd.f32 %v9876_v63, %v5367_v35  ;;  %v4518_v27 = vpop.f32.mrb[49].mxu1  ;;  %v5369_v40 = vpop.f32.mrb[195].mxu0 }
 0x73f   :  { %v4519_v36 = vadd.f32 %v4518_v27, %v9373_v32  ;;  %v4520_v37 = vpop.f32.mrb[50].mxu1  ;;  %5578 = vmatprep.mubr.bf16.mxu0 %v4930_v3 }
 0x740   :  { %5684 = vst.msk [vmem:[%s10376_s9 + $0x208] sm:$0xff] %vm2844_vm0, %v5368_v51  ;;  %v4521_v18 = vadd.f32 %v4520_v37, %v9369_v38  ;;  %v4522_v29 = vpop.f32.mrb[51].mxu1  ;;  %5579 = vmatmul.mubr.bf16.gmra.mrb[44].mxu0 %v4929_v4  ;;  %v4795_v55 = vmax.f32 %v4517_v48, 0.0 }
 0x741   :  { %v4523_v14 = vadd.f32 %v4522_v29, %v9373_v32  ;;  %v4796_v57 = vmax.f32 %v4519_v36, 0.0 }
 0x742   :  { %v4797_v21 = vmax.f32 %v4521_v18, 0.0 }
 0x743   :  { %v4798_v30 = vmax.f32 %v4523_v14, 0.0  ;;  %v5372_v46 = vpop.f32.mrb[196].mxu0 }
 0x744   :  { %v4931_v7 = vpack.c.bf16 %v4797_v21, %v4795_v55  ;;  %v5373_v52 = vadd.f32 %v9876_v63, %v5372_v46  ;;  %v5374_v6 = vpop.f32.mrb[197].mxu0 }
 0x745   :  { %v4932_v60 = vpack.c.bf16 %v4798_v30, %v4796_v57  ;;  %v4526_v61 = vpop.f32.mrb[52].mxu1  ;;  %v5375_v2 = vpop.f32.mrb[198].mxu0 }
 0x746   :  { %5685 = vst.msk [vmem:[%s10376_s9 + $0x210] sm:$0xff] %vm2844_vm0, %v5373_v52  ;;  %v4527_v58 = vadd.f32 %v4526_v61, %v9369_v38  ;;  %v5376_v5 = vadd.f32 %v9876_v63, %v5375_v2  ;;  %v4528_v9 = vpop.f32.mrb[53].mxu1  ;;  %v5377_v62 = vpop.f32.mrb[199].mxu0 }
 0x747   :  { %v4529_v16 = vadd.f32 %v4528_v9, %v9373_v32  ;;  %v4530_v23 = vpop.f32.mrb[54].mxu1  ;;  %5586 = vmatprep.mubr.bf16.mxu0 %v4932_v60 }
 0x748   :  { %5686 = vst.msk [vmem:[%s10376_s9 + $0x218] sm:$0xff] %vm2844_vm0, %v5376_v5  ;;  %v4531_v42 = vadd.f32 %v4530_v23, %v9369_v38  ;;  %v4532_v22 = vpop.f32.mrb[55].mxu1  ;;  %5587 = vmatmul.mubr.bf16.gmra.mrb[48].mxu0 %v4931_v7  ;;  %v4799_v13 = vmax.f32 %v4527_v58, 0.0 }
 0x749   :  { %v4533_v8 = vadd.f32 %v4532_v22, %v9373_v32  ;;  %v4800_v53 = vmax.f32 %v4529_v16, 0.0 }
 0x74a   :  { %v4801_v17 = vmax.f32 %v4531_v42, 0.0 }
 0x74b   :  { %v4802_v59 = vmax.f32 %v4533_v8, 0.0  ;;  %v5380_v43 = vpop.f32.mrb[200].mxu0 }
 0x74c   :  { %v4933_v15 = vpack.c.bf16 %v4801_v17, %v4799_v13  ;;  %v5381_v12 = vadd.f32 %v9876_v63, %v5380_v43  ;;  %v5382_v25 = vpop.f32.mrb[201].mxu0 }
 0x74d   :  { %v4934_v26 = vpack.c.bf16 %v4802_v59, %v4800_v53  ;;  %v4536_v1 = vpop.f32.mrb[56].mxu1  ;;  %v5383_v39 = vpop.f32.mrb[202].mxu0 }
 0x74e   :  { %5687 = vst.msk [vmem:[%s10376_s9 + $0x220] sm:$0xff] %vm2844_vm0, %v5381_v12  ;;  %v4537_v45 = vadd.f32 %v4536_v1, %v9369_v38  ;;  %v5384_v20 = vadd.f32 %v9876_v63, %v5383_v39  ;;  %v4538_v19 = vpop.f32.mrb[57].mxu1  ;;  %v5385_v31 = vpop.f32.mrb[203].mxu0 }
 0x74f   :  { %v4539_v56 = vadd.f32 %v4538_v19, %v9373_v32  ;;  %v4540_v33 = vpop.f32.mrb[58].mxu1  ;;  %5594 = vmatprep.mubr.bf16.mxu0 %v4934_v26 }
 0x750   :  { %5688 = vst.msk [vmem:[%s10376_s9 + $0x228] sm:$0xff] %vm2844_vm0, %v5384_v20  ;;  %v4541_v24 = vadd.f32 %v4540_v33, %v9369_v38  ;;  %v4542_v41 = vpop.f32.mrb[59].mxu1  ;;  %5595 = vmatmul.mubr.bf16.gmra.mrb[52].mxu0 %v4933_v15  ;;  %v4803_v34 = vmax.f32 %v4537_v45, 0.0 }
 0x751   :  { %v4543_v54 = vadd.f32 %v4542_v41, %v9373_v32  ;;  %v4804_v44 = vmax.f32 %v4539_v56, 0.0 }
 0x752   :  { %v4805_v0 = vmax.f32 %v4541_v24, 0.0 }
 0x753   :  { %v4806_v49 = vmax.f32 %v4543_v54, 0.0  ;;  %v5388_v11 = vpop.f32.mrb[204].mxu0 }
 0x754   :  { %v4935_v47 = vpack.c.bf16 %v4805_v0, %v4803_v34  ;;  %v5389_v4 = vadd.f32 %v9876_v63, %v5388_v11  ;;  %v5390_v10 = vpop.f32.mrb[205].mxu0 }
 0x755   :  { %v4936_v28 = vpack.c.bf16 %v4806_v49, %v4804_v44  ;;  %v4546_v3 = vpop.f32.mrb[60].mxu1  ;;  %v5391_v50 = vpop.f32.mrb[206].mxu0 }
 0x756   :  { %5689 = vst.msk [vmem:[%s10376_s9 + $0x230] sm:$0xff] %vm2844_vm0, %v5389_v4  ;;  %v4547_v35 = vadd.f32 %v4546_v3, %v9369_v38  ;;  %v5392_v48 = vadd.f32 %v9876_v63, %v5391_v50  ;;  %v4548_v51 = vpop.f32.mrb[61].mxu1  ;;  %v5393_v27 = vpop.f32.mrb[207].mxu0 }
 0x757   :  { %v4549_v40 = vadd.f32 %v4548_v51, %v9373_v32  ;;  %v4550_v36 = vpop.f32.mrb[62].mxu1  ;;  %5602 = vmatprep.mubr.bf16.mxu0 %v4936_v28 }
 0x758   :  { %5690 = vst.msk [vmem:[%s10376_s9 + $0x238] sm:$0xff] %vm2844_vm0, %v5392_v48  ;;  %v4551_v37 = vadd.f32 %v4550_v36, %v9369_v38  ;;  %v4552_v18 = vpop.f32.mrb[63].mxu1  ;;  %5603 = vmatmul.mubr.bf16.gmra.mrb[56].mxu0 %v4935_v47  ;;  %v4807_v14 = vmax.f32 %v4547_v35, 0.0 }
 0x759   :  { %v4553_v29 = vadd.f32 %v4552_v18, %v9373_v32  ;;  %v4808_v21 = vmax.f32 %v4549_v40, 0.0 }
 0x75a   :  { %v4809_v55 = vmax.f32 %v4551_v37, 0.0 }
 0x75b   :  { %v4810_v57 = vmax.f32 %v4553_v29, 0.0  ;;  %v5396_v30 = vpop.f32.mrb[208].mxu0 }
 0x75c   :  { %v4937_v46 = vpack.c.bf16 %v4809_v55, %v4807_v14  ;;  %v5397_v7 = vadd.f32 %v9876_v63, %v5396_v30  ;;  %v5398_v52 = vpop.f32.mrb[209].mxu0 }
 0x75d   :  { %v4938_v6 = vpack.c.bf16 %v4810_v57, %v4808_v21  ;;  %v5399_v60 = vpop.f32.mrb[210].mxu0 }
 0x75e   :  { %5691 = vst.msk [vmem:[%s10376_s9 + $0x240] sm:$0xff] %vm2844_vm0, %v5397_v7  ;;  %v5400_v38 = vadd.f32 %v9876_v63, %v5399_v60  ;;  %v5401_v61 = vpop.f32.mrb[211].mxu0 }
 0x75f   :  { %5610 = vmatprep.mubr.bf16.mxu0 %v4938_v6 }
 0x760   :  { %5692 = vst.msk [vmem:[%s10376_s9 + $0x248] sm:$0xff] %vm2844_vm0, %v5400_v38  ;;  %5611 = vmatmul.mubr.bf16.gmra.mrb[60].mxu0 %v4937_v46 }
 0x763   :  { %v5404_v32 = vpop.f32.mrb[212].mxu0 }
 0x764   :  { %v5405_v2 = vadd.f32 %v9876_v63, %v5404_v32  ;;  %v5406_v58 = vpop.f32.mrb[213].mxu0 }
 0x765   :  { %v5407_v5 = vpop.f32.mrb[214].mxu0 }
 0x766   :  { %5693 = vst.msk [vmem:[%s10376_s9 + $0x250] sm:$0xff] %vm2844_vm0, %v5405_v2  ;;  %v5408_v9 = vadd.f32 %v9876_v63, %v5407_v5  ;;  %v5409_v62 = vpop.f32.mrb[215].mxu0 }
 0x768   :  { %5694 = vst.msk [vmem:[%s10376_s9 + $0x258] sm:$0xff] %vm2844_vm0, %v5408_v9 }
 0x76b   :  { %v5412_v16 = vpop.f32.mrb[216].mxu0 }
 0x76c   :  { %v5413_v23 = vadd.f32 %v9876_v63, %v5412_v16  ;;  %v5414_v42 = vpop.f32.mrb[217].mxu0 }
 0x76d   :  { %v5415_v22 = vpop.f32.mrb[218].mxu0 }
 0x76e   :  { %5695 = vst.msk [vmem:[%s10376_s9 + $0x260] sm:$0xff] %vm2844_vm0, %v5413_v23  ;;  %v5416_v8 = vadd.f32 %v9876_v63, %v5415_v22  ;;  %v5417_v13 = vpop.f32.mrb[219].mxu0 }
 0x770   :  { %5696 = vst.msk [vmem:[%s10376_s9 + $0x268] sm:$0xff] %vm2844_vm0, %v5416_v8 }
 0x773   :  { %v5420_v17 = vpop.f32.mrb[220].mxu0 }
 0x774   :  { %v5421_v53 = vadd.f32 %v9876_v63, %v5420_v17  ;;  %v5422_v59 = vpop.f32.mrb[221].mxu0 }
 0x775   :  { %v5423_v43 = vpop.f32.mrb[222].mxu0 }
 0x776   :  { %5697 = vst.msk [vmem:[%s10376_s9 + $0x270] sm:$0xff] %vm2844_vm0, %v5421_v53  ;;  %v5424_v15 = vadd.f32 %v9876_v63, %v5423_v43  ;;  %v5425_v12 = vpop.f32.mrb[223].mxu0 }
 0x778   :  { %5698 = vst.msk [vmem:[%s10376_s9 + $0x278] sm:$0xff] %vm2844_vm0, %v5424_v15 }
 0x77b   :  { %v5428_v25 = vpop.f32.mrb[224].mxu0 }
 0x77c   :  { %v5429_v26 = vadd.f32 %v9876_v63, %v5428_v25  ;;  %v5430_v1 = vpop.f32.mrb[225].mxu0 }
 0x77d   :  { %v5431_v39 = vpop.f32.mrb[226].mxu0 }
 0x77e   :  { %5699 = vst.msk [vmem:[%s10376_s9 + $0x280] sm:$0xff] %vm2844_vm0, %v5429_v26  ;;  %v5432_v45 = vadd.f32 %v9876_v63, %v5431_v39  ;;  %v5433_v20 = vpop.f32.mrb[227].mxu0 }
 0x780   :  { %5700 = vst.msk [vmem:[%s10376_s9 + $0x288] sm:$0xff] %vm2844_vm0, %v5432_v45 }
 0x783   :  { %v5436_v19 = vpop.f32.mrb[228].mxu0 }
 0x784   :  { %v5437_v31 = vadd.f32 %v9876_v63, %v5436_v19  ;;  %v5438_v56 = vpop.f32.mrb[229].mxu0 }
 0x785   :  { %v5439_v33 = vpop.f32.mrb[230].mxu0 }
 0x786   :  { %5701 = vst.msk [vmem:[%s10376_s9 + $0x290] sm:$0xff] %vm2844_vm0, %v5437_v31  ;;  %v5440_v24 = vadd.f32 %v9876_v63, %v5439_v33  ;;  %v5441_v41 = vpop.f32.mrb[231].mxu0 }
 0x788   :  { %5702 = vst.msk [vmem:[%s10376_s9 + $0x298] sm:$0xff] %vm2844_vm0, %v5440_v24 }
 0x78b   :  { %v5444_v54 = vpop.f32.mrb[232].mxu0 }
 0x78c   :  { %v5445_v34 = vadd.f32 %v9876_v63, %v5444_v54  ;;  %v5446_v0 = vpop.f32.mrb[233].mxu0 }
 0x78d   :  { %v5447_v44 = vpop.f32.mrb[234].mxu0 }
 0x78e   :  { %5703 = vst.msk [vmem:[%s10376_s9 + $0x2a0] sm:$0xff] %vm2844_vm0, %v5445_v34  ;;  %v5448_v49 = vadd.f32 %v9876_v63, %v5447_v44  ;;  %v5449_v11 = vpop.f32.mrb[235].mxu0 }
 0x790   :  { %5704 = vst.msk [vmem:[%s10376_s9 + $0x2a8] sm:$0xff] %vm2844_vm0, %v5448_v49 }
 0x793   :  { %v5452_v47 = vpop.f32.mrb[236].mxu0 }
 0x794   :  { %v5453_v4 = vadd.f32 %v9876_v63, %v5452_v47  ;;  %v5454_v10 = vpop.f32.mrb[237].mxu0 }
 0x795   :  { %v5455_v28 = vpop.f32.mrb[238].mxu0 }
 0x796   :  { %5705 = vst.msk [vmem:[%s10376_s9 + $0x2b0] sm:$0xff] %vm2844_vm0, %v5453_v4  ;;  %v5456_v3 = vadd.f32 %v9876_v63, %v5455_v28  ;;  %v5457_v50 = vpop.f32.mrb[239].mxu0  ;;  %v10260_v4 = vld [vmem:[%s10375_s8] ss:$0 sm:$0xff] }
 0x798   :  { %5706 = vst.msk [vmem:[%s10376_s9 + $0x2b8] sm:$0xff] %vm2844_vm0, %v5456_v3 }
 0x79b   :  { %v5460_v35 = vpop.f32.mrb[240].mxu0 }
 0x79c   :  { %v5461_v48 = vadd.f32 %v9876_v63, %v5460_v35  ;;  %v5462_v51 = vpop.f32.mrb[241].mxu0 }
 0x79d   :  { %v5463_v27 = vpop.f32.mrb[242].mxu0 }
 0x79e   :  { %5707 = vst.msk [vmem:[%s10376_s9 + $0x2c0] sm:$0xff] %vm2844_vm0, %v5461_v48  ;;  %v5464_v40 = vadd.f32 %v9876_v63, %v5463_v27  ;;  %v5465_v36 = vpop.f32.mrb[243].mxu0 }
 0x7a0   :  { %5708 = vst.msk [vmem:[%s10376_s9 + $0x2c8] sm:$0xff] %vm2844_vm0, %v5464_v40 }
 0x7a3   :  { %v5468_v37 = vpop.f32.mrb[244].mxu0 }
 0x7a4   :  { %v5469_v18 = vadd.f32 %v9876_v63, %v5468_v37  ;;  %v5470_v29 = vpop.f32.mrb[245].mxu0 }
 0x7a5   :  { %v5471_v14 = vpop.f32.mrb[246].mxu0 }
 0x7a6   :  { %5709 = vst.msk [vmem:[%s10376_s9 + $0x2d0] sm:$0xff] %vm2844_vm0, %v5469_v18  ;;  %v5472_v55 = vadd.f32 %v9876_v63, %v5471_v14  ;;  %v5473_v21 = vpop.f32.mrb[247].mxu0 }
 0x7a8   :  { %5710 = vst.msk [vmem:[%s10376_s9 + $0x2d8] sm:$0xff] %vm2844_vm0, %v5472_v55 }
 0x7ab   :  { %v5476_v57 = vpop.f32.mrb[248].mxu0 }
 0x7ac   :  { %v5477_v30 = vadd.f32 %v9876_v63, %v5476_v57  ;;  %v5478_v46 = vpop.f32.mrb[249].mxu0 }
 0x7ad   :  { %v5479_v7 = vpop.f32.mrb[250].mxu0 }
 0x7ae   :  { %5711 = vst.msk [vmem:[%s10376_s9 + $0x2e0] sm:$0xff] %vm2844_vm0, %v5477_v30  ;;  %v5480_v52 = vadd.f32 %v9876_v63, %v5479_v7  ;;  %v5481_v6 = vpop.f32.mrb[251].mxu0 }
 0x7b0   :  { %5712 = vst.msk [vmem:[%s10376_s9 + $0x2e8] sm:$0xff] %vm2844_vm0, %v5480_v52 }
 0x7b3   :  { %v5484_v60 = vpop.f32.mrb[252].mxu0 }
 0x7b4   :  { %v5485_v38 = vadd.f32 %v9876_v63, %v5484_v60  ;;  %v5486_v61 = vpop.f32.mrb[253].mxu0 }
 0x7b5   :  { %v5487_v32 = vpop.f32.mrb[254].mxu0 }
 0x7b6   :  { %5713 = vst.msk [vmem:[%s10376_s9 + $0x2f0] sm:$0xff] %vm2844_vm0, %v5485_v38  ;;  %v5488_v2 = vadd.f32 %v9876_v63, %v5487_v32  ;;  %v5489_v58 = vpop.f32.mrb[255].mxu0 }
 0x7b8   :  { %5714 = vst.msk [vmem:[%s10376_s9 + $0x2f8] sm:$0xff] %vm2844_vm0, %v5488_v2 }
 0x7bb   :  { %v5492_v5 = vpop.f32.mrb[0].mxu0 }
 0x7bc   :  { %v5493_v9 = vadd.f32 %v9876_v63, %v5492_v5  ;;  %v5494_v62 = vpop.f32.mrb[1].mxu0 }
 0x7bd   :  { %v5495_v16 = vpop.f32.mrb[2].mxu0 }
 0x7be   :  { %5715 = vst.msk [vmem:[%s10376_s9 + $0x300] sm:$0xff] %vm2844_vm0, %v5493_v9  ;;  %v5496_v23 = vadd.f32 %v9876_v63, %v5495_v16  ;;  %v5497_v42 = vpop.f32.mrb[3].mxu0 }
 0x7c0   :  { %5716 = vst.msk [vmem:[%s10376_s9 + $0x308] sm:$0xff] %vm2844_vm0, %v5496_v23 }
 0x7c3   :  { %v5500_v22 = vpop.f32.mrb[4].mxu0 }
 0x7c4   :  { %v5501_v8 = vadd.f32 %v9876_v63, %v5500_v22  ;;  %v5502_v13 = vpop.f32.mrb[5].mxu0 }
 0x7c5   :  { %v5503_v17 = vpop.f32.mrb[6].mxu0 }
 0x7c6   :  { %5717 = vst.msk [vmem:[%s10376_s9 + $0x310] sm:$0xff] %vm2844_vm0, %v5501_v8  ;;  %v5504_v53 = vadd.f32 %v9876_v63, %v5503_v17  ;;  %v5505_v59 = vpop.f32.mrb[7].mxu0 }
 0x7c8   :  { %5718 = vst.msk [vmem:[%s10376_s9 + $0x318] sm:$0xff] %vm2844_vm0, %v5504_v53 }
 0x7cb   :  { %v5508_v43 = vpop.f32.mrb[8].mxu0 }
 0x7cc   :  { %v5509_v15 = vadd.f32 %v9876_v63, %v5508_v43  ;;  %v5510_v12 = vpop.f32.mrb[9].mxu0 }
 0x7cd   :  { %v5511_v25 = vpop.f32.mrb[10].mxu0 }
 0x7ce   :  { %5719 = vst.msk [vmem:[%s10376_s9 + $0x320] sm:$0xff] %vm2844_vm0, %v5509_v15  ;;  %v5512_v26 = vadd.f32 %v9876_v63, %v5511_v25  ;;  %v5513_v1 = vpop.f32.mrb[11].mxu0 }
 0x7d0   :  { %5720 = vst.msk [vmem:[%s10376_s9 + $0x328] sm:$0xff] %vm2844_vm0, %v5512_v26 }
 0x7d3   :  { %v5516_v39 = vpop.f32.mrb[12].mxu0 }
 0x7d4   :  { %v5517_v45 = vadd.f32 %v9876_v63, %v5516_v39  ;;  %v5518_v20 = vpop.f32.mrb[13].mxu0 }
 0x7d5   :  { %v5519_v19 = vpop.f32.mrb[14].mxu0 }
 0x7d6   :  { %5721 = vst.msk [vmem:[%s10376_s9 + $0x330] sm:$0xff] %vm2844_vm0, %v5517_v45  ;;  %v5520_v31 = vadd.f32 %v9876_v63, %v5519_v19  ;;  %v5521_v56 = vpop.f32.mrb[15].mxu0 }
 0x7d8   :  { %5722 = vst.msk [vmem:[%s10376_s9 + $0x338] sm:$0xff] %vm2844_vm0, %v5520_v31 }
 0x7db   :  { %v5524_v33 = vpop.f32.mrb[16].mxu0 }
 0x7dc   :  { %v5525_v24 = vadd.f32 %v9876_v63, %v5524_v33  ;;  %v5526_v41 = vpop.f32.mrb[17].mxu0 }
 0x7dd   :  { %v5527_v54 = vpop.f32.mrb[18].mxu0 }
 0x7de   :  { %5723 = vst.msk [vmem:[%s10376_s9 + $0x340] sm:$0xff] %vm2844_vm0, %v5525_v24  ;;  %v5528_v34 = vadd.f32 %v9876_v63, %v5527_v54  ;;  %v5529_v0 = vpop.f32.mrb[19].mxu0 }
 0x7e0   :  { %5724 = vst.msk [vmem:[%s10376_s9 + $0x348] sm:$0xff] %vm2844_vm0, %v5528_v34 }
 0x7e3   :  { %v5532_v44 = vpop.f32.mrb[20].mxu0 }
 0x7e4   :  { %v5533_v49 = vadd.f32 %v9876_v63, %v5532_v44  ;;  %v5534_v11 = vpop.f32.mrb[21].mxu0 }
 0x7e5   :  { %v5535_v47 = vpop.f32.mrb[22].mxu0 }
 0x7e6   :  { %5725 = vst.msk [vmem:[%s10376_s9 + $0x350] sm:$0xff] %vm2844_vm0, %v5533_v49  ;;  %v5536_v10 = vadd.f32 %v10260_v4, %v5535_v47  ;;  %v5537_v28 = vpop.f32.mrb[23].mxu0 }
 0x7e8   :  { %5726 = vst.msk [vmem:[%s10376_s9 + $0x358] sm:$0xff] %vm2844_vm0, %v5536_v10 }
 0x7eb   :  { %v5540_v63 = vpop.f32.mrb[24].mxu0 }
 0x7ec   :  { %v5541_v3 = vadd.f32 %v10260_v4, %v5540_v63  ;;  %v5542_v50 = vpop.f32.mrb[25].mxu0 }
 0x7ed   :  { %v5543_v35 = vpop.f32.mrb[26].mxu0 }
 0x7ee   :  { %5727 = vst.msk [vmem:[%s10376_s9 + $0x360] sm:$0xff] %vm2844_vm0, %v5541_v3  ;;  %v5544_v48 = vadd.f32 %v10260_v4, %v5543_v35  ;;  %v5545_v51 = vpop.f32.mrb[27].mxu0 }
 0x7f0   :  { %5728 = vst.msk [vmem:[%s10376_s9 + $0x368] sm:$0xff] %vm2844_vm0, %v5544_v48 }
 0x7f3   :  { %v5548_v27 = vpop.f32.mrb[28].mxu0 }
 0x7f4   :  { %v5549_v40 = vadd.f32 %v10260_v4, %v5548_v27  ;;  %v5550_v36 = vpop.f32.mrb[29].mxu0 }
 0x7f5   :  { %v5551_v37 = vpop.f32.mrb[30].mxu0 }
 0x7f6   :  { %5729 = vst.msk [vmem:[%s10376_s9 + $0x370] sm:$0xff] %vm2844_vm0, %v5549_v40  ;;  %v5552_v18 = vadd.f32 %v10260_v4, %v5551_v37  ;;  %v5553_v29 = vpop.f32.mrb[31].mxu0 }
 0x7f8   :  { %5730 = vst.msk [vmem:[%s10376_s9 + $0x378] sm:$0xff] %vm2844_vm0, %v5552_v18 }
 0x7fb   :  { %v5556_v14 = vpop.f32.mrb[32].mxu0 }
 0x7fc   :  { %v5557_v55 = vadd.f32 %v10260_v4, %v5556_v14  ;;  %v5558_v21 = vpop.f32.mrb[33].mxu0 }
 0x7fd   :  { %v5559_v57 = vpop.f32.mrb[34].mxu0 }
 0x7fe   :  { %5731 = vst.msk [vmem:[%s10376_s9 + $0x380] sm:$0xff] %vm2844_vm0, %v5557_v55  ;;  %v5560_v30 = vadd.f32 %v10260_v4, %v5559_v57  ;;  %v5561_v46 = vpop.f32.mrb[35].mxu0 }
 0x800   :  { %5732 = vst.msk [vmem:[%s10376_s9 + $0x388] sm:$0xff] %vm2844_vm0, %v5560_v30 }
 0x803   :  { %v5564_v7 = vpop.f32.mrb[36].mxu0 }
 0x804   :  { %v5565_v52 = vadd.f32 %v10260_v4, %v5564_v7  ;;  %v5566_v6 = vpop.f32.mrb[37].mxu0 }
 0x805   :  { %v5567_v60 = vpop.f32.mrb[38].mxu0 }
 0x806   :  { %5733 = vst.msk [vmem:[%s10376_s9 + $0x390] sm:$0xff] %vm2844_vm0, %v5565_v52  ;;  %v5568_v38 = vadd.f32 %v10260_v4, %v5567_v60  ;;  %v5569_v61 = vpop.f32.mrb[39].mxu0 }
 0x808   :  { %5734 = vst.msk [vmem:[%s10376_s9 + $0x398] sm:$0xff] %vm2844_vm0, %v5568_v38 }
 0x80b   :  { %v5572_v32 = vpop.f32.mrb[40].mxu0 }
 0x80c   :  { %v5573_v2 = vadd.f32 %v10260_v4, %v5572_v32  ;;  %v5574_v58 = vpop.f32.mrb[41].mxu0 }
 0x80d   :  { %v5575_v5 = vpop.f32.mrb[42].mxu0 }
 0x80e   :  { %5735 = vst.msk [vmem:[%s10376_s9 + $0x3a0] sm:$0xff] %vm2844_vm0, %v5573_v2  ;;  %v5576_v9 = vadd.f32 %v10260_v4, %v5575_v5  ;;  %v5577_v62 = vpop.f32.mrb[43].mxu0 }
 0x810   :  { %5736 = vst.msk [vmem:[%s10376_s9 + $0x3a8] sm:$0xff] %vm2844_vm0, %v5576_v9 }
 0x813   :  { %v5580_v16 = vpop.f32.mrb[44].mxu0 }
 0x814   :  { %v5581_v23 = vadd.f32 %v10260_v4, %v5580_v16  ;;  %v5582_v42 = vpop.f32.mrb[45].mxu0 }
 0x815   :  { %v5583_v22 = vpop.f32.mrb[46].mxu0 }
 0x816   :  { %5737 = vst.msk [vmem:[%s10376_s9 + $0x3b0] sm:$0xff] %vm2844_vm0, %v5581_v23  ;;  %v5584_v8 = vadd.f32 %v10260_v4, %v5583_v22  ;;  %v5585_v13 = vpop.f32.mrb[47].mxu0 }
 0x818   :  { %5738 = vst.msk [vmem:[%s10376_s9 + $0x3b8] sm:$0xff] %vm2844_vm0, %v5584_v8 }
 0x81b   :  { %v5588_v17 = vpop.f32.mrb[48].mxu0 }
 0x81c   :  { %v5589_v53 = vadd.f32 %v10260_v4, %v5588_v17  ;;  %v5590_v59 = vpop.f32.mrb[49].mxu0 }
 0x81d   :  { %v5591_v43 = vpop.f32.mrb[50].mxu0 }
 0x81e   :  { %5739 = vst.msk [vmem:[%s10376_s9 + $0x3c0] sm:$0xff] %vm2844_vm0, %v5589_v53  ;;  %v5592_v15 = vadd.f32 %v10260_v4, %v5591_v43  ;;  %v5593_v12 = vpop.f32.mrb[51].mxu0 }
 0x820   :  { %5740 = vst.msk [vmem:[%s10376_s9 + $0x3c8] sm:$0xff] %vm2844_vm0, %v5592_v15 }
 0x823   :  { %v5596_v25 = vpop.f32.mrb[52].mxu0 }
 0x824   :  { %v5597_v26 = vadd.f32 %v10260_v4, %v5596_v25  ;;  %v5598_v1 = vpop.f32.mrb[53].mxu0 }
 0x825   :  { %v5599_v39 = vpop.f32.mrb[54].mxu0 }
 0x826   :  { %5741 = vst.msk [vmem:[%s10376_s9 + $0x3d0] sm:$0xff] %vm2844_vm0, %v5597_v26  ;;  %v5600_v45 = vadd.f32 %v10260_v4, %v5599_v39  ;;  %v5601_v20 = vpop.f32.mrb[55].mxu0 }
 0x828   :  { %5742 = vst.msk [vmem:[%s10376_s9 + $0x3d8] sm:$0xff] %vm2844_vm0, %v5600_v45 }
 0x82b   :  { %v5604_v19 = vpop.f32.mrb[56].mxu0 }
 0x82c   :  { %v5605_v31 = vadd.f32 %v10260_v4, %v5604_v19  ;;  %v5606_v56 = vpop.f32.mrb[57].mxu0 }
 0x82d   :  { %v5607_v33 = vpop.f32.mrb[58].mxu0 }
 0x82e   :  { %5743 = vst.msk [vmem:[%s10376_s9 + $0x3e0] sm:$0xff] %vm2844_vm0, %v5605_v31  ;;  %v5608_v24 = vadd.f32 %v10260_v4, %v5607_v33  ;;  %v5609_v41 = vpop.f32.mrb[59].mxu0 }
 0x830   :  { %5744 = vst.msk [vmem:[%s10376_s9 + $0x3e8] sm:$0xff] %vm2844_vm0, %v5608_v24 }
 0x833   :  { %v5612_v54 = vpop.f32.mrb[60].mxu0 }
 0x834   :  { %v5613_v34 = vadd.f32 %v10260_v4, %v5612_v54  ;;  %v5614_v0 = vpop.f32.mrb[61].mxu0 }
 0x835   :  { %v5615_v44 = vpop.f32.mrb[62].mxu0 }
 0x836   :  { %5745 = vst.msk [vmem:[%s10376_s9 + $0x3f0] sm:$0xff] %vm2844_vm0, %v5613_v34  ;;  %v5616_v49 = vadd.f32 %v10260_v4, %v5615_v44  ;;  %v5617_v11 = vpop.f32.mrb[63].mxu0 }
 0x838   :  { %5746 = vst.msk [vmem:[%s10376_s9 + $0x3f8] sm:$0xff] %vm2844_vm0, %v5616_v49 }

</bundles_post_ra>
